<compile_context>
chip_gen: v5e
topology: v5e:2x2
jax: 0.10.0
libtpu: 0.0.40
codegen_flags: <defaults>
</compile_context>

<pallas_src>
import functools

import jax
import jax.numpy as jnp
from jax.experimental import pallas as pl
from jax.experimental.pallas import tpu as pltpu


def _kp_gather_loss_kernel(idx_ref,           # SMEM prefetch: [B*2*Np*4] int32
                           w_ref,             # VMEM: [Np, 128] f32 (batch dim squeezed)
                           f1_ref, f2_ref,    # HBM (ANY): [B*H*W, C]
                           out_ref,           # VMEM: [Np, 128] f32 (batch dim squeezed)
                           gbuf,              # VMEM scratch: [8, Np, C]
                           sem,               # DMA sems: (2, 4)
                           *, n_pad):
    b = pl.program_id(0)
    Np = n_pad

    base = b * (2 * Np * 4)
    feat_refs = (f1_ref, f2_ref)

    # Gather the 2 * 4 * Np needed feature rows straight from HBM.
    copies = []
    for f in range(2):
        for c in range(4):
            for n in range(Np):
                flat = idx_ref[base + (f * Np + n) * 4 + c]   # global row index
                cp = pltpu.make_async_copy(
                    feat_refs[f].at[pl.ds(flat, 1), :],       # [1, C] in HBM
                    gbuf.at[4 * f + c, pl.ds(n, 1), :],       # [1, C] in VMEM
                    sem.at[f, c])
                cp.start()
                copies.append(cp)
    for cp in copies:
        cp.wait()

    w = w_ref[...].astype(jnp.float32)                        # [Np, 128]

    def bilinear(f):
        # sum of 4 gathered corner rows weighted on the VPU -> [Np, C]
        acc = gbuf[4 * f].astype(jnp.float32) * w[:, 4 * f:4 * f + 1]
        for c in range(1, 4):
            acc = acc + (gbuf[4 * f + c].astype(jnp.float32)
                         * w[:, 4 * f + c:4 * f + c + 1])
        return acc

    def l2_normalize(v):
        # matches F.normalize(p=2, eps=1e-12): v / max(||v||, eps)
        ss = jnp.sum(v * v, axis=-1, keepdims=True)
        return v * jax.lax.rsqrt(jnp.maximum(ss, 1e-24))

    d = l2_normalize(bilinear(0)) - l2_normalize(bilinear(1))
    l2 = jnp.sum(d * d, axis=-1, keepdims=True)               # [Np, 1]
    # Invalid / padded keypoints have all-zero weights -> l2 == 0 already.
    out_ref[...] = jnp.broadcast_to(l2, (Np, 128))


def keypoint_alignment_loss_l2(feat1, feat2, kp1, kp2, kp1_mask, kp2_mask):
    """feat1, feat2: [B, C, H, W]; kp: [B, N, 2] (x, y); masks: [B, N]."""
    B, C, H, W = feat1.shape
    N = kp1.shape[1]
    Np = max(8, ((N + 7) // 8) * 8)        # pad keypoints to a sublane multiple

    # layout: NCHW -> channels-last, flattened spatial+batch: [B*H*W, C]
    # TODO(synk): if the producer already emits channels-last features this
    # transpose (an XLA op outside the kernel) disappears.
    f1 = jnp.transpose(feat1, (0, 2, 3, 1)).reshape(B * H * W, C)
    f2 = jnp.transpose(feat2, (0, 2, 3, 1)).reshape(B * H * W, C)

    valid = (kp1_mask.astype(bool) & kp2_mask.astype(bool)).astype(jnp.float32)

    def corners(kp):
        # align_corners=True with the module's normalization maps grid coords
        # back exactly to pixel coords, so we work in pixel space directly.
        x = kp[..., 0].astype(jnp.float32)
        y = kp[..., 1].astype(jnp.float32)
        x0 = jnp.floor(x)
        y0 = jnp.floor(y)
        wx1 = x - x0
        wx0 = 1.0 - wx1
        wy1 = y - y0
        wy0 = 1.0 - wy1
        boff = (jnp.arange(B, dtype=jnp.int32) * (H * W))[:, None]     # [B, 1]
        idxs, ws = [], []
        for cx, cy, wgt in ((x0, y0, wx0 * wy0),
                            (x0 + 1.0, y0, wx1 * wy0),
                            (x0, y0 + 1.0, wx0 * wy1),
                            (x0 + 1.0, y0 + 1.0, wx1 * wy1)):
            # zeros padding: out-of-bounds corners contribute nothing
            inb = ((cx >= 0) & (cx <= W - 1) & (cy >= 0) & (cy <= H - 1))
            cxi = jnp.clip(cx, 0, W - 1).astype(jnp.int32)   # clamp for safe DMA
            cyi = jnp.clip(cy, 0, H - 1).astype(jnp.int32)
            idxs.append(boff + cyi * W + cxi)                            # [B, N]
            ws.append(wgt * inb.astype(jnp.float32) * valid)             # [B, N]
        return jnp.stack(idxs, axis=-1), jnp.stack(ws, axis=-1)          # [B, N, 4]

    idx1, w1 = corners(kp1)
    idx2, w2 = corners(kp2)

    pad = Np - N
    if pad:
        idx1 = jnp.pad(idx1, ((0, 0), (0, pad), (0, 0)))
        idx2 = jnp.pad(idx2, ((0, 0), (0, pad), (0, 0)))
        w1 = jnp.pad(w1, ((0, 0), (0, pad), (0, 0)))
        w2 = jnp.pad(w2, ((0, 0), (0, pad), (0, 0)))

    # scalar-prefetch indices: [B, 2, Np, 4] flattened to 1-D (SMEM-friendly)
    idx_flat = jnp.stack([idx1, idx2], axis=1).reshape(-1).astype(jnp.int32)

    # single packed, lane-padded weight slab: cols 0-3 = feat1, 4-7 = feat2
    w_all = jnp.concatenate([w1, w2], axis=-1)                 # [B, Np, 8]
    w_all = jnp.pad(w_all, ((0, 0), (0, 0), (0, 128 - 8))).astype(jnp.float32)

    kernel = functools.partial(_kp_gather_loss_kernel, n_pad=Np)

    partial = pl.pallas_call(
        kernel,
        out_shape=jax.ShapeDtypeStruct((B, Np, 128), jnp.float32),
        grid_spec=pltpu.PrefetchScalarGridSpec(
            num_scalar_prefetch=1,
            grid=(B,),
            in_specs=[
                pl.BlockSpec((None, Np, 128), lambda b, idx: (b, 0, 0)),
                pl.BlockSpec(memory_space=pl.ANY),   # feat1 rows stay in HBM
                pl.BlockSpec(memory_space=pl.ANY),   # feat2 rows stay in HBM
            ],
            out_specs=pl.BlockSpec((None, Np, 128), lambda b, idx: (b, 0, 0)),
            scratch_shapes=[
                pltpu.VMEM((8, Np, C), feat1.dtype),
                pltpu.SemaphoreType.DMA((2, 4)),
            ],
        ),
        compiler_params=pltpu.CompilerParams(
            dimension_semantics=("parallel",)),
    )(idx_flat, w_all, f1, f2)

    total = jnp.sum(partial[:, :, 0])      # padded/invalid keypoints are zero
    cnt = jnp.sum(valid)
    # total_valid == 0 -> loss 0
    return jnp.where(cnt == 0, jnp.float32(0.0), total / jnp.maximum(cnt, 1.0))


def _reference(feat1, feat2, kp1, kp2, kp1_mask, kp2_mask):
    """Pure-JAX reference mirroring the PyTorch forward."""
    B, C, H, W = feat1.shape

    def sample(feat, kp):
        x = kp[..., 0].astype(jnp.float32)
        y = kp[..., 1].astype(jnp.float32)
        x0 = jnp.floor(x)
        y0 = jnp.floor(y)
        wx1 = x - x0
        wy1 = y - y0

        def gather(cx, cy):
            inb = (cx >= 0) & (cx <= W - 1) & (cy >= 0) & (cy <= H - 1)
            cxi = jnp.clip(cx, 0, W - 1).astype(jnp.int32)
            cyi = jnp.clip(cy, 0, H - 1).astype(jnp.int32)
            vals = jax.vmap(lambda f, yy, xx: f[:, yy, xx].T)(feat, cyi, cxi)
            return vals * inb[..., None].astype(feat.dtype)

        return (gather(x0, y0) * ((1 - wx1) * (1 - wy1))[..., None]
                + gather(x0 + 1, y0) * (wx1 * (1 - wy1))[..., None]
                + gather(x0, y0 + 1) * ((1 - wx1) * wy1)[..., None]
                + gather(x0 + 1, y0 + 1) * (wx1 * wy1)[..., None])

    def normalize(v):
        n = jnp.sqrt(jnp.sum(v * v, axis=-1, keepdims=True))
        return v / jnp.maximum(n, 1e-12)

    f1 = normalize(sample(feat1, kp1))
    f2 = normalize(sample(feat2, kp2))
    valid = (kp1_mask & kp2_mask).astype(jnp.float32)
    l2 = jnp.sum((f1 - f2) ** 2, axis=-1) * valid
    cnt = jnp.sum(valid)
    return jnp.where(cnt == 0, 0.0, jnp.sum(l2) / jnp.maximum(cnt, 1.0))


if __name__ == "__main__":
    key = jax.random.PRNGKey(0)
    k1, k2, k3, k4, k5, k6 = jax.random.split(key, 6)

    B, C, H, W, N = 2, 128, 16, 16, 8

    feat1 = jax.random.normal(k1, (B, C, H, W), dtype=jnp.float32)
    feat2 = jax.random.normal(k2, (B, C, H, W), dtype=jnp.float32)
    # include slightly out-of-bounds coordinates to exercise zeros padding
    kp1 = jax.random.uniform(k3, (B, N, 2), minval=-2.0, maxval=W + 1.0,
                             dtype=jnp.float32)
    kp2 = jax.random.uniform(k4, (B, N, 2), minval=-2.0, maxval=W + 1.0,
                             dtype=jnp.float32)
    kp1_mask = jax.random.bernoulli(k5, 0.75, (B, N))
    kp2_mask = jax.random.bernoulli(k6, 0.75, (B, N))

    loss = keypoint_alignment_loss_l2(feat1, feat2, kp1, kp2,
                                      kp1_mask, kp2_mask)
    loss = jax.block_until_ready(loss)

    ref = _reference(feat1, feat2, kp1, kp2, kp1_mask, kp2_mask)
    assert jnp.allclose(loss, ref, rtol=1e-4, atol=1e-5), (loss, ref)

    print("KERNEL_OK")
</pallas_src>

<mosaic_0001>
module attributes {stable_mosaic.version = 11 : i64} {
  func.func @_kp_gather_loss_kernel(%arg0: i32, %arg1: memref<128xi32, #tpu.memory_space<smem>>, %arg2: memref<1x8x128xf32, #tpu.memory_space<vmem>>, %arg3: memref<512x128xf32, #tpu.memory_space<any>>, %arg4: memref<512x128xf32, #tpu.memory_space<any>>, %arg5: memref<1x8x128xf32, #tpu.memory_space<vmem>>, %arg6: memref<8x8x128xf32, #tpu.memory_space<vmem>>, %arg7: memref<2x4x!tpu.dma_semaphore, #tpu.memory_space<semaphore_mem>>) attributes {dimension_semantics = [#tpu.dimension_semantics<parallel>], iteration_bounds = array<i64: 2>, scalar_prefetch = 1 : i64, scratch_operands = 2 : i64, tpu.core_type = #tpu.core_type<tc>, window_params = [{transform_indices = @transform_0, window_bounds = array<i64: 1, 8, 128>}, {}, {}, {transform_indices = @transform_3, window_bounds = array<i64: 1, 8, 128>}]} {
    %c64_i32 = arith.constant 64 : i32
    %0 = arith.muli %arg0, %c64_i32 : i32
    %c0_i32 = arith.constant 0 : i32
    %1 = arith.addi %0, %c0_i32 : i32
    %c0_i32_0 = arith.constant 0 : i32
    %2 = arith.addi %1, %c0_i32_0 : i32
    %3 = arith.index_cast %2 : i32 to index
    %4 = memref.load %arg1[%3] : memref<128xi32, #tpu.memory_space<smem>>
    %c0_i32_1 = arith.constant 0 : i32
    %c0_i32_2 = arith.constant 0 : i32
    %c0_i32_3 = arith.constant 0 : i32
    %c0_i32_4 = arith.constant 0 : i32
    %5 = tpu.memref_slice %arg3[%4, %c0_i32_4] : memref<512x128xf32, #tpu.memory_space<any>> -> memref<1x128xf32, #tpu.memory_space<any>>
    %c0_i32_5 = arith.constant 0 : i32
    %c0_i32_6 = arith.constant 0 : i32
    %6 = tpu.memref_slice %arg6[%c0_i32_1, %c0_i32_5, %c0_i32_6] : memref<8x8x128xf32, #tpu.memory_space<vmem>> -> memref<1x1x128xf32, #tpu.memory_space<vmem>>
    %7 = tpu.memref_squeeze %6 : memref<1x1x128xf32, #tpu.memory_space<vmem>> -> memref<1x128xf32, #tpu.memory_space<vmem>>
    %8 = tpu.memref_slice %arg7[%c0_i32_2, %c0_i32_3] : memref<2x4x!tpu.dma_semaphore, #tpu.memory_space<semaphore_mem>> -> memref<1x1x!tpu.dma_semaphore, #tpu.memory_space<semaphore_mem>>
    %9 = tpu.memref_squeeze %8 : memref<1x1x!tpu.dma_semaphore, #tpu.memory_space<semaphore_mem>> -> memref<!tpu.dma_semaphore, #tpu.memory_space<semaphore_mem>>
    tpu.enqueue_dma source(%5 : memref<1x128xf32, #tpu.memory_space<any>>) target(%7 : memref<1x128xf32, #tpu.memory_space<vmem>>) target_semaphore(%9 : memref<!tpu.dma_semaphore, #tpu.memory_space<semaphore_mem>>)
    %c4_i32 = arith.constant 4 : i32
    %10 = arith.addi %0, %c4_i32 : i32
    %c0_i32_7 = arith.constant 0 : i32
    %11 = arith.addi %10, %c0_i32_7 : i32
    %12 = arith.index_cast %11 : i32 to index
    %13 = memref.load %arg1[%12] : memref<128xi32, #tpu.memory_space<smem>>
    %c0_i32_8 = arith.constant 0 : i32
    %c0_i32_9 = arith.constant 0 : i32
    %c0_i32_10 = arith.constant 0 : i32
    %c0_i32_11 = arith.constant 0 : i32
    %14 = tpu.memref_slice %arg3[%13, %c0_i32_11] : memref<512x128xf32, #tpu.memory_space<any>> -> memref<1x128xf32, #tpu.memory_space<any>>
    %c1_i32 = arith.constant 1 : i32
    %c0_i32_12 = arith.constant 0 : i32
    %15 = tpu.memref_slice %arg6[%c0_i32_8, %c1_i32, %c0_i32_12] : memref<8x8x128xf32, #tpu.memory_space<vmem>> -> memref<1x1x128xf32, #tpu.memory_space<vmem>>
    %16 = tpu.memref_squeeze %15 : memref<1x1x128xf32, #tpu.memory_space<vmem>> -> memref<1x128xf32, #tpu.memory_space<vmem>>
    %17 = tpu.memref_slice %arg7[%c0_i32_9, %c0_i32_10] : memref<2x4x!tpu.dma_semaphore, #tpu.memory_space<semaphore_mem>> -> memref<1x1x!tpu.dma_semaphore, #tpu.memory_space<semaphore_mem>>
    %18 = tpu.memref_squeeze %17 : memref<1x1x!tpu.dma_semaphore, #tpu.memory_space<semaphore_mem>> -> memref<!tpu.dma_semaphore, #tpu.memory_space<semaphore_mem>>
    tpu.enqueue_dma source(%14 : memref<1x128xf32, #tpu.memory_space<any>>) target(%16 : memref<1x128xf32, #tpu.memory_space<vmem>>) target_semaphore(%18 : memref<!tpu.dma_semaphore, #tpu.memory_space<semaphore_mem>>)
    %c8_i32 = arith.constant 8 : i32
    %19 = arith.addi %0, %c8_i32 : i32
    %c0_i32_13 = arith.constant 0 : i32
    %20 = arith.addi %19, %c0_i32_13 : i32
    %21 = arith.index_cast %20 : i32 to index
    %22 = memref.load %arg1[%21] : memref<128xi32, #tpu.memory_space<smem>>
    %c0_i32_14 = arith.constant 0 : i32
    %c0_i32_15 = arith.constant 0 : i32
    %c0_i32_16 = arith.constant 0 : i32
    %c0_i32_17 = arith.constant 0 : i32
    %23 = tpu.memref_slice %arg3[%22, %c0_i32_17] : memref<512x128xf32, #tpu.memory_space<any>> -> memref<1x128xf32, #tpu.memory_space<any>>
    %c2_i32 = arith.constant 2 : i32
    %c0_i32_18 = arith.constant 0 : i32
    %24 = tpu.memref_slice %arg6[%c0_i32_14, %c2_i32, %c0_i32_18] : memref<8x8x128xf32, #tpu.memory_space<vmem>> -> memref<1x1x128xf32, #tpu.memory_space<vmem>>
    %25 = tpu.memref_squeeze %24 : memref<1x1x128xf32, #tpu.memory_space<vmem>> -> memref<1x128xf32, #tpu.memory_space<vmem>>
    %26 = tpu.memref_slice %arg7[%c0_i32_15, %c0_i32_16] : memref<2x4x!tpu.dma_semaphore, #tpu.memory_space<semaphore_mem>> -> memref<1x1x!tpu.dma_semaphore, #tpu.memory_space<semaphore_mem>>
    %27 = tpu.memref_squeeze %26 : memref<1x1x!tpu.dma_semaphore, #tpu.memory_space<semaphore_mem>> -> memref<!tpu.dma_semaphore, #tpu.memory_space<semaphore_mem>>
    tpu.enqueue_dma source(%23 : memref<1x128xf32, #tpu.memory_space<any>>) target(%25 : memref<1x128xf32, #tpu.memory_space<vmem>>) target_semaphore(%27 : memref<!tpu.dma_semaphore, #tpu.memory_space<semaphore_mem>>)
    %c12_i32 = arith.constant 12 : i32
    %28 = arith.addi %0, %c12_i32 : i32
    %c0_i32_19 = arith.constant 0 : i32
    %29 = arith.addi %28, %c0_i32_19 : i32
    %30 = arith.index_cast %29 : i32 to index
    %31 = memref.load %arg1[%30] : memref<128xi32, #tpu.memory_space<smem>>
    %c0_i32_20 = arith.constant 0 : i32
    %c0_i32_21 = arith.constant 0 : i32
    %c0_i32_22 = arith.constant 0 : i32
    %c0_i32_23 = arith.constant 0 : i32
    %32 = tpu.memref_slice %arg3[%31, %c0_i32_23] : memref<512x128xf32, #tpu.memory_space<any>> -> memref<1x128xf32, #tpu.memory_space<any>>
    %c3_i32 = arith.constant 3 : i32
    %c0_i32_24 = arith.constant 0 : i32
    %33 = tpu.memref_slice %arg6[%c0_i32_20, %c3_i32, %c0_i32_24] : memref<8x8x128xf32, #tpu.memory_space<vmem>> -> memref<1x1x128xf32, #tpu.memory_space<vmem>>
    %34 = tpu.memref_squeeze %33 : memref<1x1x128xf32, #tpu.memory_space<vmem>> -> memref<1x128xf32, #tpu.memory_space<vmem>>
    %35 = tpu.memref_slice %arg7[%c0_i32_21, %c0_i32_22] : memref<2x4x!tpu.dma_semaphore, #tpu.memory_space<semaphore_mem>> -> memref<1x1x!tpu.dma_semaphore, #tpu.memory_space<semaphore_mem>>
    %36 = tpu.memref_squeeze %35 : memref<1x1x!tpu.dma_semaphore, #tpu.memory_space<semaphore_mem>> -> memref<!tpu.dma_semaphore, #tpu.memory_space<semaphore_mem>>
    tpu.enqueue_dma source(%32 : memref<1x128xf32, #tpu.memory_space<any>>) target(%34 : memref<1x128xf32, #tpu.memory_space<vmem>>) target_semaphore(%36 : memref<!tpu.dma_semaphore, #tpu.memory_space<semaphore_mem>>)
    %c16_i32 = arith.constant 16 : i32
    %37 = arith.addi %0, %c16_i32 : i32
    %c0_i32_25 = arith.constant 0 : i32
    %38 = arith.addi %37, %c0_i32_25 : i32
    %39 = arith.index_cast %38 : i32 to index
    %40 = memref.load %arg1[%39] : memref<128xi32, #tpu.memory_space<smem>>
    %c0_i32_26 = arith.constant 0 : i32
    %c0_i32_27 = arith.constant 0 : i32
    %c0_i32_28 = arith.constant 0 : i32
    %c0_i32_29 = arith.constant 0 : i32
    %41 = tpu.memref_slice %arg3[%40, %c0_i32_29] : memref<512x128xf32, #tpu.memory_space<any>> -> memref<1x128xf32, #tpu.memory_space<any>>
    %c4_i32_30 = arith.constant 4 : i32
    %c0_i32_31 = arith.constant 0 : i32
    %42 = tpu.memref_slice %arg6[%c0_i32_26, %c4_i32_30, %c0_i32_31] : memref<8x8x128xf32, #tpu.memory_space<vmem>> -> memref<1x1x128xf32, #tpu.memory_space<vmem>>
    %43 = tpu.memref_squeeze %42 : memref<1x1x128xf32, #tpu.memory_space<vmem>> -> memref<1x128xf32, #tpu.memory_space<vmem>>
    %44 = tpu.memref_slice %arg7[%c0_i32_27, %c0_i32_28] : memref<2x4x!tpu.dma_semaphore, #tpu.memory_space<semaphore_mem>> -> memref<1x1x!tpu.dma_semaphore, #tpu.memory_space<semaphore_mem>>
    %45 = tpu.memref_squeeze %44 : memref<1x1x!tpu.dma_semaphore, #tpu.memory_space<semaphore_mem>> -> memref<!tpu.dma_semaphore, #tpu.memory_space<semaphore_mem>>
    tpu.enqueue_dma source(%41 : memref<1x128xf32, #tpu.memory_space<any>>) target(%43 : memref<1x128xf32, #tpu.memory_space<vmem>>) target_semaphore(%45 : memref<!tpu.dma_semaphore, #tpu.memory_space<semaphore_mem>>)
    %c20_i32 = arith.constant 20 : i32
    %46 = arith.addi %0, %c20_i32 : i32
    %c0_i32_32 = arith.constant 0 : i32
    %47 = arith.addi %46, %c0_i32_32 : i32
    %48 = arith.index_cast %47 : i32 to index
    %49 = memref.load %arg1[%48] : memref<128xi32, #tpu.memory_space<smem>>
    %c0_i32_33 = arith.constant 0 : i32
    %c0_i32_34 = arith.constant 0 : i32
    %c0_i32_35 = arith.constant 0 : i32
    %c0_i32_36 = arith.constant 0 : i32
    %50 = tpu.memref_slice %arg3[%49, %c0_i32_36] : memref<512x128xf32, #tpu.memory_space<any>> -> memref<1x128xf32, #tpu.memory_space<any>>
    %c5_i32 = arith.constant 5 : i32
    %c0_i32_37 = arith.constant 0 : i32
    %51 = tpu.memref_slice %arg6[%c0_i32_33, %c5_i32, %c0_i32_37] : memref<8x8x128xf32, #tpu.memory_space<vmem>> -> memref<1x1x128xf32, #tpu.memory_space<vmem>>
    %52 = tpu.memref_squeeze %51 : memref<1x1x128xf32, #tpu.memory_space<vmem>> -> memref<1x128xf32, #tpu.memory_space<vmem>>
    %53 = tpu.memref_slice %arg7[%c0_i32_34, %c0_i32_35] : memref<2x4x!tpu.dma_semaphore, #tpu.memory_space<semaphore_mem>> -> memref<1x1x!tpu.dma_semaphore, #tpu.memory_space<semaphore_mem>>
    %54 = tpu.memref_squeeze %53 : memref<1x1x!tpu.dma_semaphore, #tpu.memory_space<semaphore_mem>> -> memref<!tpu.dma_semaphore, #tpu.memory_space<semaphore_mem>>
    tpu.enqueue_dma source(%50 : memref<1x128xf32, #tpu.memory_space<any>>) target(%52 : memref<1x128xf32, #tpu.memory_space<vmem>>) target_semaphore(%54 : memref<!tpu.dma_semaphore, #tpu.memory_space<semaphore_mem>>)
    %c24_i32 = arith.constant 24 : i32
    %55 = arith.addi %0, %c24_i32 : i32
    %c0_i32_38 = arith.constant 0 : i32
    %56 = arith.addi %55, %c0_i32_38 : i32
    %57 = arith.index_cast %56 : i32 to index
    %58 = memref.load %arg1[%57] : memref<128xi32, #tpu.memory_space<smem>>
    %c0_i32_39 = arith.constant 0 : i32
    %c0_i32_40 = arith.constant 0 : i32
    %c0_i32_41 = arith.constant 0 : i32
    %c0_i32_42 = arith.constant 0 : i32
    %59 = tpu.memref_slice %arg3[%58, %c0_i32_42] : memref<512x128xf32, #tpu.memory_space<any>> -> memref<1x128xf32, #tpu.memory_space<any>>
    %c6_i32 = arith.constant 6 : i32
    %c0_i32_43 = arith.constant 0 : i32
    %60 = tpu.memref_slice %arg6[%c0_i32_39, %c6_i32, %c0_i32_43] : memref<8x8x128xf32, #tpu.memory_space<vmem>> -> memref<1x1x128xf32, #tpu.memory_space<vmem>>
    %61 = tpu.memref_squeeze %60 : memref<1x1x128xf32, #tpu.memory_space<vmem>> -> memref<1x128xf32, #tpu.memory_space<vmem>>
    %62 = tpu.memref_slice %arg7[%c0_i32_40, %c0_i32_41] : memref<2x4x!tpu.dma_semaphore, #tpu.memory_space<semaphore_mem>> -> memref<1x1x!tpu.dma_semaphore, #tpu.memory_space<semaphore_mem>>
    %63 = tpu.memref_squeeze %62 : memref<1x1x!tpu.dma_semaphore, #tpu.memory_space<semaphore_mem>> -> memref<!tpu.dma_semaphore, #tpu.memory_space<semaphore_mem>>
    tpu.enqueue_dma source(%59 : memref<1x128xf32, #tpu.memory_space<any>>) target(%61 : memref<1x128xf32, #tpu.memory_space<vmem>>) target_semaphore(%63 : memref<!tpu.dma_semaphore, #tpu.memory_space<semaphore_mem>>)
    %c28_i32 = arith.constant 28 : i32
    %64 = arith.addi %0, %c28_i32 : i32
    %c0_i32_44 = arith.constant 0 : i32
    %65 = arith.addi %64, %c0_i32_44 : i32
    %66 = arith.index_cast %65 : i32 to index
    %67 = memref.load %arg1[%66] : memref<128xi32, #tpu.memory_space<smem>>
    %c0_i32_45 = arith.constant 0 : i32
    %c0_i32_46 = arith.constant 0 : i32
    %c0_i32_47 = arith.constant 0 : i32
    %c0_i32_48 = arith.constant 0 : i32
    %68 = tpu.memref_slice %arg3[%67, %c0_i32_48] : memref<512x128xf32, #tpu.memory_space<any>> -> memref<1x128xf32, #tpu.memory_space<any>>
    %c7_i32 = arith.constant 7 : i32
    %c0_i32_49 = arith.constant 0 : i32
    %69 = tpu.memref_slice %arg6[%c0_i32_45, %c7_i32, %c0_i32_49] : memref<8x8x128xf32, #tpu.memory_space<vmem>> -> memref<1x1x128xf32, #tpu.memory_space<vmem>>
    %70 = tpu.memref_squeeze %69 : memref<1x1x128xf32, #tpu.memory_space<vmem>> -> memref<1x128xf32, #tpu.memory_space<vmem>>
    %71 = tpu.memref_slice %arg7[%c0_i32_46, %c0_i32_47] : memref<2x4x!tpu.dma_semaphore, #tpu.memory_space<semaphore_mem>> -> memref<1x1x!tpu.dma_semaphore, #tpu.memory_space<semaphore_mem>>
    %72 = tpu.memref_squeeze %71 : memref<1x1x!tpu.dma_semaphore, #tpu.memory_space<semaphore_mem>> -> memref<!tpu.dma_semaphore, #tpu.memory_space<semaphore_mem>>
    tpu.enqueue_dma source(%68 : memref<1x128xf32, #tpu.memory_space<any>>) target(%70 : memref<1x128xf32, #tpu.memory_space<vmem>>) target_semaphore(%72 : memref<!tpu.dma_semaphore, #tpu.memory_space<semaphore_mem>>)
    %c0_i32_50 = arith.constant 0 : i32
    %73 = arith.addi %0, %c0_i32_50 : i32
    %c1_i32_51 = arith.constant 1 : i32
    %74 = arith.addi %73, %c1_i32_51 : i32
    %75 = arith.index_cast %74 : i32 to index
    %76 = memref.load %arg1[%75] : memref<128xi32, #tpu.memory_space<smem>>
    %c1_i32_52 = arith.constant 1 : i32
    %c0_i32_53 = arith.constant 0 : i32
    %c1_i32_54 = arith.constant 1 : i32
    %c0_i32_55 = arith.constant 0 : i32
    %77 = tpu.memref_slice %arg3[%76, %c0_i32_55] : memref<512x128xf32, #tpu.memory_space<any>> -> memref<1x128xf32, #tpu.memory_space<any>>
    %c0_i32_56 = arith.constant 0 : i32
    %c0_i32_57 = arith.constant 0 : i32
    %78 = tpu.memref_slice %arg6[%c1_i32_52, %c0_i32_56, %c0_i32_57] : memref<8x8x128xf32, #tpu.memory_space<vmem>> -> memref<1x1x128xf32, #tpu.memory_space<vmem>>
    %79 = tpu.memref_squeeze %78 : memref<1x1x128xf32, #tpu.memory_space<vmem>> -> memref<1x128xf32, #tpu.memory_space<vmem>>
    %80 = tpu.memref_slice %arg7[%c0_i32_53, %c1_i32_54] : memref<2x4x!tpu.dma_semaphore, #tpu.memory_space<semaphore_mem>> -> memref<1x1x!tpu.dma_semaphore, #tpu.memory_space<semaphore_mem>>
    %81 = tpu.memref_squeeze %80 : memref<1x1x!tpu.dma_semaphore, #tpu.memory_space<semaphore_mem>> -> memref<!tpu.dma_semaphore, #tpu.memory_space<semaphore_mem>>
    tpu.enqueue_dma source(%77 : memref<1x128xf32, #tpu.memory_space<any>>) target(%79 : memref<1x128xf32, #tpu.memory_space<vmem>>) target_semaphore(%81 : memref<!tpu.dma_semaphore, #tpu.memory_space<semaphore_mem>>)
    %c4_i32_58 = arith.constant 4 : i32
    %82 = arith.addi %0, %c4_i32_58 : i32
    %c1_i32_59 = arith.constant 1 : i32
    %83 = arith.addi %82, %c1_i32_59 : i32
    %84 = arith.index_cast %83 : i32 to index
    %85 = memref.load %arg1[%84] : memref<128xi32, #tpu.memory_space<smem>>
    %c1_i32_60 = arith.constant 1 : i32
    %c0_i32_61 = arith.constant 0 : i32
    %c1_i32_62 = arith.constant 1 : i32
    %c0_i32_63 = arith.constant 0 : i32
    %86 = tpu.memref_slice %arg3[%85, %c0_i32_63] : memref<512x128xf32, #tpu.memory_space<any>> -> memref<1x128xf32, #tpu.memory_space<any>>
    %c1_i32_64 = arith.constant 1 : i32
    %c0_i32_65 = arith.constant 0 : i32
    %87 = tpu.memref_slice %arg6[%c1_i32_60, %c1_i32_64, %c0_i32_65] : memref<8x8x128xf32, #tpu.memory_space<vmem>> -> memref<1x1x128xf32, #tpu.memory_space<vmem>>
    %88 = tpu.memref_squeeze %87 : memref<1x1x128xf32, #tpu.memory_space<vmem>> -> memref<1x128xf32, #tpu.memory_space<vmem>>
    %89 = tpu.memref_slice %arg7[%c0_i32_61, %c1_i32_62] : memref<2x4x!tpu.dma_semaphore, #tpu.memory_space<semaphore_mem>> -> memref<1x1x!tpu.dma_semaphore, #tpu.memory_space<semaphore_mem>>
    %90 = tpu.memref_squeeze %89 : memref<1x1x!tpu.dma_semaphore, #tpu.memory_space<semaphore_mem>> -> memref<!tpu.dma_semaphore, #tpu.memory_space<semaphore_mem>>
    tpu.enqueue_dma source(%86 : memref<1x128xf32, #tpu.memory_space<any>>) target(%88 : memref<1x128xf32, #tpu.memory_space<vmem>>) target_semaphore(%90 : memref<!tpu.dma_semaphore, #tpu.memory_space<semaphore_mem>>)
    %c8_i32_66 = arith.constant 8 : i32
    %91 = arith.addi %0, %c8_i32_66 : i32
    %c1_i32_67 = arith.constant 1 : i32
    %92 = arith.addi %91, %c1_i32_67 : i32
    %93 = arith.index_cast %92 : i32 to index
    %94 = memref.load %arg1[%93] : memref<128xi32, #tpu.memory_space<smem>>
    %c1_i32_68 = arith.constant 1 : i32
    %c0_i32_69 = arith.constant 0 : i32
    %c1_i32_70 = arith.constant 1 : i32
    %c0_i32_71 = arith.constant 0 : i32
    %95 = tpu.memref_slice %arg3[%94, %c0_i32_71] : memref<512x128xf32, #tpu.memory_space<any>> -> memref<1x128xf32, #tpu.memory_space<any>>
    %c2_i32_72 = arith.constant 2 : i32
    %c0_i32_73 = arith.constant 0 : i32
    %96 = tpu.memref_slice %arg6[%c1_i32_68, %c2_i32_72, %c0_i32_73] : memref<8x8x128xf32, #tpu.memory_space<vmem>> -> memref<1x1x128xf32, #tpu.memory_space<vmem>>
    %97 = tpu.memref_squeeze %96 : memref<1x1x128xf32, #tpu.memory_space<vmem>> -> memref<1x128xf32, #tpu.memory_space<vmem>>
    %98 = tpu.memref_slice %arg7[%c0_i32_69, %c1_i32_70] : memref<2x4x!tpu.dma_semaphore, #tpu.memory_space<semaphore_mem>> -> memref<1x1x!tpu.dma_semaphore, #tpu.memory_space<semaphore_mem>>
    %99 = tpu.memref_squeeze %98 : memref<1x1x!tpu.dma_semaphore, #tpu.memory_space<semaphore_mem>> -> memref<!tpu.dma_semaphore, #tpu.memory_space<semaphore_mem>>
    tpu.enqueue_dma source(%95 : memref<1x128xf32, #tpu.memory_space<any>>) target(%97 : memref<1x128xf32, #tpu.memory_space<vmem>>) target_semaphore(%99 : memref<!tpu.dma_semaphore, #tpu.memory_space<semaphore_mem>>)
    %c12_i32_74 = arith.constant 12 : i32
    %100 = arith.addi %0, %c12_i32_74 : i32
    %c1_i32_75 = arith.constant 1 : i32
    %101 = arith.addi %100, %c1_i32_75 : i32
    %102 = arith.index_cast %101 : i32 to index
    %103 = memref.load %arg1[%102] : memref<128xi32, #tpu.memory_space<smem>>
    %c1_i32_76 = arith.constant 1 : i32
    %c0_i32_77 = arith.constant 0 : i32
    %c1_i32_78 = arith.constant 1 : i32
    %c0_i32_79 = arith.constant 0 : i32
    %104 = tpu.memref_slice %arg3[%103, %c0_i32_79] : memref<512x128xf32, #tpu.memory_space<any>> -> memref<1x128xf32, #tpu.memory_space<any>>
    %c3_i32_80 = arith.constant 3 : i32
    %c0_i32_81 = arith.constant 0 : i32
    %105 = tpu.memref_slice %arg6[%c1_i32_76, %c3_i32_80, %c0_i32_81] : memref<8x8x128xf32, #tpu.memory_space<vmem>> -> memref<1x1x128xf32, #tpu.memory_space<vmem>>
    %106 = tpu.memref_squeeze %105 : memref<1x1x128xf32, #tpu.memory_space<vmem>> -> memref<1x128xf32, #tpu.memory_space<vmem>>
    %107 = tpu.memref_slice %arg7[%c0_i32_77, %c1_i32_78] : memref<2x4x!tpu.dma_semaphore, #tpu.memory_space<semaphore_mem>> -> memref<1x1x!tpu.dma_semaphore, #tpu.memory_space<semaphore_mem>>
    %108 = tpu.memref_squeeze %107 : memref<1x1x!tpu.dma_semaphore, #tpu.memory_space<semaphore_mem>> -> memref<!tpu.dma_semaphore, #tpu.memory_space<semaphore_mem>>
    tpu.enqueue_dma source(%104 : memref<1x128xf32, #tpu.memory_space<any>>) target(%106 : memref<1x128xf32, #tpu.memory_space<vmem>>) target_semaphore(%108 : memref<!tpu.dma_semaphore, #tpu.memory_space<semaphore_mem>>)
    %c16_i32_82 = arith.constant 16 : i32
    %109 = arith.addi %0, %c16_i32_82 : i32
    %c1_i32_83 = arith.constant 1 : i32
    %110 = arith.addi %109, %c1_i32_83 : i32
    %111 = arith.index_cast %110 : i32 to index
    %112 = memref.load %arg1[%111] : memref<128xi32, #tpu.memory_space<smem>>
    %c1_i32_84 = arith.constant 1 : i32
    %c0_i32_85 = arith.constant 0 : i32
    %c1_i32_86 = arith.constant 1 : i32
    %c0_i32_87 = arith.constant 0 : i32
    %113 = tpu.memref_slice %arg3[%112, %c0_i32_87] : memref<512x128xf32, #tpu.memory_space<any>> -> memref<1x128xf32, #tpu.memory_space<any>>
    %c4_i32_88 = arith.constant 4 : i32
    %c0_i32_89 = arith.constant 0 : i32
    %114 = tpu.memref_slice %arg6[%c1_i32_84, %c4_i32_88, %c0_i32_89] : memref<8x8x128xf32, #tpu.memory_space<vmem>> -> memref<1x1x128xf32, #tpu.memory_space<vmem>>
    %115 = tpu.memref_squeeze %114 : memref<1x1x128xf32, #tpu.memory_space<vmem>> -> memref<1x128xf32, #tpu.memory_space<vmem>>
    %116 = tpu.memref_slice %arg7[%c0_i32_85, %c1_i32_86] : memref<2x4x!tpu.dma_semaphore, #tpu.memory_space<semaphore_mem>> -> memref<1x1x!tpu.dma_semaphore, #tpu.memory_space<semaphore_mem>>
    %117 = tpu.memref_squeeze %116 : memref<1x1x!tpu.dma_semaphore, #tpu.memory_space<semaphore_mem>> -> memref<!tpu.dma_semaphore, #tpu.memory_space<semaphore_mem>>
    tpu.enqueue_dma source(%113 : memref<1x128xf32, #tpu.memory_space<any>>) target(%115 : memref<1x128xf32, #tpu.memory_space<vmem>>) target_semaphore(%117 : memref<!tpu.dma_semaphore, #tpu.memory_space<semaphore_mem>>)
    %c20_i32_90 = arith.constant 20 : i32
    %118 = arith.addi %0, %c20_i32_90 : i32
    %c1_i32_91 = arith.constant 1 : i32
    %119 = arith.addi %118, %c1_i32_91 : i32
    %120 = arith.index_cast %119 : i32 to index
    %121 = memref.load %arg1[%120] : memref<128xi32, #tpu.memory_space<smem>>
    %c1_i32_92 = arith.constant 1 : i32
    %c0_i32_93 = arith.constant 0 : i32
    %c1_i32_94 = arith.constant 1 : i32
    %c0_i32_95 = arith.constant 0 : i32
    %122 = tpu.memref_slice %arg3[%121, %c0_i32_95] : memref<512x128xf32, #tpu.memory_space<any>> -> memref<1x128xf32, #tpu.memory_space<any>>
    %c5_i32_96 = arith.constant 5 : i32
    %c0_i32_97 = arith.constant 0 : i32
    %123 = tpu.memref_slice %arg6[%c1_i32_92, %c5_i32_96, %c0_i32_97] : memref<8x8x128xf32, #tpu.memory_space<vmem>> -> memref<1x1x128xf32, #tpu.memory_space<vmem>>
    %124 = tpu.memref_squeeze %123 : memref<1x1x128xf32, #tpu.memory_space<vmem>> -> memref<1x128xf32, #tpu.memory_space<vmem>>
    %125 = tpu.memref_slice %arg7[%c0_i32_93, %c1_i32_94] : memref<2x4x!tpu.dma_semaphore, #tpu.memory_space<semaphore_mem>> -> memref<1x1x!tpu.dma_semaphore, #tpu.memory_space<semaphore_mem>>
    %126 = tpu.memref_squeeze %125 : memref<1x1x!tpu.dma_semaphore, #tpu.memory_space<semaphore_mem>> -> memref<!tpu.dma_semaphore, #tpu.memory_space<semaphore_mem>>
    tpu.enqueue_dma source(%122 : memref<1x128xf32, #tpu.memory_space<any>>) target(%124 : memref<1x128xf32, #tpu.memory_space<vmem>>) target_semaphore(%126 : memref<!tpu.dma_semaphore, #tpu.memory_space<semaphore_mem>>)
    %c24_i32_98 = arith.constant 24 : i32
    %127 = arith.addi %0, %c24_i32_98 : i32
    %c1_i32_99 = arith.constant 1 : i32
    %128 = arith.addi %127, %c1_i32_99 : i32
    %129 = arith.index_cast %128 : i32 to index
    %130 = memref.load %arg1[%129] : memref<128xi32, #tpu.memory_space<smem>>
    %c1_i32_100 = arith.constant 1 : i32
    %c0_i32_101 = arith.constant 0 : i32
    %c1_i32_102 = arith.constant 1 : i32
    %c0_i32_103 = arith.constant 0 : i32
    %131 = tpu.memref_slice %arg3[%130, %c0_i32_103] : memref<512x128xf32, #tpu.memory_space<any>> -> memref<1x128xf32, #tpu.memory_space<any>>
    %c6_i32_104 = arith.constant 6 : i32
    %c0_i32_105 = arith.constant 0 : i32
    %132 = tpu.memref_slice %arg6[%c1_i32_100, %c6_i32_104, %c0_i32_105] : memref<8x8x128xf32, #tpu.memory_space<vmem>> -> memref<1x1x128xf32, #tpu.memory_space<vmem>>
    %133 = tpu.memref_squeeze %132 : memref<1x1x128xf32, #tpu.memory_space<vmem>> -> memref<1x128xf32, #tpu.memory_space<vmem>>
    %134 = tpu.memref_slice %arg7[%c0_i32_101, %c1_i32_102] : memref<2x4x!tpu.dma_semaphore, #tpu.memory_space<semaphore_mem>> -> memref<1x1x!tpu.dma_semaphore, #tpu.memory_space<semaphore_mem>>
    %135 = tpu.memref_squeeze %134 : memref<1x1x!tpu.dma_semaphore, #tpu.memory_space<semaphore_mem>> -> memref<!tpu.dma_semaphore, #tpu.memory_space<semaphore_mem>>
    tpu.enqueue_dma source(%131 : memref<1x128xf32, #tpu.memory_space<any>>) target(%133 : memref<1x128xf32, #tpu.memory_space<vmem>>) target_semaphore(%135 : memref<!tpu.dma_semaphore, #tpu.memory_space<semaphore_mem>>)
    %c28_i32_106 = arith.constant 28 : i32
    %136 = arith.addi %0, %c28_i32_106 : i32
    %c1_i32_107 = arith.constant 1 : i32
    %137 = arith.addi %136, %c1_i32_107 : i32
    %138 = arith.index_cast %137 : i32 to index
    %139 = memref.load %arg1[%138] : memref<128xi32, #tpu.memory_space<smem>>
    %c1_i32_108 = arith.constant 1 : i32
    %c0_i32_109 = arith.constant 0 : i32
    %c1_i32_110 = arith.constant 1 : i32
    %c0_i32_111 = arith.constant 0 : i32
    %140 = tpu.memref_slice %arg3[%139, %c0_i32_111] : memref<512x128xf32, #tpu.memory_space<any>> -> memref<1x128xf32, #tpu.memory_space<any>>
    %c7_i32_112 = arith.constant 7 : i32
    %c0_i32_113 = arith.constant 0 : i32
    %141 = tpu.memref_slice %arg6[%c1_i32_108, %c7_i32_112, %c0_i32_113] : memref<8x8x128xf32, #tpu.memory_space<vmem>> -> memref<1x1x128xf32, #tpu.memory_space<vmem>>
    %142 = tpu.memref_squeeze %141 : memref<1x1x128xf32, #tpu.memory_space<vmem>> -> memref<1x128xf32, #tpu.memory_space<vmem>>
    %143 = tpu.memref_slice %arg7[%c0_i32_109, %c1_i32_110] : memref<2x4x!tpu.dma_semaphore, #tpu.memory_space<semaphore_mem>> -> memref<1x1x!tpu.dma_semaphore, #tpu.memory_space<semaphore_mem>>
    %144 = tpu.memref_squeeze %143 : memref<1x1x!tpu.dma_semaphore, #tpu.memory_space<semaphore_mem>> -> memref<!tpu.dma_semaphore, #tpu.memory_space<semaphore_mem>>
    tpu.enqueue_dma source(%140 : memref<1x128xf32, #tpu.memory_space<any>>) target(%142 : memref<1x128xf32, #tpu.memory_space<vmem>>) target_semaphore(%144 : memref<!tpu.dma_semaphore, #tpu.memory_space<semaphore_mem>>)
    %c0_i32_114 = arith.constant 0 : i32
    %145 = arith.addi %0, %c0_i32_114 : i32
    %c2_i32_115 = arith.constant 2 : i32
    %146 = arith.addi %145, %c2_i32_115 : i32
    %147 = arith.index_cast %146 : i32 to index
    %148 = memref.load %arg1[%147] : memref<128xi32, #tpu.memory_space<smem>>
    %c2_i32_116 = arith.constant 2 : i32
    %c0_i32_117 = arith.constant 0 : i32
    %c2_i32_118 = arith.constant 2 : i32
    %c0_i32_119 = arith.constant 0 : i32
    %149 = tpu.memref_slice %arg3[%148, %c0_i32_119] : memref<512x128xf32, #tpu.memory_space<any>> -> memref<1x128xf32, #tpu.memory_space<any>>
    %c0_i32_120 = arith.constant 0 : i32
    %c0_i32_121 = arith.constant 0 : i32
    %150 = tpu.memref_slice %arg6[%c2_i32_116, %c0_i32_120, %c0_i32_121] : memref<8x8x128xf32, #tpu.memory_space<vmem>> -> memref<1x1x128xf32, #tpu.memory_space<vmem>>
    %151 = tpu.memref_squeeze %150 : memref<1x1x128xf32, #tpu.memory_space<vmem>> -> memref<1x128xf32, #tpu.memory_space<vmem>>
    %152 = tpu.memref_slice %arg7[%c0_i32_117, %c2_i32_118] : memref<2x4x!tpu.dma_semaphore, #tpu.memory_space<semaphore_mem>> -> memref<1x1x!tpu.dma_semaphore, #tpu.memory_space<semaphore_mem>>
    %153 = tpu.memref_squeeze %152 : memref<1x1x!tpu.dma_semaphore, #tpu.memory_space<semaphore_mem>> -> memref<!tpu.dma_semaphore, #tpu.memory_space<semaphore_mem>>
    tpu.enqueue_dma source(%149 : memref<1x128xf32, #tpu.memory_space<any>>) target(%151 : memref<1x128xf32, #tpu.memory_space<vmem>>) target_semaphore(%153 : memref<!tpu.dma_semaphore, #tpu.memory_space<semaphore_mem>>)
    %c4_i32_122 = arith.constant 4 : i32
    %154 = arith.addi %0, %c4_i32_122 : i32
    %c2_i32_123 = arith.constant 2 : i32
    %155 = arith.addi %154, %c2_i32_123 : i32
    %156 = arith.index_cast %155 : i32 to index
    %157 = memref.load %arg1[%156] : memref<128xi32, #tpu.memory_space<smem>>
    %c2_i32_124 = arith.constant 2 : i32
    %c0_i32_125 = arith.constant 0 : i32
    %c2_i32_126 = arith.constant 2 : i32
    %c0_i32_127 = arith.constant 0 : i32
    %158 = tpu.memref_slice %arg3[%157, %c0_i32_127] : memref<512x128xf32, #tpu.memory_space<any>> -> memref<1x128xf32, #tpu.memory_space<any>>
    %c1_i32_128 = arith.constant 1 : i32
    %c0_i32_129 = arith.constant 0 : i32
    %159 = tpu.memref_slice %arg6[%c2_i32_124, %c1_i32_128, %c0_i32_129] : memref<8x8x128xf32, #tpu.memory_space<vmem>> -> memref<1x1x128xf32, #tpu.memory_space<vmem>>
    %160 = tpu.memref_squeeze %159 : memref<1x1x128xf32, #tpu.memory_space<vmem>> -> memref<1x128xf32, #tpu.memory_space<vmem>>
    %161 = tpu.memref_slice %arg7[%c0_i32_125, %c2_i32_126] : memref<2x4x!tpu.dma_semaphore, #tpu.memory_space<semaphore_mem>> -> memref<1x1x!tpu.dma_semaphore, #tpu.memory_space<semaphore_mem>>
    %162 = tpu.memref_squeeze %161 : memref<1x1x!tpu.dma_semaphore, #tpu.memory_space<semaphore_mem>> -> memref<!tpu.dma_semaphore, #tpu.memory_space<semaphore_mem>>
    tpu.enqueue_dma source(%158 : memref<1x128xf32, #tpu.memory_space<any>>) target(%160 : memref<1x128xf32, #tpu.memory_space<vmem>>) target_semaphore(%162 : memref<!tpu.dma_semaphore, #tpu.memory_space<semaphore_mem>>)
    %c8_i32_130 = arith.constant 8 : i32
    %163 = arith.addi %0, %c8_i32_130 : i32
    %c2_i32_131 = arith.constant 2 : i32
    %164 = arith.addi %163, %c2_i32_131 : i32
    %165 = arith.index_cast %164 : i32 to index
    %166 = memref.load %arg1[%165] : memref<128xi32, #tpu.memory_space<smem>>
    %c2_i32_132 = arith.constant 2 : i32
    %c0_i32_133 = arith.constant 0 : i32
    %c2_i32_134 = arith.constant 2 : i32
    %c0_i32_135 = arith.constant 0 : i32
    %167 = tpu.memref_slice %arg3[%166, %c0_i32_135] : memref<512x128xf32, #tpu.memory_space<any>> -> memref<1x128xf32, #tpu.memory_space<any>>
    %c2_i32_136 = arith.constant 2 : i32
    %c0_i32_137 = arith.constant 0 : i32
    %168 = tpu.memref_slice %arg6[%c2_i32_132, %c2_i32_136, %c0_i32_137] : memref<8x8x128xf32, #tpu.memory_space<vmem>> -> memref<1x1x128xf32, #tpu.memory_space<vmem>>
    %169 = tpu.memref_squeeze %168 : memref<1x1x128xf32, #tpu.memory_space<vmem>> -> memref<1x128xf32, #tpu.memory_space<vmem>>
    %170 = tpu.memref_slice %arg7[%c0_i32_133, %c2_i32_134] : memref<2x4x!tpu.dma_semaphore, #tpu.memory_space<semaphore_mem>> -> memref<1x1x!tpu.dma_semaphore, #tpu.memory_space<semaphore_mem>>
    %171 = tpu.memref_squeeze %170 : memref<1x1x!tpu.dma_semaphore, #tpu.memory_space<semaphore_mem>> -> memref<!tpu.dma_semaphore, #tpu.memory_space<semaphore_mem>>
    tpu.enqueue_dma source(%167 : memref<1x128xf32, #tpu.memory_space<any>>) target(%169 : memref<1x128xf32, #tpu.memory_space<vmem>>) target_semaphore(%171 : memref<!tpu.dma_semaphore, #tpu.memory_space<semaphore_mem>>)
    %c12_i32_138 = arith.constant 12 : i32
    %172 = arith.addi %0, %c12_i32_138 : i32
    %c2_i32_139 = arith.constant 2 : i32
    %173 = arith.addi %172, %c2_i32_139 : i32
    %174 = arith.index_cast %173 : i32 to index
    %175 = memref.load %arg1[%174] : memref<128xi32, #tpu.memory_space<smem>>
    %c2_i32_140 = arith.constant 2 : i32
    %c0_i32_141 = arith.constant 0 : i32
    %c2_i32_142 = arith.constant 2 : i32
    %c0_i32_143 = arith.constant 0 : i32
    %176 = tpu.memref_slice %arg3[%175, %c0_i32_143] : memref<512x128xf32, #tpu.memory_space<any>> -> memref<1x128xf32, #tpu.memory_space<any>>
    %c3_i32_144 = arith.constant 3 : i32
    %c0_i32_145 = arith.constant 0 : i32
    %177 = tpu.memref_slice %arg6[%c2_i32_140, %c3_i32_144, %c0_i32_145] : memref<8x8x128xf32, #tpu.memory_space<vmem>> -> memref<1x1x128xf32, #tpu.memory_space<vmem>>
    %178 = tpu.memref_squeeze %177 : memref<1x1x128xf32, #tpu.memory_space<vmem>> -> memref<1x128xf32, #tpu.memory_space<vmem>>
    %179 = tpu.memref_slice %arg7[%c0_i32_141, %c2_i32_142] : memref<2x4x!tpu.dma_semaphore, #tpu.memory_space<semaphore_mem>> -> memref<1x1x!tpu.dma_semaphore, #tpu.memory_space<semaphore_mem>>
    %180 = tpu.memref_squeeze %179 : memref<1x1x!tpu.dma_semaphore, #tpu.memory_space<semaphore_mem>> -> memref<!tpu.dma_semaphore, #tpu.memory_space<semaphore_mem>>
    tpu.enqueue_dma source(%176 : memref<1x128xf32, #tpu.memory_space<any>>) target(%178 : memref<1x128xf32, #tpu.memory_space<vmem>>) target_semaphore(%180 : memref<!tpu.dma_semaphore, #tpu.memory_space<semaphore_mem>>)
    %c16_i32_146 = arith.constant 16 : i32
    %181 = arith.addi %0, %c16_i32_146 : i32
    %c2_i32_147 = arith.constant 2 : i32
    %182 = arith.addi %181, %c2_i32_147 : i32
    %183 = arith.index_cast %182 : i32 to index
    %184 = memref.load %arg1[%183] : memref<128xi32, #tpu.memory_space<smem>>
    %c2_i32_148 = arith.constant 2 : i32
    %c0_i32_149 = arith.constant 0 : i32
    %c2_i32_150 = arith.constant 2 : i32
    %c0_i32_151 = arith.constant 0 : i32
    %185 = tpu.memref_slice %arg3[%184, %c0_i32_151] : memref<512x128xf32, #tpu.memory_space<any>> -> memref<1x128xf32, #tpu.memory_space<any>>
    %c4_i32_152 = arith.constant 4 : i32
    %c0_i32_153 = arith.constant 0 : i32
    %186 = tpu.memref_slice %arg6[%c2_i32_148, %c4_i32_152, %c0_i32_153] : memref<8x8x128xf32, #tpu.memory_space<vmem>> -> memref<1x1x128xf32, #tpu.memory_space<vmem>>
    %187 = tpu.memref_squeeze %186 : memref<1x1x128xf32, #tpu.memory_space<vmem>> -> memref<1x128xf32, #tpu.memory_space<vmem>>
    %188 = tpu.memref_slice %arg7[%c0_i32_149, %c2_i32_150] : memref<2x4x!tpu.dma_semaphore, #tpu.memory_space<semaphore_mem>> -> memref<1x1x!tpu.dma_semaphore, #tpu.memory_space<semaphore_mem>>
    %189 = tpu.memref_squeeze %188 : memref<1x1x!tpu.dma_semaphore, #tpu.memory_space<semaphore_mem>> -> memref<!tpu.dma_semaphore, #tpu.memory_space<semaphore_mem>>
    tpu.enqueue_dma source(%185 : memref<1x128xf32, #tpu.memory_space<any>>) target(%187 : memref<1x128xf32, #tpu.memory_space<vmem>>) target_semaphore(%189 : memref<!tpu.dma_semaphore, #tpu.memory_space<semaphore_mem>>)
    %c20_i32_154 = arith.constant 20 : i32
    %190 = arith.addi %0, %c20_i32_154 : i32
    %c2_i32_155 = arith.constant 2 : i32
    %191 = arith.addi %190, %c2_i32_155 : i32
    %192 = arith.index_cast %191 : i32 to index
    %193 = memref.load %arg1[%192] : memref<128xi32, #tpu.memory_space<smem>>
    %c2_i32_156 = arith.constant 2 : i32
    %c0_i32_157 = arith.constant 0 : i32
    %c2_i32_158 = arith.constant 2 : i32
    %c0_i32_159 = arith.constant 0 : i32
    %194 = tpu.memref_slice %arg3[%193, %c0_i32_159] : memref<512x128xf32, #tpu.memory_space<any>> -> memref<1x128xf32, #tpu.memory_space<any>>
    %c5_i32_160 = arith.constant 5 : i32
    %c0_i32_161 = arith.constant 0 : i32
    %195 = tpu.memref_slice %arg6[%c2_i32_156, %c5_i32_160, %c0_i32_161] : memref<8x8x128xf32, #tpu.memory_space<vmem>> -> memref<1x1x128xf32, #tpu.memory_space<vmem>>
    %196 = tpu.memref_squeeze %195 : memref<1x1x128xf32, #tpu.memory_space<vmem>> -> memref<1x128xf32, #tpu.memory_space<vmem>>
    %197 = tpu.memref_slice %arg7[%c0_i32_157, %c2_i32_158] : memref<2x4x!tpu.dma_semaphore, #tpu.memory_space<semaphore_mem>> -> memref<1x1x!tpu.dma_semaphore, #tpu.memory_space<semaphore_mem>>
    %198 = tpu.memref_squeeze %197 : memref<1x1x!tpu.dma_semaphore, #tpu.memory_space<semaphore_mem>> -> memref<!tpu.dma_semaphore, #tpu.memory_space<semaphore_mem>>
    tpu.enqueue_dma source(%194 : memref<1x128xf32, #tpu.memory_space<any>>) target(%196 : memref<1x128xf32, #tpu.memory_space<vmem>>) target_semaphore(%198 : memref<!tpu.dma_semaphore, #tpu.memory_space<semaphore_mem>>)
    %c24_i32_162 = arith.constant 24 : i32
    %199 = arith.addi %0, %c24_i32_162 : i32
    %c2_i32_163 = arith.constant 2 : i32
    %200 = arith.addi %199, %c2_i32_163 : i32
    %201 = arith.index_cast %200 : i32 to index
    %202 = memref.load %arg1[%201] : memref<128xi32, #tpu.memory_space<smem>>
    %c2_i32_164 = arith.constant 2 : i32
    %c0_i32_165 = arith.constant 0 : i32
    %c2_i32_166 = arith.constant 2 : i32
    %c0_i32_167 = arith.constant 0 : i32
    %203 = tpu.memref_slice %arg3[%202, %c0_i32_167] : memref<512x128xf32, #tpu.memory_space<any>> -> memref<1x128xf32, #tpu.memory_space<any>>
    %c6_i32_168 = arith.constant 6 : i32
    %c0_i32_169 = arith.constant 0 : i32
    %204 = tpu.memref_slice %arg6[%c2_i32_164, %c6_i32_168, %c0_i32_169] : memref<8x8x128xf32, #tpu.memory_space<vmem>> -> memref<1x1x128xf32, #tpu.memory_space<vmem>>
    %205 = tpu.memref_squeeze %204 : memref<1x1x128xf32, #tpu.memory_space<vmem>> -> memref<1x128xf32, #tpu.memory_space<vmem>>
    %206 = tpu.memref_slice %arg7[%c0_i32_165, %c2_i32_166] : memref<2x4x!tpu.dma_semaphore, #tpu.memory_space<semaphore_mem>> -> memref<1x1x!tpu.dma_semaphore, #tpu.memory_space<semaphore_mem>>
    %207 = tpu.memref_squeeze %206 : memref<1x1x!tpu.dma_semaphore, #tpu.memory_space<semaphore_mem>> -> memref<!tpu.dma_semaphore, #tpu.memory_space<semaphore_mem>>
    tpu.enqueue_dma source(%203 : memref<1x128xf32, #tpu.memory_space<any>>) target(%205 : memref<1x128xf32, #tpu.memory_space<vmem>>) target_semaphore(%207 : memref<!tpu.dma_semaphore, #tpu.memory_space<semaphore_mem>>)
    %c28_i32_170 = arith.constant 28 : i32
    %208 = arith.addi %0, %c28_i32_170 : i32
    %c2_i32_171 = arith.constant 2 : i32
    %209 = arith.addi %208, %c2_i32_171 : i32
    %210 = arith.index_cast %209 : i32 to index
    %211 = memref.load %arg1[%210] : memref<128xi32, #tpu.memory_space<smem>>
    %c2_i32_172 = arith.constant 2 : i32
    %c0_i32_173 = arith.constant 0 : i32
    %c2_i32_174 = arith.constant 2 : i32
    %c0_i32_175 = arith.constant 0 : i32
    %212 = tpu.memref_slice %arg3[%211, %c0_i32_175] : memref<512x128xf32, #tpu.memory_space<any>> -> memref<1x128xf32, #tpu.memory_space<any>>
    %c7_i32_176 = arith.constant 7 : i32
    %c0_i32_177 = arith.constant 0 : i32
    %213 = tpu.memref_slice %arg6[%c2_i32_172, %c7_i32_176, %c0_i32_177] : memref<8x8x128xf32, #tpu.memory_space<vmem>> -> memref<1x1x128xf32, #tpu.memory_space<vmem>>
    %214 = tpu.memref_squeeze %213 : memref<1x1x128xf32, #tpu.memory_space<vmem>> -> memref<1x128xf32, #tpu.memory_space<vmem>>
    %215 = tpu.memref_slice %arg7[%c0_i32_173, %c2_i32_174] : memref<2x4x!tpu.dma_semaphore, #tpu.memory_space<semaphore_mem>> -> memref<1x1x!tpu.dma_semaphore, #tpu.memory_space<semaphore_mem>>
    %216 = tpu.memref_squeeze %215 : memref<1x1x!tpu.dma_semaphore, #tpu.memory_space<semaphore_mem>> -> memref<!tpu.dma_semaphore, #tpu.memory_space<semaphore_mem>>
    tpu.enqueue_dma source(%212 : memref<1x128xf32, #tpu.memory_space<any>>) target(%214 : memref<1x128xf32, #tpu.memory_space<vmem>>) target_semaphore(%216 : memref<!tpu.dma_semaphore, #tpu.memory_space<semaphore_mem>>)
    %c0_i32_178 = arith.constant 0 : i32
    %217 = arith.addi %0, %c0_i32_178 : i32
    %c3_i32_179 = arith.constant 3 : i32
    %218 = arith.addi %217, %c3_i32_179 : i32
    %219 = arith.index_cast %218 : i32 to index
    %220 = memref.load %arg1[%219] : memref<128xi32, #tpu.memory_space<smem>>
    %c3_i32_180 = arith.constant 3 : i32
    %c0_i32_181 = arith.constant 0 : i32
    %c3_i32_182 = arith.constant 3 : i32
    %c0_i32_183 = arith.constant 0 : i32
    %221 = tpu.memref_slice %arg3[%220, %c0_i32_183] : memref<512x128xf32, #tpu.memory_space<any>> -> memref<1x128xf32, #tpu.memory_space<any>>
    %c0_i32_184 = arith.constant 0 : i32
    %c0_i32_185 = arith.constant 0 : i32
    %222 = tpu.memref_slice %arg6[%c3_i32_180, %c0_i32_184, %c0_i32_185] : memref<8x8x128xf32, #tpu.memory_space<vmem>> -> memref<1x1x128xf32, #tpu.memory_space<vmem>>
    %223 = tpu.memref_squeeze %222 : memref<1x1x128xf32, #tpu.memory_space<vmem>> -> memref<1x128xf32, #tpu.memory_space<vmem>>
    %224 = tpu.memref_slice %arg7[%c0_i32_181, %c3_i32_182] : memref<2x4x!tpu.dma_semaphore, #tpu.memory_space<semaphore_mem>> -> memref<1x1x!tpu.dma_semaphore, #tpu.memory_space<semaphore_mem>>
    %225 = tpu.memref_squeeze %224 : memref<1x1x!tpu.dma_semaphore, #tpu.memory_space<semaphore_mem>> -> memref<!tpu.dma_semaphore, #tpu.memory_space<semaphore_mem>>
    tpu.enqueue_dma source(%221 : memref<1x128xf32, #tpu.memory_space<any>>) target(%223 : memref<1x128xf32, #tpu.memory_space<vmem>>) target_semaphore(%225 : memref<!tpu.dma_semaphore, #tpu.memory_space<semaphore_mem>>)
    %c4_i32_186 = arith.constant 4 : i32
    %226 = arith.addi %0, %c4_i32_186 : i32
    %c3_i32_187 = arith.constant 3 : i32
    %227 = arith.addi %226, %c3_i32_187 : i32
    %228 = arith.index_cast %227 : i32 to index
    %229 = memref.load %arg1[%228] : memref<128xi32, #tpu.memory_space<smem>>
    %c3_i32_188 = arith.constant 3 : i32
    %c0_i32_189 = arith.constant 0 : i32
    %c3_i32_190 = arith.constant 3 : i32
    %c0_i32_191 = arith.constant 0 : i32
    %230 = tpu.memref_slice %arg3[%229, %c0_i32_191] : memref<512x128xf32, #tpu.memory_space<any>> -> memref<1x128xf32, #tpu.memory_space<any>>
    %c1_i32_192 = arith.constant 1 : i32
    %c0_i32_193 = arith.constant 0 : i32
    %231 = tpu.memref_slice %arg6[%c3_i32_188, %c1_i32_192, %c0_i32_193] : memref<8x8x128xf32, #tpu.memory_space<vmem>> -> memref<1x1x128xf32, #tpu.memory_space<vmem>>
    %232 = tpu.memref_squeeze %231 : memref<1x1x128xf32, #tpu.memory_space<vmem>> -> memref<1x128xf32, #tpu.memory_space<vmem>>
    %233 = tpu.memref_slice %arg7[%c0_i32_189, %c3_i32_190] : memref<2x4x!tpu.dma_semaphore, #tpu.memory_space<semaphore_mem>> -> memref<1x1x!tpu.dma_semaphore, #tpu.memory_space<semaphore_mem>>
    %234 = tpu.memref_squeeze %233 : memref<1x1x!tpu.dma_semaphore, #tpu.memory_space<semaphore_mem>> -> memref<!tpu.dma_semaphore, #tpu.memory_space<semaphore_mem>>
    tpu.enqueue_dma source(%230 : memref<1x128xf32, #tpu.memory_space<any>>) target(%232 : memref<1x128xf32, #tpu.memory_space<vmem>>) target_semaphore(%234 : memref<!tpu.dma_semaphore, #tpu.memory_space<semaphore_mem>>)
    %c8_i32_194 = arith.constant 8 : i32
    %235 = arith.addi %0, %c8_i32_194 : i32
    %c3_i32_195 = arith.constant 3 : i32
    %236 = arith.addi %235, %c3_i32_195 : i32
    %237 = arith.index_cast %236 : i32 to index
    %238 = memref.load %arg1[%237] : memref<128xi32, #tpu.memory_space<smem>>
    %c3_i32_196 = arith.constant 3 : i32
    %c0_i32_197 = arith.constant 0 : i32
    %c3_i32_198 = arith.constant 3 : i32
    %c0_i32_199 = arith.constant 0 : i32
    %239 = tpu.memref_slice %arg3[%238, %c0_i32_199] : memref<512x128xf32, #tpu.memory_space<any>> -> memref<1x128xf32, #tpu.memory_space<any>>
    %c2_i32_200 = arith.constant 2 : i32
    %c0_i32_201 = arith.constant 0 : i32
    %240 = tpu.memref_slice %arg6[%c3_i32_196, %c2_i32_200, %c0_i32_201] : memref<8x8x128xf32, #tpu.memory_space<vmem>> -> memref<1x1x128xf32, #tpu.memory_space<vmem>>
    %241 = tpu.memref_squeeze %240 : memref<1x1x128xf32, #tpu.memory_space<vmem>> -> memref<1x128xf32, #tpu.memory_space<vmem>>
    %242 = tpu.memref_slice %arg7[%c0_i32_197, %c3_i32_198] : memref<2x4x!tpu.dma_semaphore, #tpu.memory_space<semaphore_mem>> -> memref<1x1x!tpu.dma_semaphore, #tpu.memory_space<semaphore_mem>>
    %243 = tpu.memref_squeeze %242 : memref<1x1x!tpu.dma_semaphore, #tpu.memory_space<semaphore_mem>> -> memref<!tpu.dma_semaphore, #tpu.memory_space<semaphore_mem>>
    tpu.enqueue_dma source(%239 : memref<1x128xf32, #tpu.memory_space<any>>) target(%241 : memref<1x128xf32, #tpu.memory_space<vmem>>) target_semaphore(%243 : memref<!tpu.dma_semaphore, #tpu.memory_space<semaphore_mem>>)
    %c12_i32_202 = arith.constant 12 : i32
    %244 = arith.addi %0, %c12_i32_202 : i32
    %c3_i32_203 = arith.constant 3 : i32
    %245 = arith.addi %244, %c3_i32_203 : i32
    %246 = arith.index_cast %245 : i32 to index
    %247 = memref.load %arg1[%246] : memref<128xi32, #tpu.memory_space<smem>>
    %c3_i32_204 = arith.constant 3 : i32
    %c0_i32_205 = arith.constant 0 : i32
    %c3_i32_206 = arith.constant 3 : i32
    %c0_i32_207 = arith.constant 0 : i32
    %248 = tpu.memref_slice %arg3[%247, %c0_i32_207] : memref<512x128xf32, #tpu.memory_space<any>> -> memref<1x128xf32, #tpu.memory_space<any>>
    %c3_i32_208 = arith.constant 3 : i32
    %c0_i32_209 = arith.constant 0 : i32
    %249 = tpu.memref_slice %arg6[%c3_i32_204, %c3_i32_208, %c0_i32_209] : memref<8x8x128xf32, #tpu.memory_space<vmem>> -> memref<1x1x128xf32, #tpu.memory_space<vmem>>
    %250 = tpu.memref_squeeze %249 : memref<1x1x128xf32, #tpu.memory_space<vmem>> -> memref<1x128xf32, #tpu.memory_space<vmem>>
    %251 = tpu.memref_slice %arg7[%c0_i32_205, %c3_i32_206] : memref<2x4x!tpu.dma_semaphore, #tpu.memory_space<semaphore_mem>> -> memref<1x1x!tpu.dma_semaphore, #tpu.memory_space<semaphore_mem>>
    %252 = tpu.memref_squeeze %251 : memref<1x1x!tpu.dma_semaphore, #tpu.memory_space<semaphore_mem>> -> memref<!tpu.dma_semaphore, #tpu.memory_space<semaphore_mem>>
    tpu.enqueue_dma source(%248 : memref<1x128xf32, #tpu.memory_space<any>>) target(%250 : memref<1x128xf32, #tpu.memory_space<vmem>>) target_semaphore(%252 : memref<!tpu.dma_semaphore, #tpu.memory_space<semaphore_mem>>)
    %c16_i32_210 = arith.constant 16 : i32
    %253 = arith.addi %0, %c16_i32_210 : i32
    %c3_i32_211 = arith.constant 3 : i32
    %254 = arith.addi %253, %c3_i32_211 : i32
    %255 = arith.index_cast %254 : i32 to index
    %256 = memref.load %arg1[%255] : memref<128xi32, #tpu.memory_space<smem>>
    %c3_i32_212 = arith.constant 3 : i32
    %c0_i32_213 = arith.constant 0 : i32
    %c3_i32_214 = arith.constant 3 : i32
    %c0_i32_215 = arith.constant 0 : i32
    %257 = tpu.memref_slice %arg3[%256, %c0_i32_215] : memref<512x128xf32, #tpu.memory_space<any>> -> memref<1x128xf32, #tpu.memory_space<any>>
    %c4_i32_216 = arith.constant 4 : i32
    %c0_i32_217 = arith.constant 0 : i32
    %258 = tpu.memref_slice %arg6[%c3_i32_212, %c4_i32_216, %c0_i32_217] : memref<8x8x128xf32, #tpu.memory_space<vmem>> -> memref<1x1x128xf32, #tpu.memory_space<vmem>>
    %259 = tpu.memref_squeeze %258 : memref<1x1x128xf32, #tpu.memory_space<vmem>> -> memref<1x128xf32, #tpu.memory_space<vmem>>
    %260 = tpu.memref_slice %arg7[%c0_i32_213, %c3_i32_214] : memref<2x4x!tpu.dma_semaphore, #tpu.memory_space<semaphore_mem>> -> memref<1x1x!tpu.dma_semaphore, #tpu.memory_space<semaphore_mem>>
    %261 = tpu.memref_squeeze %260 : memref<1x1x!tpu.dma_semaphore, #tpu.memory_space<semaphore_mem>> -> memref<!tpu.dma_semaphore, #tpu.memory_space<semaphore_mem>>
    tpu.enqueue_dma source(%257 : memref<1x128xf32, #tpu.memory_space<any>>) target(%259 : memref<1x128xf32, #tpu.memory_space<vmem>>) target_semaphore(%261 : memref<!tpu.dma_semaphore, #tpu.memory_space<semaphore_mem>>)
    %c20_i32_218 = arith.constant 20 : i32
    %262 = arith.addi %0, %c20_i32_218 : i32
    %c3_i32_219 = arith.constant 3 : i32
    %263 = arith.addi %262, %c3_i32_219 : i32
    %264 = arith.index_cast %263 : i32 to index
    %265 = memref.load %arg1[%264] : memref<128xi32, #tpu.memory_space<smem>>
    %c3_i32_220 = arith.constant 3 : i32
    %c0_i32_221 = arith.constant 0 : i32
    %c3_i32_222 = arith.constant 3 : i32
    %c0_i32_223 = arith.constant 0 : i32
    %266 = tpu.memref_slice %arg3[%265, %c0_i32_223] : memref<512x128xf32, #tpu.memory_space<any>> -> memref<1x128xf32, #tpu.memory_space<any>>
    %c5_i32_224 = arith.constant 5 : i32
    %c0_i32_225 = arith.constant 0 : i32
    %267 = tpu.memref_slice %arg6[%c3_i32_220, %c5_i32_224, %c0_i32_225] : memref<8x8x128xf32, #tpu.memory_space<vmem>> -> memref<1x1x128xf32, #tpu.memory_space<vmem>>
    %268 = tpu.memref_squeeze %267 : memref<1x1x128xf32, #tpu.memory_space<vmem>> -> memref<1x128xf32, #tpu.memory_space<vmem>>
    %269 = tpu.memref_slice %arg7[%c0_i32_221, %c3_i32_222] : memref<2x4x!tpu.dma_semaphore, #tpu.memory_space<semaphore_mem>> -> memref<1x1x!tpu.dma_semaphore, #tpu.memory_space<semaphore_mem>>
    %270 = tpu.memref_squeeze %269 : memref<1x1x!tpu.dma_semaphore, #tpu.memory_space<semaphore_mem>> -> memref<!tpu.dma_semaphore, #tpu.memory_space<semaphore_mem>>
    tpu.enqueue_dma source(%266 : memref<1x128xf32, #tpu.memory_space<any>>) target(%268 : memref<1x128xf32, #tpu.memory_space<vmem>>) target_semaphore(%270 : memref<!tpu.dma_semaphore, #tpu.memory_space<semaphore_mem>>)
    %c24_i32_226 = arith.constant 24 : i32
    %271 = arith.addi %0, %c24_i32_226 : i32
    %c3_i32_227 = arith.constant 3 : i32
    %272 = arith.addi %271, %c3_i32_227 : i32
    %273 = arith.index_cast %272 : i32 to index
    %274 = memref.load %arg1[%273] : memref<128xi32, #tpu.memory_space<smem>>
    %c3_i32_228 = arith.constant 3 : i32
    %c0_i32_229 = arith.constant 0 : i32
    %c3_i32_230 = arith.constant 3 : i32
    %c0_i32_231 = arith.constant 0 : i32
    %275 = tpu.memref_slice %arg3[%274, %c0_i32_231] : memref<512x128xf32, #tpu.memory_space<any>> -> memref<1x128xf32, #tpu.memory_space<any>>
    %c6_i32_232 = arith.constant 6 : i32
    %c0_i32_233 = arith.constant 0 : i32
    %276 = tpu.memref_slice %arg6[%c3_i32_228, %c6_i32_232, %c0_i32_233] : memref<8x8x128xf32, #tpu.memory_space<vmem>> -> memref<1x1x128xf32, #tpu.memory_space<vmem>>
    %277 = tpu.memref_squeeze %276 : memref<1x1x128xf32, #tpu.memory_space<vmem>> -> memref<1x128xf32, #tpu.memory_space<vmem>>
    %278 = tpu.memref_slice %arg7[%c0_i32_229, %c3_i32_230] : memref<2x4x!tpu.dma_semaphore, #tpu.memory_space<semaphore_mem>> -> memref<1x1x!tpu.dma_semaphore, #tpu.memory_space<semaphore_mem>>
    %279 = tpu.memref_squeeze %278 : memref<1x1x!tpu.dma_semaphore, #tpu.memory_space<semaphore_mem>> -> memref<!tpu.dma_semaphore, #tpu.memory_space<semaphore_mem>>
    tpu.enqueue_dma source(%275 : memref<1x128xf32, #tpu.memory_space<any>>) target(%277 : memref<1x128xf32, #tpu.memory_space<vmem>>) target_semaphore(%279 : memref<!tpu.dma_semaphore, #tpu.memory_space<semaphore_mem>>)
    %c28_i32_234 = arith.constant 28 : i32
    %280 = arith.addi %0, %c28_i32_234 : i32
    %c3_i32_235 = arith.constant 3 : i32
    %281 = arith.addi %280, %c3_i32_235 : i32
    %282 = arith.index_cast %281 : i32 to index
    %283 = memref.load %arg1[%282] : memref<128xi32, #tpu.memory_space<smem>>
    %c3_i32_236 = arith.constant 3 : i32
    %c0_i32_237 = arith.constant 0 : i32
    %c3_i32_238 = arith.constant 3 : i32
    %c0_i32_239 = arith.constant 0 : i32
    %284 = tpu.memref_slice %arg3[%283, %c0_i32_239] : memref<512x128xf32, #tpu.memory_space<any>> -> memref<1x128xf32, #tpu.memory_space<any>>
    %c7_i32_240 = arith.constant 7 : i32
    %c0_i32_241 = arith.constant 0 : i32
    %285 = tpu.memref_slice %arg6[%c3_i32_236, %c7_i32_240, %c0_i32_241] : memref<8x8x128xf32, #tpu.memory_space<vmem>> -> memref<1x1x128xf32, #tpu.memory_space<vmem>>
    %286 = tpu.memref_squeeze %285 : memref<1x1x128xf32, #tpu.memory_space<vmem>> -> memref<1x128xf32, #tpu.memory_space<vmem>>
    %287 = tpu.memref_slice %arg7[%c0_i32_237, %c3_i32_238] : memref<2x4x!tpu.dma_semaphore, #tpu.memory_space<semaphore_mem>> -> memref<1x1x!tpu.dma_semaphore, #tpu.memory_space<semaphore_mem>>
    %288 = tpu.memref_squeeze %287 : memref<1x1x!tpu.dma_semaphore, #tpu.memory_space<semaphore_mem>> -> memref<!tpu.dma_semaphore, #tpu.memory_space<semaphore_mem>>
    tpu.enqueue_dma source(%284 : memref<1x128xf32, #tpu.memory_space<any>>) target(%286 : memref<1x128xf32, #tpu.memory_space<vmem>>) target_semaphore(%288 : memref<!tpu.dma_semaphore, #tpu.memory_space<semaphore_mem>>)
    %c32_i32 = arith.constant 32 : i32
    %289 = arith.addi %0, %c32_i32 : i32
    %c0_i32_242 = arith.constant 0 : i32
    %290 = arith.addi %289, %c0_i32_242 : i32
    %291 = arith.index_cast %290 : i32 to index
    %292 = memref.load %arg1[%291] : memref<128xi32, #tpu.memory_space<smem>>
    %c4_i32_243 = arith.constant 4 : i32
    %c1_i32_244 = arith.constant 1 : i32
    %c0_i32_245 = arith.constant 0 : i32
    %c0_i32_246 = arith.constant 0 : i32
    %293 = tpu.memref_slice %arg4[%292, %c0_i32_246] : memref<512x128xf32, #tpu.memory_space<any>> -> memref<1x128xf32, #tpu.memory_space<any>>
    %c0_i32_247 = arith.constant 0 : i32
    %c0_i32_248 = arith.constant 0 : i32
    %294 = tpu.memref_slice %arg6[%c4_i32_243, %c0_i32_247, %c0_i32_248] : memref<8x8x128xf32, #tpu.memory_space<vmem>> -> memref<1x1x128xf32, #tpu.memory_space<vmem>>
    %295 = tpu.memref_squeeze %294 : memref<1x1x128xf32, #tpu.memory_space<vmem>> -> memref<1x128xf32, #tpu.memory_space<vmem>>
    %296 = tpu.memref_slice %arg7[%c1_i32_244, %c0_i32_245] : memref<2x4x!tpu.dma_semaphore, #tpu.memory_space<semaphore_mem>> -> memref<1x1x!tpu.dma_semaphore, #tpu.memory_space<semaphore_mem>>
    %297 = tpu.memref_squeeze %296 : memref<1x1x!tpu.dma_semaphore, #tpu.memory_space<semaphore_mem>> -> memref<!tpu.dma_semaphore, #tpu.memory_space<semaphore_mem>>
    tpu.enqueue_dma source(%293 : memref<1x128xf32, #tpu.memory_space<any>>) target(%295 : memref<1x128xf32, #tpu.memory_space<vmem>>) target_semaphore(%297 : memref<!tpu.dma_semaphore, #tpu.memory_space<semaphore_mem>>)
    %c36_i32 = arith.constant 36 : i32
    %298 = arith.addi %0, %c36_i32 : i32
    %c0_i32_249 = arith.constant 0 : i32
    %299 = arith.addi %298, %c0_i32_249 : i32
    %300 = arith.index_cast %299 : i32 to index
    %301 = memref.load %arg1[%300] : memref<128xi32, #tpu.memory_space<smem>>
    %c4_i32_250 = arith.constant 4 : i32
    %c1_i32_251 = arith.constant 1 : i32
    %c0_i32_252 = arith.constant 0 : i32
    %c0_i32_253 = arith.constant 0 : i32
    %302 = tpu.memref_slice %arg4[%301, %c0_i32_253] : memref<512x128xf32, #tpu.memory_space<any>> -> memref<1x128xf32, #tpu.memory_space<any>>
    %c1_i32_254 = arith.constant 1 : i32
    %c0_i32_255 = arith.constant 0 : i32
    %303 = tpu.memref_slice %arg6[%c4_i32_250, %c1_i32_254, %c0_i32_255] : memref<8x8x128xf32, #tpu.memory_space<vmem>> -> memref<1x1x128xf32, #tpu.memory_space<vmem>>
    %304 = tpu.memref_squeeze %303 : memref<1x1x128xf32, #tpu.memory_space<vmem>> -> memref<1x128xf32, #tpu.memory_space<vmem>>
    %305 = tpu.memref_slice %arg7[%c1_i32_251, %c0_i32_252] : memref<2x4x!tpu.dma_semaphore, #tpu.memory_space<semaphore_mem>> -> memref<1x1x!tpu.dma_semaphore, #tpu.memory_space<semaphore_mem>>
    %306 = tpu.memref_squeeze %305 : memref<1x1x!tpu.dma_semaphore, #tpu.memory_space<semaphore_mem>> -> memref<!tpu.dma_semaphore, #tpu.memory_space<semaphore_mem>>
    tpu.enqueue_dma source(%302 : memref<1x128xf32, #tpu.memory_space<any>>) target(%304 : memref<1x128xf32, #tpu.memory_space<vmem>>) target_semaphore(%306 : memref<!tpu.dma_semaphore, #tpu.memory_space<semaphore_mem>>)
    %c40_i32 = arith.constant 40 : i32
    %307 = arith.addi %0, %c40_i32 : i32
    %c0_i32_256 = arith.constant 0 : i32
    %308 = arith.addi %307, %c0_i32_256 : i32
    %309 = arith.index_cast %308 : i32 to index
    %310 = memref.load %arg1[%309] : memref<128xi32, #tpu.memory_space<smem>>
    %c4_i32_257 = arith.constant 4 : i32
    %c1_i32_258 = arith.constant 1 : i32
    %c0_i32_259 = arith.constant 0 : i32
    %c0_i32_260 = arith.constant 0 : i32
    %311 = tpu.memref_slice %arg4[%310, %c0_i32_260] : memref<512x128xf32, #tpu.memory_space<any>> -> memref<1x128xf32, #tpu.memory_space<any>>
    %c2_i32_261 = arith.constant 2 : i32
    %c0_i32_262 = arith.constant 0 : i32
    %312 = tpu.memref_slice %arg6[%c4_i32_257, %c2_i32_261, %c0_i32_262] : memref<8x8x128xf32, #tpu.memory_space<vmem>> -> memref<1x1x128xf32, #tpu.memory_space<vmem>>
    %313 = tpu.memref_squeeze %312 : memref<1x1x128xf32, #tpu.memory_space<vmem>> -> memref<1x128xf32, #tpu.memory_space<vmem>>
    %314 = tpu.memref_slice %arg7[%c1_i32_258, %c0_i32_259] : memref<2x4x!tpu.dma_semaphore, #tpu.memory_space<semaphore_mem>> -> memref<1x1x!tpu.dma_semaphore, #tpu.memory_space<semaphore_mem>>
    %315 = tpu.memref_squeeze %314 : memref<1x1x!tpu.dma_semaphore, #tpu.memory_space<semaphore_mem>> -> memref<!tpu.dma_semaphore, #tpu.memory_space<semaphore_mem>>
    tpu.enqueue_dma source(%311 : memref<1x128xf32, #tpu.memory_space<any>>) target(%313 : memref<1x128xf32, #tpu.memory_space<vmem>>) target_semaphore(%315 : memref<!tpu.dma_semaphore, #tpu.memory_space<semaphore_mem>>)
    %c44_i32 = arith.constant 44 : i32
    %316 = arith.addi %0, %c44_i32 : i32
    %c0_i32_263 = arith.constant 0 : i32
    %317 = arith.addi %316, %c0_i32_263 : i32
    %318 = arith.index_cast %317 : i32 to index
    %319 = memref.load %arg1[%318] : memref<128xi32, #tpu.memory_space<smem>>
    %c4_i32_264 = arith.constant 4 : i32
    %c1_i32_265 = arith.constant 1 : i32
    %c0_i32_266 = arith.constant 0 : i32
    %c0_i32_267 = arith.constant 0 : i32
    %320 = tpu.memref_slice %arg4[%319, %c0_i32_267] : memref<512x128xf32, #tpu.memory_space<any>> -> memref<1x128xf32, #tpu.memory_space<any>>
    %c3_i32_268 = arith.constant 3 : i32
    %c0_i32_269 = arith.constant 0 : i32
    %321 = tpu.memref_slice %arg6[%c4_i32_264, %c3_i32_268, %c0_i32_269] : memref<8x8x128xf32, #tpu.memory_space<vmem>> -> memref<1x1x128xf32, #tpu.memory_space<vmem>>
    %322 = tpu.memref_squeeze %321 : memref<1x1x128xf32, #tpu.memory_space<vmem>> -> memref<1x128xf32, #tpu.memory_space<vmem>>
    %323 = tpu.memref_slice %arg7[%c1_i32_265, %c0_i32_266] : memref<2x4x!tpu.dma_semaphore, #tpu.memory_space<semaphore_mem>> -> memref<1x1x!tpu.dma_semaphore, #tpu.memory_space<semaphore_mem>>
    %324 = tpu.memref_squeeze %323 : memref<1x1x!tpu.dma_semaphore, #tpu.memory_space<semaphore_mem>> -> memref<!tpu.dma_semaphore, #tpu.memory_space<semaphore_mem>>
    tpu.enqueue_dma source(%320 : memref<1x128xf32, #tpu.memory_space<any>>) target(%322 : memref<1x128xf32, #tpu.memory_space<vmem>>) target_semaphore(%324 : memref<!tpu.dma_semaphore, #tpu.memory_space<semaphore_mem>>)
    %c48_i32 = arith.constant 48 : i32
    %325 = arith.addi %0, %c48_i32 : i32
    %c0_i32_270 = arith.constant 0 : i32
    %326 = arith.addi %325, %c0_i32_270 : i32
    %327 = arith.index_cast %326 : i32 to index
    %328 = memref.load %arg1[%327] : memref<128xi32, #tpu.memory_space<smem>>
    %c4_i32_271 = arith.constant 4 : i32
    %c1_i32_272 = arith.constant 1 : i32
    %c0_i32_273 = arith.constant 0 : i32
    %c0_i32_274 = arith.constant 0 : i32
    %329 = tpu.memref_slice %arg4[%328, %c0_i32_274] : memref<512x128xf32, #tpu.memory_space<any>> -> memref<1x128xf32, #tpu.memory_space<any>>
    %c4_i32_275 = arith.constant 4 : i32
    %c0_i32_276 = arith.constant 0 : i32
    %330 = tpu.memref_slice %arg6[%c4_i32_271, %c4_i32_275, %c0_i32_276] : memref<8x8x128xf32, #tpu.memory_space<vmem>> -> memref<1x1x128xf32, #tpu.memory_space<vmem>>
    %331 = tpu.memref_squeeze %330 : memref<1x1x128xf32, #tpu.memory_space<vmem>> -> memref<1x128xf32, #tpu.memory_space<vmem>>
    %332 = tpu.memref_slice %arg7[%c1_i32_272, %c0_i32_273] : memref<2x4x!tpu.dma_semaphore, #tpu.memory_space<semaphore_mem>> -> memref<1x1x!tpu.dma_semaphore, #tpu.memory_space<semaphore_mem>>
    %333 = tpu.memref_squeeze %332 : memref<1x1x!tpu.dma_semaphore, #tpu.memory_space<semaphore_mem>> -> memref<!tpu.dma_semaphore, #tpu.memory_space<semaphore_mem>>
    tpu.enqueue_dma source(%329 : memref<1x128xf32, #tpu.memory_space<any>>) target(%331 : memref<1x128xf32, #tpu.memory_space<vmem>>) target_semaphore(%333 : memref<!tpu.dma_semaphore, #tpu.memory_space<semaphore_mem>>)
    %c52_i32 = arith.constant 52 : i32
    %334 = arith.addi %0, %c52_i32 : i32
    %c0_i32_277 = arith.constant 0 : i32
    %335 = arith.addi %334, %c0_i32_277 : i32
    %336 = arith.index_cast %335 : i32 to index
    %337 = memref.load %arg1[%336] : memref<128xi32, #tpu.memory_space<smem>>
    %c4_i32_278 = arith.constant 4 : i32
    %c1_i32_279 = arith.constant 1 : i32
    %c0_i32_280 = arith.constant 0 : i32
    %c0_i32_281 = arith.constant 0 : i32
    %338 = tpu.memref_slice %arg4[%337, %c0_i32_281] : memref<512x128xf32, #tpu.memory_space<any>> -> memref<1x128xf32, #tpu.memory_space<any>>
    %c5_i32_282 = arith.constant 5 : i32
    %c0_i32_283 = arith.constant 0 : i32
    %339 = tpu.memref_slice %arg6[%c4_i32_278, %c5_i32_282, %c0_i32_283] : memref<8x8x128xf32, #tpu.memory_space<vmem>> -> memref<1x1x128xf32, #tpu.memory_space<vmem>>
    %340 = tpu.memref_squeeze %339 : memref<1x1x128xf32, #tpu.memory_space<vmem>> -> memref<1x128xf32, #tpu.memory_space<vmem>>
    %341 = tpu.memref_slice %arg7[%c1_i32_279, %c0_i32_280] : memref<2x4x!tpu.dma_semaphore, #tpu.memory_space<semaphore_mem>> -> memref<1x1x!tpu.dma_semaphore, #tpu.memory_space<semaphore_mem>>
    %342 = tpu.memref_squeeze %341 : memref<1x1x!tpu.dma_semaphore, #tpu.memory_space<semaphore_mem>> -> memref<!tpu.dma_semaphore, #tpu.memory_space<semaphore_mem>>
    tpu.enqueue_dma source(%338 : memref<1x128xf32, #tpu.memory_space<any>>) target(%340 : memref<1x128xf32, #tpu.memory_space<vmem>>) target_semaphore(%342 : memref<!tpu.dma_semaphore, #tpu.memory_space<semaphore_mem>>)
    %c56_i32 = arith.constant 56 : i32
    %343 = arith.addi %0, %c56_i32 : i32
    %c0_i32_284 = arith.constant 0 : i32
    %344 = arith.addi %343, %c0_i32_284 : i32
    %345 = arith.index_cast %344 : i32 to index
    %346 = memref.load %arg1[%345] : memref<128xi32, #tpu.memory_space<smem>>
    %c4_i32_285 = arith.constant 4 : i32
    %c1_i32_286 = arith.constant 1 : i32
    %c0_i32_287 = arith.constant 0 : i32
    %c0_i32_288 = arith.constant 0 : i32
    %347 = tpu.memref_slice %arg4[%346, %c0_i32_288] : memref<512x128xf32, #tpu.memory_space<any>> -> memref<1x128xf32, #tpu.memory_space<any>>
    %c6_i32_289 = arith.constant 6 : i32
    %c0_i32_290 = arith.constant 0 : i32
    %348 = tpu.memref_slice %arg6[%c4_i32_285, %c6_i32_289, %c0_i32_290] : memref<8x8x128xf32, #tpu.memory_space<vmem>> -> memref<1x1x128xf32, #tpu.memory_space<vmem>>
    %349 = tpu.memref_squeeze %348 : memref<1x1x128xf32, #tpu.memory_space<vmem>> -> memref<1x128xf32, #tpu.memory_space<vmem>>
    %350 = tpu.memref_slice %arg7[%c1_i32_286, %c0_i32_287] : memref<2x4x!tpu.dma_semaphore, #tpu.memory_space<semaphore_mem>> -> memref<1x1x!tpu.dma_semaphore, #tpu.memory_space<semaphore_mem>>
    %351 = tpu.memref_squeeze %350 : memref<1x1x!tpu.dma_semaphore, #tpu.memory_space<semaphore_mem>> -> memref<!tpu.dma_semaphore, #tpu.memory_space<semaphore_mem>>
    tpu.enqueue_dma source(%347 : memref<1x128xf32, #tpu.memory_space<any>>) target(%349 : memref<1x128xf32, #tpu.memory_space<vmem>>) target_semaphore(%351 : memref<!tpu.dma_semaphore, #tpu.memory_space<semaphore_mem>>)
    %c60_i32 = arith.constant 60 : i32
    %352 = arith.addi %0, %c60_i32 : i32
    %c0_i32_291 = arith.constant 0 : i32
    %353 = arith.addi %352, %c0_i32_291 : i32
    %354 = arith.index_cast %353 : i32 to index
    %355 = memref.load %arg1[%354] : memref<128xi32, #tpu.memory_space<smem>>
    %c4_i32_292 = arith.constant 4 : i32
    %c1_i32_293 = arith.constant 1 : i32
    %c0_i32_294 = arith.constant 0 : i32
    %c0_i32_295 = arith.constant 0 : i32
    %356 = tpu.memref_slice %arg4[%355, %c0_i32_295] : memref<512x128xf32, #tpu.memory_space<any>> -> memref<1x128xf32, #tpu.memory_space<any>>
    %c7_i32_296 = arith.constant 7 : i32
    %c0_i32_297 = arith.constant 0 : i32
    %357 = tpu.memref_slice %arg6[%c4_i32_292, %c7_i32_296, %c0_i32_297] : memref<8x8x128xf32, #tpu.memory_space<vmem>> -> memref<1x1x128xf32, #tpu.memory_space<vmem>>
    %358 = tpu.memref_squeeze %357 : memref<1x1x128xf32, #tpu.memory_space<vmem>> -> memref<1x128xf32, #tpu.memory_space<vmem>>
    %359 = tpu.memref_slice %arg7[%c1_i32_293, %c0_i32_294] : memref<2x4x!tpu.dma_semaphore, #tpu.memory_space<semaphore_mem>> -> memref<1x1x!tpu.dma_semaphore, #tpu.memory_space<semaphore_mem>>
    %360 = tpu.memref_squeeze %359 : memref<1x1x!tpu.dma_semaphore, #tpu.memory_space<semaphore_mem>> -> memref<!tpu.dma_semaphore, #tpu.memory_space<semaphore_mem>>
    tpu.enqueue_dma source(%356 : memref<1x128xf32, #tpu.memory_space<any>>) target(%358 : memref<1x128xf32, #tpu.memory_space<vmem>>) target_semaphore(%360 : memref<!tpu.dma_semaphore, #tpu.memory_space<semaphore_mem>>)
    %c32_i32_298 = arith.constant 32 : i32
    %361 = arith.addi %0, %c32_i32_298 : i32
    %c1_i32_299 = arith.constant 1 : i32
    %362 = arith.addi %361, %c1_i32_299 : i32
    %363 = arith.index_cast %362 : i32 to index
    %364 = memref.load %arg1[%363] : memref<128xi32, #tpu.memory_space<smem>>
    %c5_i32_300 = arith.constant 5 : i32
    %c1_i32_301 = arith.constant 1 : i32
    %c1_i32_302 = arith.constant 1 : i32
    %c0_i32_303 = arith.constant 0 : i32
    %365 = tpu.memref_slice %arg4[%364, %c0_i32_303] : memref<512x128xf32, #tpu.memory_space<any>> -> memref<1x128xf32, #tpu.memory_space<any>>
    %c0_i32_304 = arith.constant 0 : i32
    %c0_i32_305 = arith.constant 0 : i32
    %366 = tpu.memref_slice %arg6[%c5_i32_300, %c0_i32_304, %c0_i32_305] : memref<8x8x128xf32, #tpu.memory_space<vmem>> -> memref<1x1x128xf32, #tpu.memory_space<vmem>>
    %367 = tpu.memref_squeeze %366 : memref<1x1x128xf32, #tpu.memory_space<vmem>> -> memref<1x128xf32, #tpu.memory_space<vmem>>
    %368 = tpu.memref_slice %arg7[%c1_i32_301, %c1_i32_302] : memref<2x4x!tpu.dma_semaphore, #tpu.memory_space<semaphore_mem>> -> memref<1x1x!tpu.dma_semaphore, #tpu.memory_space<semaphore_mem>>
    %369 = tpu.memref_squeeze %368 : memref<1x1x!tpu.dma_semaphore, #tpu.memory_space<semaphore_mem>> -> memref<!tpu.dma_semaphore, #tpu.memory_space<semaphore_mem>>
    tpu.enqueue_dma source(%365 : memref<1x128xf32, #tpu.memory_space<any>>) target(%367 : memref<1x128xf32, #tpu.memory_space<vmem>>) target_semaphore(%369 : memref<!tpu.dma_semaphore, #tpu.memory_space<semaphore_mem>>)
    %c36_i32_306 = arith.constant 36 : i32
    %370 = arith.addi %0, %c36_i32_306 : i32
    %c1_i32_307 = arith.constant 1 : i32
    %371 = arith.addi %370, %c1_i32_307 : i32
    %372 = arith.index_cast %371 : i32 to index
    %373 = memref.load %arg1[%372] : memref<128xi32, #tpu.memory_space<smem>>
    %c5_i32_308 = arith.constant 5 : i32
    %c1_i32_309 = arith.constant 1 : i32
    %c1_i32_310 = arith.constant 1 : i32
    %c0_i32_311 = arith.constant 0 : i32
    %374 = tpu.memref_slice %arg4[%373, %c0_i32_311] : memref<512x128xf32, #tpu.memory_space<any>> -> memref<1x128xf32, #tpu.memory_space<any>>
    %c1_i32_312 = arith.constant 1 : i32
    %c0_i32_313 = arith.constant 0 : i32
    %375 = tpu.memref_slice %arg6[%c5_i32_308, %c1_i32_312, %c0_i32_313] : memref<8x8x128xf32, #tpu.memory_space<vmem>> -> memref<1x1x128xf32, #tpu.memory_space<vmem>>
    %376 = tpu.memref_squeeze %375 : memref<1x1x128xf32, #tpu.memory_space<vmem>> -> memref<1x128xf32, #tpu.memory_space<vmem>>
    %377 = tpu.memref_slice %arg7[%c1_i32_309, %c1_i32_310] : memref<2x4x!tpu.dma_semaphore, #tpu.memory_space<semaphore_mem>> -> memref<1x1x!tpu.dma_semaphore, #tpu.memory_space<semaphore_mem>>
    %378 = tpu.memref_squeeze %377 : memref<1x1x!tpu.dma_semaphore, #tpu.memory_space<semaphore_mem>> -> memref<!tpu.dma_semaphore, #tpu.memory_space<semaphore_mem>>
    tpu.enqueue_dma source(%374 : memref<1x128xf32, #tpu.memory_space<any>>) target(%376 : memref<1x128xf32, #tpu.memory_space<vmem>>) target_semaphore(%378 : memref<!tpu.dma_semaphore, #tpu.memory_space<semaphore_mem>>)
    %c40_i32_314 = arith.constant 40 : i32
    %379 = arith.addi %0, %c40_i32_314 : i32
    %c1_i32_315 = arith.constant 1 : i32
    %380 = arith.addi %379, %c1_i32_315 : i32
    %381 = arith.index_cast %380 : i32 to index
    %382 = memref.load %arg1[%381] : memref<128xi32, #tpu.memory_space<smem>>
    %c5_i32_316 = arith.constant 5 : i32
    %c1_i32_317 = arith.constant 1 : i32
    %c1_i32_318 = arith.constant 1 : i32
    %c0_i32_319 = arith.constant 0 : i32
    %383 = tpu.memref_slice %arg4[%382, %c0_i32_319] : memref<512x128xf32, #tpu.memory_space<any>> -> memref<1x128xf32, #tpu.memory_space<any>>
    %c2_i32_320 = arith.constant 2 : i32
    %c0_i32_321 = arith.constant 0 : i32
    %384 = tpu.memref_slice %arg6[%c5_i32_316, %c2_i32_320, %c0_i32_321] : memref<8x8x128xf32, #tpu.memory_space<vmem>> -> memref<1x1x128xf32, #tpu.memory_space<vmem>>
    %385 = tpu.memref_squeeze %384 : memref<1x1x128xf32, #tpu.memory_space<vmem>> -> memref<1x128xf32, #tpu.memory_space<vmem>>
    %386 = tpu.memref_slice %arg7[%c1_i32_317, %c1_i32_318] : memref<2x4x!tpu.dma_semaphore, #tpu.memory_space<semaphore_mem>> -> memref<1x1x!tpu.dma_semaphore, #tpu.memory_space<semaphore_mem>>
    %387 = tpu.memref_squeeze %386 : memref<1x1x!tpu.dma_semaphore, #tpu.memory_space<semaphore_mem>> -> memref<!tpu.dma_semaphore, #tpu.memory_space<semaphore_mem>>
    tpu.enqueue_dma source(%383 : memref<1x128xf32, #tpu.memory_space<any>>) target(%385 : memref<1x128xf32, #tpu.memory_space<vmem>>) target_semaphore(%387 : memref<!tpu.dma_semaphore, #tpu.memory_space<semaphore_mem>>)
    %c44_i32_322 = arith.constant 44 : i32
    %388 = arith.addi %0, %c44_i32_322 : i32
    %c1_i32_323 = arith.constant 1 : i32
    %389 = arith.addi %388, %c1_i32_323 : i32
    %390 = arith.index_cast %389 : i32 to index
    %391 = memref.load %arg1[%390] : memref<128xi32, #tpu.memory_space<smem>>
    %c5_i32_324 = arith.constant 5 : i32
    %c1_i32_325 = arith.constant 1 : i32
    %c1_i32_326 = arith.constant 1 : i32
    %c0_i32_327 = arith.constant 0 : i32
    %392 = tpu.memref_slice %arg4[%391, %c0_i32_327] : memref<512x128xf32, #tpu.memory_space<any>> -> memref<1x128xf32, #tpu.memory_space<any>>
    %c3_i32_328 = arith.constant 3 : i32
    %c0_i32_329 = arith.constant 0 : i32
    %393 = tpu.memref_slice %arg6[%c5_i32_324, %c3_i32_328, %c0_i32_329] : memref<8x8x128xf32, #tpu.memory_space<vmem>> -> memref<1x1x128xf32, #tpu.memory_space<vmem>>
    %394 = tpu.memref_squeeze %393 : memref<1x1x128xf32, #tpu.memory_space<vmem>> -> memref<1x128xf32, #tpu.memory_space<vmem>>
    %395 = tpu.memref_slice %arg7[%c1_i32_325, %c1_i32_326] : memref<2x4x!tpu.dma_semaphore, #tpu.memory_space<semaphore_mem>> -> memref<1x1x!tpu.dma_semaphore, #tpu.memory_space<semaphore_mem>>
    %396 = tpu.memref_squeeze %395 : memref<1x1x!tpu.dma_semaphore, #tpu.memory_space<semaphore_mem>> -> memref<!tpu.dma_semaphore, #tpu.memory_space<semaphore_mem>>
    tpu.enqueue_dma source(%392 : memref<1x128xf32, #tpu.memory_space<any>>) target(%394 : memref<1x128xf32, #tpu.memory_space<vmem>>) target_semaphore(%396 : memref<!tpu.dma_semaphore, #tpu.memory_space<semaphore_mem>>)
    %c48_i32_330 = arith.constant 48 : i32
    %397 = arith.addi %0, %c48_i32_330 : i32
    %c1_i32_331 = arith.constant 1 : i32
    %398 = arith.addi %397, %c1_i32_331 : i32
    %399 = arith.index_cast %398 : i32 to index
    %400 = memref.load %arg1[%399] : memref<128xi32, #tpu.memory_space<smem>>
    %c5_i32_332 = arith.constant 5 : i32
    %c1_i32_333 = arith.constant 1 : i32
    %c1_i32_334 = arith.constant 1 : i32
    %c0_i32_335 = arith.constant 0 : i32
    %401 = tpu.memref_slice %arg4[%400, %c0_i32_335] : memref<512x128xf32, #tpu.memory_space<any>> -> memref<1x128xf32, #tpu.memory_space<any>>
    %c4_i32_336 = arith.constant 4 : i32
    %c0_i32_337 = arith.constant 0 : i32
    %402 = tpu.memref_slice %arg6[%c5_i32_332, %c4_i32_336, %c0_i32_337] : memref<8x8x128xf32, #tpu.memory_space<vmem>> -> memref<1x1x128xf32, #tpu.memory_space<vmem>>
    %403 = tpu.memref_squeeze %402 : memref<1x1x128xf32, #tpu.memory_space<vmem>> -> memref<1x128xf32, #tpu.memory_space<vmem>>
    %404 = tpu.memref_slice %arg7[%c1_i32_333, %c1_i32_334] : memref<2x4x!tpu.dma_semaphore, #tpu.memory_space<semaphore_mem>> -> memref<1x1x!tpu.dma_semaphore, #tpu.memory_space<semaphore_mem>>
    %405 = tpu.memref_squeeze %404 : memref<1x1x!tpu.dma_semaphore, #tpu.memory_space<semaphore_mem>> -> memref<!tpu.dma_semaphore, #tpu.memory_space<semaphore_mem>>
    tpu.enqueue_dma source(%401 : memref<1x128xf32, #tpu.memory_space<any>>) target(%403 : memref<1x128xf32, #tpu.memory_space<vmem>>) target_semaphore(%405 : memref<!tpu.dma_semaphore, #tpu.memory_space<semaphore_mem>>)
    %c52_i32_338 = arith.constant 52 : i32
    %406 = arith.addi %0, %c52_i32_338 : i32
    %c1_i32_339 = arith.constant 1 : i32
    %407 = arith.addi %406, %c1_i32_339 : i32
    %408 = arith.index_cast %407 : i32 to index
    %409 = memref.load %arg1[%408] : memref<128xi32, #tpu.memory_space<smem>>
    %c5_i32_340 = arith.constant 5 : i32
    %c1_i32_341 = arith.constant 1 : i32
    %c1_i32_342 = arith.constant 1 : i32
    %c0_i32_343 = arith.constant 0 : i32
    %410 = tpu.memref_slice %arg4[%409, %c0_i32_343] : memref<512x128xf32, #tpu.memory_space<any>> -> memref<1x128xf32, #tpu.memory_space<any>>
    %c5_i32_344 = arith.constant 5 : i32
    %c0_i32_345 = arith.constant 0 : i32
    %411 = tpu.memref_slice %arg6[%c5_i32_340, %c5_i32_344, %c0_i32_345] : memref<8x8x128xf32, #tpu.memory_space<vmem>> -> memref<1x1x128xf32, #tpu.memory_space<vmem>>
    %412 = tpu.memref_squeeze %411 : memref<1x1x128xf32, #tpu.memory_space<vmem>> -> memref<1x128xf32, #tpu.memory_space<vmem>>
    %413 = tpu.memref_slice %arg7[%c1_i32_341, %c1_i32_342] : memref<2x4x!tpu.dma_semaphore, #tpu.memory_space<semaphore_mem>> -> memref<1x1x!tpu.dma_semaphore, #tpu.memory_space<semaphore_mem>>
    %414 = tpu.memref_squeeze %413 : memref<1x1x!tpu.dma_semaphore, #tpu.memory_space<semaphore_mem>> -> memref<!tpu.dma_semaphore, #tpu.memory_space<semaphore_mem>>
    tpu.enqueue_dma source(%410 : memref<1x128xf32, #tpu.memory_space<any>>) target(%412 : memref<1x128xf32, #tpu.memory_space<vmem>>) target_semaphore(%414 : memref<!tpu.dma_semaphore, #tpu.memory_space<semaphore_mem>>)
    %c56_i32_346 = arith.constant 56 : i32
    %415 = arith.addi %0, %c56_i32_346 : i32
    %c1_i32_347 = arith.constant 1 : i32
    %416 = arith.addi %415, %c1_i32_347 : i32
    %417 = arith.index_cast %416 : i32 to index
    %418 = memref.load %arg1[%417] : memref<128xi32, #tpu.memory_space<smem>>
    %c5_i32_348 = arith.constant 5 : i32
    %c1_i32_349 = arith.constant 1 : i32
    %c1_i32_350 = arith.constant 1 : i32
    %c0_i32_351 = arith.constant 0 : i32
    %419 = tpu.memref_slice %arg4[%418, %c0_i32_351] : memref<512x128xf32, #tpu.memory_space<any>> -> memref<1x128xf32, #tpu.memory_space<any>>
    %c6_i32_352 = arith.constant 6 : i32
    %c0_i32_353 = arith.constant 0 : i32
    %420 = tpu.memref_slice %arg6[%c5_i32_348, %c6_i32_352, %c0_i32_353] : memref<8x8x128xf32, #tpu.memory_space<vmem>> -> memref<1x1x128xf32, #tpu.memory_space<vmem>>
    %421 = tpu.memref_squeeze %420 : memref<1x1x128xf32, #tpu.memory_space<vmem>> -> memref<1x128xf32, #tpu.memory_space<vmem>>
    %422 = tpu.memref_slice %arg7[%c1_i32_349, %c1_i32_350] : memref<2x4x!tpu.dma_semaphore, #tpu.memory_space<semaphore_mem>> -> memref<1x1x!tpu.dma_semaphore, #tpu.memory_space<semaphore_mem>>
    %423 = tpu.memref_squeeze %422 : memref<1x1x!tpu.dma_semaphore, #tpu.memory_space<semaphore_mem>> -> memref<!tpu.dma_semaphore, #tpu.memory_space<semaphore_mem>>
    tpu.enqueue_dma source(%419 : memref<1x128xf32, #tpu.memory_space<any>>) target(%421 : memref<1x128xf32, #tpu.memory_space<vmem>>) target_semaphore(%423 : memref<!tpu.dma_semaphore, #tpu.memory_space<semaphore_mem>>)
    %c60_i32_354 = arith.constant 60 : i32
    %424 = arith.addi %0, %c60_i32_354 : i32
    %c1_i32_355 = arith.constant 1 : i32
    %425 = arith.addi %424, %c1_i32_355 : i32
    %426 = arith.index_cast %425 : i32 to index
    %427 = memref.load %arg1[%426] : memref<128xi32, #tpu.memory_space<smem>>
    %c5_i32_356 = arith.constant 5 : i32
    %c1_i32_357 = arith.constant 1 : i32
    %c1_i32_358 = arith.constant 1 : i32
    %c0_i32_359 = arith.constant 0 : i32
    %428 = tpu.memref_slice %arg4[%427, %c0_i32_359] : memref<512x128xf32, #tpu.memory_space<any>> -> memref<1x128xf32, #tpu.memory_space<any>>
    %c7_i32_360 = arith.constant 7 : i32
    %c0_i32_361 = arith.constant 0 : i32
    %429 = tpu.memref_slice %arg6[%c5_i32_356, %c7_i32_360, %c0_i32_361] : memref<8x8x128xf32, #tpu.memory_space<vmem>> -> memref<1x1x128xf32, #tpu.memory_space<vmem>>
    %430 = tpu.memref_squeeze %429 : memref<1x1x128xf32, #tpu.memory_space<vmem>> -> memref<1x128xf32, #tpu.memory_space<vmem>>
    %431 = tpu.memref_slice %arg7[%c1_i32_357, %c1_i32_358] : memref<2x4x!tpu.dma_semaphore, #tpu.memory_space<semaphore_mem>> -> memref<1x1x!tpu.dma_semaphore, #tpu.memory_space<semaphore_mem>>
    %432 = tpu.memref_squeeze %431 : memref<1x1x!tpu.dma_semaphore, #tpu.memory_space<semaphore_mem>> -> memref<!tpu.dma_semaphore, #tpu.memory_space<semaphore_mem>>
    tpu.enqueue_dma source(%428 : memref<1x128xf32, #tpu.memory_space<any>>) target(%430 : memref<1x128xf32, #tpu.memory_space<vmem>>) target_semaphore(%432 : memref<!tpu.dma_semaphore, #tpu.memory_space<semaphore_mem>>)
    %c32_i32_362 = arith.constant 32 : i32
    %433 = arith.addi %0, %c32_i32_362 : i32
    %c2_i32_363 = arith.constant 2 : i32
    %434 = arith.addi %433, %c2_i32_363 : i32
    %435 = arith.index_cast %434 : i32 to index
    %436 = memref.load %arg1[%435] : memref<128xi32, #tpu.memory_space<smem>>
    %c6_i32_364 = arith.constant 6 : i32
    %c1_i32_365 = arith.constant 1 : i32
    %c2_i32_366 = arith.constant 2 : i32
    %c0_i32_367 = arith.constant 0 : i32
    %437 = tpu.memref_slice %arg4[%436, %c0_i32_367] : memref<512x128xf32, #tpu.memory_space<any>> -> memref<1x128xf32, #tpu.memory_space<any>>
    %c0_i32_368 = arith.constant 0 : i32
    %c0_i32_369 = arith.constant 0 : i32
    %438 = tpu.memref_slice %arg6[%c6_i32_364, %c0_i32_368, %c0_i32_369] : memref<8x8x128xf32, #tpu.memory_space<vmem>> -> memref<1x1x128xf32, #tpu.memory_space<vmem>>
    %439 = tpu.memref_squeeze %438 : memref<1x1x128xf32, #tpu.memory_space<vmem>> -> memref<1x128xf32, #tpu.memory_space<vmem>>
    %440 = tpu.memref_slice %arg7[%c1_i32_365, %c2_i32_366] : memref<2x4x!tpu.dma_semaphore, #tpu.memory_space<semaphore_mem>> -> memref<1x1x!tpu.dma_semaphore, #tpu.memory_space<semaphore_mem>>
    %441 = tpu.memref_squeeze %440 : memref<1x1x!tpu.dma_semaphore, #tpu.memory_space<semaphore_mem>> -> memref<!tpu.dma_semaphore, #tpu.memory_space<semaphore_mem>>
    tpu.enqueue_dma source(%437 : memref<1x128xf32, #tpu.memory_space<any>>) target(%439 : memref<1x128xf32, #tpu.memory_space<vmem>>) target_semaphore(%441 : memref<!tpu.dma_semaphore, #tpu.memory_space<semaphore_mem>>)
    %c36_i32_370 = arith.constant 36 : i32
    %442 = arith.addi %0, %c36_i32_370 : i32
    %c2_i32_371 = arith.constant 2 : i32
    %443 = arith.addi %442, %c2_i32_371 : i32
    %444 = arith.index_cast %443 : i32 to index
    %445 = memref.load %arg1[%444] : memref<128xi32, #tpu.memory_space<smem>>
    %c6_i32_372 = arith.constant 6 : i32
    %c1_i32_373 = arith.constant 1 : i32
    %c2_i32_374 = arith.constant 2 : i32
    %c0_i32_375 = arith.constant 0 : i32
    %446 = tpu.memref_slice %arg4[%445, %c0_i32_375] : memref<512x128xf32, #tpu.memory_space<any>> -> memref<1x128xf32, #tpu.memory_space<any>>
    %c1_i32_376 = arith.constant 1 : i32
    %c0_i32_377 = arith.constant 0 : i32
    %447 = tpu.memref_slice %arg6[%c6_i32_372, %c1_i32_376, %c0_i32_377] : memref<8x8x128xf32, #tpu.memory_space<vmem>> -> memref<1x1x128xf32, #tpu.memory_space<vmem>>
    %448 = tpu.memref_squeeze %447 : memref<1x1x128xf32, #tpu.memory_space<vmem>> -> memref<1x128xf32, #tpu.memory_space<vmem>>
    %449 = tpu.memref_slice %arg7[%c1_i32_373, %c2_i32_374] : memref<2x4x!tpu.dma_semaphore, #tpu.memory_space<semaphore_mem>> -> memref<1x1x!tpu.dma_semaphore, #tpu.memory_space<semaphore_mem>>
    %450 = tpu.memref_squeeze %449 : memref<1x1x!tpu.dma_semaphore, #tpu.memory_space<semaphore_mem>> -> memref<!tpu.dma_semaphore, #tpu.memory_space<semaphore_mem>>
    tpu.enqueue_dma source(%446 : memref<1x128xf32, #tpu.memory_space<any>>) target(%448 : memref<1x128xf32, #tpu.memory_space<vmem>>) target_semaphore(%450 : memref<!tpu.dma_semaphore, #tpu.memory_space<semaphore_mem>>)
    %c40_i32_378 = arith.constant 40 : i32
    %451 = arith.addi %0, %c40_i32_378 : i32
    %c2_i32_379 = arith.constant 2 : i32
    %452 = arith.addi %451, %c2_i32_379 : i32
    %453 = arith.index_cast %452 : i32 to index
    %454 = memref.load %arg1[%453] : memref<128xi32, #tpu.memory_space<smem>>
    %c6_i32_380 = arith.constant 6 : i32
    %c1_i32_381 = arith.constant 1 : i32
    %c2_i32_382 = arith.constant 2 : i32
    %c0_i32_383 = arith.constant 0 : i32
    %455 = tpu.memref_slice %arg4[%454, %c0_i32_383] : memref<512x128xf32, #tpu.memory_space<any>> -> memref<1x128xf32, #tpu.memory_space<any>>
    %c2_i32_384 = arith.constant 2 : i32
    %c0_i32_385 = arith.constant 0 : i32
    %456 = tpu.memref_slice %arg6[%c6_i32_380, %c2_i32_384, %c0_i32_385] : memref<8x8x128xf32, #tpu.memory_space<vmem>> -> memref<1x1x128xf32, #tpu.memory_space<vmem>>
    %457 = tpu.memref_squeeze %456 : memref<1x1x128xf32, #tpu.memory_space<vmem>> -> memref<1x128xf32, #tpu.memory_space<vmem>>
    %458 = tpu.memref_slice %arg7[%c1_i32_381, %c2_i32_382] : memref<2x4x!tpu.dma_semaphore, #tpu.memory_space<semaphore_mem>> -> memref<1x1x!tpu.dma_semaphore, #tpu.memory_space<semaphore_mem>>
    %459 = tpu.memref_squeeze %458 : memref<1x1x!tpu.dma_semaphore, #tpu.memory_space<semaphore_mem>> -> memref<!tpu.dma_semaphore, #tpu.memory_space<semaphore_mem>>
    tpu.enqueue_dma source(%455 : memref<1x128xf32, #tpu.memory_space<any>>) target(%457 : memref<1x128xf32, #tpu.memory_space<vmem>>) target_semaphore(%459 : memref<!tpu.dma_semaphore, #tpu.memory_space<semaphore_mem>>)
    %c44_i32_386 = arith.constant 44 : i32
    %460 = arith.addi %0, %c44_i32_386 : i32
    %c2_i32_387 = arith.constant 2 : i32
    %461 = arith.addi %460, %c2_i32_387 : i32
    %462 = arith.index_cast %461 : i32 to index
    %463 = memref.load %arg1[%462] : memref<128xi32, #tpu.memory_space<smem>>
    %c6_i32_388 = arith.constant 6 : i32
    %c1_i32_389 = arith.constant 1 : i32
    %c2_i32_390 = arith.constant 2 : i32
    %c0_i32_391 = arith.constant 0 : i32
    %464 = tpu.memref_slice %arg4[%463, %c0_i32_391] : memref<512x128xf32, #tpu.memory_space<any>> -> memref<1x128xf32, #tpu.memory_space<any>>
    %c3_i32_392 = arith.constant 3 : i32
    %c0_i32_393 = arith.constant 0 : i32
    %465 = tpu.memref_slice %arg6[%c6_i32_388, %c3_i32_392, %c0_i32_393] : memref<8x8x128xf32, #tpu.memory_space<vmem>> -> memref<1x1x128xf32, #tpu.memory_space<vmem>>
    %466 = tpu.memref_squeeze %465 : memref<1x1x128xf32, #tpu.memory_space<vmem>> -> memref<1x128xf32, #tpu.memory_space<vmem>>
    %467 = tpu.memref_slice %arg7[%c1_i32_389, %c2_i32_390] : memref<2x4x!tpu.dma_semaphore, #tpu.memory_space<semaphore_mem>> -> memref<1x1x!tpu.dma_semaphore, #tpu.memory_space<semaphore_mem>>
    %468 = tpu.memref_squeeze %467 : memref<1x1x!tpu.dma_semaphore, #tpu.memory_space<semaphore_mem>> -> memref<!tpu.dma_semaphore, #tpu.memory_space<semaphore_mem>>
    tpu.enqueue_dma source(%464 : memref<1x128xf32, #tpu.memory_space<any>>) target(%466 : memref<1x128xf32, #tpu.memory_space<vmem>>) target_semaphore(%468 : memref<!tpu.dma_semaphore, #tpu.memory_space<semaphore_mem>>)
    %c48_i32_394 = arith.constant 48 : i32
    %469 = arith.addi %0, %c48_i32_394 : i32
    %c2_i32_395 = arith.constant 2 : i32
    %470 = arith.addi %469, %c2_i32_395 : i32
    %471 = arith.index_cast %470 : i32 to index
    %472 = memref.load %arg1[%471] : memref<128xi32, #tpu.memory_space<smem>>
    %c6_i32_396 = arith.constant 6 : i32
    %c1_i32_397 = arith.constant 1 : i32
    %c2_i32_398 = arith.constant 2 : i32
    %c0_i32_399 = arith.constant 0 : i32
    %473 = tpu.memref_slice %arg4[%472, %c0_i32_399] : memref<512x128xf32, #tpu.memory_space<any>> -> memref<1x128xf32, #tpu.memory_space<any>>
    %c4_i32_400 = arith.constant 4 : i32
    %c0_i32_401 = arith.constant 0 : i32
    %474 = tpu.memref_slice %arg6[%c6_i32_396, %c4_i32_400, %c0_i32_401] : memref<8x8x128xf32, #tpu.memory_space<vmem>> -> memref<1x1x128xf32, #tpu.memory_space<vmem>>
    %475 = tpu.memref_squeeze %474 : memref<1x1x128xf32, #tpu.memory_space<vmem>> -> memref<1x128xf32, #tpu.memory_space<vmem>>
    %476 = tpu.memref_slice %arg7[%c1_i32_397, %c2_i32_398] : memref<2x4x!tpu.dma_semaphore, #tpu.memory_space<semaphore_mem>> -> memref<1x1x!tpu.dma_semaphore, #tpu.memory_space<semaphore_mem>>
    %477 = tpu.memref_squeeze %476 : memref<1x1x!tpu.dma_semaphore, #tpu.memory_space<semaphore_mem>> -> memref<!tpu.dma_semaphore, #tpu.memory_space<semaphore_mem>>
    tpu.enqueue_dma source(%473 : memref<1x128xf32, #tpu.memory_space<any>>) target(%475 : memref<1x128xf32, #tpu.memory_space<vmem>>) target_semaphore(%477 : memref<!tpu.dma_semaphore, #tpu.memory_space<semaphore_mem>>)
    %c52_i32_402 = arith.constant 52 : i32
    %478 = arith.addi %0, %c52_i32_402 : i32
    %c2_i32_403 = arith.constant 2 : i32
    %479 = arith.addi %478, %c2_i32_403 : i32
    %480 = arith.index_cast %479 : i32 to index
    %481 = memref.load %arg1[%480] : memref<128xi32, #tpu.memory_space<smem>>
    %c6_i32_404 = arith.constant 6 : i32
    %c1_i32_405 = arith.constant 1 : i32
    %c2_i32_406 = arith.constant 2 : i32
    %c0_i32_407 = arith.constant 0 : i32
    %482 = tpu.memref_slice %arg4[%481, %c0_i32_407] : memref<512x128xf32, #tpu.memory_space<any>> -> memref<1x128xf32, #tpu.memory_space<any>>
    %c5_i32_408 = arith.constant 5 : i32
    %c0_i32_409 = arith.constant 0 : i32
    %483 = tpu.memref_slice %arg6[%c6_i32_404, %c5_i32_408, %c0_i32_409] : memref<8x8x128xf32, #tpu.memory_space<vmem>> -> memref<1x1x128xf32, #tpu.memory_space<vmem>>
    %484 = tpu.memref_squeeze %483 : memref<1x1x128xf32, #tpu.memory_space<vmem>> -> memref<1x128xf32, #tpu.memory_space<vmem>>
    %485 = tpu.memref_slice %arg7[%c1_i32_405, %c2_i32_406] : memref<2x4x!tpu.dma_semaphore, #tpu.memory_space<semaphore_mem>> -> memref<1x1x!tpu.dma_semaphore, #tpu.memory_space<semaphore_mem>>
    %486 = tpu.memref_squeeze %485 : memref<1x1x!tpu.dma_semaphore, #tpu.memory_space<semaphore_mem>> -> memref<!tpu.dma_semaphore, #tpu.memory_space<semaphore_mem>>
    tpu.enqueue_dma source(%482 : memref<1x128xf32, #tpu.memory_space<any>>) target(%484 : memref<1x128xf32, #tpu.memory_space<vmem>>) target_semaphore(%486 : memref<!tpu.dma_semaphore, #tpu.memory_space<semaphore_mem>>)
    %c56_i32_410 = arith.constant 56 : i32
    %487 = arith.addi %0, %c56_i32_410 : i32
    %c2_i32_411 = arith.constant 2 : i32
    %488 = arith.addi %487, %c2_i32_411 : i32
    %489 = arith.index_cast %488 : i32 to index
    %490 = memref.load %arg1[%489] : memref<128xi32, #tpu.memory_space<smem>>
    %c6_i32_412 = arith.constant 6 : i32
    %c1_i32_413 = arith.constant 1 : i32
    %c2_i32_414 = arith.constant 2 : i32
    %c0_i32_415 = arith.constant 0 : i32
    %491 = tpu.memref_slice %arg4[%490, %c0_i32_415] : memref<512x128xf32, #tpu.memory_space<any>> -> memref<1x128xf32, #tpu.memory_space<any>>
    %c6_i32_416 = arith.constant 6 : i32
    %c0_i32_417 = arith.constant 0 : i32
    %492 = tpu.memref_slice %arg6[%c6_i32_412, %c6_i32_416, %c0_i32_417] : memref<8x8x128xf32, #tpu.memory_space<vmem>> -> memref<1x1x128xf32, #tpu.memory_space<vmem>>
    %493 = tpu.memref_squeeze %492 : memref<1x1x128xf32, #tpu.memory_space<vmem>> -> memref<1x128xf32, #tpu.memory_space<vmem>>
    %494 = tpu.memref_slice %arg7[%c1_i32_413, %c2_i32_414] : memref<2x4x!tpu.dma_semaphore, #tpu.memory_space<semaphore_mem>> -> memref<1x1x!tpu.dma_semaphore, #tpu.memory_space<semaphore_mem>>
    %495 = tpu.memref_squeeze %494 : memref<1x1x!tpu.dma_semaphore, #tpu.memory_space<semaphore_mem>> -> memref<!tpu.dma_semaphore, #tpu.memory_space<semaphore_mem>>
    tpu.enqueue_dma source(%491 : memref<1x128xf32, #tpu.memory_space<any>>) target(%493 : memref<1x128xf32, #tpu.memory_space<vmem>>) target_semaphore(%495 : memref<!tpu.dma_semaphore, #tpu.memory_space<semaphore_mem>>)
    %c60_i32_418 = arith.constant 60 : i32
    %496 = arith.addi %0, %c60_i32_418 : i32
    %c2_i32_419 = arith.constant 2 : i32
    %497 = arith.addi %496, %c2_i32_419 : i32
    %498 = arith.index_cast %497 : i32 to index
    %499 = memref.load %arg1[%498] : memref<128xi32, #tpu.memory_space<smem>>
    %c6_i32_420 = arith.constant 6 : i32
    %c1_i32_421 = arith.constant 1 : i32
    %c2_i32_422 = arith.constant 2 : i32
    %c0_i32_423 = arith.constant 0 : i32
    %500 = tpu.memref_slice %arg4[%499, %c0_i32_423] : memref<512x128xf32, #tpu.memory_space<any>> -> memref<1x128xf32, #tpu.memory_space<any>>
    %c7_i32_424 = arith.constant 7 : i32
    %c0_i32_425 = arith.constant 0 : i32
    %501 = tpu.memref_slice %arg6[%c6_i32_420, %c7_i32_424, %c0_i32_425] : memref<8x8x128xf32, #tpu.memory_space<vmem>> -> memref<1x1x128xf32, #tpu.memory_space<vmem>>
    %502 = tpu.memref_squeeze %501 : memref<1x1x128xf32, #tpu.memory_space<vmem>> -> memref<1x128xf32, #tpu.memory_space<vmem>>
    %503 = tpu.memref_slice %arg7[%c1_i32_421, %c2_i32_422] : memref<2x4x!tpu.dma_semaphore, #tpu.memory_space<semaphore_mem>> -> memref<1x1x!tpu.dma_semaphore, #tpu.memory_space<semaphore_mem>>
    %504 = tpu.memref_squeeze %503 : memref<1x1x!tpu.dma_semaphore, #tpu.memory_space<semaphore_mem>> -> memref<!tpu.dma_semaphore, #tpu.memory_space<semaphore_mem>>
    tpu.enqueue_dma source(%500 : memref<1x128xf32, #tpu.memory_space<any>>) target(%502 : memref<1x128xf32, #tpu.memory_space<vmem>>) target_semaphore(%504 : memref<!tpu.dma_semaphore, #tpu.memory_space<semaphore_mem>>)
    %c32_i32_426 = arith.constant 32 : i32
    %505 = arith.addi %0, %c32_i32_426 : i32
    %c3_i32_427 = arith.constant 3 : i32
    %506 = arith.addi %505, %c3_i32_427 : i32
    %507 = arith.index_cast %506 : i32 to index
    %508 = memref.load %arg1[%507] : memref<128xi32, #tpu.memory_space<smem>>
    %c7_i32_428 = arith.constant 7 : i32
    %c1_i32_429 = arith.constant 1 : i32
    %c3_i32_430 = arith.constant 3 : i32
    %c0_i32_431 = arith.constant 0 : i32
    %509 = tpu.memref_slice %arg4[%508, %c0_i32_431] : memref<512x128xf32, #tpu.memory_space<any>> -> memref<1x128xf32, #tpu.memory_space<any>>
    %c0_i32_432 = arith.constant 0 : i32
    %c0_i32_433 = arith.constant 0 : i32
    %510 = tpu.memref_slice %arg6[%c7_i32_428, %c0_i32_432, %c0_i32_433] : memref<8x8x128xf32, #tpu.memory_space<vmem>> -> memref<1x1x128xf32, #tpu.memory_space<vmem>>
    %511 = tpu.memref_squeeze %510 : memref<1x1x128xf32, #tpu.memory_space<vmem>> -> memref<1x128xf32, #tpu.memory_space<vmem>>
    %512 = tpu.memref_slice %arg7[%c1_i32_429, %c3_i32_430] : memref<2x4x!tpu.dma_semaphore, #tpu.memory_space<semaphore_mem>> -> memref<1x1x!tpu.dma_semaphore, #tpu.memory_space<semaphore_mem>>
    %513 = tpu.memref_squeeze %512 : memref<1x1x!tpu.dma_semaphore, #tpu.memory_space<semaphore_mem>> -> memref<!tpu.dma_semaphore, #tpu.memory_space<semaphore_mem>>
    tpu.enqueue_dma source(%509 : memref<1x128xf32, #tpu.memory_space<any>>) target(%511 : memref<1x128xf32, #tpu.memory_space<vmem>>) target_semaphore(%513 : memref<!tpu.dma_semaphore, #tpu.memory_space<semaphore_mem>>)
    %c36_i32_434 = arith.constant 36 : i32
    %514 = arith.addi %0, %c36_i32_434 : i32
    %c3_i32_435 = arith.constant 3 : i32
    %515 = arith.addi %514, %c3_i32_435 : i32
    %516 = arith.index_cast %515 : i32 to index
    %517 = memref.load %arg1[%516] : memref<128xi32, #tpu.memory_space<smem>>
    %c7_i32_436 = arith.constant 7 : i32
    %c1_i32_437 = arith.constant 1 : i32
    %c3_i32_438 = arith.constant 3 : i32
    %c0_i32_439 = arith.constant 0 : i32
    %518 = tpu.memref_slice %arg4[%517, %c0_i32_439] : memref<512x128xf32, #tpu.memory_space<any>> -> memref<1x128xf32, #tpu.memory_space<any>>
    %c1_i32_440 = arith.constant 1 : i32
    %c0_i32_441 = arith.constant 0 : i32
    %519 = tpu.memref_slice %arg6[%c7_i32_436, %c1_i32_440, %c0_i32_441] : memref<8x8x128xf32, #tpu.memory_space<vmem>> -> memref<1x1x128xf32, #tpu.memory_space<vmem>>
    %520 = tpu.memref_squeeze %519 : memref<1x1x128xf32, #tpu.memory_space<vmem>> -> memref<1x128xf32, #tpu.memory_space<vmem>>
    %521 = tpu.memref_slice %arg7[%c1_i32_437, %c3_i32_438] : memref<2x4x!tpu.dma_semaphore, #tpu.memory_space<semaphore_mem>> -> memref<1x1x!tpu.dma_semaphore, #tpu.memory_space<semaphore_mem>>
    %522 = tpu.memref_squeeze %521 : memref<1x1x!tpu.dma_semaphore, #tpu.memory_space<semaphore_mem>> -> memref<!tpu.dma_semaphore, #tpu.memory_space<semaphore_mem>>
    tpu.enqueue_dma source(%518 : memref<1x128xf32, #tpu.memory_space<any>>) target(%520 : memref<1x128xf32, #tpu.memory_space<vmem>>) target_semaphore(%522 : memref<!tpu.dma_semaphore, #tpu.memory_space<semaphore_mem>>)
    %c40_i32_442 = arith.constant 40 : i32
    %523 = arith.addi %0, %c40_i32_442 : i32
    %c3_i32_443 = arith.constant 3 : i32
    %524 = arith.addi %523, %c3_i32_443 : i32
    %525 = arith.index_cast %524 : i32 to index
    %526 = memref.load %arg1[%525] : memref<128xi32, #tpu.memory_space<smem>>
    %c7_i32_444 = arith.constant 7 : i32
    %c1_i32_445 = arith.constant 1 : i32
    %c3_i32_446 = arith.constant 3 : i32
    %c0_i32_447 = arith.constant 0 : i32
    %527 = tpu.memref_slice %arg4[%526, %c0_i32_447] : memref<512x128xf32, #tpu.memory_space<any>> -> memref<1x128xf32, #tpu.memory_space<any>>
    %c2_i32_448 = arith.constant 2 : i32
    %c0_i32_449 = arith.constant 0 : i32
    %528 = tpu.memref_slice %arg6[%c7_i32_444, %c2_i32_448, %c0_i32_449] : memref<8x8x128xf32, #tpu.memory_space<vmem>> -> memref<1x1x128xf32, #tpu.memory_space<vmem>>
    %529 = tpu.memref_squeeze %528 : memref<1x1x128xf32, #tpu.memory_space<vmem>> -> memref<1x128xf32, #tpu.memory_space<vmem>>
    %530 = tpu.memref_slice %arg7[%c1_i32_445, %c3_i32_446] : memref<2x4x!tpu.dma_semaphore, #tpu.memory_space<semaphore_mem>> -> memref<1x1x!tpu.dma_semaphore, #tpu.memory_space<semaphore_mem>>
    %531 = tpu.memref_squeeze %530 : memref<1x1x!tpu.dma_semaphore, #tpu.memory_space<semaphore_mem>> -> memref<!tpu.dma_semaphore, #tpu.memory_space<semaphore_mem>>
    tpu.enqueue_dma source(%527 : memref<1x128xf32, #tpu.memory_space<any>>) target(%529 : memref<1x128xf32, #tpu.memory_space<vmem>>) target_semaphore(%531 : memref<!tpu.dma_semaphore, #tpu.memory_space<semaphore_mem>>)
    %c44_i32_450 = arith.constant 44 : i32
    %532 = arith.addi %0, %c44_i32_450 : i32
    %c3_i32_451 = arith.constant 3 : i32
    %533 = arith.addi %532, %c3_i32_451 : i32
    %534 = arith.index_cast %533 : i32 to index
    %535 = memref.load %arg1[%534] : memref<128xi32, #tpu.memory_space<smem>>
    %c7_i32_452 = arith.constant 7 : i32
    %c1_i32_453 = arith.constant 1 : i32
    %c3_i32_454 = arith.constant 3 : i32
    %c0_i32_455 = arith.constant 0 : i32
    %536 = tpu.memref_slice %arg4[%535, %c0_i32_455] : memref<512x128xf32, #tpu.memory_space<any>> -> memref<1x128xf32, #tpu.memory_space<any>>
    %c3_i32_456 = arith.constant 3 : i32
    %c0_i32_457 = arith.constant 0 : i32
    %537 = tpu.memref_slice %arg6[%c7_i32_452, %c3_i32_456, %c0_i32_457] : memref<8x8x128xf32, #tpu.memory_space<vmem>> -> memref<1x1x128xf32, #tpu.memory_space<vmem>>
    %538 = tpu.memref_squeeze %537 : memref<1x1x128xf32, #tpu.memory_space<vmem>> -> memref<1x128xf32, #tpu.memory_space<vmem>>
    %539 = tpu.memref_slice %arg7[%c1_i32_453, %c3_i32_454] : memref<2x4x!tpu.dma_semaphore, #tpu.memory_space<semaphore_mem>> -> memref<1x1x!tpu.dma_semaphore, #tpu.memory_space<semaphore_mem>>
    %540 = tpu.memref_squeeze %539 : memref<1x1x!tpu.dma_semaphore, #tpu.memory_space<semaphore_mem>> -> memref<!tpu.dma_semaphore, #tpu.memory_space<semaphore_mem>>
    tpu.enqueue_dma source(%536 : memref<1x128xf32, #tpu.memory_space<any>>) target(%538 : memref<1x128xf32, #tpu.memory_space<vmem>>) target_semaphore(%540 : memref<!tpu.dma_semaphore, #tpu.memory_space<semaphore_mem>>)
    %c48_i32_458 = arith.constant 48 : i32
    %541 = arith.addi %0, %c48_i32_458 : i32
    %c3_i32_459 = arith.constant 3 : i32
    %542 = arith.addi %541, %c3_i32_459 : i32
    %543 = arith.index_cast %542 : i32 to index
    %544 = memref.load %arg1[%543] : memref<128xi32, #tpu.memory_space<smem>>
    %c7_i32_460 = arith.constant 7 : i32
    %c1_i32_461 = arith.constant 1 : i32
    %c3_i32_462 = arith.constant 3 : i32
    %c0_i32_463 = arith.constant 0 : i32
    %545 = tpu.memref_slice %arg4[%544, %c0_i32_463] : memref<512x128xf32, #tpu.memory_space<any>> -> memref<1x128xf32, #tpu.memory_space<any>>
    %c4_i32_464 = arith.constant 4 : i32
    %c0_i32_465 = arith.constant 0 : i32
    %546 = tpu.memref_slice %arg6[%c7_i32_460, %c4_i32_464, %c0_i32_465] : memref<8x8x128xf32, #tpu.memory_space<vmem>> -> memref<1x1x128xf32, #tpu.memory_space<vmem>>
    %547 = tpu.memref_squeeze %546 : memref<1x1x128xf32, #tpu.memory_space<vmem>> -> memref<1x128xf32, #tpu.memory_space<vmem>>
    %548 = tpu.memref_slice %arg7[%c1_i32_461, %c3_i32_462] : memref<2x4x!tpu.dma_semaphore, #tpu.memory_space<semaphore_mem>> -> memref<1x1x!tpu.dma_semaphore, #tpu.memory_space<semaphore_mem>>
    %549 = tpu.memref_squeeze %548 : memref<1x1x!tpu.dma_semaphore, #tpu.memory_space<semaphore_mem>> -> memref<!tpu.dma_semaphore, #tpu.memory_space<semaphore_mem>>
    tpu.enqueue_dma source(%545 : memref<1x128xf32, #tpu.memory_space<any>>) target(%547 : memref<1x128xf32, #tpu.memory_space<vmem>>) target_semaphore(%549 : memref<!tpu.dma_semaphore, #tpu.memory_space<semaphore_mem>>)
    %c52_i32_466 = arith.constant 52 : i32
    %550 = arith.addi %0, %c52_i32_466 : i32
    %c3_i32_467 = arith.constant 3 : i32
    %551 = arith.addi %550, %c3_i32_467 : i32
    %552 = arith.index_cast %551 : i32 to index
    %553 = memref.load %arg1[%552] : memref<128xi32, #tpu.memory_space<smem>>
    %c7_i32_468 = arith.constant 7 : i32
    %c1_i32_469 = arith.constant 1 : i32
    %c3_i32_470 = arith.constant 3 : i32
    %c0_i32_471 = arith.constant 0 : i32
    %554 = tpu.memref_slice %arg4[%553, %c0_i32_471] : memref<512x128xf32, #tpu.memory_space<any>> -> memref<1x128xf32, #tpu.memory_space<any>>
    %c5_i32_472 = arith.constant 5 : i32
    %c0_i32_473 = arith.constant 0 : i32
    %555 = tpu.memref_slice %arg6[%c7_i32_468, %c5_i32_472, %c0_i32_473] : memref<8x8x128xf32, #tpu.memory_space<vmem>> -> memref<1x1x128xf32, #tpu.memory_space<vmem>>
    %556 = tpu.memref_squeeze %555 : memref<1x1x128xf32, #tpu.memory_space<vmem>> -> memref<1x128xf32, #tpu.memory_space<vmem>>
    %557 = tpu.memref_slice %arg7[%c1_i32_469, %c3_i32_470] : memref<2x4x!tpu.dma_semaphore, #tpu.memory_space<semaphore_mem>> -> memref<1x1x!tpu.dma_semaphore, #tpu.memory_space<semaphore_mem>>
    %558 = tpu.memref_squeeze %557 : memref<1x1x!tpu.dma_semaphore, #tpu.memory_space<semaphore_mem>> -> memref<!tpu.dma_semaphore, #tpu.memory_space<semaphore_mem>>
    tpu.enqueue_dma source(%554 : memref<1x128xf32, #tpu.memory_space<any>>) target(%556 : memref<1x128xf32, #tpu.memory_space<vmem>>) target_semaphore(%558 : memref<!tpu.dma_semaphore, #tpu.memory_space<semaphore_mem>>)
    %c56_i32_474 = arith.constant 56 : i32
    %559 = arith.addi %0, %c56_i32_474 : i32
    %c3_i32_475 = arith.constant 3 : i32
    %560 = arith.addi %559, %c3_i32_475 : i32
    %561 = arith.index_cast %560 : i32 to index
    %562 = memref.load %arg1[%561] : memref<128xi32, #tpu.memory_space<smem>>
    %c7_i32_476 = arith.constant 7 : i32
    %c1_i32_477 = arith.constant 1 : i32
    %c3_i32_478 = arith.constant 3 : i32
    %c0_i32_479 = arith.constant 0 : i32
    %563 = tpu.memref_slice %arg4[%562, %c0_i32_479] : memref<512x128xf32, #tpu.memory_space<any>> -> memref<1x128xf32, #tpu.memory_space<any>>
    %c6_i32_480 = arith.constant 6 : i32
    %c0_i32_481 = arith.constant 0 : i32
    %564 = tpu.memref_slice %arg6[%c7_i32_476, %c6_i32_480, %c0_i32_481] : memref<8x8x128xf32, #tpu.memory_space<vmem>> -> memref<1x1x128xf32, #tpu.memory_space<vmem>>
    %565 = tpu.memref_squeeze %564 : memref<1x1x128xf32, #tpu.memory_space<vmem>> -> memref<1x128xf32, #tpu.memory_space<vmem>>
    %566 = tpu.memref_slice %arg7[%c1_i32_477, %c3_i32_478] : memref<2x4x!tpu.dma_semaphore, #tpu.memory_space<semaphore_mem>> -> memref<1x1x!tpu.dma_semaphore, #tpu.memory_space<semaphore_mem>>
    %567 = tpu.memref_squeeze %566 : memref<1x1x!tpu.dma_semaphore, #tpu.memory_space<semaphore_mem>> -> memref<!tpu.dma_semaphore, #tpu.memory_space<semaphore_mem>>
    tpu.enqueue_dma source(%563 : memref<1x128xf32, #tpu.memory_space<any>>) target(%565 : memref<1x128xf32, #tpu.memory_space<vmem>>) target_semaphore(%567 : memref<!tpu.dma_semaphore, #tpu.memory_space<semaphore_mem>>)
    %c60_i32_482 = arith.constant 60 : i32
    %568 = arith.addi %0, %c60_i32_482 : i32
    %c3_i32_483 = arith.constant 3 : i32
    %569 = arith.addi %568, %c3_i32_483 : i32
    %570 = arith.index_cast %569 : i32 to index
    %571 = memref.load %arg1[%570] : memref<128xi32, #tpu.memory_space<smem>>
    %c7_i32_484 = arith.constant 7 : i32
    %c1_i32_485 = arith.constant 1 : i32
    %c3_i32_486 = arith.constant 3 : i32
    %c0_i32_487 = arith.constant 0 : i32
    %572 = tpu.memref_slice %arg4[%571, %c0_i32_487] : memref<512x128xf32, #tpu.memory_space<any>> -> memref<1x128xf32, #tpu.memory_space<any>>
    %c7_i32_488 = arith.constant 7 : i32
    %c0_i32_489 = arith.constant 0 : i32
    %573 = tpu.memref_slice %arg6[%c7_i32_484, %c7_i32_488, %c0_i32_489] : memref<8x8x128xf32, #tpu.memory_space<vmem>> -> memref<1x1x128xf32, #tpu.memory_space<vmem>>
    %574 = tpu.memref_squeeze %573 : memref<1x1x128xf32, #tpu.memory_space<vmem>> -> memref<1x128xf32, #tpu.memory_space<vmem>>
    %575 = tpu.memref_slice %arg7[%c1_i32_485, %c3_i32_486] : memref<2x4x!tpu.dma_semaphore, #tpu.memory_space<semaphore_mem>> -> memref<1x1x!tpu.dma_semaphore, #tpu.memory_space<semaphore_mem>>
    %576 = tpu.memref_squeeze %575 : memref<1x1x!tpu.dma_semaphore, #tpu.memory_space<semaphore_mem>> -> memref<!tpu.dma_semaphore, #tpu.memory_space<semaphore_mem>>
    tpu.enqueue_dma source(%572 : memref<1x128xf32, #tpu.memory_space<any>>) target(%574 : memref<1x128xf32, #tpu.memory_space<vmem>>) target_semaphore(%576 : memref<!tpu.dma_semaphore, #tpu.memory_space<semaphore_mem>>)
    %c0_i32_490 = arith.constant 0 : i32
    %c0_i32_491 = arith.constant 0 : i32
    %c0_i32_492 = arith.constant 0 : i32
    %c0_i32_493 = arith.constant 0 : i32
    %577 = tpu.memref_slice %arg3[%4, %c0_i32_493] : memref<512x128xf32, #tpu.memory_space<any>> -> memref<1x128xf32, #tpu.memory_space<any>>
    %c0_i32_494 = arith.constant 0 : i32
    %c0_i32_495 = arith.constant 0 : i32
    %578 = tpu.memref_slice %arg6[%c0_i32_490, %c0_i32_494, %c0_i32_495] : memref<8x8x128xf32, #tpu.memory_space<vmem>> -> memref<1x1x128xf32, #tpu.memory_space<vmem>>
    %579 = tpu.memref_squeeze %578 : memref<1x1x128xf32, #tpu.memory_space<vmem>> -> memref<1x128xf32, #tpu.memory_space<vmem>>
    %580 = tpu.memref_slice %arg7[%c0_i32_491, %c0_i32_492] : memref<2x4x!tpu.dma_semaphore, #tpu.memory_space<semaphore_mem>> -> memref<1x1x!tpu.dma_semaphore, #tpu.memory_space<semaphore_mem>>
    %581 = tpu.memref_squeeze %580 : memref<1x1x!tpu.dma_semaphore, #tpu.memory_space<semaphore_mem>> -> memref<!tpu.dma_semaphore, #tpu.memory_space<semaphore_mem>>
    tpu.wait_dma2 semaphore(%581 : memref<!tpu.dma_semaphore, #tpu.memory_space<semaphore_mem>>) src(%577 : memref<1x128xf32, #tpu.memory_space<any>>) dst(%579 : memref<1x128xf32, #tpu.memory_space<vmem>>)
    %c0_i32_496 = arith.constant 0 : i32
    %c0_i32_497 = arith.constant 0 : i32
    %c0_i32_498 = arith.constant 0 : i32
    %c0_i32_499 = arith.constant 0 : i32
    %582 = tpu.memref_slice %arg3[%13, %c0_i32_499] : memref<512x128xf32, #tpu.memory_space<any>> -> memref<1x128xf32, #tpu.memory_space<any>>
    %c1_i32_500 = arith.constant 1 : i32
    %c0_i32_501 = arith.constant 0 : i32
    %583 = tpu.memref_slice %arg6[%c0_i32_496, %c1_i32_500, %c0_i32_501] : memref<8x8x128xf32, #tpu.memory_space<vmem>> -> memref<1x1x128xf32, #tpu.memory_space<vmem>>
    %584 = tpu.memref_squeeze %583 : memref<1x1x128xf32, #tpu.memory_space<vmem>> -> memref<1x128xf32, #tpu.memory_space<vmem>>
    %585 = tpu.memref_slice %arg7[%c0_i32_497, %c0_i32_498] : memref<2x4x!tpu.dma_semaphore, #tpu.memory_space<semaphore_mem>> -> memref<1x1x!tpu.dma_semaphore, #tpu.memory_space<semaphore_mem>>
    %586 = tpu.memref_squeeze %585 : memref<1x1x!tpu.dma_semaphore, #tpu.memory_space<semaphore_mem>> -> memref<!tpu.dma_semaphore, #tpu.memory_space<semaphore_mem>>
    tpu.wait_dma2 semaphore(%586 : memref<!tpu.dma_semaphore, #tpu.memory_space<semaphore_mem>>) src(%582 : memref<1x128xf32, #tpu.memory_space<any>>) dst(%584 : memref<1x128xf32, #tpu.memory_space<vmem>>)
    %c0_i32_502 = arith.constant 0 : i32
    %c0_i32_503 = arith.constant 0 : i32
    %c0_i32_504 = arith.constant 0 : i32
    %c0_i32_505 = arith.constant 0 : i32
    %587 = tpu.memref_slice %arg3[%22, %c0_i32_505] : memref<512x128xf32, #tpu.memory_space<any>> -> memref<1x128xf32, #tpu.memory_space<any>>
    %c2_i32_506 = arith.constant 2 : i32
    %c0_i32_507 = arith.constant 0 : i32
    %588 = tpu.memref_slice %arg6[%c0_i32_502, %c2_i32_506, %c0_i32_507] : memref<8x8x128xf32, #tpu.memory_space<vmem>> -> memref<1x1x128xf32, #tpu.memory_space<vmem>>
    %589 = tpu.memref_squeeze %588 : memref<1x1x128xf32, #tpu.memory_space<vmem>> -> memref<1x128xf32, #tpu.memory_space<vmem>>
    %590 = tpu.memref_slice %arg7[%c0_i32_503, %c0_i32_504] : memref<2x4x!tpu.dma_semaphore, #tpu.memory_space<semaphore_mem>> -> memref<1x1x!tpu.dma_semaphore, #tpu.memory_space<semaphore_mem>>
    %591 = tpu.memref_squeeze %590 : memref<1x1x!tpu.dma_semaphore, #tpu.memory_space<semaphore_mem>> -> memref<!tpu.dma_semaphore, #tpu.memory_space<semaphore_mem>>
    tpu.wait_dma2 semaphore(%591 : memref<!tpu.dma_semaphore, #tpu.memory_space<semaphore_mem>>) src(%587 : memref<1x128xf32, #tpu.memory_space<any>>) dst(%589 : memref<1x128xf32, #tpu.memory_space<vmem>>)
    %c0_i32_508 = arith.constant 0 : i32
    %c0_i32_509 = arith.constant 0 : i32
    %c0_i32_510 = arith.constant 0 : i32
    %c0_i32_511 = arith.constant 0 : i32
    %592 = tpu.memref_slice %arg3[%31, %c0_i32_511] : memref<512x128xf32, #tpu.memory_space<any>> -> memref<1x128xf32, #tpu.memory_space<any>>
    %c3_i32_512 = arith.constant 3 : i32
    %c0_i32_513 = arith.constant 0 : i32
    %593 = tpu.memref_slice %arg6[%c0_i32_508, %c3_i32_512, %c0_i32_513] : memref<8x8x128xf32, #tpu.memory_space<vmem>> -> memref<1x1x128xf32, #tpu.memory_space<vmem>>
    %594 = tpu.memref_squeeze %593 : memref<1x1x128xf32, #tpu.memory_space<vmem>> -> memref<1x128xf32, #tpu.memory_space<vmem>>
    %595 = tpu.memref_slice %arg7[%c0_i32_509, %c0_i32_510] : memref<2x4x!tpu.dma_semaphore, #tpu.memory_space<semaphore_mem>> -> memref<1x1x!tpu.dma_semaphore, #tpu.memory_space<semaphore_mem>>
    %596 = tpu.memref_squeeze %595 : memref<1x1x!tpu.dma_semaphore, #tpu.memory_space<semaphore_mem>> -> memref<!tpu.dma_semaphore, #tpu.memory_space<semaphore_mem>>
    tpu.wait_dma2 semaphore(%596 : memref<!tpu.dma_semaphore, #tpu.memory_space<semaphore_mem>>) src(%592 : memref<1x128xf32, #tpu.memory_space<any>>) dst(%594 : memref<1x128xf32, #tpu.memory_space<vmem>>)
    %c0_i32_514 = arith.constant 0 : i32
    %c0_i32_515 = arith.constant 0 : i32
    %c0_i32_516 = arith.constant 0 : i32
    %c0_i32_517 = arith.constant 0 : i32
    %597 = tpu.memref_slice %arg3[%40, %c0_i32_517] : memref<512x128xf32, #tpu.memory_space<any>> -> memref<1x128xf32, #tpu.memory_space<any>>
    %c4_i32_518 = arith.constant 4 : i32
    %c0_i32_519 = arith.constant 0 : i32
    %598 = tpu.memref_slice %arg6[%c0_i32_514, %c4_i32_518, %c0_i32_519] : memref<8x8x128xf32, #tpu.memory_space<vmem>> -> memref<1x1x128xf32, #tpu.memory_space<vmem>>
    %599 = tpu.memref_squeeze %598 : memref<1x1x128xf32, #tpu.memory_space<vmem>> -> memref<1x128xf32, #tpu.memory_space<vmem>>
    %600 = tpu.memref_slice %arg7[%c0_i32_515, %c0_i32_516] : memref<2x4x!tpu.dma_semaphore, #tpu.memory_space<semaphore_mem>> -> memref<1x1x!tpu.dma_semaphore, #tpu.memory_space<semaphore_mem>>
    %601 = tpu.memref_squeeze %600 : memref<1x1x!tpu.dma_semaphore, #tpu.memory_space<semaphore_mem>> -> memref<!tpu.dma_semaphore, #tpu.memory_space<semaphore_mem>>
    tpu.wait_dma2 semaphore(%601 : memref<!tpu.dma_semaphore, #tpu.memory_space<semaphore_mem>>) src(%597 : memref<1x128xf32, #tpu.memory_space<any>>) dst(%599 : memref<1x128xf32, #tpu.memory_space<vmem>>)
    %c0_i32_520 = arith.constant 0 : i32
    %c0_i32_521 = arith.constant 0 : i32
    %c0_i32_522 = arith.constant 0 : i32
    %c0_i32_523 = arith.constant 0 : i32
    %602 = tpu.memref_slice %arg3[%49, %c0_i32_523] : memref<512x128xf32, #tpu.memory_space<any>> -> memref<1x128xf32, #tpu.memory_space<any>>
    %c5_i32_524 = arith.constant 5 : i32
    %c0_i32_525 = arith.constant 0 : i32
    %603 = tpu.memref_slice %arg6[%c0_i32_520, %c5_i32_524, %c0_i32_525] : memref<8x8x128xf32, #tpu.memory_space<vmem>> -> memref<1x1x128xf32, #tpu.memory_space<vmem>>
    %604 = tpu.memref_squeeze %603 : memref<1x1x128xf32, #tpu.memory_space<vmem>> -> memref<1x128xf32, #tpu.memory_space<vmem>>
    %605 = tpu.memref_slice %arg7[%c0_i32_521, %c0_i32_522] : memref<2x4x!tpu.dma_semaphore, #tpu.memory_space<semaphore_mem>> -> memref<1x1x!tpu.dma_semaphore, #tpu.memory_space<semaphore_mem>>
    %606 = tpu.memref_squeeze %605 : memref<1x1x!tpu.dma_semaphore, #tpu.memory_space<semaphore_mem>> -> memref<!tpu.dma_semaphore, #tpu.memory_space<semaphore_mem>>
    tpu.wait_dma2 semaphore(%606 : memref<!tpu.dma_semaphore, #tpu.memory_space<semaphore_mem>>) src(%602 : memref<1x128xf32, #tpu.memory_space<any>>) dst(%604 : memref<1x128xf32, #tpu.memory_space<vmem>>)
    %c0_i32_526 = arith.constant 0 : i32
    %c0_i32_527 = arith.constant 0 : i32
    %c0_i32_528 = arith.constant 0 : i32
    %c0_i32_529 = arith.constant 0 : i32
    %607 = tpu.memref_slice %arg3[%58, %c0_i32_529] : memref<512x128xf32, #tpu.memory_space<any>> -> memref<1x128xf32, #tpu.memory_space<any>>
    %c6_i32_530 = arith.constant 6 : i32
    %c0_i32_531 = arith.constant 0 : i32
    %608 = tpu.memref_slice %arg6[%c0_i32_526, %c6_i32_530, %c0_i32_531] : memref<8x8x128xf32, #tpu.memory_space<vmem>> -> memref<1x1x128xf32, #tpu.memory_space<vmem>>
    %609 = tpu.memref_squeeze %608 : memref<1x1x128xf32, #tpu.memory_space<vmem>> -> memref<1x128xf32, #tpu.memory_space<vmem>>
    %610 = tpu.memref_slice %arg7[%c0_i32_527, %c0_i32_528] : memref<2x4x!tpu.dma_semaphore, #tpu.memory_space<semaphore_mem>> -> memref<1x1x!tpu.dma_semaphore, #tpu.memory_space<semaphore_mem>>
    %611 = tpu.memref_squeeze %610 : memref<1x1x!tpu.dma_semaphore, #tpu.memory_space<semaphore_mem>> -> memref<!tpu.dma_semaphore, #tpu.memory_space<semaphore_mem>>
    tpu.wait_dma2 semaphore(%611 : memref<!tpu.dma_semaphore, #tpu.memory_space<semaphore_mem>>) src(%607 : memref<1x128xf32, #tpu.memory_space<any>>) dst(%609 : memref<1x128xf32, #tpu.memory_space<vmem>>)
    %c0_i32_532 = arith.constant 0 : i32
    %c0_i32_533 = arith.constant 0 : i32
    %c0_i32_534 = arith.constant 0 : i32
    %c0_i32_535 = arith.constant 0 : i32
    %612 = tpu.memref_slice %arg3[%67, %c0_i32_535] : memref<512x128xf32, #tpu.memory_space<any>> -> memref<1x128xf32, #tpu.memory_space<any>>
    %c7_i32_536 = arith.constant 7 : i32
    %c0_i32_537 = arith.constant 0 : i32
    %613 = tpu.memref_slice %arg6[%c0_i32_532, %c7_i32_536, %c0_i32_537] : memref<8x8x128xf32, #tpu.memory_space<vmem>> -> memref<1x1x128xf32, #tpu.memory_space<vmem>>
    %614 = tpu.memref_squeeze %613 : memref<1x1x128xf32, #tpu.memory_space<vmem>> -> memref<1x128xf32, #tpu.memory_space<vmem>>
    %615 = tpu.memref_slice %arg7[%c0_i32_533, %c0_i32_534] : memref<2x4x!tpu.dma_semaphore, #tpu.memory_space<semaphore_mem>> -> memref<1x1x!tpu.dma_semaphore, #tpu.memory_space<semaphore_mem>>
    %616 = tpu.memref_squeeze %615 : memref<1x1x!tpu.dma_semaphore, #tpu.memory_space<semaphore_mem>> -> memref<!tpu.dma_semaphore, #tpu.memory_space<semaphore_mem>>
    tpu.wait_dma2 semaphore(%616 : memref<!tpu.dma_semaphore, #tpu.memory_space<semaphore_mem>>) src(%612 : memref<1x128xf32, #tpu.memory_space<any>>) dst(%614 : memref<1x128xf32, #tpu.memory_space<vmem>>)
    %c1_i32_538 = arith.constant 1 : i32
    %c0_i32_539 = arith.constant 0 : i32
    %c1_i32_540 = arith.constant 1 : i32
    %c0_i32_541 = arith.constant 0 : i32
    %617 = tpu.memref_slice %arg3[%76, %c0_i32_541] : memref<512x128xf32, #tpu.memory_space<any>> -> memref<1x128xf32, #tpu.memory_space<any>>
    %c0_i32_542 = arith.constant 0 : i32
    %c0_i32_543 = arith.constant 0 : i32
    %618 = tpu.memref_slice %arg6[%c1_i32_538, %c0_i32_542, %c0_i32_543] : memref<8x8x128xf32, #tpu.memory_space<vmem>> -> memref<1x1x128xf32, #tpu.memory_space<vmem>>
    %619 = tpu.memref_squeeze %618 : memref<1x1x128xf32, #tpu.memory_space<vmem>> -> memref<1x128xf32, #tpu.memory_space<vmem>>
    %620 = tpu.memref_slice %arg7[%c0_i32_539, %c1_i32_540] : memref<2x4x!tpu.dma_semaphore, #tpu.memory_space<semaphore_mem>> -> memref<1x1x!tpu.dma_semaphore, #tpu.memory_space<semaphore_mem>>
    %621 = tpu.memref_squeeze %620 : memref<1x1x!tpu.dma_semaphore, #tpu.memory_space<semaphore_mem>> -> memref<!tpu.dma_semaphore, #tpu.memory_space<semaphore_mem>>
    tpu.wait_dma2 semaphore(%621 : memref<!tpu.dma_semaphore, #tpu.memory_space<semaphore_mem>>) src(%617 : memref<1x128xf32, #tpu.memory_space<any>>) dst(%619 : memref<1x128xf32, #tpu.memory_space<vmem>>)
    %c1_i32_544 = arith.constant 1 : i32
    %c0_i32_545 = arith.constant 0 : i32
    %c1_i32_546 = arith.constant 1 : i32
    %c0_i32_547 = arith.constant 0 : i32
    %622 = tpu.memref_slice %arg3[%85, %c0_i32_547] : memref<512x128xf32, #tpu.memory_space<any>> -> memref<1x128xf32, #tpu.memory_space<any>>
    %c1_i32_548 = arith.constant 1 : i32
    %c0_i32_549 = arith.constant 0 : i32
    %623 = tpu.memref_slice %arg6[%c1_i32_544, %c1_i32_548, %c0_i32_549] : memref<8x8x128xf32, #tpu.memory_space<vmem>> -> memref<1x1x128xf32, #tpu.memory_space<vmem>>
    %624 = tpu.memref_squeeze %623 : memref<1x1x128xf32, #tpu.memory_space<vmem>> -> memref<1x128xf32, #tpu.memory_space<vmem>>
    %625 = tpu.memref_slice %arg7[%c0_i32_545, %c1_i32_546] : memref<2x4x!tpu.dma_semaphore, #tpu.memory_space<semaphore_mem>> -> memref<1x1x!tpu.dma_semaphore, #tpu.memory_space<semaphore_mem>>
    %626 = tpu.memref_squeeze %625 : memref<1x1x!tpu.dma_semaphore, #tpu.memory_space<semaphore_mem>> -> memref<!tpu.dma_semaphore, #tpu.memory_space<semaphore_mem>>
    tpu.wait_dma2 semaphore(%626 : memref<!tpu.dma_semaphore, #tpu.memory_space<semaphore_mem>>) src(%622 : memref<1x128xf32, #tpu.memory_space<any>>) dst(%624 : memref<1x128xf32, #tpu.memory_space<vmem>>)
    %c1_i32_550 = arith.constant 1 : i32
    %c0_i32_551 = arith.constant 0 : i32
    %c1_i32_552 = arith.constant 1 : i32
    %c0_i32_553 = arith.constant 0 : i32
    %627 = tpu.memref_slice %arg3[%94, %c0_i32_553] : memref<512x128xf32, #tpu.memory_space<any>> -> memref<1x128xf32, #tpu.memory_space<any>>
    %c2_i32_554 = arith.constant 2 : i32
    %c0_i32_555 = arith.constant 0 : i32
    %628 = tpu.memref_slice %arg6[%c1_i32_550, %c2_i32_554, %c0_i32_555] : memref<8x8x128xf32, #tpu.memory_space<vmem>> -> memref<1x1x128xf32, #tpu.memory_space<vmem>>
    %629 = tpu.memref_squeeze %628 : memref<1x1x128xf32, #tpu.memory_space<vmem>> -> memref<1x128xf32, #tpu.memory_space<vmem>>
    %630 = tpu.memref_slice %arg7[%c0_i32_551, %c1_i32_552] : memref<2x4x!tpu.dma_semaphore, #tpu.memory_space<semaphore_mem>> -> memref<1x1x!tpu.dma_semaphore, #tpu.memory_space<semaphore_mem>>
    %631 = tpu.memref_squeeze %630 : memref<1x1x!tpu.dma_semaphore, #tpu.memory_space<semaphore_mem>> -> memref<!tpu.dma_semaphore, #tpu.memory_space<semaphore_mem>>
    tpu.wait_dma2 semaphore(%631 : memref<!tpu.dma_semaphore, #tpu.memory_space<semaphore_mem>>) src(%627 : memref<1x128xf32, #tpu.memory_space<any>>) dst(%629 : memref<1x128xf32, #tpu.memory_space<vmem>>)
    %c1_i32_556 = arith.constant 1 : i32
    %c0_i32_557 = arith.constant 0 : i32
    %c1_i32_558 = arith.constant 1 : i32
    %c0_i32_559 = arith.constant 0 : i32
    %632 = tpu.memref_slice %arg3[%103, %c0_i32_559] : memref<512x128xf32, #tpu.memory_space<any>> -> memref<1x128xf32, #tpu.memory_space<any>>
    %c3_i32_560 = arith.constant 3 : i32
    %c0_i32_561 = arith.constant 0 : i32
    %633 = tpu.memref_slice %arg6[%c1_i32_556, %c3_i32_560, %c0_i32_561] : memref<8x8x128xf32, #tpu.memory_space<vmem>> -> memref<1x1x128xf32, #tpu.memory_space<vmem>>
    %634 = tpu.memref_squeeze %633 : memref<1x1x128xf32, #tpu.memory_space<vmem>> -> memref<1x128xf32, #tpu.memory_space<vmem>>
    %635 = tpu.memref_slice %arg7[%c0_i32_557, %c1_i32_558] : memref<2x4x!tpu.dma_semaphore, #tpu.memory_space<semaphore_mem>> -> memref<1x1x!tpu.dma_semaphore, #tpu.memory_space<semaphore_mem>>
    %636 = tpu.memref_squeeze %635 : memref<1x1x!tpu.dma_semaphore, #tpu.memory_space<semaphore_mem>> -> memref<!tpu.dma_semaphore, #tpu.memory_space<semaphore_mem>>
    tpu.wait_dma2 semaphore(%636 : memref<!tpu.dma_semaphore, #tpu.memory_space<semaphore_mem>>) src(%632 : memref<1x128xf32, #tpu.memory_space<any>>) dst(%634 : memref<1x128xf32, #tpu.memory_space<vmem>>)
    %c1_i32_562 = arith.constant 1 : i32
    %c0_i32_563 = arith.constant 0 : i32
    %c1_i32_564 = arith.constant 1 : i32
    %c0_i32_565 = arith.constant 0 : i32
    %637 = tpu.memref_slice %arg3[%112, %c0_i32_565] : memref<512x128xf32, #tpu.memory_space<any>> -> memref<1x128xf32, #tpu.memory_space<any>>
    %c4_i32_566 = arith.constant 4 : i32
    %c0_i32_567 = arith.constant 0 : i32
    %638 = tpu.memref_slice %arg6[%c1_i32_562, %c4_i32_566, %c0_i32_567] : memref<8x8x128xf32, #tpu.memory_space<vmem>> -> memref<1x1x128xf32, #tpu.memory_space<vmem>>
    %639 = tpu.memref_squeeze %638 : memref<1x1x128xf32, #tpu.memory_space<vmem>> -> memref<1x128xf32, #tpu.memory_space<vmem>>
    %640 = tpu.memref_slice %arg7[%c0_i32_563, %c1_i32_564] : memref<2x4x!tpu.dma_semaphore, #tpu.memory_space<semaphore_mem>> -> memref<1x1x!tpu.dma_semaphore, #tpu.memory_space<semaphore_mem>>
    %641 = tpu.memref_squeeze %640 : memref<1x1x!tpu.dma_semaphore, #tpu.memory_space<semaphore_mem>> -> memref<!tpu.dma_semaphore, #tpu.memory_space<semaphore_mem>>
    tpu.wait_dma2 semaphore(%641 : memref<!tpu.dma_semaphore, #tpu.memory_space<semaphore_mem>>) src(%637 : memref<1x128xf32, #tpu.memory_space<any>>) dst(%639 : memref<1x128xf32, #tpu.memory_space<vmem>>)
    %c1_i32_568 = arith.constant 1 : i32
    %c0_i32_569 = arith.constant 0 : i32
    %c1_i32_570 = arith.constant 1 : i32
    %c0_i32_571 = arith.constant 0 : i32
    %642 = tpu.memref_slice %arg3[%121, %c0_i32_571] : memref<512x128xf32, #tpu.memory_space<any>> -> memref<1x128xf32, #tpu.memory_space<any>>
    %c5_i32_572 = arith.constant 5 : i32
    %c0_i32_573 = arith.constant 0 : i32
    %643 = tpu.memref_slice %arg6[%c1_i32_568, %c5_i32_572, %c0_i32_573] : memref<8x8x128xf32, #tpu.memory_space<vmem>> -> memref<1x1x128xf32, #tpu.memory_space<vmem>>
    %644 = tpu.memref_squeeze %643 : memref<1x1x128xf32, #tpu.memory_space<vmem>> -> memref<1x128xf32, #tpu.memory_space<vmem>>
    %645 = tpu.memref_slice %arg7[%c0_i32_569, %c1_i32_570] : memref<2x4x!tpu.dma_semaphore, #tpu.memory_space<semaphore_mem>> -> memref<1x1x!tpu.dma_semaphore, #tpu.memory_space<semaphore_mem>>
    %646 = tpu.memref_squeeze %645 : memref<1x1x!tpu.dma_semaphore, #tpu.memory_space<semaphore_mem>> -> memref<!tpu.dma_semaphore, #tpu.memory_space<semaphore_mem>>
    tpu.wait_dma2 semaphore(%646 : memref<!tpu.dma_semaphore, #tpu.memory_space<semaphore_mem>>) src(%642 : memref<1x128xf32, #tpu.memory_space<any>>) dst(%644 : memref<1x128xf32, #tpu.memory_space<vmem>>)
    %c1_i32_574 = arith.constant 1 : i32
    %c0_i32_575 = arith.constant 0 : i32
    %c1_i32_576 = arith.constant 1 : i32
    %c0_i32_577 = arith.constant 0 : i32
    %647 = tpu.memref_slice %arg3[%130, %c0_i32_577] : memref<512x128xf32, #tpu.memory_space<any>> -> memref<1x128xf32, #tpu.memory_space<any>>
    %c6_i32_578 = arith.constant 6 : i32
    %c0_i32_579 = arith.constant 0 : i32
    %648 = tpu.memref_slice %arg6[%c1_i32_574, %c6_i32_578, %c0_i32_579] : memref<8x8x128xf32, #tpu.memory_space<vmem>> -> memref<1x1x128xf32, #tpu.memory_space<vmem>>
    %649 = tpu.memref_squeeze %648 : memref<1x1x128xf32, #tpu.memory_space<vmem>> -> memref<1x128xf32, #tpu.memory_space<vmem>>
    %650 = tpu.memref_slice %arg7[%c0_i32_575, %c1_i32_576] : memref<2x4x!tpu.dma_semaphore, #tpu.memory_space<semaphore_mem>> -> memref<1x1x!tpu.dma_semaphore, #tpu.memory_space<semaphore_mem>>
    %651 = tpu.memref_squeeze %650 : memref<1x1x!tpu.dma_semaphore, #tpu.memory_space<semaphore_mem>> -> memref<!tpu.dma_semaphore, #tpu.memory_space<semaphore_mem>>
    tpu.wait_dma2 semaphore(%651 : memref<!tpu.dma_semaphore, #tpu.memory_space<semaphore_mem>>) src(%647 : memref<1x128xf32, #tpu.memory_space<any>>) dst(%649 : memref<1x128xf32, #tpu.memory_space<vmem>>)
    %c1_i32_580 = arith.constant 1 : i32
    %c0_i32_581 = arith.constant 0 : i32
    %c1_i32_582 = arith.constant 1 : i32
    %c0_i32_583 = arith.constant 0 : i32
    %652 = tpu.memref_slice %arg3[%139, %c0_i32_583] : memref<512x128xf32, #tpu.memory_space<any>> -> memref<1x128xf32, #tpu.memory_space<any>>
    %c7_i32_584 = arith.constant 7 : i32
    %c0_i32_585 = arith.constant 0 : i32
    %653 = tpu.memref_slice %arg6[%c1_i32_580, %c7_i32_584, %c0_i32_585] : memref<8x8x128xf32, #tpu.memory_space<vmem>> -> memref<1x1x128xf32, #tpu.memory_space<vmem>>
    %654 = tpu.memref_squeeze %653 : memref<1x1x128xf32, #tpu.memory_space<vmem>> -> memref<1x128xf32, #tpu.memory_space<vmem>>
    %655 = tpu.memref_slice %arg7[%c0_i32_581, %c1_i32_582] : memref<2x4x!tpu.dma_semaphore, #tpu.memory_space<semaphore_mem>> -> memref<1x1x!tpu.dma_semaphore, #tpu.memory_space<semaphore_mem>>
    %656 = tpu.memref_squeeze %655 : memref<1x1x!tpu.dma_semaphore, #tpu.memory_space<semaphore_mem>> -> memref<!tpu.dma_semaphore, #tpu.memory_space<semaphore_mem>>
    tpu.wait_dma2 semaphore(%656 : memref<!tpu.dma_semaphore, #tpu.memory_space<semaphore_mem>>) src(%652 : memref<1x128xf32, #tpu.memory_space<any>>) dst(%654 : memref<1x128xf32, #tpu.memory_space<vmem>>)
    %c2_i32_586 = arith.constant 2 : i32
    %c0_i32_587 = arith.constant 0 : i32
    %c2_i32_588 = arith.constant 2 : i32
    %c0_i32_589 = arith.constant 0 : i32
    %657 = tpu.memref_slice %arg3[%148, %c0_i32_589] : memref<512x128xf32, #tpu.memory_space<any>> -> memref<1x128xf32, #tpu.memory_space<any>>
    %c0_i32_590 = arith.constant 0 : i32
    %c0_i32_591 = arith.constant 0 : i32
    %658 = tpu.memref_slice %arg6[%c2_i32_586, %c0_i32_590, %c0_i32_591] : memref<8x8x128xf32, #tpu.memory_space<vmem>> -> memref<1x1x128xf32, #tpu.memory_space<vmem>>
    %659 = tpu.memref_squeeze %658 : memref<1x1x128xf32, #tpu.memory_space<vmem>> -> memref<1x128xf32, #tpu.memory_space<vmem>>
    %660 = tpu.memref_slice %arg7[%c0_i32_587, %c2_i32_588] : memref<2x4x!tpu.dma_semaphore, #tpu.memory_space<semaphore_mem>> -> memref<1x1x!tpu.dma_semaphore, #tpu.memory_space<semaphore_mem>>
    %661 = tpu.memref_squeeze %660 : memref<1x1x!tpu.dma_semaphore, #tpu.memory_space<semaphore_mem>> -> memref<!tpu.dma_semaphore, #tpu.memory_space<semaphore_mem>>
    tpu.wait_dma2 semaphore(%661 : memref<!tpu.dma_semaphore, #tpu.memory_space<semaphore_mem>>) src(%657 : memref<1x128xf32, #tpu.memory_space<any>>) dst(%659 : memref<1x128xf32, #tpu.memory_space<vmem>>)
    %c2_i32_592 = arith.constant 2 : i32
    %c0_i32_593 = arith.constant 0 : i32
    %c2_i32_594 = arith.constant 2 : i32
    %c0_i32_595 = arith.constant 0 : i32
    %662 = tpu.memref_slice %arg3[%157, %c0_i32_595] : memref<512x128xf32, #tpu.memory_space<any>> -> memref<1x128xf32, #tpu.memory_space<any>>
    %c1_i32_596 = arith.constant 1 : i32
    %c0_i32_597 = arith.constant 0 : i32
    %663 = tpu.memref_slice %arg6[%c2_i32_592, %c1_i32_596, %c0_i32_597] : memref<8x8x128xf32, #tpu.memory_space<vmem>> -> memref<1x1x128xf32, #tpu.memory_space<vmem>>
    %664 = tpu.memref_squeeze %663 : memref<1x1x128xf32, #tpu.memory_space<vmem>> -> memref<1x128xf32, #tpu.memory_space<vmem>>
    %665 = tpu.memref_slice %arg7[%c0_i32_593, %c2_i32_594] : memref<2x4x!tpu.dma_semaphore, #tpu.memory_space<semaphore_mem>> -> memref<1x1x!tpu.dma_semaphore, #tpu.memory_space<semaphore_mem>>
    %666 = tpu.memref_squeeze %665 : memref<1x1x!tpu.dma_semaphore, #tpu.memory_space<semaphore_mem>> -> memref<!tpu.dma_semaphore, #tpu.memory_space<semaphore_mem>>
    tpu.wait_dma2 semaphore(%666 : memref<!tpu.dma_semaphore, #tpu.memory_space<semaphore_mem>>) src(%662 : memref<1x128xf32, #tpu.memory_space<any>>) dst(%664 : memref<1x128xf32, #tpu.memory_space<vmem>>)
    %c2_i32_598 = arith.constant 2 : i32
    %c0_i32_599 = arith.constant 0 : i32
    %c2_i32_600 = arith.constant 2 : i32
    %c0_i32_601 = arith.constant 0 : i32
    %667 = tpu.memref_slice %arg3[%166, %c0_i32_601] : memref<512x128xf32, #tpu.memory_space<any>> -> memref<1x128xf32, #tpu.memory_space<any>>
    %c2_i32_602 = arith.constant 2 : i32
    %c0_i32_603 = arith.constant 0 : i32
    %668 = tpu.memref_slice %arg6[%c2_i32_598, %c2_i32_602, %c0_i32_603] : memref<8x8x128xf32, #tpu.memory_space<vmem>> -> memref<1x1x128xf32, #tpu.memory_space<vmem>>
    %669 = tpu.memref_squeeze %668 : memref<1x1x128xf32, #tpu.memory_space<vmem>> -> memref<1x128xf32, #tpu.memory_space<vmem>>
    %670 = tpu.memref_slice %arg7[%c0_i32_599, %c2_i32_600] : memref<2x4x!tpu.dma_semaphore, #tpu.memory_space<semaphore_mem>> -> memref<1x1x!tpu.dma_semaphore, #tpu.memory_space<semaphore_mem>>
    %671 = tpu.memref_squeeze %670 : memref<1x1x!tpu.dma_semaphore, #tpu.memory_space<semaphore_mem>> -> memref<!tpu.dma_semaphore, #tpu.memory_space<semaphore_mem>>
    tpu.wait_dma2 semaphore(%671 : memref<!tpu.dma_semaphore, #tpu.memory_space<semaphore_mem>>) src(%667 : memref<1x128xf32, #tpu.memory_space<any>>) dst(%669 : memref<1x128xf32, #tpu.memory_space<vmem>>)
    %c2_i32_604 = arith.constant 2 : i32
    %c0_i32_605 = arith.constant 0 : i32
    %c2_i32_606 = arith.constant 2 : i32
    %c0_i32_607 = arith.constant 0 : i32
    %672 = tpu.memref_slice %arg3[%175, %c0_i32_607] : memref<512x128xf32, #tpu.memory_space<any>> -> memref<1x128xf32, #tpu.memory_space<any>>
    %c3_i32_608 = arith.constant 3 : i32
    %c0_i32_609 = arith.constant 0 : i32
    %673 = tpu.memref_slice %arg6[%c2_i32_604, %c3_i32_608, %c0_i32_609] : memref<8x8x128xf32, #tpu.memory_space<vmem>> -> memref<1x1x128xf32, #tpu.memory_space<vmem>>
    %674 = tpu.memref_squeeze %673 : memref<1x1x128xf32, #tpu.memory_space<vmem>> -> memref<1x128xf32, #tpu.memory_space<vmem>>
    %675 = tpu.memref_slice %arg7[%c0_i32_605, %c2_i32_606] : memref<2x4x!tpu.dma_semaphore, #tpu.memory_space<semaphore_mem>> -> memref<1x1x!tpu.dma_semaphore, #tpu.memory_space<semaphore_mem>>
    %676 = tpu.memref_squeeze %675 : memref<1x1x!tpu.dma_semaphore, #tpu.memory_space<semaphore_mem>> -> memref<!tpu.dma_semaphore, #tpu.memory_space<semaphore_mem>>
    tpu.wait_dma2 semaphore(%676 : memref<!tpu.dma_semaphore, #tpu.memory_space<semaphore_mem>>) src(%672 : memref<1x128xf32, #tpu.memory_space<any>>) dst(%674 : memref<1x128xf32, #tpu.memory_space<vmem>>)
    %c2_i32_610 = arith.constant 2 : i32
    %c0_i32_611 = arith.constant 0 : i32
    %c2_i32_612 = arith.constant 2 : i32
    %c0_i32_613 = arith.constant 0 : i32
    %677 = tpu.memref_slice %arg3[%184, %c0_i32_613] : memref<512x128xf32, #tpu.memory_space<any>> -> memref<1x128xf32, #tpu.memory_space<any>>
    %c4_i32_614 = arith.constant 4 : i32
    %c0_i32_615 = arith.constant 0 : i32
    %678 = tpu.memref_slice %arg6[%c2_i32_610, %c4_i32_614, %c0_i32_615] : memref<8x8x128xf32, #tpu.memory_space<vmem>> -> memref<1x1x128xf32, #tpu.memory_space<vmem>>
    %679 = tpu.memref_squeeze %678 : memref<1x1x128xf32, #tpu.memory_space<vmem>> -> memref<1x128xf32, #tpu.memory_space<vmem>>
    %680 = tpu.memref_slice %arg7[%c0_i32_611, %c2_i32_612] : memref<2x4x!tpu.dma_semaphore, #tpu.memory_space<semaphore_mem>> -> memref<1x1x!tpu.dma_semaphore, #tpu.memory_space<semaphore_mem>>
    %681 = tpu.memref_squeeze %680 : memref<1x1x!tpu.dma_semaphore, #tpu.memory_space<semaphore_mem>> -> memref<!tpu.dma_semaphore, #tpu.memory_space<semaphore_mem>>
    tpu.wait_dma2 semaphore(%681 : memref<!tpu.dma_semaphore, #tpu.memory_space<semaphore_mem>>) src(%677 : memref<1x128xf32, #tpu.memory_space<any>>) dst(%679 : memref<1x128xf32, #tpu.memory_space<vmem>>)
    %c2_i32_616 = arith.constant 2 : i32
    %c0_i32_617 = arith.constant 0 : i32
    %c2_i32_618 = arith.constant 2 : i32
    %c0_i32_619 = arith.constant 0 : i32
    %682 = tpu.memref_slice %arg3[%193, %c0_i32_619] : memref<512x128xf32, #tpu.memory_space<any>> -> memref<1x128xf32, #tpu.memory_space<any>>
    %c5_i32_620 = arith.constant 5 : i32
    %c0_i32_621 = arith.constant 0 : i32
    %683 = tpu.memref_slice %arg6[%c2_i32_616, %c5_i32_620, %c0_i32_621] : memref<8x8x128xf32, #tpu.memory_space<vmem>> -> memref<1x1x128xf32, #tpu.memory_space<vmem>>
    %684 = tpu.memref_squeeze %683 : memref<1x1x128xf32, #tpu.memory_space<vmem>> -> memref<1x128xf32, #tpu.memory_space<vmem>>
    %685 = tpu.memref_slice %arg7[%c0_i32_617, %c2_i32_618] : memref<2x4x!tpu.dma_semaphore, #tpu.memory_space<semaphore_mem>> -> memref<1x1x!tpu.dma_semaphore, #tpu.memory_space<semaphore_mem>>
    %686 = tpu.memref_squeeze %685 : memref<1x1x!tpu.dma_semaphore, #tpu.memory_space<semaphore_mem>> -> memref<!tpu.dma_semaphore, #tpu.memory_space<semaphore_mem>>
    tpu.wait_dma2 semaphore(%686 : memref<!tpu.dma_semaphore, #tpu.memory_space<semaphore_mem>>) src(%682 : memref<1x128xf32, #tpu.memory_space<any>>) dst(%684 : memref<1x128xf32, #tpu.memory_space<vmem>>)
    %c2_i32_622 = arith.constant 2 : i32
    %c0_i32_623 = arith.constant 0 : i32
    %c2_i32_624 = arith.constant 2 : i32
    %c0_i32_625 = arith.constant 0 : i32
    %687 = tpu.memref_slice %arg3[%202, %c0_i32_625] : memref<512x128xf32, #tpu.memory_space<any>> -> memref<1x128xf32, #tpu.memory_space<any>>
    %c6_i32_626 = arith.constant 6 : i32
    %c0_i32_627 = arith.constant 0 : i32
    %688 = tpu.memref_slice %arg6[%c2_i32_622, %c6_i32_626, %c0_i32_627] : memref<8x8x128xf32, #tpu.memory_space<vmem>> -> memref<1x1x128xf32, #tpu.memory_space<vmem>>
    %689 = tpu.memref_squeeze %688 : memref<1x1x128xf32, #tpu.memory_space<vmem>> -> memref<1x128xf32, #tpu.memory_space<vmem>>
    %690 = tpu.memref_slice %arg7[%c0_i32_623, %c2_i32_624] : memref<2x4x!tpu.dma_semaphore, #tpu.memory_space<semaphore_mem>> -> memref<1x1x!tpu.dma_semaphore, #tpu.memory_space<semaphore_mem>>
    %691 = tpu.memref_squeeze %690 : memref<1x1x!tpu.dma_semaphore, #tpu.memory_space<semaphore_mem>> -> memref<!tpu.dma_semaphore, #tpu.memory_space<semaphore_mem>>
    tpu.wait_dma2 semaphore(%691 : memref<!tpu.dma_semaphore, #tpu.memory_space<semaphore_mem>>) src(%687 : memref<1x128xf32, #tpu.memory_space<any>>) dst(%689 : memref<1x128xf32, #tpu.memory_space<vmem>>)
    %c2_i32_628 = arith.constant 2 : i32
    %c0_i32_629 = arith.constant 0 : i32
    %c2_i32_630 = arith.constant 2 : i32
    %c0_i32_631 = arith.constant 0 : i32
    %692 = tpu.memref_slice %arg3[%211, %c0_i32_631] : memref<512x128xf32, #tpu.memory_space<any>> -> memref<1x128xf32, #tpu.memory_space<any>>
    %c7_i32_632 = arith.constant 7 : i32
    %c0_i32_633 = arith.constant 0 : i32
    %693 = tpu.memref_slice %arg6[%c2_i32_628, %c7_i32_632, %c0_i32_633] : memref<8x8x128xf32, #tpu.memory_space<vmem>> -> memref<1x1x128xf32, #tpu.memory_space<vmem>>
    %694 = tpu.memref_squeeze %693 : memref<1x1x128xf32, #tpu.memory_space<vmem>> -> memref<1x128xf32, #tpu.memory_space<vmem>>
    %695 = tpu.memref_slice %arg7[%c0_i32_629, %c2_i32_630] : memref<2x4x!tpu.dma_semaphore, #tpu.memory_space<semaphore_mem>> -> memref<1x1x!tpu.dma_semaphore, #tpu.memory_space<semaphore_mem>>
    %696 = tpu.memref_squeeze %695 : memref<1x1x!tpu.dma_semaphore, #tpu.memory_space<semaphore_mem>> -> memref<!tpu.dma_semaphore, #tpu.memory_space<semaphore_mem>>
    tpu.wait_dma2 semaphore(%696 : memref<!tpu.dma_semaphore, #tpu.memory_space<semaphore_mem>>) src(%692 : memref<1x128xf32, #tpu.memory_space<any>>) dst(%694 : memref<1x128xf32, #tpu.memory_space<vmem>>)
    %c3_i32_634 = arith.constant 3 : i32
    %c0_i32_635 = arith.constant 0 : i32
    %c3_i32_636 = arith.constant 3 : i32
    %c0_i32_637 = arith.constant 0 : i32
    %697 = tpu.memref_slice %arg3[%220, %c0_i32_637] : memref<512x128xf32, #tpu.memory_space<any>> -> memref<1x128xf32, #tpu.memory_space<any>>
    %c0_i32_638 = arith.constant 0 : i32
    %c0_i32_639 = arith.constant 0 : i32
    %698 = tpu.memref_slice %arg6[%c3_i32_634, %c0_i32_638, %c0_i32_639] : memref<8x8x128xf32, #tpu.memory_space<vmem>> -> memref<1x1x128xf32, #tpu.memory_space<vmem>>
    %699 = tpu.memref_squeeze %698 : memref<1x1x128xf32, #tpu.memory_space<vmem>> -> memref<1x128xf32, #tpu.memory_space<vmem>>
    %700 = tpu.memref_slice %arg7[%c0_i32_635, %c3_i32_636] : memref<2x4x!tpu.dma_semaphore, #tpu.memory_space<semaphore_mem>> -> memref<1x1x!tpu.dma_semaphore, #tpu.memory_space<semaphore_mem>>
    %701 = tpu.memref_squeeze %700 : memref<1x1x!tpu.dma_semaphore, #tpu.memory_space<semaphore_mem>> -> memref<!tpu.dma_semaphore, #tpu.memory_space<semaphore_mem>>
    tpu.wait_dma2 semaphore(%701 : memref<!tpu.dma_semaphore, #tpu.memory_space<semaphore_mem>>) src(%697 : memref<1x128xf32, #tpu.memory_space<any>>) dst(%699 : memref<1x128xf32, #tpu.memory_space<vmem>>)
    %c3_i32_640 = arith.constant 3 : i32
    %c0_i32_641 = arith.constant 0 : i32
    %c3_i32_642 = arith.constant 3 : i32
    %c0_i32_643 = arith.constant 0 : i32
    %702 = tpu.memref_slice %arg3[%229, %c0_i32_643] : memref<512x128xf32, #tpu.memory_space<any>> -> memref<1x128xf32, #tpu.memory_space<any>>
    %c1_i32_644 = arith.constant 1 : i32
    %c0_i32_645 = arith.constant 0 : i32
    %703 = tpu.memref_slice %arg6[%c3_i32_640, %c1_i32_644, %c0_i32_645] : memref<8x8x128xf32, #tpu.memory_space<vmem>> -> memref<1x1x128xf32, #tpu.memory_space<vmem>>
    %704 = tpu.memref_squeeze %703 : memref<1x1x128xf32, #tpu.memory_space<vmem>> -> memref<1x128xf32, #tpu.memory_space<vmem>>
    %705 = tpu.memref_slice %arg7[%c0_i32_641, %c3_i32_642] : memref<2x4x!tpu.dma_semaphore, #tpu.memory_space<semaphore_mem>> -> memref<1x1x!tpu.dma_semaphore, #tpu.memory_space<semaphore_mem>>
    %706 = tpu.memref_squeeze %705 : memref<1x1x!tpu.dma_semaphore, #tpu.memory_space<semaphore_mem>> -> memref<!tpu.dma_semaphore, #tpu.memory_space<semaphore_mem>>
    tpu.wait_dma2 semaphore(%706 : memref<!tpu.dma_semaphore, #tpu.memory_space<semaphore_mem>>) src(%702 : memref<1x128xf32, #tpu.memory_space<any>>) dst(%704 : memref<1x128xf32, #tpu.memory_space<vmem>>)
    %c3_i32_646 = arith.constant 3 : i32
    %c0_i32_647 = arith.constant 0 : i32
    %c3_i32_648 = arith.constant 3 : i32
    %c0_i32_649 = arith.constant 0 : i32
    %707 = tpu.memref_slice %arg3[%238, %c0_i32_649] : memref<512x128xf32, #tpu.memory_space<any>> -> memref<1x128xf32, #tpu.memory_space<any>>
    %c2_i32_650 = arith.constant 2 : i32
    %c0_i32_651 = arith.constant 0 : i32
    %708 = tpu.memref_slice %arg6[%c3_i32_646, %c2_i32_650, %c0_i32_651] : memref<8x8x128xf32, #tpu.memory_space<vmem>> -> memref<1x1x128xf32, #tpu.memory_space<vmem>>
    %709 = tpu.memref_squeeze %708 : memref<1x1x128xf32, #tpu.memory_space<vmem>> -> memref<1x128xf32, #tpu.memory_space<vmem>>
    %710 = tpu.memref_slice %arg7[%c0_i32_647, %c3_i32_648] : memref<2x4x!tpu.dma_semaphore, #tpu.memory_space<semaphore_mem>> -> memref<1x1x!tpu.dma_semaphore, #tpu.memory_space<semaphore_mem>>
    %711 = tpu.memref_squeeze %710 : memref<1x1x!tpu.dma_semaphore, #tpu.memory_space<semaphore_mem>> -> memref<!tpu.dma_semaphore, #tpu.memory_space<semaphore_mem>>
    tpu.wait_dma2 semaphore(%711 : memref<!tpu.dma_semaphore, #tpu.memory_space<semaphore_mem>>) src(%707 : memref<1x128xf32, #tpu.memory_space<any>>) dst(%709 : memref<1x128xf32, #tpu.memory_space<vmem>>)
    %c3_i32_652 = arith.constant 3 : i32
    %c0_i32_653 = arith.constant 0 : i32
    %c3_i32_654 = arith.constant 3 : i32
    %c0_i32_655 = arith.constant 0 : i32
    %712 = tpu.memref_slice %arg3[%247, %c0_i32_655] : memref<512x128xf32, #tpu.memory_space<any>> -> memref<1x128xf32, #tpu.memory_space<any>>
    %c3_i32_656 = arith.constant 3 : i32
    %c0_i32_657 = arith.constant 0 : i32
    %713 = tpu.memref_slice %arg6[%c3_i32_652, %c3_i32_656, %c0_i32_657] : memref<8x8x128xf32, #tpu.memory_space<vmem>> -> memref<1x1x128xf32, #tpu.memory_space<vmem>>
    %714 = tpu.memref_squeeze %713 : memref<1x1x128xf32, #tpu.memory_space<vmem>> -> memref<1x128xf32, #tpu.memory_space<vmem>>
    %715 = tpu.memref_slice %arg7[%c0_i32_653, %c3_i32_654] : memref<2x4x!tpu.dma_semaphore, #tpu.memory_space<semaphore_mem>> -> memref<1x1x!tpu.dma_semaphore, #tpu.memory_space<semaphore_mem>>
    %716 = tpu.memref_squeeze %715 : memref<1x1x!tpu.dma_semaphore, #tpu.memory_space<semaphore_mem>> -> memref<!tpu.dma_semaphore, #tpu.memory_space<semaphore_mem>>
    tpu.wait_dma2 semaphore(%716 : memref<!tpu.dma_semaphore, #tpu.memory_space<semaphore_mem>>) src(%712 : memref<1x128xf32, #tpu.memory_space<any>>) dst(%714 : memref<1x128xf32, #tpu.memory_space<vmem>>)
    %c3_i32_658 = arith.constant 3 : i32
    %c0_i32_659 = arith.constant 0 : i32
    %c3_i32_660 = arith.constant 3 : i32
    %c0_i32_661 = arith.constant 0 : i32
    %717 = tpu.memref_slice %arg3[%256, %c0_i32_661] : memref<512x128xf32, #tpu.memory_space<any>> -> memref<1x128xf32, #tpu.memory_space<any>>
    %c4_i32_662 = arith.constant 4 : i32
    %c0_i32_663 = arith.constant 0 : i32
    %718 = tpu.memref_slice %arg6[%c3_i32_658, %c4_i32_662, %c0_i32_663] : memref<8x8x128xf32, #tpu.memory_space<vmem>> -> memref<1x1x128xf32, #tpu.memory_space<vmem>>
    %719 = tpu.memref_squeeze %718 : memref<1x1x128xf32, #tpu.memory_space<vmem>> -> memref<1x128xf32, #tpu.memory_space<vmem>>
    %720 = tpu.memref_slice %arg7[%c0_i32_659, %c3_i32_660] : memref<2x4x!tpu.dma_semaphore, #tpu.memory_space<semaphore_mem>> -> memref<1x1x!tpu.dma_semaphore, #tpu.memory_space<semaphore_mem>>
    %721 = tpu.memref_squeeze %720 : memref<1x1x!tpu.dma_semaphore, #tpu.memory_space<semaphore_mem>> -> memref<!tpu.dma_semaphore, #tpu.memory_space<semaphore_mem>>
    tpu.wait_dma2 semaphore(%721 : memref<!tpu.dma_semaphore, #tpu.memory_space<semaphore_mem>>) src(%717 : memref<1x128xf32, #tpu.memory_space<any>>) dst(%719 : memref<1x128xf32, #tpu.memory_space<vmem>>)
    %c3_i32_664 = arith.constant 3 : i32
    %c0_i32_665 = arith.constant 0 : i32
    %c3_i32_666 = arith.constant 3 : i32
    %c0_i32_667 = arith.constant 0 : i32
    %722 = tpu.memref_slice %arg3[%265, %c0_i32_667] : memref<512x128xf32, #tpu.memory_space<any>> -> memref<1x128xf32, #tpu.memory_space<any>>
    %c5_i32_668 = arith.constant 5 : i32
    %c0_i32_669 = arith.constant 0 : i32
    %723 = tpu.memref_slice %arg6[%c3_i32_664, %c5_i32_668, %c0_i32_669] : memref<8x8x128xf32, #tpu.memory_space<vmem>> -> memref<1x1x128xf32, #tpu.memory_space<vmem>>
    %724 = tpu.memref_squeeze %723 : memref<1x1x128xf32, #tpu.memory_space<vmem>> -> memref<1x128xf32, #tpu.memory_space<vmem>>
    %725 = tpu.memref_slice %arg7[%c0_i32_665, %c3_i32_666] : memref<2x4x!tpu.dma_semaphore, #tpu.memory_space<semaphore_mem>> -> memref<1x1x!tpu.dma_semaphore, #tpu.memory_space<semaphore_mem>>
    %726 = tpu.memref_squeeze %725 : memref<1x1x!tpu.dma_semaphore, #tpu.memory_space<semaphore_mem>> -> memref<!tpu.dma_semaphore, #tpu.memory_space<semaphore_mem>>
    tpu.wait_dma2 semaphore(%726 : memref<!tpu.dma_semaphore, #tpu.memory_space<semaphore_mem>>) src(%722 : memref<1x128xf32, #tpu.memory_space<any>>) dst(%724 : memref<1x128xf32, #tpu.memory_space<vmem>>)
    %c3_i32_670 = arith.constant 3 : i32
    %c0_i32_671 = arith.constant 0 : i32
    %c3_i32_672 = arith.constant 3 : i32
    %c0_i32_673 = arith.constant 0 : i32
    %727 = tpu.memref_slice %arg3[%274, %c0_i32_673] : memref<512x128xf32, #tpu.memory_space<any>> -> memref<1x128xf32, #tpu.memory_space<any>>
    %c6_i32_674 = arith.constant 6 : i32
    %c0_i32_675 = arith.constant 0 : i32
    %728 = tpu.memref_slice %arg6[%c3_i32_670, %c6_i32_674, %c0_i32_675] : memref<8x8x128xf32, #tpu.memory_space<vmem>> -> memref<1x1x128xf32, #tpu.memory_space<vmem>>
    %729 = tpu.memref_squeeze %728 : memref<1x1x128xf32, #tpu.memory_space<vmem>> -> memref<1x128xf32, #tpu.memory_space<vmem>>
    %730 = tpu.memref_slice %arg7[%c0_i32_671, %c3_i32_672] : memref<2x4x!tpu.dma_semaphore, #tpu.memory_space<semaphore_mem>> -> memref<1x1x!tpu.dma_semaphore, #tpu.memory_space<semaphore_mem>>
    %731 = tpu.memref_squeeze %730 : memref<1x1x!tpu.dma_semaphore, #tpu.memory_space<semaphore_mem>> -> memref<!tpu.dma_semaphore, #tpu.memory_space<semaphore_mem>>
    tpu.wait_dma2 semaphore(%731 : memref<!tpu.dma_semaphore, #tpu.memory_space<semaphore_mem>>) src(%727 : memref<1x128xf32, #tpu.memory_space<any>>) dst(%729 : memref<1x128xf32, #tpu.memory_space<vmem>>)
    %c3_i32_676 = arith.constant 3 : i32
    %c0_i32_677 = arith.constant 0 : i32
    %c3_i32_678 = arith.constant 3 : i32
    %c0_i32_679 = arith.constant 0 : i32
    %732 = tpu.memref_slice %arg3[%283, %c0_i32_679] : memref<512x128xf32, #tpu.memory_space<any>> -> memref<1x128xf32, #tpu.memory_space<any>>
    %c7_i32_680 = arith.constant 7 : i32
    %c0_i32_681 = arith.constant 0 : i32
    %733 = tpu.memref_slice %arg6[%c3_i32_676, %c7_i32_680, %c0_i32_681] : memref<8x8x128xf32, #tpu.memory_space<vmem>> -> memref<1x1x128xf32, #tpu.memory_space<vmem>>
    %734 = tpu.memref_squeeze %733 : memref<1x1x128xf32, #tpu.memory_space<vmem>> -> memref<1x128xf32, #tpu.memory_space<vmem>>
    %735 = tpu.memref_slice %arg7[%c0_i32_677, %c3_i32_678] : memref<2x4x!tpu.dma_semaphore, #tpu.memory_space<semaphore_mem>> -> memref<1x1x!tpu.dma_semaphore, #tpu.memory_space<semaphore_mem>>
    %736 = tpu.memref_squeeze %735 : memref<1x1x!tpu.dma_semaphore, #tpu.memory_space<semaphore_mem>> -> memref<!tpu.dma_semaphore, #tpu.memory_space<semaphore_mem>>
    tpu.wait_dma2 semaphore(%736 : memref<!tpu.dma_semaphore, #tpu.memory_space<semaphore_mem>>) src(%732 : memref<1x128xf32, #tpu.memory_space<any>>) dst(%734 : memref<1x128xf32, #tpu.memory_space<vmem>>)
    %c4_i32_682 = arith.constant 4 : i32
    %c1_i32_683 = arith.constant 1 : i32
    %c0_i32_684 = arith.constant 0 : i32
    %c0_i32_685 = arith.constant 0 : i32
    %737 = tpu.memref_slice %arg4[%292, %c0_i32_685] : memref<512x128xf32, #tpu.memory_space<any>> -> memref<1x128xf32, #tpu.memory_space<any>>
    %c0_i32_686 = arith.constant 0 : i32
    %c0_i32_687 = arith.constant 0 : i32
    %738 = tpu.memref_slice %arg6[%c4_i32_682, %c0_i32_686, %c0_i32_687] : memref<8x8x128xf32, #tpu.memory_space<vmem>> -> memref<1x1x128xf32, #tpu.memory_space<vmem>>
    %739 = tpu.memref_squeeze %738 : memref<1x1x128xf32, #tpu.memory_space<vmem>> -> memref<1x128xf32, #tpu.memory_space<vmem>>
    %740 = tpu.memref_slice %arg7[%c1_i32_683, %c0_i32_684] : memref<2x4x!tpu.dma_semaphore, #tpu.memory_space<semaphore_mem>> -> memref<1x1x!tpu.dma_semaphore, #tpu.memory_space<semaphore_mem>>
    %741 = tpu.memref_squeeze %740 : memref<1x1x!tpu.dma_semaphore, #tpu.memory_space<semaphore_mem>> -> memref<!tpu.dma_semaphore, #tpu.memory_space<semaphore_mem>>
    tpu.wait_dma2 semaphore(%741 : memref<!tpu.dma_semaphore, #tpu.memory_space<semaphore_mem>>) src(%737 : memref<1x128xf32, #tpu.memory_space<any>>) dst(%739 : memref<1x128xf32, #tpu.memory_space<vmem>>)
    %c4_i32_688 = arith.constant 4 : i32
    %c1_i32_689 = arith.constant 1 : i32
    %c0_i32_690 = arith.constant 0 : i32
    %c0_i32_691 = arith.constant 0 : i32
    %742 = tpu.memref_slice %arg4[%301, %c0_i32_691] : memref<512x128xf32, #tpu.memory_space<any>> -> memref<1x128xf32, #tpu.memory_space<any>>
    %c1_i32_692 = arith.constant 1 : i32
    %c0_i32_693 = arith.constant 0 : i32
    %743 = tpu.memref_slice %arg6[%c4_i32_688, %c1_i32_692, %c0_i32_693] : memref<8x8x128xf32, #tpu.memory_space<vmem>> -> memref<1x1x128xf32, #tpu.memory_space<vmem>>
    %744 = tpu.memref_squeeze %743 : memref<1x1x128xf32, #tpu.memory_space<vmem>> -> memref<1x128xf32, #tpu.memory_space<vmem>>
    %745 = tpu.memref_slice %arg7[%c1_i32_689, %c0_i32_690] : memref<2x4x!tpu.dma_semaphore, #tpu.memory_space<semaphore_mem>> -> memref<1x1x!tpu.dma_semaphore, #tpu.memory_space<semaphore_mem>>
    %746 = tpu.memref_squeeze %745 : memref<1x1x!tpu.dma_semaphore, #tpu.memory_space<semaphore_mem>> -> memref<!tpu.dma_semaphore, #tpu.memory_space<semaphore_mem>>
    tpu.wait_dma2 semaphore(%746 : memref<!tpu.dma_semaphore, #tpu.memory_space<semaphore_mem>>) src(%742 : memref<1x128xf32, #tpu.memory_space<any>>) dst(%744 : memref<1x128xf32, #tpu.memory_space<vmem>>)
    %c4_i32_694 = arith.constant 4 : i32
    %c1_i32_695 = arith.constant 1 : i32
    %c0_i32_696 = arith.constant 0 : i32
    %c0_i32_697 = arith.constant 0 : i32
    %747 = tpu.memref_slice %arg4[%310, %c0_i32_697] : memref<512x128xf32, #tpu.memory_space<any>> -> memref<1x128xf32, #tpu.memory_space<any>>
    %c2_i32_698 = arith.constant 2 : i32
    %c0_i32_699 = arith.constant 0 : i32
    %748 = tpu.memref_slice %arg6[%c4_i32_694, %c2_i32_698, %c0_i32_699] : memref<8x8x128xf32, #tpu.memory_space<vmem>> -> memref<1x1x128xf32, #tpu.memory_space<vmem>>
    %749 = tpu.memref_squeeze %748 : memref<1x1x128xf32, #tpu.memory_space<vmem>> -> memref<1x128xf32, #tpu.memory_space<vmem>>
    %750 = tpu.memref_slice %arg7[%c1_i32_695, %c0_i32_696] : memref<2x4x!tpu.dma_semaphore, #tpu.memory_space<semaphore_mem>> -> memref<1x1x!tpu.dma_semaphore, #tpu.memory_space<semaphore_mem>>
    %751 = tpu.memref_squeeze %750 : memref<1x1x!tpu.dma_semaphore, #tpu.memory_space<semaphore_mem>> -> memref<!tpu.dma_semaphore, #tpu.memory_space<semaphore_mem>>
    tpu.wait_dma2 semaphore(%751 : memref<!tpu.dma_semaphore, #tpu.memory_space<semaphore_mem>>) src(%747 : memref<1x128xf32, #tpu.memory_space<any>>) dst(%749 : memref<1x128xf32, #tpu.memory_space<vmem>>)
    %c4_i32_700 = arith.constant 4 : i32
    %c1_i32_701 = arith.constant 1 : i32
    %c0_i32_702 = arith.constant 0 : i32
    %c0_i32_703 = arith.constant 0 : i32
    %752 = tpu.memref_slice %arg4[%319, %c0_i32_703] : memref<512x128xf32, #tpu.memory_space<any>> -> memref<1x128xf32, #tpu.memory_space<any>>
    %c3_i32_704 = arith.constant 3 : i32
    %c0_i32_705 = arith.constant 0 : i32
    %753 = tpu.memref_slice %arg6[%c4_i32_700, %c3_i32_704, %c0_i32_705] : memref<8x8x128xf32, #tpu.memory_space<vmem>> -> memref<1x1x128xf32, #tpu.memory_space<vmem>>
    %754 = tpu.memref_squeeze %753 : memref<1x1x128xf32, #tpu.memory_space<vmem>> -> memref<1x128xf32, #tpu.memory_space<vmem>>
    %755 = tpu.memref_slice %arg7[%c1_i32_701, %c0_i32_702] : memref<2x4x!tpu.dma_semaphore, #tpu.memory_space<semaphore_mem>> -> memref<1x1x!tpu.dma_semaphore, #tpu.memory_space<semaphore_mem>>
    %756 = tpu.memref_squeeze %755 : memref<1x1x!tpu.dma_semaphore, #tpu.memory_space<semaphore_mem>> -> memref<!tpu.dma_semaphore, #tpu.memory_space<semaphore_mem>>
    tpu.wait_dma2 semaphore(%756 : memref<!tpu.dma_semaphore, #tpu.memory_space<semaphore_mem>>) src(%752 : memref<1x128xf32, #tpu.memory_space<any>>) dst(%754 : memref<1x128xf32, #tpu.memory_space<vmem>>)
    %c4_i32_706 = arith.constant 4 : i32
    %c1_i32_707 = arith.constant 1 : i32
    %c0_i32_708 = arith.constant 0 : i32
    %c0_i32_709 = arith.constant 0 : i32
    %757 = tpu.memref_slice %arg4[%328, %c0_i32_709] : memref<512x128xf32, #tpu.memory_space<any>> -> memref<1x128xf32, #tpu.memory_space<any>>
    %c4_i32_710 = arith.constant 4 : i32
    %c0_i32_711 = arith.constant 0 : i32
    %758 = tpu.memref_slice %arg6[%c4_i32_706, %c4_i32_710, %c0_i32_711] : memref<8x8x128xf32, #tpu.memory_space<vmem>> -> memref<1x1x128xf32, #tpu.memory_space<vmem>>
    %759 = tpu.memref_squeeze %758 : memref<1x1x128xf32, #tpu.memory_space<vmem>> -> memref<1x128xf32, #tpu.memory_space<vmem>>
    %760 = tpu.memref_slice %arg7[%c1_i32_707, %c0_i32_708] : memref<2x4x!tpu.dma_semaphore, #tpu.memory_space<semaphore_mem>> -> memref<1x1x!tpu.dma_semaphore, #tpu.memory_space<semaphore_mem>>
    %761 = tpu.memref_squeeze %760 : memref<1x1x!tpu.dma_semaphore, #tpu.memory_space<semaphore_mem>> -> memref<!tpu.dma_semaphore, #tpu.memory_space<semaphore_mem>>
    tpu.wait_dma2 semaphore(%761 : memref<!tpu.dma_semaphore, #tpu.memory_space<semaphore_mem>>) src(%757 : memref<1x128xf32, #tpu.memory_space<any>>) dst(%759 : memref<1x128xf32, #tpu.memory_space<vmem>>)
    %c4_i32_712 = arith.constant 4 : i32
    %c1_i32_713 = arith.constant 1 : i32
    %c0_i32_714 = arith.constant 0 : i32
    %c0_i32_715 = arith.constant 0 : i32
    %762 = tpu.memref_slice %arg4[%337, %c0_i32_715] : memref<512x128xf32, #tpu.memory_space<any>> -> memref<1x128xf32, #tpu.memory_space<any>>
    %c5_i32_716 = arith.constant 5 : i32
    %c0_i32_717 = arith.constant 0 : i32
    %763 = tpu.memref_slice %arg6[%c4_i32_712, %c5_i32_716, %c0_i32_717] : memref<8x8x128xf32, #tpu.memory_space<vmem>> -> memref<1x1x128xf32, #tpu.memory_space<vmem>>
    %764 = tpu.memref_squeeze %763 : memref<1x1x128xf32, #tpu.memory_space<vmem>> -> memref<1x128xf32, #tpu.memory_space<vmem>>
    %765 = tpu.memref_slice %arg7[%c1_i32_713, %c0_i32_714] : memref<2x4x!tpu.dma_semaphore, #tpu.memory_space<semaphore_mem>> -> memref<1x1x!tpu.dma_semaphore, #tpu.memory_space<semaphore_mem>>
    %766 = tpu.memref_squeeze %765 : memref<1x1x!tpu.dma_semaphore, #tpu.memory_space<semaphore_mem>> -> memref<!tpu.dma_semaphore, #tpu.memory_space<semaphore_mem>>
    tpu.wait_dma2 semaphore(%766 : memref<!tpu.dma_semaphore, #tpu.memory_space<semaphore_mem>>) src(%762 : memref<1x128xf32, #tpu.memory_space<any>>) dst(%764 : memref<1x128xf32, #tpu.memory_space<vmem>>)
    %c4_i32_718 = arith.constant 4 : i32
    %c1_i32_719 = arith.constant 1 : i32
    %c0_i32_720 = arith.constant 0 : i32
    %c0_i32_721 = arith.constant 0 : i32
    %767 = tpu.memref_slice %arg4[%346, %c0_i32_721] : memref<512x128xf32, #tpu.memory_space<any>> -> memref<1x128xf32, #tpu.memory_space<any>>
    %c6_i32_722 = arith.constant 6 : i32
    %c0_i32_723 = arith.constant 0 : i32
    %768 = tpu.memref_slice %arg6[%c4_i32_718, %c6_i32_722, %c0_i32_723] : memref<8x8x128xf32, #tpu.memory_space<vmem>> -> memref<1x1x128xf32, #tpu.memory_space<vmem>>
    %769 = tpu.memref_squeeze %768 : memref<1x1x128xf32, #tpu.memory_space<vmem>> -> memref<1x128xf32, #tpu.memory_space<vmem>>
    %770 = tpu.memref_slice %arg7[%c1_i32_719, %c0_i32_720] : memref<2x4x!tpu.dma_semaphore, #tpu.memory_space<semaphore_mem>> -> memref<1x1x!tpu.dma_semaphore, #tpu.memory_space<semaphore_mem>>
    %771 = tpu.memref_squeeze %770 : memref<1x1x!tpu.dma_semaphore, #tpu.memory_space<semaphore_mem>> -> memref<!tpu.dma_semaphore, #tpu.memory_space<semaphore_mem>>
    tpu.wait_dma2 semaphore(%771 : memref<!tpu.dma_semaphore, #tpu.memory_space<semaphore_mem>>) src(%767 : memref<1x128xf32, #tpu.memory_space<any>>) dst(%769 : memref<1x128xf32, #tpu.memory_space<vmem>>)
    %c4_i32_724 = arith.constant 4 : i32
    %c1_i32_725 = arith.constant 1 : i32
    %c0_i32_726 = arith.constant 0 : i32
    %c0_i32_727 = arith.constant 0 : i32
    %772 = tpu.memref_slice %arg4[%355, %c0_i32_727] : memref<512x128xf32, #tpu.memory_space<any>> -> memref<1x128xf32, #tpu.memory_space<any>>
    %c7_i32_728 = arith.constant 7 : i32
    %c0_i32_729 = arith.constant 0 : i32
    %773 = tpu.memref_slice %arg6[%c4_i32_724, %c7_i32_728, %c0_i32_729] : memref<8x8x128xf32, #tpu.memory_space<vmem>> -> memref<1x1x128xf32, #tpu.memory_space<vmem>>
    %774 = tpu.memref_squeeze %773 : memref<1x1x128xf32, #tpu.memory_space<vmem>> -> memref<1x128xf32, #tpu.memory_space<vmem>>
    %775 = tpu.memref_slice %arg7[%c1_i32_725, %c0_i32_726] : memref<2x4x!tpu.dma_semaphore, #tpu.memory_space<semaphore_mem>> -> memref<1x1x!tpu.dma_semaphore, #tpu.memory_space<semaphore_mem>>
    %776 = tpu.memref_squeeze %775 : memref<1x1x!tpu.dma_semaphore, #tpu.memory_space<semaphore_mem>> -> memref<!tpu.dma_semaphore, #tpu.memory_space<semaphore_mem>>
    tpu.wait_dma2 semaphore(%776 : memref<!tpu.dma_semaphore, #tpu.memory_space<semaphore_mem>>) src(%772 : memref<1x128xf32, #tpu.memory_space<any>>) dst(%774 : memref<1x128xf32, #tpu.memory_space<vmem>>)
    %c5_i32_730 = arith.constant 5 : i32
    %c1_i32_731 = arith.constant 1 : i32
    %c1_i32_732 = arith.constant 1 : i32
    %c0_i32_733 = arith.constant 0 : i32
    %777 = tpu.memref_slice %arg4[%364, %c0_i32_733] : memref<512x128xf32, #tpu.memory_space<any>> -> memref<1x128xf32, #tpu.memory_space<any>>
    %c0_i32_734 = arith.constant 0 : i32
    %c0_i32_735 = arith.constant 0 : i32
    %778 = tpu.memref_slice %arg6[%c5_i32_730, %c0_i32_734, %c0_i32_735] : memref<8x8x128xf32, #tpu.memory_space<vmem>> -> memref<1x1x128xf32, #tpu.memory_space<vmem>>
    %779 = tpu.memref_squeeze %778 : memref<1x1x128xf32, #tpu.memory_space<vmem>> -> memref<1x128xf32, #tpu.memory_space<vmem>>
    %780 = tpu.memref_slice %arg7[%c1_i32_731, %c1_i32_732] : memref<2x4x!tpu.dma_semaphore, #tpu.memory_space<semaphore_mem>> -> memref<1x1x!tpu.dma_semaphore, #tpu.memory_space<semaphore_mem>>
    %781 = tpu.memref_squeeze %780 : memref<1x1x!tpu.dma_semaphore, #tpu.memory_space<semaphore_mem>> -> memref<!tpu.dma_semaphore, #tpu.memory_space<semaphore_mem>>
    tpu.wait_dma2 semaphore(%781 : memref<!tpu.dma_semaphore, #tpu.memory_space<semaphore_mem>>) src(%777 : memref<1x128xf32, #tpu.memory_space<any>>) dst(%779 : memref<1x128xf32, #tpu.memory_space<vmem>>)
    %c5_i32_736 = arith.constant 5 : i32
    %c1_i32_737 = arith.constant 1 : i32
    %c1_i32_738 = arith.constant 1 : i32
    %c0_i32_739 = arith.constant 0 : i32
    %782 = tpu.memref_slice %arg4[%373, %c0_i32_739] : memref<512x128xf32, #tpu.memory_space<any>> -> memref<1x128xf32, #tpu.memory_space<any>>
    %c1_i32_740 = arith.constant 1 : i32
    %c0_i32_741 = arith.constant 0 : i32
    %783 = tpu.memref_slice %arg6[%c5_i32_736, %c1_i32_740, %c0_i32_741] : memref<8x8x128xf32, #tpu.memory_space<vmem>> -> memref<1x1x128xf32, #tpu.memory_space<vmem>>
    %784 = tpu.memref_squeeze %783 : memref<1x1x128xf32, #tpu.memory_space<vmem>> -> memref<1x128xf32, #tpu.memory_space<vmem>>
    %785 = tpu.memref_slice %arg7[%c1_i32_737, %c1_i32_738] : memref<2x4x!tpu.dma_semaphore, #tpu.memory_space<semaphore_mem>> -> memref<1x1x!tpu.dma_semaphore, #tpu.memory_space<semaphore_mem>>
    %786 = tpu.memref_squeeze %785 : memref<1x1x!tpu.dma_semaphore, #tpu.memory_space<semaphore_mem>> -> memref<!tpu.dma_semaphore, #tpu.memory_space<semaphore_mem>>
    tpu.wait_dma2 semaphore(%786 : memref<!tpu.dma_semaphore, #tpu.memory_space<semaphore_mem>>) src(%782 : memref<1x128xf32, #tpu.memory_space<any>>) dst(%784 : memref<1x128xf32, #tpu.memory_space<vmem>>)
    %c5_i32_742 = arith.constant 5 : i32
    %c1_i32_743 = arith.constant 1 : i32
    %c1_i32_744 = arith.constant 1 : i32
    %c0_i32_745 = arith.constant 0 : i32
    %787 = tpu.memref_slice %arg4[%382, %c0_i32_745] : memref<512x128xf32, #tpu.memory_space<any>> -> memref<1x128xf32, #tpu.memory_space<any>>
    %c2_i32_746 = arith.constant 2 : i32
    %c0_i32_747 = arith.constant 0 : i32
    %788 = tpu.memref_slice %arg6[%c5_i32_742, %c2_i32_746, %c0_i32_747] : memref<8x8x128xf32, #tpu.memory_space<vmem>> -> memref<1x1x128xf32, #tpu.memory_space<vmem>>
    %789 = tpu.memref_squeeze %788 : memref<1x1x128xf32, #tpu.memory_space<vmem>> -> memref<1x128xf32, #tpu.memory_space<vmem>>
    %790 = tpu.memref_slice %arg7[%c1_i32_743, %c1_i32_744] : memref<2x4x!tpu.dma_semaphore, #tpu.memory_space<semaphore_mem>> -> memref<1x1x!tpu.dma_semaphore, #tpu.memory_space<semaphore_mem>>
    %791 = tpu.memref_squeeze %790 : memref<1x1x!tpu.dma_semaphore, #tpu.memory_space<semaphore_mem>> -> memref<!tpu.dma_semaphore, #tpu.memory_space<semaphore_mem>>
    tpu.wait_dma2 semaphore(%791 : memref<!tpu.dma_semaphore, #tpu.memory_space<semaphore_mem>>) src(%787 : memref<1x128xf32, #tpu.memory_space<any>>) dst(%789 : memref<1x128xf32, #tpu.memory_space<vmem>>)
    %c5_i32_748 = arith.constant 5 : i32
    %c1_i32_749 = arith.constant 1 : i32
    %c1_i32_750 = arith.constant 1 : i32
    %c0_i32_751 = arith.constant 0 : i32
    %792 = tpu.memref_slice %arg4[%391, %c0_i32_751] : memref<512x128xf32, #tpu.memory_space<any>> -> memref<1x128xf32, #tpu.memory_space<any>>
    %c3_i32_752 = arith.constant 3 : i32
    %c0_i32_753 = arith.constant 0 : i32
    %793 = tpu.memref_slice %arg6[%c5_i32_748, %c3_i32_752, %c0_i32_753] : memref<8x8x128xf32, #tpu.memory_space<vmem>> -> memref<1x1x128xf32, #tpu.memory_space<vmem>>
    %794 = tpu.memref_squeeze %793 : memref<1x1x128xf32, #tpu.memory_space<vmem>> -> memref<1x128xf32, #tpu.memory_space<vmem>>
    %795 = tpu.memref_slice %arg7[%c1_i32_749, %c1_i32_750] : memref<2x4x!tpu.dma_semaphore, #tpu.memory_space<semaphore_mem>> -> memref<1x1x!tpu.dma_semaphore, #tpu.memory_space<semaphore_mem>>
    %796 = tpu.memref_squeeze %795 : memref<1x1x!tpu.dma_semaphore, #tpu.memory_space<semaphore_mem>> -> memref<!tpu.dma_semaphore, #tpu.memory_space<semaphore_mem>>
    tpu.wait_dma2 semaphore(%796 : memref<!tpu.dma_semaphore, #tpu.memory_space<semaphore_mem>>) src(%792 : memref<1x128xf32, #tpu.memory_space<any>>) dst(%794 : memref<1x128xf32, #tpu.memory_space<vmem>>)
    %c5_i32_754 = arith.constant 5 : i32
    %c1_i32_755 = arith.constant 1 : i32
    %c1_i32_756 = arith.constant 1 : i32
    %c0_i32_757 = arith.constant 0 : i32
    %797 = tpu.memref_slice %arg4[%400, %c0_i32_757] : memref<512x128xf32, #tpu.memory_space<any>> -> memref<1x128xf32, #tpu.memory_space<any>>
    %c4_i32_758 = arith.constant 4 : i32
    %c0_i32_759 = arith.constant 0 : i32
    %798 = tpu.memref_slice %arg6[%c5_i32_754, %c4_i32_758, %c0_i32_759] : memref<8x8x128xf32, #tpu.memory_space<vmem>> -> memref<1x1x128xf32, #tpu.memory_space<vmem>>
    %799 = tpu.memref_squeeze %798 : memref<1x1x128xf32, #tpu.memory_space<vmem>> -> memref<1x128xf32, #tpu.memory_space<vmem>>
    %800 = tpu.memref_slice %arg7[%c1_i32_755, %c1_i32_756] : memref<2x4x!tpu.dma_semaphore, #tpu.memory_space<semaphore_mem>> -> memref<1x1x!tpu.dma_semaphore, #tpu.memory_space<semaphore_mem>>
    %801 = tpu.memref_squeeze %800 : memref<1x1x!tpu.dma_semaphore, #tpu.memory_space<semaphore_mem>> -> memref<!tpu.dma_semaphore, #tpu.memory_space<semaphore_mem>>
    tpu.wait_dma2 semaphore(%801 : memref<!tpu.dma_semaphore, #tpu.memory_space<semaphore_mem>>) src(%797 : memref<1x128xf32, #tpu.memory_space<any>>) dst(%799 : memref<1x128xf32, #tpu.memory_space<vmem>>)
    %c5_i32_760 = arith.constant 5 : i32
    %c1_i32_761 = arith.constant 1 : i32
    %c1_i32_762 = arith.constant 1 : i32
    %c0_i32_763 = arith.constant 0 : i32
    %802 = tpu.memref_slice %arg4[%409, %c0_i32_763] : memref<512x128xf32, #tpu.memory_space<any>> -> memref<1x128xf32, #tpu.memory_space<any>>
    %c5_i32_764 = arith.constant 5 : i32
    %c0_i32_765 = arith.constant 0 : i32
    %803 = tpu.memref_slice %arg6[%c5_i32_760, %c5_i32_764, %c0_i32_765] : memref<8x8x128xf32, #tpu.memory_space<vmem>> -> memref<1x1x128xf32, #tpu.memory_space<vmem>>
    %804 = tpu.memref_squeeze %803 : memref<1x1x128xf32, #tpu.memory_space<vmem>> -> memref<1x128xf32, #tpu.memory_space<vmem>>
    %805 = tpu.memref_slice %arg7[%c1_i32_761, %c1_i32_762] : memref<2x4x!tpu.dma_semaphore, #tpu.memory_space<semaphore_mem>> -> memref<1x1x!tpu.dma_semaphore, #tpu.memory_space<semaphore_mem>>
    %806 = tpu.memref_squeeze %805 : memref<1x1x!tpu.dma_semaphore, #tpu.memory_space<semaphore_mem>> -> memref<!tpu.dma_semaphore, #tpu.memory_space<semaphore_mem>>
    tpu.wait_dma2 semaphore(%806 : memref<!tpu.dma_semaphore, #tpu.memory_space<semaphore_mem>>) src(%802 : memref<1x128xf32, #tpu.memory_space<any>>) dst(%804 : memref<1x128xf32, #tpu.memory_space<vmem>>)
    %c5_i32_766 = arith.constant 5 : i32
    %c1_i32_767 = arith.constant 1 : i32
    %c1_i32_768 = arith.constant 1 : i32
    %c0_i32_769 = arith.constant 0 : i32
    %807 = tpu.memref_slice %arg4[%418, %c0_i32_769] : memref<512x128xf32, #tpu.memory_space<any>> -> memref<1x128xf32, #tpu.memory_space<any>>
    %c6_i32_770 = arith.constant 6 : i32
    %c0_i32_771 = arith.constant 0 : i32
    %808 = tpu.memref_slice %arg6[%c5_i32_766, %c6_i32_770, %c0_i32_771] : memref<8x8x128xf32, #tpu.memory_space<vmem>> -> memref<1x1x128xf32, #tpu.memory_space<vmem>>
    %809 = tpu.memref_squeeze %808 : memref<1x1x128xf32, #tpu.memory_space<vmem>> -> memref<1x128xf32, #tpu.memory_space<vmem>>
    %810 = tpu.memref_slice %arg7[%c1_i32_767, %c1_i32_768] : memref<2x4x!tpu.dma_semaphore, #tpu.memory_space<semaphore_mem>> -> memref<1x1x!tpu.dma_semaphore, #tpu.memory_space<semaphore_mem>>
    %811 = tpu.memref_squeeze %810 : memref<1x1x!tpu.dma_semaphore, #tpu.memory_space<semaphore_mem>> -> memref<!tpu.dma_semaphore, #tpu.memory_space<semaphore_mem>>
    tpu.wait_dma2 semaphore(%811 : memref<!tpu.dma_semaphore, #tpu.memory_space<semaphore_mem>>) src(%807 : memref<1x128xf32, #tpu.memory_space<any>>) dst(%809 : memref<1x128xf32, #tpu.memory_space<vmem>>)
    %c5_i32_772 = arith.constant 5 : i32
    %c1_i32_773 = arith.constant 1 : i32
    %c1_i32_774 = arith.constant 1 : i32
    %c0_i32_775 = arith.constant 0 : i32
    %812 = tpu.memref_slice %arg4[%427, %c0_i32_775] : memref<512x128xf32, #tpu.memory_space<any>> -> memref<1x128xf32, #tpu.memory_space<any>>
    %c7_i32_776 = arith.constant 7 : i32
    %c0_i32_777 = arith.constant 0 : i32
    %813 = tpu.memref_slice %arg6[%c5_i32_772, %c7_i32_776, %c0_i32_777] : memref<8x8x128xf32, #tpu.memory_space<vmem>> -> memref<1x1x128xf32, #tpu.memory_space<vmem>>
    %814 = tpu.memref_squeeze %813 : memref<1x1x128xf32, #tpu.memory_space<vmem>> -> memref<1x128xf32, #tpu.memory_space<vmem>>
    %815 = tpu.memref_slice %arg7[%c1_i32_773, %c1_i32_774] : memref<2x4x!tpu.dma_semaphore, #tpu.memory_space<semaphore_mem>> -> memref<1x1x!tpu.dma_semaphore, #tpu.memory_space<semaphore_mem>>
    %816 = tpu.memref_squeeze %815 : memref<1x1x!tpu.dma_semaphore, #tpu.memory_space<semaphore_mem>> -> memref<!tpu.dma_semaphore, #tpu.memory_space<semaphore_mem>>
    tpu.wait_dma2 semaphore(%816 : memref<!tpu.dma_semaphore, #tpu.memory_space<semaphore_mem>>) src(%812 : memref<1x128xf32, #tpu.memory_space<any>>) dst(%814 : memref<1x128xf32, #tpu.memory_space<vmem>>)
    %c6_i32_778 = arith.constant 6 : i32
    %c1_i32_779 = arith.constant 1 : i32
    %c2_i32_780 = arith.constant 2 : i32
    %c0_i32_781 = arith.constant 0 : i32
    %817 = tpu.memref_slice %arg4[%436, %c0_i32_781] : memref<512x128xf32, #tpu.memory_space<any>> -> memref<1x128xf32, #tpu.memory_space<any>>
    %c0_i32_782 = arith.constant 0 : i32
    %c0_i32_783 = arith.constant 0 : i32
    %818 = tpu.memref_slice %arg6[%c6_i32_778, %c0_i32_782, %c0_i32_783] : memref<8x8x128xf32, #tpu.memory_space<vmem>> -> memref<1x1x128xf32, #tpu.memory_space<vmem>>
    %819 = tpu.memref_squeeze %818 : memref<1x1x128xf32, #tpu.memory_space<vmem>> -> memref<1x128xf32, #tpu.memory_space<vmem>>
    %820 = tpu.memref_slice %arg7[%c1_i32_779, %c2_i32_780] : memref<2x4x!tpu.dma_semaphore, #tpu.memory_space<semaphore_mem>> -> memref<1x1x!tpu.dma_semaphore, #tpu.memory_space<semaphore_mem>>
    %821 = tpu.memref_squeeze %820 : memref<1x1x!tpu.dma_semaphore, #tpu.memory_space<semaphore_mem>> -> memref<!tpu.dma_semaphore, #tpu.memory_space<semaphore_mem>>
    tpu.wait_dma2 semaphore(%821 : memref<!tpu.dma_semaphore, #tpu.memory_space<semaphore_mem>>) src(%817 : memref<1x128xf32, #tpu.memory_space<any>>) dst(%819 : memref<1x128xf32, #tpu.memory_space<vmem>>)
    %c6_i32_784 = arith.constant 6 : i32
    %c1_i32_785 = arith.constant 1 : i32
    %c2_i32_786 = arith.constant 2 : i32
    %c0_i32_787 = arith.constant 0 : i32
    %822 = tpu.memref_slice %arg4[%445, %c0_i32_787] : memref<512x128xf32, #tpu.memory_space<any>> -> memref<1x128xf32, #tpu.memory_space<any>>
    %c1_i32_788 = arith.constant 1 : i32
    %c0_i32_789 = arith.constant 0 : i32
    %823 = tpu.memref_slice %arg6[%c6_i32_784, %c1_i32_788, %c0_i32_789] : memref<8x8x128xf32, #tpu.memory_space<vmem>> -> memref<1x1x128xf32, #tpu.memory_space<vmem>>
    %824 = tpu.memref_squeeze %823 : memref<1x1x128xf32, #tpu.memory_space<vmem>> -> memref<1x128xf32, #tpu.memory_space<vmem>>
    %825 = tpu.memref_slice %arg7[%c1_i32_785, %c2_i32_786] : memref<2x4x!tpu.dma_semaphore, #tpu.memory_space<semaphore_mem>> -> memref<1x1x!tpu.dma_semaphore, #tpu.memory_space<semaphore_mem>>
    %826 = tpu.memref_squeeze %825 : memref<1x1x!tpu.dma_semaphore, #tpu.memory_space<semaphore_mem>> -> memref<!tpu.dma_semaphore, #tpu.memory_space<semaphore_mem>>
    tpu.wait_dma2 semaphore(%826 : memref<!tpu.dma_semaphore, #tpu.memory_space<semaphore_mem>>) src(%822 : memref<1x128xf32, #tpu.memory_space<any>>) dst(%824 : memref<1x128xf32, #tpu.memory_space<vmem>>)
    %c6_i32_790 = arith.constant 6 : i32
    %c1_i32_791 = arith.constant 1 : i32
    %c2_i32_792 = arith.constant 2 : i32
    %c0_i32_793 = arith.constant 0 : i32
    %827 = tpu.memref_slice %arg4[%454, %c0_i32_793] : memref<512x128xf32, #tpu.memory_space<any>> -> memref<1x128xf32, #tpu.memory_space<any>>
    %c2_i32_794 = arith.constant 2 : i32
    %c0_i32_795 = arith.constant 0 : i32
    %828 = tpu.memref_slice %arg6[%c6_i32_790, %c2_i32_794, %c0_i32_795] : memref<8x8x128xf32, #tpu.memory_space<vmem>> -> memref<1x1x128xf32, #tpu.memory_space<vmem>>
    %829 = tpu.memref_squeeze %828 : memref<1x1x128xf32, #tpu.memory_space<vmem>> -> memref<1x128xf32, #tpu.memory_space<vmem>>
    %830 = tpu.memref_slice %arg7[%c1_i32_791, %c2_i32_792] : memref<2x4x!tpu.dma_semaphore, #tpu.memory_space<semaphore_mem>> -> memref<1x1x!tpu.dma_semaphore, #tpu.memory_space<semaphore_mem>>
    %831 = tpu.memref_squeeze %830 : memref<1x1x!tpu.dma_semaphore, #tpu.memory_space<semaphore_mem>> -> memref<!tpu.dma_semaphore, #tpu.memory_space<semaphore_mem>>
    tpu.wait_dma2 semaphore(%831 : memref<!tpu.dma_semaphore, #tpu.memory_space<semaphore_mem>>) src(%827 : memref<1x128xf32, #tpu.memory_space<any>>) dst(%829 : memref<1x128xf32, #tpu.memory_space<vmem>>)
    %c6_i32_796 = arith.constant 6 : i32
    %c1_i32_797 = arith.constant 1 : i32
    %c2_i32_798 = arith.constant 2 : i32
    %c0_i32_799 = arith.constant 0 : i32
    %832 = tpu.memref_slice %arg4[%463, %c0_i32_799] : memref<512x128xf32, #tpu.memory_space<any>> -> memref<1x128xf32, #tpu.memory_space<any>>
    %c3_i32_800 = arith.constant 3 : i32
    %c0_i32_801 = arith.constant 0 : i32
    %833 = tpu.memref_slice %arg6[%c6_i32_796, %c3_i32_800, %c0_i32_801] : memref<8x8x128xf32, #tpu.memory_space<vmem>> -> memref<1x1x128xf32, #tpu.memory_space<vmem>>
    %834 = tpu.memref_squeeze %833 : memref<1x1x128xf32, #tpu.memory_space<vmem>> -> memref<1x128xf32, #tpu.memory_space<vmem>>
    %835 = tpu.memref_slice %arg7[%c1_i32_797, %c2_i32_798] : memref<2x4x!tpu.dma_semaphore, #tpu.memory_space<semaphore_mem>> -> memref<1x1x!tpu.dma_semaphore, #tpu.memory_space<semaphore_mem>>
    %836 = tpu.memref_squeeze %835 : memref<1x1x!tpu.dma_semaphore, #tpu.memory_space<semaphore_mem>> -> memref<!tpu.dma_semaphore, #tpu.memory_space<semaphore_mem>>
    tpu.wait_dma2 semaphore(%836 : memref<!tpu.dma_semaphore, #tpu.memory_space<semaphore_mem>>) src(%832 : memref<1x128xf32, #tpu.memory_space<any>>) dst(%834 : memref<1x128xf32, #tpu.memory_space<vmem>>)
    %c6_i32_802 = arith.constant 6 : i32
    %c1_i32_803 = arith.constant 1 : i32
    %c2_i32_804 = arith.constant 2 : i32
    %c0_i32_805 = arith.constant 0 : i32
    %837 = tpu.memref_slice %arg4[%472, %c0_i32_805] : memref<512x128xf32, #tpu.memory_space<any>> -> memref<1x128xf32, #tpu.memory_space<any>>
    %c4_i32_806 = arith.constant 4 : i32
    %c0_i32_807 = arith.constant 0 : i32
    %838 = tpu.memref_slice %arg6[%c6_i32_802, %c4_i32_806, %c0_i32_807] : memref<8x8x128xf32, #tpu.memory_space<vmem>> -> memref<1x1x128xf32, #tpu.memory_space<vmem>>
    %839 = tpu.memref_squeeze %838 : memref<1x1x128xf32, #tpu.memory_space<vmem>> -> memref<1x128xf32, #tpu.memory_space<vmem>>
    %840 = tpu.memref_slice %arg7[%c1_i32_803, %c2_i32_804] : memref<2x4x!tpu.dma_semaphore, #tpu.memory_space<semaphore_mem>> -> memref<1x1x!tpu.dma_semaphore, #tpu.memory_space<semaphore_mem>>
    %841 = tpu.memref_squeeze %840 : memref<1x1x!tpu.dma_semaphore, #tpu.memory_space<semaphore_mem>> -> memref<!tpu.dma_semaphore, #tpu.memory_space<semaphore_mem>>
    tpu.wait_dma2 semaphore(%841 : memref<!tpu.dma_semaphore, #tpu.memory_space<semaphore_mem>>) src(%837 : memref<1x128xf32, #tpu.memory_space<any>>) dst(%839 : memref<1x128xf32, #tpu.memory_space<vmem>>)
    %c6_i32_808 = arith.constant 6 : i32
    %c1_i32_809 = arith.constant 1 : i32
    %c2_i32_810 = arith.constant 2 : i32
    %c0_i32_811 = arith.constant 0 : i32
    %842 = tpu.memref_slice %arg4[%481, %c0_i32_811] : memref<512x128xf32, #tpu.memory_space<any>> -> memref<1x128xf32, #tpu.memory_space<any>>
    %c5_i32_812 = arith.constant 5 : i32
    %c0_i32_813 = arith.constant 0 : i32
    %843 = tpu.memref_slice %arg6[%c6_i32_808, %c5_i32_812, %c0_i32_813] : memref<8x8x128xf32, #tpu.memory_space<vmem>> -> memref<1x1x128xf32, #tpu.memory_space<vmem>>
    %844 = tpu.memref_squeeze %843 : memref<1x1x128xf32, #tpu.memory_space<vmem>> -> memref<1x128xf32, #tpu.memory_space<vmem>>
    %845 = tpu.memref_slice %arg7[%c1_i32_809, %c2_i32_810] : memref<2x4x!tpu.dma_semaphore, #tpu.memory_space<semaphore_mem>> -> memref<1x1x!tpu.dma_semaphore, #tpu.memory_space<semaphore_mem>>
    %846 = tpu.memref_squeeze %845 : memref<1x1x!tpu.dma_semaphore, #tpu.memory_space<semaphore_mem>> -> memref<!tpu.dma_semaphore, #tpu.memory_space<semaphore_mem>>
    tpu.wait_dma2 semaphore(%846 : memref<!tpu.dma_semaphore, #tpu.memory_space<semaphore_mem>>) src(%842 : memref<1x128xf32, #tpu.memory_space<any>>) dst(%844 : memref<1x128xf32, #tpu.memory_space<vmem>>)
    %c6_i32_814 = arith.constant 6 : i32
    %c1_i32_815 = arith.constant 1 : i32
    %c2_i32_816 = arith.constant 2 : i32
    %c0_i32_817 = arith.constant 0 : i32
    %847 = tpu.memref_slice %arg4[%490, %c0_i32_817] : memref<512x128xf32, #tpu.memory_space<any>> -> memref<1x128xf32, #tpu.memory_space<any>>
    %c6_i32_818 = arith.constant 6 : i32
    %c0_i32_819 = arith.constant 0 : i32
    %848 = tpu.memref_slice %arg6[%c6_i32_814, %c6_i32_818, %c0_i32_819] : memref<8x8x128xf32, #tpu.memory_space<vmem>> -> memref<1x1x128xf32, #tpu.memory_space<vmem>>
    %849 = tpu.memref_squeeze %848 : memref<1x1x128xf32, #tpu.memory_space<vmem>> -> memref<1x128xf32, #tpu.memory_space<vmem>>
    %850 = tpu.memref_slice %arg7[%c1_i32_815, %c2_i32_816] : memref<2x4x!tpu.dma_semaphore, #tpu.memory_space<semaphore_mem>> -> memref<1x1x!tpu.dma_semaphore, #tpu.memory_space<semaphore_mem>>
    %851 = tpu.memref_squeeze %850 : memref<1x1x!tpu.dma_semaphore, #tpu.memory_space<semaphore_mem>> -> memref<!tpu.dma_semaphore, #tpu.memory_space<semaphore_mem>>
    tpu.wait_dma2 semaphore(%851 : memref<!tpu.dma_semaphore, #tpu.memory_space<semaphore_mem>>) src(%847 : memref<1x128xf32, #tpu.memory_space<any>>) dst(%849 : memref<1x128xf32, #tpu.memory_space<vmem>>)
    %c6_i32_820 = arith.constant 6 : i32
    %c1_i32_821 = arith.constant 1 : i32
    %c2_i32_822 = arith.constant 2 : i32
    %c0_i32_823 = arith.constant 0 : i32
    %852 = tpu.memref_slice %arg4[%499, %c0_i32_823] : memref<512x128xf32, #tpu.memory_space<any>> -> memref<1x128xf32, #tpu.memory_space<any>>
    %c7_i32_824 = arith.constant 7 : i32
    %c0_i32_825 = arith.constant 0 : i32
    %853 = tpu.memref_slice %arg6[%c6_i32_820, %c7_i32_824, %c0_i32_825] : memref<8x8x128xf32, #tpu.memory_space<vmem>> -> memref<1x1x128xf32, #tpu.memory_space<vmem>>
    %854 = tpu.memref_squeeze %853 : memref<1x1x128xf32, #tpu.memory_space<vmem>> -> memref<1x128xf32, #tpu.memory_space<vmem>>
    %855 = tpu.memref_slice %arg7[%c1_i32_821, %c2_i32_822] : memref<2x4x!tpu.dma_semaphore, #tpu.memory_space<semaphore_mem>> -> memref<1x1x!tpu.dma_semaphore, #tpu.memory_space<semaphore_mem>>
    %856 = tpu.memref_squeeze %855 : memref<1x1x!tpu.dma_semaphore, #tpu.memory_space<semaphore_mem>> -> memref<!tpu.dma_semaphore, #tpu.memory_space<semaphore_mem>>
    tpu.wait_dma2 semaphore(%856 : memref<!tpu.dma_semaphore, #tpu.memory_space<semaphore_mem>>) src(%852 : memref<1x128xf32, #tpu.memory_space<any>>) dst(%854 : memref<1x128xf32, #tpu.memory_space<vmem>>)
    %c7_i32_826 = arith.constant 7 : i32
    %c1_i32_827 = arith.constant 1 : i32
    %c3_i32_828 = arith.constant 3 : i32
    %c0_i32_829 = arith.constant 0 : i32
    %857 = tpu.memref_slice %arg4[%508, %c0_i32_829] : memref<512x128xf32, #tpu.memory_space<any>> -> memref<1x128xf32, #tpu.memory_space<any>>
    %c0_i32_830 = arith.constant 0 : i32
    %c0_i32_831 = arith.constant 0 : i32
    %858 = tpu.memref_slice %arg6[%c7_i32_826, %c0_i32_830, %c0_i32_831] : memref<8x8x128xf32, #tpu.memory_space<vmem>> -> memref<1x1x128xf32, #tpu.memory_space<vmem>>
    %859 = tpu.memref_squeeze %858 : memref<1x1x128xf32, #tpu.memory_space<vmem>> -> memref<1x128xf32, #tpu.memory_space<vmem>>
    %860 = tpu.memref_slice %arg7[%c1_i32_827, %c3_i32_828] : memref<2x4x!tpu.dma_semaphore, #tpu.memory_space<semaphore_mem>> -> memref<1x1x!tpu.dma_semaphore, #tpu.memory_space<semaphore_mem>>
    %861 = tpu.memref_squeeze %860 : memref<1x1x!tpu.dma_semaphore, #tpu.memory_space<semaphore_mem>> -> memref<!tpu.dma_semaphore, #tpu.memory_space<semaphore_mem>>
    tpu.wait_dma2 semaphore(%861 : memref<!tpu.dma_semaphore, #tpu.memory_space<semaphore_mem>>) src(%857 : memref<1x128xf32, #tpu.memory_space<any>>) dst(%859 : memref<1x128xf32, #tpu.memory_space<vmem>>)
    %c7_i32_832 = arith.constant 7 : i32
    %c1_i32_833 = arith.constant 1 : i32
    %c3_i32_834 = arith.constant 3 : i32
    %c0_i32_835 = arith.constant 0 : i32
    %862 = tpu.memref_slice %arg4[%517, %c0_i32_835] : memref<512x128xf32, #tpu.memory_space<any>> -> memref<1x128xf32, #tpu.memory_space<any>>
    %c1_i32_836 = arith.constant 1 : i32
    %c0_i32_837 = arith.constant 0 : i32
    %863 = tpu.memref_slice %arg6[%c7_i32_832, %c1_i32_836, %c0_i32_837] : memref<8x8x128xf32, #tpu.memory_space<vmem>> -> memref<1x1x128xf32, #tpu.memory_space<vmem>>
    %864 = tpu.memref_squeeze %863 : memref<1x1x128xf32, #tpu.memory_space<vmem>> -> memref<1x128xf32, #tpu.memory_space<vmem>>
    %865 = tpu.memref_slice %arg7[%c1_i32_833, %c3_i32_834] : memref<2x4x!tpu.dma_semaphore, #tpu.memory_space<semaphore_mem>> -> memref<1x1x!tpu.dma_semaphore, #tpu.memory_space<semaphore_mem>>
    %866 = tpu.memref_squeeze %865 : memref<1x1x!tpu.dma_semaphore, #tpu.memory_space<semaphore_mem>> -> memref<!tpu.dma_semaphore, #tpu.memory_space<semaphore_mem>>
    tpu.wait_dma2 semaphore(%866 : memref<!tpu.dma_semaphore, #tpu.memory_space<semaphore_mem>>) src(%862 : memref<1x128xf32, #tpu.memory_space<any>>) dst(%864 : memref<1x128xf32, #tpu.memory_space<vmem>>)
    %c7_i32_838 = arith.constant 7 : i32
    %c1_i32_839 = arith.constant 1 : i32
    %c3_i32_840 = arith.constant 3 : i32
    %c0_i32_841 = arith.constant 0 : i32
    %867 = tpu.memref_slice %arg4[%526, %c0_i32_841] : memref<512x128xf32, #tpu.memory_space<any>> -> memref<1x128xf32, #tpu.memory_space<any>>
    %c2_i32_842 = arith.constant 2 : i32
    %c0_i32_843 = arith.constant 0 : i32
    %868 = tpu.memref_slice %arg6[%c7_i32_838, %c2_i32_842, %c0_i32_843] : memref<8x8x128xf32, #tpu.memory_space<vmem>> -> memref<1x1x128xf32, #tpu.memory_space<vmem>>
    %869 = tpu.memref_squeeze %868 : memref<1x1x128xf32, #tpu.memory_space<vmem>> -> memref<1x128xf32, #tpu.memory_space<vmem>>
    %870 = tpu.memref_slice %arg7[%c1_i32_839, %c3_i32_840] : memref<2x4x!tpu.dma_semaphore, #tpu.memory_space<semaphore_mem>> -> memref<1x1x!tpu.dma_semaphore, #tpu.memory_space<semaphore_mem>>
    %871 = tpu.memref_squeeze %870 : memref<1x1x!tpu.dma_semaphore, #tpu.memory_space<semaphore_mem>> -> memref<!tpu.dma_semaphore, #tpu.memory_space<semaphore_mem>>
    tpu.wait_dma2 semaphore(%871 : memref<!tpu.dma_semaphore, #tpu.memory_space<semaphore_mem>>) src(%867 : memref<1x128xf32, #tpu.memory_space<any>>) dst(%869 : memref<1x128xf32, #tpu.memory_space<vmem>>)
    %c7_i32_844 = arith.constant 7 : i32
    %c1_i32_845 = arith.constant 1 : i32
    %c3_i32_846 = arith.constant 3 : i32
    %c0_i32_847 = arith.constant 0 : i32
    %872 = tpu.memref_slice %arg4[%535, %c0_i32_847] : memref<512x128xf32, #tpu.memory_space<any>> -> memref<1x128xf32, #tpu.memory_space<any>>
    %c3_i32_848 = arith.constant 3 : i32
    %c0_i32_849 = arith.constant 0 : i32
    %873 = tpu.memref_slice %arg6[%c7_i32_844, %c3_i32_848, %c0_i32_849] : memref<8x8x128xf32, #tpu.memory_space<vmem>> -> memref<1x1x128xf32, #tpu.memory_space<vmem>>
    %874 = tpu.memref_squeeze %873 : memref<1x1x128xf32, #tpu.memory_space<vmem>> -> memref<1x128xf32, #tpu.memory_space<vmem>>
    %875 = tpu.memref_slice %arg7[%c1_i32_845, %c3_i32_846] : memref<2x4x!tpu.dma_semaphore, #tpu.memory_space<semaphore_mem>> -> memref<1x1x!tpu.dma_semaphore, #tpu.memory_space<semaphore_mem>>
    %876 = tpu.memref_squeeze %875 : memref<1x1x!tpu.dma_semaphore, #tpu.memory_space<semaphore_mem>> -> memref<!tpu.dma_semaphore, #tpu.memory_space<semaphore_mem>>
    tpu.wait_dma2 semaphore(%876 : memref<!tpu.dma_semaphore, #tpu.memory_space<semaphore_mem>>) src(%872 : memref<1x128xf32, #tpu.memory_space<any>>) dst(%874 : memref<1x128xf32, #tpu.memory_space<vmem>>)
    %c7_i32_850 = arith.constant 7 : i32
    %c1_i32_851 = arith.constant 1 : i32
    %c3_i32_852 = arith.constant 3 : i32
    %c0_i32_853 = arith.constant 0 : i32
    %877 = tpu.memref_slice %arg4[%544, %c0_i32_853] : memref<512x128xf32, #tpu.memory_space<any>> -> memref<1x128xf32, #tpu.memory_space<any>>
    %c4_i32_854 = arith.constant 4 : i32
    %c0_i32_855 = arith.constant 0 : i32
    %878 = tpu.memref_slice %arg6[%c7_i32_850, %c4_i32_854, %c0_i32_855] : memref<8x8x128xf32, #tpu.memory_space<vmem>> -> memref<1x1x128xf32, #tpu.memory_space<vmem>>
    %879 = tpu.memref_squeeze %878 : memref<1x1x128xf32, #tpu.memory_space<vmem>> -> memref<1x128xf32, #tpu.memory_space<vmem>>
    %880 = tpu.memref_slice %arg7[%c1_i32_851, %c3_i32_852] : memref<2x4x!tpu.dma_semaphore, #tpu.memory_space<semaphore_mem>> -> memref<1x1x!tpu.dma_semaphore, #tpu.memory_space<semaphore_mem>>
    %881 = tpu.memref_squeeze %880 : memref<1x1x!tpu.dma_semaphore, #tpu.memory_space<semaphore_mem>> -> memref<!tpu.dma_semaphore, #tpu.memory_space<semaphore_mem>>
    tpu.wait_dma2 semaphore(%881 : memref<!tpu.dma_semaphore, #tpu.memory_space<semaphore_mem>>) src(%877 : memref<1x128xf32, #tpu.memory_space<any>>) dst(%879 : memref<1x128xf32, #tpu.memory_space<vmem>>)
    %c7_i32_856 = arith.constant 7 : i32
    %c1_i32_857 = arith.constant 1 : i32
    %c3_i32_858 = arith.constant 3 : i32
    %c0_i32_859 = arith.constant 0 : i32
    %882 = tpu.memref_slice %arg4[%553, %c0_i32_859] : memref<512x128xf32, #tpu.memory_space<any>> -> memref<1x128xf32, #tpu.memory_space<any>>
    %c5_i32_860 = arith.constant 5 : i32
    %c0_i32_861 = arith.constant 0 : i32
    %883 = tpu.memref_slice %arg6[%c7_i32_856, %c5_i32_860, %c0_i32_861] : memref<8x8x128xf32, #tpu.memory_space<vmem>> -> memref<1x1x128xf32, #tpu.memory_space<vmem>>
    %884 = tpu.memref_squeeze %883 : memref<1x1x128xf32, #tpu.memory_space<vmem>> -> memref<1x128xf32, #tpu.memory_space<vmem>>
    %885 = tpu.memref_slice %arg7[%c1_i32_857, %c3_i32_858] : memref<2x4x!tpu.dma_semaphore, #tpu.memory_space<semaphore_mem>> -> memref<1x1x!tpu.dma_semaphore, #tpu.memory_space<semaphore_mem>>
    %886 = tpu.memref_squeeze %885 : memref<1x1x!tpu.dma_semaphore, #tpu.memory_space<semaphore_mem>> -> memref<!tpu.dma_semaphore, #tpu.memory_space<semaphore_mem>>
    tpu.wait_dma2 semaphore(%886 : memref<!tpu.dma_semaphore, #tpu.memory_space<semaphore_mem>>) src(%882 : memref<1x128xf32, #tpu.memory_space<any>>) dst(%884 : memref<1x128xf32, #tpu.memory_space<vmem>>)
    %c7_i32_862 = arith.constant 7 : i32
    %c1_i32_863 = arith.constant 1 : i32
    %c3_i32_864 = arith.constant 3 : i32
    %c0_i32_865 = arith.constant 0 : i32
    %887 = tpu.memref_slice %arg4[%562, %c0_i32_865] : memref<512x128xf32, #tpu.memory_space<any>> -> memref<1x128xf32, #tpu.memory_space<any>>
    %c6_i32_866 = arith.constant 6 : i32
    %c0_i32_867 = arith.constant 0 : i32
    %888 = tpu.memref_slice %arg6[%c7_i32_862, %c6_i32_866, %c0_i32_867] : memref<8x8x128xf32, #tpu.memory_space<vmem>> -> memref<1x1x128xf32, #tpu.memory_space<vmem>>
    %889 = tpu.memref_squeeze %888 : memref<1x1x128xf32, #tpu.memory_space<vmem>> -> memref<1x128xf32, #tpu.memory_space<vmem>>
    %890 = tpu.memref_slice %arg7[%c1_i32_863, %c3_i32_864] : memref<2x4x!tpu.dma_semaphore, #tpu.memory_space<semaphore_mem>> -> memref<1x1x!tpu.dma_semaphore, #tpu.memory_space<semaphore_mem>>
    %891 = tpu.memref_squeeze %890 : memref<1x1x!tpu.dma_semaphore, #tpu.memory_space<semaphore_mem>> -> memref<!tpu.dma_semaphore, #tpu.memory_space<semaphore_mem>>
    tpu.wait_dma2 semaphore(%891 : memref<!tpu.dma_semaphore, #tpu.memory_space<semaphore_mem>>) src(%887 : memref<1x128xf32, #tpu.memory_space<any>>) dst(%889 : memref<1x128xf32, #tpu.memory_space<vmem>>)
    %c7_i32_868 = arith.constant 7 : i32
    %c1_i32_869 = arith.constant 1 : i32
    %c3_i32_870 = arith.constant 3 : i32
    %c0_i32_871 = arith.constant 0 : i32
    %892 = tpu.memref_slice %arg4[%571, %c0_i32_871] : memref<512x128xf32, #tpu.memory_space<any>> -> memref<1x128xf32, #tpu.memory_space<any>>
    %c7_i32_872 = arith.constant 7 : i32
    %c0_i32_873 = arith.constant 0 : i32
    %893 = tpu.memref_slice %arg6[%c7_i32_868, %c7_i32_872, %c0_i32_873] : memref<8x8x128xf32, #tpu.memory_space<vmem>> -> memref<1x1x128xf32, #tpu.memory_space<vmem>>
    %894 = tpu.memref_squeeze %893 : memref<1x1x128xf32, #tpu.memory_space<vmem>> -> memref<1x128xf32, #tpu.memory_space<vmem>>
    %895 = tpu.memref_slice %arg7[%c1_i32_869, %c3_i32_870] : memref<2x4x!tpu.dma_semaphore, #tpu.memory_space<semaphore_mem>> -> memref<1x1x!tpu.dma_semaphore, #tpu.memory_space<semaphore_mem>>
    %896 = tpu.memref_squeeze %895 : memref<1x1x!tpu.dma_semaphore, #tpu.memory_space<semaphore_mem>> -> memref<!tpu.dma_semaphore, #tpu.memory_space<semaphore_mem>>
    tpu.wait_dma2 semaphore(%896 : memref<!tpu.dma_semaphore, #tpu.memory_space<semaphore_mem>>) src(%892 : memref<1x128xf32, #tpu.memory_space<any>>) dst(%894 : memref<1x128xf32, #tpu.memory_space<vmem>>)
    %c0 = arith.constant 0 : index
    %c0_874 = arith.constant 0 : index
    %c0_875 = arith.constant 0 : index
    %897 = vector.load %arg2[%c0, %c0_874, %c0_875] : memref<1x8x128xf32, #tpu.memory_space<vmem>>, vector<1x8x128xf32>
    %898 = vector.shape_cast %897 : vector<1x8x128xf32> to vector<8x128xf32>
    %c0_876 = arith.constant 0 : index
    %c0_877 = arith.constant 0 : index
    %c0_878 = arith.constant 0 : index
    %899 = vector.load %arg6[%c0_876, %c0_877, %c0_878] : memref<8x8x128xf32, #tpu.memory_space<vmem>>, vector<1x8x128xf32>
    %900 = vector.shape_cast %899 : vector<1x8x128xf32> to vector<8x128xf32>
    %901 = vector.extract_strided_slice %898 {offsets = [0, 0], sizes = [8, 1], strides = [1, 1]} : vector<8x128xf32> to vector<8x1xf32>
    %902 = vector.broadcast %901 : vector<8x1xf32> to vector<8x128xf32>
    %903 = arith.mulf %900, %902 : vector<8x128xf32>
    %c1 = arith.constant 1 : index
    %c0_879 = arith.constant 0 : index
    %c0_880 = arith.constant 0 : index
    %904 = vector.load %arg6[%c1, %c0_879, %c0_880] : memref<8x8x128xf32, #tpu.memory_space<vmem>>, vector<1x8x128xf32>
    %905 = vector.shape_cast %904 : vector<1x8x128xf32> to vector<8x128xf32>
    %906 = vector.extract_strided_slice %898 {offsets = [0, 1], sizes = [8, 1], strides = [1, 1]} : vector<8x128xf32> to vector<8x1xf32>
    %907 = vector.broadcast %906 : vector<8x1xf32> to vector<8x128xf32>
    %908 = arith.mulf %905, %907 : vector<8x128xf32>
    %909 = arith.addf %903, %908 : vector<8x128xf32>
    %c2 = arith.constant 2 : index
    %c0_881 = arith.constant 0 : index
    %c0_882 = arith.constant 0 : index
    %910 = vector.load %arg6[%c2, %c0_881, %c0_882] : memref<8x8x128xf32, #tpu.memory_space<vmem>>, vector<1x8x128xf32>
    %911 = vector.shape_cast %910 : vector<1x8x128xf32> to vector<8x128xf32>
    %912 = vector.extract_strided_slice %898 {offsets = [0, 2], sizes = [8, 1], strides = [1, 1]} : vector<8x128xf32> to vector<8x1xf32>
    %913 = vector.broadcast %912 : vector<8x1xf32> to vector<8x128xf32>
    %914 = arith.mulf %911, %913 : vector<8x128xf32>
    %915 = arith.addf %909, %914 : vector<8x128xf32>
    %c3 = arith.constant 3 : index
    %c0_883 = arith.constant 0 : index
    %c0_884 = arith.constant 0 : index
    %916 = vector.load %arg6[%c3, %c0_883, %c0_884] : memref<8x8x128xf32, #tpu.memory_space<vmem>>, vector<1x8x128xf32>
    %917 = vector.shape_cast %916 : vector<1x8x128xf32> to vector<8x128xf32>
    %918 = vector.extract_strided_slice %898 {offsets = [0, 3], sizes = [8, 1], strides = [1, 1]} : vector<8x128xf32> to vector<8x1xf32>
    %919 = vector.broadcast %918 : vector<8x1xf32> to vector<8x128xf32>
    %920 = arith.mulf %917, %919 : vector<8x128xf32>
    %921 = arith.addf %915, %920 : vector<8x128xf32>
    %922 = arith.mulf %921, %921 : vector<8x128xf32>
    %cst = arith.constant dense<0.000000e+00> : vector<8xf32>
    %923 = vector.multi_reduction <add>, %922, %cst [1] : vector<8x128xf32> to vector<8xf32>
    %924 = vector.shape_cast %923 : vector<8xf32> to vector<8x1xf32>
    %cst_885 = arith.constant 1.000000e-24 : f32
    %925 = vector.broadcast %cst_885 : f32 to vector<8x1xf32>
    %926 = arith.maximumf %924, %925 : vector<8x1xf32>
    %927 = math.rsqrt %926 : vector<8x1xf32>
    %928 = vector.broadcast %927 : vector<8x1xf32> to vector<8x128xf32>
    %929 = arith.mulf %921, %928 : vector<8x128xf32>
    %c4 = arith.constant 4 : index
    %c0_886 = arith.constant 0 : index
    %c0_887 = arith.constant 0 : index
    %930 = vector.load %arg6[%c4, %c0_886, %c0_887] : memref<8x8x128xf32, #tpu.memory_space<vmem>>, vector<1x8x128xf32>
    %931 = vector.shape_cast %930 : vector<1x8x128xf32> to vector<8x128xf32>
    %932 = vector.extract_strided_slice %898 {offsets = [0, 4], sizes = [8, 1], strides = [1, 1]} : vector<8x128xf32> to vector<8x1xf32>
    %933 = vector.broadcast %932 : vector<8x1xf32> to vector<8x128xf32>
    %934 = arith.mulf %931, %933 : vector<8x128xf32>
    %c5 = arith.constant 5 : index
    %c0_888 = arith.constant 0 : index
    %c0_889 = arith.constant 0 : index
    %935 = vector.load %arg6[%c5, %c0_888, %c0_889] : memref<8x8x128xf32, #tpu.memory_space<vmem>>, vector<1x8x128xf32>
    %936 = vector.shape_cast %935 : vector<1x8x128xf32> to vector<8x128xf32>
    %937 = vector.extract_strided_slice %898 {offsets = [0, 5], sizes = [8, 1], strides = [1, 1]} : vector<8x128xf32> to vector<8x1xf32>
    %938 = vector.broadcast %937 : vector<8x1xf32> to vector<8x128xf32>
    %939 = arith.mulf %936, %938 : vector<8x128xf32>
    %940 = arith.addf %934, %939 : vector<8x128xf32>
    %c6 = arith.constant 6 : index
    %c0_890 = arith.constant 0 : index
    %c0_891 = arith.constant 0 : index
    %941 = vector.load %arg6[%c6, %c0_890, %c0_891] : memref<8x8x128xf32, #tpu.memory_space<vmem>>, vector<1x8x128xf32>
    %942 = vector.shape_cast %941 : vector<1x8x128xf32> to vector<8x128xf32>
    %943 = vector.extract_strided_slice %898 {offsets = [0, 6], sizes = [8, 1], strides = [1, 1]} : vector<8x128xf32> to vector<8x1xf32>
    %944 = vector.broadcast %943 : vector<8x1xf32> to vector<8x128xf32>
    %945 = arith.mulf %942, %944 : vector<8x128xf32>
    %946 = arith.addf %940, %945 : vector<8x128xf32>
    %c7 = arith.constant 7 : index
    %c0_892 = arith.constant 0 : index
    %c0_893 = arith.constant 0 : index
    %947 = vector.load %arg6[%c7, %c0_892, %c0_893] : memref<8x8x128xf32, #tpu.memory_space<vmem>>, vector<1x8x128xf32>
    %948 = vector.shape_cast %947 : vector<1x8x128xf32> to vector<8x128xf32>
    %949 = vector.extract_strided_slice %898 {offsets = [0, 7], sizes = [8, 1], strides = [1, 1]} : vector<8x128xf32> to vector<8x1xf32>
    %950 = vector.broadcast %949 : vector<8x1xf32> to vector<8x128xf32>
    %951 = arith.mulf %948, %950 : vector<8x128xf32>
    %952 = arith.addf %946, %951 : vector<8x128xf32>
    %953 = arith.mulf %952, %952 : vector<8x128xf32>
    %cst_894 = arith.constant dense<0.000000e+00> : vector<8xf32>
    %954 = vector.multi_reduction <add>, %953, %cst_894 [1] : vector<8x128xf32> to vector<8xf32>
    %955 = vector.shape_cast %954 : vector<8xf32> to vector<8x1xf32>
    %cst_895 = arith.constant 1.000000e-24 : f32
    %956 = vector.broadcast %cst_895 : f32 to vector<8x1xf32>
    %957 = arith.maximumf %955, %956 : vector<8x1xf32>
    %958 = math.rsqrt %957 : vector<8x1xf32>
    %959 = vector.broadcast %958 : vector<8x1xf32> to vector<8x128xf32>
    %960 = arith.mulf %952, %959 : vector<8x128xf32>
    %961 = arith.subf %929, %960 : vector<8x128xf32>
    %962 = arith.mulf %961, %961 : vector<8x128xf32>
    %cst_896 = arith.constant dense<0.000000e+00> : vector<8xf32>
    %963 = vector.multi_reduction <add>, %962, %cst_896 [1] : vector<8x128xf32> to vector<8xf32>
    %964 = vector.shape_cast %963 : vector<8xf32> to vector<8x1xf32>
    %965 = vector.shape_cast %964 : vector<8x1xf32> to vector<8x1xf32>
    %966 = vector.broadcast %965 : vector<8x1xf32> to vector<8x128xf32>
    %c0_897 = arith.constant 0 : index
    %c0_898 = arith.constant 0 : index
    %c0_899 = arith.constant 0 : index
    %967 = vector.load %arg5[%c0_897, %c0_898, %c0_899] : memref<1x8x128xf32, #tpu.memory_space<vmem>>, vector<1x8x128xf32>
    %968 = vector.shape_cast %967 : vector<1x8x128xf32> to vector<8x128xf32>
    %969 = vector.shape_cast %966 : vector<8x128xf32> to vector<1x8x128xf32>
    tpu.vector_store %arg5[%c0_897, %c0_898, %c0_899], %969 {strides = array<i32>} : memref<1x8x128xf32, #tpu.memory_space<vmem>>, vector<1x8x128xf32>,
    return
  }
  func.func @transform_0(%arg0: i32, %arg1: memref<128xi32, #tpu.memory_space<smem>>) -> (i32, i32, i32) {
    %c0_i32 = arith.constant 0 : i32
    %c0_i32_0 = arith.constant 0 : i32
    %c0_i32_1 = arith.constant 0 : i32
    return %arg0, %c0_i32, %c0_i32_0 : i32, i32, i32
  }
  func.func @transform_3(%arg0: i32, %arg1: memref<128xi32, #tpu.memory_space<smem>>) -> (i32, i32, i32) {
    %c0_i32 = arith.constant 0 : i32
    %c0_i32_0 = arith.constant 0 : i32
    %c0_i32_1 = arith.constant 0 : i32
    return %arg0, %c0_i32, %c0_i32_0 : i32, i32, i32
  }
}

</mosaic_0001>

<bundles_post_ra>
// kernel: tpu_custom_call.1
= control target key start
LH: loop header
LB: loop body
LE: loop exit
PB: predicated region body
PF: predicated region fallthrough
CT: control target
= control target key end

     0   :  { %s3481_s18 = smov [#allocation5]   ;;  %s4455_s0 = inlined_call_operand.hbm [shape: s32[128], index: 0, kind: input, shape index: {}]   ;;  %s4456_s1 = inlined_call_operand.hbm [shape: f32[2,8,128], index: 1, kind: input, shape index: {}]   ;;  %s4457_s2 = inlined_call_operand.hbm [shape: f32[512,128], index: 2, kind: input, shape index: {}]   ;;  %s4458_s3 = inlined_call_operand.hbm [shape: f32[512,128], index: 3, kind: input, shape index: {}]   ;;  %s4459_s4 = inlined_call_operand.hbm [shape: f32[2,8,128], index: 4, kind: output, shape index: {}]  }
   0x1   :  { %4483 = sst [smem:[#allocation154_spill]] %s4456_s1  ;;  %s10_s17 = sshll.u32 %s4455_s0, 4  ;;  %s11_s17 = int_to_ptr.hbm [resolvable:$true] %s10_s17 }
   0x2   :  { %13 = dma.hbm_to_smem %s11_s17, 16, %s3481_s18, [#allocation4] }
   0x3   :  { %3439 = dma.done.wait [#allocation4], 16 }
   0x4   :  { %3440 = vsyncadd [#allocation4], 4294967280 }
   0x5   :  { %16 = sfence }
   0x6   :  { %17 = vsyncpa [#allocation7], 0 }
   0x7   :  { %19 = vsyncpa [#allocation7 + $0x1], 0 }
   0x8   :  { %20 = vsyncpa [#allocation8], 0 }
   0x9   :  { %22 = vsyncpa [#allocation8 + $0x1], 0  ;;  %s3582_s19 = smov 0   ;;  %s3584_s20 = smov 0  }
   0xa   :  { %s3586_s21 = smov 0   ;;  %s3588_s22 = smov 0  }
   0xb LB: > { %4484 = sst [smem:[#allocation151_spill]] %s3475_s21  ;;  %s3603_s0 = sadd.s32 4294967295, %s3479_s22   ;;  %s3479_s22 = sphi %s3588_s22, %s4561_s22   ;;  %s3475_s21 = sphi %s3586_s21, %s4558_s21   ;;  %s3471_s20 = sphi %s3584_s20, %s4560_s20   ;;  %s3467_s19 = sphi %s3582_s19, %s4559_s19  }
   0xc   : > { %s1664_s23 = sadd.s32 4294967294, %s3479_s22   ;;  %s3607_s24 = sadd.s32 1, %s3479_s22  }
   0xd   : > { %s35_s25 = sadd.s32 1, %s3475_s21  ;;  %s32_s26 = ssub.s32 %s3479_s22, %s3607_s24 }
   0xe   : > { %p42_p0 = scmp.ne.s32.totalorder %s3475_s21, %s3471_s20  ;;  %p33_p1 = scmp.eq.s32.totalorder %s32_s26, 0 }
   0xf   : > { %p43_p2 = scmp.eq.s32.totalorder %s3479_s22, 0  ;;  %p48_p3 = scmp.ne.s32.totalorder %s3471_s20, %s3467_s19 }
  0x10   : > { %p49_p4 = scmp.eq.s32.totalorder %s3603_s0, 0  ;;  %p72_p7 = scmp.eq.s32.totalorder %s3603_s0, 1 }
  0x11   : > { %s3619_s27 = scalar_select %p33_p1, %s3475_s21, %s35_s25  }
  0x12   : > { %p3621_p5 = por %p43_p2, %p42_p0  ;;  %p3625_p6 = por %p49_p4, %p48_p3 }
  0x13   : > { %4485 = sst [smem:[#allocation152_spill]] %s3619_s27  ;;  %p78_p8 = scmp.eq.s32.totalorder %s1664_s23, 1 }
  0x14   : > { %p1697_p10 = scmp.lt.s32.totalorder %s3479_s22, 2  ;;  %p3632_p11 = por %p72_p7, %p42_p0 }
  0x15   : > { %p3636_p12 = por %p78_p8, %p48_p3  ;;  %s98_s6 = sand.u32 1, %s3475_s21  }
  0x16   : > { %s1668_s7 = sshll.u32 %s3479_s22, 3  ;;  %s1667_s8 = sshll.u32 %s98_s6, 3 }
  0x17   : > { %s4490_s1 = sld [smem:[#allocation154_spill]]  ;;  %s102_s13 = scalar_lea.vmem [#allocation6], %s1667_s8 }
  0x18   : > { %s110_s14 = sshll.u32 %s102_s13, 4  ;;  %p3647_p13 = pnand %p1697_p10, %p3621_p5  ;;  %s111_s14 = int_to_ptr.vmem [resolvable:$true] %s110_s14 }
  0x19   : > { %p1669_p0 = scmp.ge.s32.totalorder %s3479_s22, 1  ;;  %p115_p1 = scmp.lt.s32.totalorder %s3479_s22, 3 }
  0x1a   : > { %s99_s16 = scalar_lea.sflag [#allocation7], %s98_s6  ;;  %p1833_p3 = pneg %p3647_p13 }
  0x1d   : > { %s106_s11 = scalar_lea.hbm %s4490_s1, %s1668_s7  ;;  %s1836_s26 = scalar_lea.hbm %s4490_s1, 16 }
  0x1e   : > { %s108_s12 = sshll.u32 %s106_s11, 4  ;;  %s109_s12 = int_to_ptr.hbm [resolvable:$true] %s108_s12 }
  0x1f   : > { %s1829_s17 = sshra.s32 %s109_s12, 4  ;;  %s1830_s17 = int_to_ptr.hbm [resolvable:$true] %s1829_s17 }
  0x20   : > { %s1831_s18 = scalar_lea.hbm %s1830_s17, 8  ;;  %p1837_p5 = scmp.lt.s32.totalorder %s1830_s17, %s4490_s1 }
  0x21   : > { %p1832_p2 = scmp.ne.s32.totalorder %s1830_s17, %s1831_s18  ;;  %p1838_p8 = scmp.lt.s32.totalorder %s1836_s26, %s1831_s18 }
  0x23   : > { %p1834_p4 = pnand %p1833_p3, %p1832_p2  ;;  %p1839_p10 = por %p1838_p8, %p1837_p5 }
  0x25   : > { %p1835_p7 = pneg %p1834_p4 }
  0x27   : > { %p1840_p9 = pnand %p1839_p10, %p1835_p7 }
  0x29   : > { %1843 = shalt.err (!%p1840_p9)
}
  0x2a   : > { %1692 = dma.hbm_to_vmem [thread:$0]  (!%p3647_p13), %s109_s12, 128, %s111_s14, %s99_s16  }
  0x2b   : > { %p116_p2 = pnand %p1669_p0, %p115_p1 }
  0x2d   : > { %119 = sbr.rel (%p116_p2) target bundleno = 1332 (0x534), region = 24 }
  0x32   : > { %s3668_s6 = sand.u32 1, %s3471_s20  }
  0x33   : > { %s4460_s8 = sshll.u32 %s3668_s6, 3  ;;  %s122_s9 = scalar_lea.sflag [#allocation7], %s3668_s6 }
  0x34   : > { %s3674_s10 = scalar_lea.vmem [#allocation6], %s4460_s8 }
  0x35   : > { %3442 = dma.done.wait (%p3625_p6), %s122_s9, 128  }
  0x36   : > { %3444 = vsyncadd (%p3625_p6), %s122_s9, 4294967168  ;;  %s3681_s11 = sshll.u32 %s3603_s0, 6  ;;  %s3482_s13 = smov [#allocation2]  }
  0x37   : > { %s146_s12 = sld [smem:[#allocation5 + %s3681_s11]]  ;;  %s157_s14 = sshll.u32 %s3482_s13, 4  ;;  %s158_s14 = int_to_ptr.vmem [resolvable:$true] %s157_s14 }
  0x38   : > { %s161_s15 = sadd.s32 4, %s3681_s11  ;;  %s178_s17 = sadd.s32 8, %s3681_s11 }
  0x39   : > { %s162_s16 = sld [smem:[#allocation5 + %s161_s15]]  ;;  %s3483_s18 = smov [#allocation2 + $0x1]  }
  0x3a   : > { %s3686_s23 = sshll.u32 %s3483_s18, 4  ;;  %s179_s25 = sld [smem:[#allocation5 + %s178_s17]] }
  0x3b   : > { %4492 = sst [smem:[#allocation153_spill]] %s3686_s23  ;;  %s3484_s7 = smov [#allocation2 + $0x2]  }
  0x3c   : > { %s3692_s9 = sshll.u32 %s3484_s7, 4  ;;  %s3701_s29 = scalar_lea.hbm %s4457_s2, 512  ;;  %s192_s9 = int_to_ptr.vmem [resolvable:$true] %s3692_s9 }
  0x3d   : > { %s147_s28 = scalar_lea.hbm %s4457_s2, %s146_s12 }
  0x3e   : > { %s155_s8 = sshll.u32 %s147_s28, 4  ;;  %s156_s8 = int_to_ptr.hbm [resolvable:$true] %s155_s8 }
  0x3f   : > { %s163_s1 = scalar_lea.hbm %s4457_s2, %s162_s16  ;;  %s1859_s18 = sshra.s32 %s156_s8, 4  ;;  %s1860_s18 = int_to_ptr.hbm [resolvable:$true] %s1859_s18 }
  0x40   : > { %s1861_s27 = scalar_lea.hbm %s1860_s18, 1  ;;  %p1864_p9 = scmp.lt.s32.totalorder %s1860_s18, %s4457_s2 }
  0x41   : > { %p1862_p6 = scmp.ne.s32.totalorder %s1860_s18, %s1861_s27  ;;  %p1865_p13 = scmp.lt.s32.totalorder %s3701_s29, %s1861_s27 }
  0x43   : > { %p1866_p0 = por %p1865_p13, %p1864_p9 }
  0x45   : > { %p1867_p1 = pnand %p1866_p0, %p1862_p6 }
  0x47   : > { %1870 = shalt.err (!%p1867_p1)  }
  0x48   : > { %160 = dma.hbm_to_vmem [thread:$0]  %s156_s8, 16, %s158_s14, [#allocation3] }
  0x49   : > { %s172_s16 = sshll.u32 %s163_s1, 4  ;;  %s180_s13 = scalar_lea.hbm %s4457_s2, %s179_s25  ;;  %s173_s16 = int_to_ptr.hbm [resolvable:$true] %s172_s16 }
  0x4a   : > { %s189_s23 = sshll.u32 %s180_s13, 4  ;;  %s1883_s15 = sshra.s32 %s173_s16, 4  ;;  %s1884_s15 = int_to_ptr.hbm [resolvable:$true] %s1883_s15  ;;  %s190_s23 = int_to_ptr.hbm [resolvable:$true] %s189_s23 }
  0x4b   : > { %s1885_s17 = scalar_lea.hbm %s1884_s15, 1  ;;  %p1888_p4 = scmp.lt.s32.totalorder %s1884_s15, %s4457_s2 }
  0x4c   : > { %p1886_p3 = scmp.ne.s32.totalorder %s1884_s15, %s1885_s17  ;;  %p1889_p7 = scmp.lt.s32.totalorder %s3701_s29, %s1885_s17 }
  0x4e   : > { %p1890_p5 = por %p1889_p7, %p1888_p4 }
  0x50   : > { %p1891_p8 = pnand %p1890_p5, %p1886_p3 }
  0x52   : > { %1894 = shalt.err (!%p1891_p8)  }
  0x53   : > { %s4493_s27 = sld [smem:[#allocation153_spill]]  ;;  %s195_s8 = sadd.s32 12, %s3681_s11 }
  0x54   : > { %s1907_s14 = sshra.s32 %s190_s23, 4  ;;  %s1908_s14 = int_to_ptr.hbm [resolvable:$true] %s1907_s14 }
  0x55   : > { %s1909_s25 = scalar_lea.hbm %s1908_s14, 1  ;;  %p1912_p2 = scmp.lt.s32.totalorder %s1908_s14, %s4457_s2 }
  0x56   : > { %p1910_p10 = scmp.ne.s32.totalorder %s1908_s14, %s1909_s25  ;;  %p1913_p6 = scmp.lt.s32.totalorder %s3701_s29, %s1909_s25 }
  0x58   : > { %p1914_p9 = por %p1913_p6, %p1912_p2 }
  0x59   : > { %s4494_s1 = int_to_ptr.vmem [resolvable:$true] %s4493_s27 }
  0x5a   : > { %177 = dma.hbm_to_vmem [thread:$0]  %s173_s16, 16, %s4494_s1, [#allocation3] }
  0x5b   : > { %p1915_p13 = pnand %p1914_p9, %p1910_p10 }
  0x5d   : > { %1918 = shalt.err (!%p1915_p13)  }
  0x5e   : > { %194 = dma.hbm_to_vmem [thread:$0]  %s190_s23, 16, %s192_s9, [#allocation3] }
  0x5f   : > { %s196_s16 = sld [smem:[#allocation5 + %s195_s8]]  ;;  %s3485_s7 = smov [#allocation2 + $0x3]  }
  0x60   : > { %s208_s13 = sshll.u32 %s3485_s7, 4  ;;  %s212_s15 = sadd.s32 16, %s3681_s11  ;;  %s209_s13 = int_to_ptr.vmem [resolvable:$true] %s208_s13 }
  0x61   : > { %s213_s17 = sld [smem:[#allocation5 + %s212_s15]]  ;;  %s229_s12 = sadd.s32 20, %s3681_s11 }
  0x62   : > { %s3486_s26 = smov [#allocation2 + $0x4]   ;;  %s230_s1 = sld [smem:[#allocation5 + %s229_s12]] }
  0x63   : > { %s3725_s27 = sshll.u32 %s3486_s26, 4  ;;  %s3487_s28 = smov [#allocation2 + $0x5]  }
  0x64   : > { %4495 = sst [smem:[#allocation153_spill]] %s3725_s27  ;;  %s3731_s9 = sshll.u32 %s3487_s28, 4  ;;  %s243_s9 = int_to_ptr.vmem [resolvable:$true] %s3731_s9 }
  0x65   : > { %s197_s18 = scalar_lea.hbm %s4457_s2, %s196_s16 }
  0x66   : > { %s206_s23 = sshll.u32 %s197_s18, 4  ;;  %s207_s23 = int_to_ptr.hbm [resolvable:$true] %s206_s23 }
  0x67   : > { %s214_s15 = scalar_lea.hbm %s4457_s2, %s213_s17  ;;  %s1931_s26 = sshra.s32 %s207_s23, 4  ;;  %s1932_s26 = int_to_ptr.hbm [resolvable:$true] %s1931_s26 }
  0x68   : > { %s1933_s21 = scalar_lea.hbm %s1932_s26, 1  ;;  %p1936_p1 = scmp.lt.s32.totalorder %s1932_s26, %s4457_s2 }
  0x69   : > { %p1934_p0 = scmp.ne.s32.totalorder %s1932_s26, %s1933_s21  ;;  %p1937_p3 = scmp.lt.s32.totalorder %s3701_s29, %s1933_s21 }
  0x6b   : > { %p1938_p4 = por %p1937_p3, %p1936_p1 }
  0x6d   : > { %p1939_p7 = pnand %p1938_p4, %p1934_p0 }
  0x6f   : > { %1942 = shalt.err (!%p1939_p7)  }
  0x70   : > { %211 = dma.hbm_to_vmem [thread:$0]  %s207_s23, 16, %s209_s13, [#allocation3] }
  0x71   : > { %s223_s16 = sshll.u32 %s214_s15, 4  ;;  %s231_s18 = scalar_lea.hbm %s4457_s2, %s230_s1  ;;  %s224_s16 = int_to_ptr.hbm [resolvable:$true] %s223_s16 }
  0x72   : > { %s240_s17 = sshll.u32 %s231_s18, 4  ;;  %s1955_s28 = sshra.s32 %s224_s16, 4  ;;  %s1956_s28 = int_to_ptr.hbm [resolvable:$true] %s1955_s28  ;;  %s241_s17 = int_to_ptr.hbm [resolvable:$true] %s240_s17 }
  0x73   : > { %s1957_s8 = scalar_lea.hbm %s1956_s28, 1  ;;  %p1960_p8 = scmp.lt.s32.totalorder %s1956_s28, %s4457_s2 }
  0x74   : > { %p1958_p5 = scmp.ne.s32.totalorder %s1956_s28, %s1957_s8  ;;  %p1961_p10 = scmp.lt.s32.totalorder %s3701_s29, %s1957_s8 }
  0x76   : > { %p1962_p2 = por %p1961_p10, %p1960_p8 }
  0x78   : > { %p1963_p6 = pnand %p1962_p2, %p1958_p5 }
  0x7a   : > { %1966 = shalt.err (!%p1963_p6)  }
  0x7b   : > { %s4496_s21 = sld [smem:[#allocation153_spill]]  ;;  %s246_s1 = sadd.s32 24, %s3681_s11 }
  0x7c   : > { %s1979_s23 = sshra.s32 %s241_s17, 4  ;;  %s1980_s23 = int_to_ptr.hbm [resolvable:$true] %s1979_s23 }
  0x7d   : > { %s1981_s15 = scalar_lea.hbm %s1980_s23, 1  ;;  %p1984_p13 = scmp.lt.s32.totalorder %s1980_s23, %s4457_s2 }
  0x7e   : > { %p1982_p9 = scmp.ne.s32.totalorder %s1980_s23, %s1981_s15  ;;  %p1985_p0 = scmp.lt.s32.totalorder %s3701_s29, %s1981_s15 }
  0x80   : > { %p1986_p1 = por %p1985_p0, %p1984_p13 }
  0x81   : > { %s4497_s13 = int_to_ptr.vmem [resolvable:$true] %s4496_s21 }
  0x82   : > { %228 = dma.hbm_to_vmem [thread:$0]  %s224_s16, 16, %s4497_s13, [#allocation3] }
  0x83   : > { %p1987_p3 = pnand %p1986_p1, %p1982_p9 }
  0x85   : > { %1990 = shalt.err (!%p1987_p3)  }
  0x86   : > { %245 = dma.hbm_to_vmem [thread:$0]  %s241_s17, 16, %s243_s9, [#allocation3] }
  0x87   : > { %s247_s16 = sld [smem:[#allocation5 + %s246_s1]]  ;;  %s3488_s14 = smov [#allocation2 + $0x6]  }
  0x88   : > { %s259_s25 = sshll.u32 %s3488_s14, 4  ;;  %s263_s18 = sadd.s32 28, %s3681_s11  ;;  %s260_s25 = int_to_ptr.vmem [resolvable:$true] %s259_s25 }
  0x89   : > { %s264_s28 = sld [smem:[#allocation5 + %s263_s18]]  ;;  %s280_s8 = sadd.s32 1, %s3681_s11 }
  0x8a   : > { %s3489_s7 = smov [#allocation2 + $0x7]   ;;  %s281_s21 = sld [smem:[#allocation5 + %s280_s8]] }
  0x8b   : > { %s3759_s27 = sshll.u32 %s3489_s7, 4  ;;  %s3490_s26 = smov [#allocation2 + $0x8]  }
  0x8c   : > { %4498 = sst [smem:[#allocation153_spill]] %s3759_s27  ;;  %s3765_s9 = sshll.u32 %s3490_s26, 4  ;;  %s295_s9 = int_to_ptr.vmem [resolvable:$true] %s3765_s9 }
  0x8d   : > { %s248_s15 = scalar_lea.hbm %s4457_s2, %s247_s16 }
  0x8e   : > { %s257_s17 = sshll.u32 %s248_s15, 4  ;;  %s258_s17 = int_to_ptr.hbm [resolvable:$true] %s257_s17 }
  0x8f   : > { %s265_s14 = scalar_lea.hbm %s4457_s2, %s264_s28  ;;  %s2003_s18 = sshra.s32 %s258_s17, 4  ;;  %s2004_s18 = int_to_ptr.hbm [resolvable:$true] %s2003_s18 }
  0x90   : > { %s2005_s7 = scalar_lea.hbm %s2004_s18, 1  ;;  %p2008_p7 = scmp.lt.s32.totalorder %s2004_s18, %s4457_s2 }
  0x91   : > { %p2006_p4 = scmp.ne.s32.totalorder %s2004_s18, %s2005_s7  ;;  %p2009_p5 = scmp.lt.s32.totalorder %s3701_s29, %s2005_s7 }
  0x93   : > { %p2010_p8 = por %p2009_p5, %p2008_p7 }
  0x95   : > { %p2011_p10 = pnand %p2010_p8, %p2006_p4 }
  0x97   : > { %2014 = shalt.err (!%p2011_p10)  }
  0x98   : > { %262 = dma.hbm_to_vmem [thread:$0]  %s258_s17, 16, %s260_s25, [#allocation3] }
  0x99   : > { %s274_s16 = sshll.u32 %s265_s14, 4  ;;  %s282_s15 = scalar_lea.hbm %s4457_s2, %s281_s21  ;;  %s275_s16 = int_to_ptr.hbm [resolvable:$true] %s274_s16 }
  0x9a   : > { %s292_s28 = sshll.u32 %s282_s15, 4  ;;  %s2027_s26 = sshra.s32 %s275_s16, 4  ;;  %s2028_s26 = int_to_ptr.hbm [resolvable:$true] %s2027_s26  ;;  %s293_s28 = int_to_ptr.hbm [resolvable:$true] %s292_s28 }
  0x9b   : > { %s2029_s1 = scalar_lea.hbm %s2028_s26, 1  ;;  %p2032_p6 = scmp.lt.s32.totalorder %s2028_s26, %s4457_s2 }
  0x9c   : > { %p2030_p2 = scmp.ne.s32.totalorder %s2028_s26, %s2029_s1  ;;  %p2033_p9 = scmp.lt.s32.totalorder %s3701_s29, %s2029_s1 }
  0x9e   : > { %p2034_p13 = por %p2033_p9, %p2032_p6 }
  0xa0   : > { %p2035_p0 = pnand %p2034_p13, %p2030_p2 }
  0xa2   : > { %2038 = shalt.err (!%p2035_p0)  }
  0xa3   : > { %s4499_s25 = sld [smem:[#allocation153_spill]]  ;;  %s298_s21 = sadd.s32 5, %s3681_s11 }
  0xa4   : > { %s2051_s14 = sshra.s32 %s293_s28, 4  ;;  %s2052_s14 = int_to_ptr.hbm [resolvable:$true] %s2051_s14 }
  0xa5   : > { %s2053_s18 = scalar_lea.hbm %s2052_s14, 1  ;;  %p2056_p3 = scmp.lt.s32.totalorder %s2052_s14, %s4457_s2 }
  0xa6   : > { %p2054_p1 = scmp.ne.s32.totalorder %s2052_s14, %s2053_s18  ;;  %p2057_p4 = scmp.lt.s32.totalorder %s3701_s29, %s2053_s18 }
  0xa8   : > { %p2058_p7 = por %p2057_p4, %p2056_p3 }
  0xa9   : > { %s4500_s17 = int_to_ptr.vmem [resolvable:$true] %s4499_s25 }
  0xaa   : > { %279 = dma.hbm_to_vmem [thread:$0]  %s275_s16, 16, %s4500_s17, [#allocation3] }
  0xab   : > { %p2059_p5 = pnand %p2058_p7, %p2054_p1 }
  0xad   : > { %2062 = shalt.err (!%p2059_p5)  }
  0xae   : > { %297 = dma.hbm_to_vmem [thread:$0]  %s293_s28, 16, %s295_s9, [#allocation3 + $0x1] }
  0xaf   : > { %s299_s16 = sld [smem:[#allocation5 + %s298_s21]]  ;;  %s3491_s13 = smov [#allocation2 + $0x9]  }
  0xb0   : > { %s311_s23 = sshll.u32 %s3491_s13, 4  ;;  %s315_s15 = sadd.s32 9, %s3681_s11  ;;  %s312_s23 = int_to_ptr.vmem [resolvable:$true] %s311_s23 }
  0xb1   : > { %s316_s26 = sld [smem:[#allocation5 + %s315_s15]]  ;;  %s332_s1 = sadd.s32 13, %s3681_s11 }
  0xb2   : > { %s3492_s12 = smov [#allocation2 + $0xa]   ;;  %s333_s25 = sld [smem:[#allocation5 + %s332_s1]] }
  0xb3   : > { %s3793_s27 = sshll.u32 %s3492_s12, 4  ;;  %s3493_s7 = smov [#allocation2 + $0xb]  }
  0xb4   : > { %4501 = sst [smem:[#allocation153_spill]] %s3793_s27  ;;  %s3799_s9 = sshll.u32 %s3493_s7, 4  ;;  %s346_s9 = int_to_ptr.vmem [resolvable:$true] %s3799_s9 }
  0xb5   : > { %s300_s18 = scalar_lea.hbm %s4457_s2, %s299_s16 }
  0xb6   : > { %s309_s28 = sshll.u32 %s300_s18, 4  ;;  %s310_s28 = int_to_ptr.hbm [resolvable:$true] %s309_s28 }
  0xb7   : > { %s317_s13 = scalar_lea.hbm %s4457_s2, %s316_s26  ;;  %s2075_s15 = sshra.s32 %s310_s28, 4  ;;  %s2076_s15 = int_to_ptr.hbm [resolvable:$true] %s2075_s15 }
  0xb8   : > { %s2077_s12 = scalar_lea.hbm %s2076_s15, 1  ;;  %p2080_p10 = scmp.lt.s32.totalorder %s2076_s15, %s4457_s2 }
  0xb9   : > { %p2078_p8 = scmp.ne.s32.totalorder %s2076_s15, %s2077_s12  ;;  %p2081_p2 = scmp.lt.s32.totalorder %s3701_s29, %s2077_s12 }
  0xbb   : > { %p2082_p6 = por %p2081_p2, %p2080_p10 }
  0xbd   : > { %p2083_p9 = pnand %p2082_p6, %p2078_p8 }
  0xbf   : > { %2086 = shalt.err (!%p2083_p9)  }
  0xc0   : > { %314 = dma.hbm_to_vmem [thread:$0]  %s310_s28, 16, %s312_s23, [#allocation3 + $0x1] }
  0xc1   : > { %s326_s16 = sshll.u32 %s317_s13, 4  ;;  %s334_s18 = scalar_lea.hbm %s4457_s2, %s333_s25  ;;  %s327_s16 = int_to_ptr.hbm [resolvable:$true] %s326_s16 }
  0xc2   : > { %s343_s26 = sshll.u32 %s334_s18, 4  ;;  %s2099_s7 = sshra.s32 %s327_s16, 4  ;;  %s2100_s7 = int_to_ptr.hbm [resolvable:$true] %s2099_s7  ;;  %s344_s26 = int_to_ptr.hbm [resolvable:$true] %s343_s26 }
  0xc3   : > { %s2101_s21 = scalar_lea.hbm %s2100_s7, 1  ;;  %p2104_p0 = scmp.lt.s32.totalorder %s2100_s7, %s4457_s2 }
  0xc4   : > { %p2102_p13 = scmp.ne.s32.totalorder %s2100_s7, %s2101_s21  ;;  %p2105_p1 = scmp.lt.s32.totalorder %s3701_s29, %s2101_s21 }
  0xc6   : > { %p2106_p3 = por %p2105_p1, %p2104_p0 }
  0xc8   : > { %p2107_p4 = pnand %p2106_p3, %p2102_p13 }
  0xca   : > { %2110 = shalt.err (!%p2107_p4)  }
  0xcb   : > { %s4502_s23 = sld [smem:[#allocation153_spill]]  ;;  %s349_s25 = sadd.s32 17, %s3681_s11 }
  0xcc   : > { %s2123_s13 = sshra.s32 %s344_s26, 4  ;;  %s2124_s13 = int_to_ptr.hbm [resolvable:$true] %s2123_s13 }
  0xcd   : > { %s2125_s15 = scalar_lea.hbm %s2124_s13, 1  ;;  %p2128_p5 = scmp.lt.s32.totalorder %s2124_s13, %s4457_s2 }
  0xce   : > { %p2126_p7 = scmp.ne.s32.totalorder %s2124_s13, %s2125_s15  ;;  %p2129_p8 = scmp.lt.s32.totalorder %s3701_s29, %s2125_s15 }
  0xd0   : > { %p2130_p10 = por %p2129_p8, %p2128_p5 }
  0xd1   : > { %s4503_s28 = int_to_ptr.vmem [resolvable:$true] %s4502_s23 }
  0xd2   : > { %331 = dma.hbm_to_vmem [thread:$0]  %s327_s16, 16, %s4503_s28, [#allocation3 + $0x1] }
  0xd3   : > { %p2131_p2 = pnand %p2130_p10, %p2126_p7 }
  0xd5   : > { %2134 = shalt.err (!%p2131_p2)  }
  0xd6   : > { %348 = dma.hbm_to_vmem [thread:$0]  %s344_s26, 16, %s346_s9, [#allocation3 + $0x1] }
  0xd7   : > { %s350_s16 = sld [smem:[#allocation5 + %s349_s25]]  ;;  %s3494_s17 = smov [#allocation2 + $0xc]  }
  0xd8   : > { %s362_s14 = sshll.u32 %s3494_s17, 4  ;;  %s366_s18 = sadd.s32 21, %s3681_s11  ;;  %s363_s14 = int_to_ptr.vmem [resolvable:$true] %s362_s14 }
  0xd9   : > { %s367_s7 = sld [smem:[#allocation5 + %s366_s18]]  ;;  %s383_s21 = sadd.s32 25, %s3681_s11 }
  0xda   : > { %s3495_s8 = smov [#allocation2 + $0xd]   ;;  %s384_s23 = sld [smem:[#allocation5 + %s383_s21]] }
  0xdb   : > { %s3827_s27 = sshll.u32 %s3495_s8, 4  ;;  %s3496_s12 = smov [#allocation2 + $0xe]  }
  0xdc   : > { %4504 = sst [smem:[#allocation153_spill]] %s3827_s27  ;;  %s3833_s9 = sshll.u32 %s3496_s12, 4  ;;  %s397_s9 = int_to_ptr.vmem [resolvable:$true] %s3833_s9 }
  0xdd   : > { %s351_s15 = scalar_lea.hbm %s4457_s2, %s350_s16 }
  0xde   : > { %s360_s26 = sshll.u32 %s351_s15, 4  ;;  %s361_s26 = int_to_ptr.hbm [resolvable:$true] %s360_s26 }
  0xdf   : > { %s368_s17 = scalar_lea.hbm %s4457_s2, %s367_s7  ;;  %s2147_s18 = sshra.s32 %s361_s26, 4  ;;  %s2148_s18 = int_to_ptr.hbm [resolvable:$true] %s2147_s18 }
  0xe0   : > { %s2149_s8 = scalar_lea.hbm %s2148_s18, 1  ;;  %p2152_p9 = scmp.lt.s32.totalorder %s2148_s18, %s4457_s2 }
  0xe1   : > { %p2150_p6 = scmp.ne.s32.totalorder %s2148_s18, %s2149_s8  ;;  %p2153_p13 = scmp.lt.s32.totalorder %s3701_s29, %s2149_s8 }
  0xe3   : > { %p2154_p0 = por %p2153_p13, %p2152_p9 }
  0xe5   : > { %p2155_p1 = pnand %p2154_p0, %p2150_p6 }
  0xe7   : > { %2158 = shalt.err (!%p2155_p1)  }
  0xe8   : > { %365 = dma.hbm_to_vmem [thread:$0]  %s361_s26, 16, %s363_s14, [#allocation3 + $0x1] }
  0xe9   : > { %s377_s16 = sshll.u32 %s368_s17, 4  ;;  %s385_s15 = scalar_lea.hbm %s4457_s2, %s384_s23  ;;  %s378_s16 = int_to_ptr.hbm [resolvable:$true] %s377_s16 }
  0xea   : > { %s394_s7 = sshll.u32 %s385_s15, 4  ;;  %s2171_s12 = sshra.s32 %s378_s16, 4  ;;  %s2172_s12 = int_to_ptr.hbm [resolvable:$true] %s2171_s12  ;;  %s395_s7 = int_to_ptr.hbm [resolvable:$true] %s394_s7 }
  0xeb   : > { %s2173_s25 = scalar_lea.hbm %s2172_s12, 1  ;;  %p2176_p4 = scmp.lt.s32.totalorder %s2172_s12, %s4457_s2 }
  0xec   : > { %p2174_p3 = scmp.ne.s32.totalorder %s2172_s12, %s2173_s25  ;;  %p2177_p7 = scmp.lt.s32.totalorder %s3701_s29, %s2173_s25 }
  0xee   : > { %p2178_p5 = por %p2177_p7, %p2176_p4 }
  0xf0   : > { %p2179_p8 = pnand %p2178_p5, %p2174_p3 }
  0xf2   : > { %2182 = shalt.err (!%p2179_p8)  }
  0xf3   : > { %s4505_s14 = sld [smem:[#allocation153_spill]]  ;;  %s400_s23 = sadd.s32 29, %s3681_s11 }
  0xf4   : > { %s2195_s17 = sshra.s32 %s395_s7, 4  ;;  %s2196_s17 = int_to_ptr.hbm [resolvable:$true] %s2195_s17 }
  0xf5   : > { %s2197_s18 = scalar_lea.hbm %s2196_s17, 1  ;;  %p2200_p2 = scmp.lt.s32.totalorder %s2196_s17, %s4457_s2 }
  0xf6   : > { %p2198_p10 = scmp.ne.s32.totalorder %s2196_s17, %s2197_s18  ;;  %p2201_p6 = scmp.lt.s32.totalorder %s3701_s29, %s2197_s18 }
  0xf8   : > { %p2202_p9 = por %p2201_p6, %p2200_p2 }
  0xf9   : > { %s4506_s26 = int_to_ptr.vmem [resolvable:$true] %s4505_s14 }
  0xfa   : > { %382 = dma.hbm_to_vmem [thread:$0]  %s378_s16, 16, %s4506_s26, [#allocation3 + $0x1] }
  0xfb   : > { %p2203_p13 = pnand %p2202_p9, %p2198_p10 }
  0xfd   : > { %2206 = shalt.err (!%p2203_p13)  }
  0xfe   : > { %399 = dma.hbm_to_vmem [thread:$0]  %s395_s7, 16, %s397_s9, [#allocation3 + $0x1] }
  0xff   : > { %s401_s16 = sld [smem:[#allocation5 + %s400_s23]]  ;;  %s3497_s28 = smov [#allocation2 + $0xf]  }
 0x100   : > { %s413_s13 = sshll.u32 %s3497_s28, 4  ;;  %s417_s15 = sadd.s32 2, %s3681_s11  ;;  %s414_s13 = int_to_ptr.vmem [resolvable:$true] %s413_s13 }
 0x101   : > { %s418_s12 = sld [smem:[#allocation5 + %s417_s15]]  ;;  %s435_s25 = sadd.s32 6, %s3681_s11 }
 0x102   : > { %s3498_s1 = smov [#allocation2 + $0x10]   ;;  %s436_s14 = sld [smem:[#allocation5 + %s435_s25]] }
 0x103   : > { %s3861_s27 = sshll.u32 %s3498_s1, 4  ;;  %s3499_s8 = smov [#allocation2 + $0x11]  }
 0x104   : > { %4507 = sst [smem:[#allocation153_spill]] %s3861_s27  ;;  %s3867_s9 = sshll.u32 %s3499_s8, 4  ;;  %s449_s9 = int_to_ptr.vmem [resolvable:$true] %s3867_s9 }
 0x105   : > { %s402_s18 = scalar_lea.hbm %s4457_s2, %s401_s16 }
 0x106   : > { %s411_s7 = sshll.u32 %s402_s18, 4  ;;  %s412_s7 = int_to_ptr.hbm [resolvable:$true] %s411_s7 }
 0x107   : > { %s419_s28 = scalar_lea.hbm %s4457_s2, %s418_s12  ;;  %s2219_s15 = sshra.s32 %s412_s7, 4  ;;  %s2220_s15 = int_to_ptr.hbm [resolvable:$true] %s2219_s15 }
 0x108   : > { %s2221_s1 = scalar_lea.hbm %s2220_s15, 1  ;;  %p2224_p1 = scmp.lt.s32.totalorder %s2220_s15, %s4457_s2 }
 0x109   : > { %p2222_p0 = scmp.ne.s32.totalorder %s2220_s15, %s2221_s1  ;;  %p2225_p3 = scmp.lt.s32.totalorder %s3701_s29, %s2221_s1 }
 0x10b   : > { %p2226_p4 = por %p2225_p3, %p2224_p1 }
 0x10d   : > { %p2227_p7 = pnand %p2226_p4, %p2222_p0 }
 0x10f   : > { %2230 = shalt.err (!%p2227_p7)  }
 0x110   : > { %416 = dma.hbm_to_vmem [thread:$0]  %s412_s7, 16, %s414_s13, [#allocation3 + $0x1] }
 0x111   : > { %s429_s16 = sshll.u32 %s419_s28, 4  ;;  %s437_s18 = scalar_lea.hbm %s4457_s2, %s436_s14  ;;  %s430_s16 = int_to_ptr.hbm [resolvable:$true] %s429_s16 }
 0x112   : > { %s446_s12 = sshll.u32 %s437_s18, 4  ;;  %s2243_s8 = sshra.s32 %s430_s16, 4  ;;  %s2244_s8 = int_to_ptr.hbm [resolvable:$true] %s2243_s8  ;;  %s447_s12 = int_to_ptr.hbm [resolvable:$true] %s446_s12 }
 0x113   : > { %s2245_s23 = scalar_lea.hbm %s2244_s8, 1  ;;  %p2248_p8 = scmp.lt.s32.totalorder %s2244_s8, %s4457_s2 }
 0x114   : > { %p2246_p5 = scmp.ne.s32.totalorder %s2244_s8, %s2245_s23  ;;  %p2249_p10 = scmp.lt.s32.totalorder %s3701_s29, %s2245_s23 }
 0x116   : > { %p2250_p2 = por %p2249_p10, %p2248_p8 }
 0x118   : > { %p2251_p6 = pnand %p2250_p2, %p2246_p5 }
 0x11a   : > { %2254 = shalt.err (!%p2251_p6)  }
 0x11b   : > { %s4508_s13 = sld [smem:[#allocation153_spill]]  ;;  %s452_s14 = sadd.s32 10, %s3681_s11 }
 0x11c   : > { %s2267_s28 = sshra.s32 %s447_s12, 4  ;;  %s2268_s28 = int_to_ptr.hbm [resolvable:$true] %s2267_s28 }
 0x11d   : > { %s2269_s15 = scalar_lea.hbm %s2268_s28, 1  ;;  %p2272_p13 = scmp.lt.s32.totalorder %s2268_s28, %s4457_s2 }
 0x11e   : > { %p2270_p9 = scmp.ne.s32.totalorder %s2268_s28, %s2269_s15  ;;  %p2273_p0 = scmp.lt.s32.totalorder %s3701_s29, %s2269_s15 }
 0x120   : > { %p2274_p1 = por %p2273_p0, %p2272_p13 }
 0x121   : > { %s4509_s7 = int_to_ptr.vmem [resolvable:$true] %s4508_s13 }
 0x122   : > { %434 = dma.hbm_to_vmem [thread:$0]  %s430_s16, 16, %s4509_s7, [#allocation3 + $0x2] }
 0x123   : > { %p2275_p3 = pnand %p2274_p1, %p2270_p9 }
 0x125   : > { %2278 = shalt.err (!%p2275_p3)  }
 0x126   : > { %451 = dma.hbm_to_vmem [thread:$0]  %s447_s12, 16, %s449_s9, [#allocation3 + $0x2] }
 0x127   : > { %s453_s16 = sld [smem:[#allocation5 + %s452_s14]]  ;;  %s3500_s26 = smov [#allocation2 + $0x12]  }
 0x128   : > { %s465_s17 = sshll.u32 %s3500_s26, 4  ;;  %s469_s18 = sadd.s32 14, %s3681_s11  ;;  %s466_s17 = int_to_ptr.vmem [resolvable:$true] %s465_s17 }
 0x129   : > { %s470_s8 = sld [smem:[#allocation5 + %s469_s18]]  ;;  %s486_s23 = sadd.s32 18, %s3681_s11 }
 0x12a   : > { %s3501_s21 = smov [#allocation2 + $0x13]   ;;  %s487_s13 = sld [smem:[#allocation5 + %s486_s23]] }
 0x12b   : > { %s3895_s27 = sshll.u32 %s3501_s21, 4  ;;  %s3502_s1 = smov [#allocation2 + $0x14]  }
 0x12c   : > { %4510 = sst [smem:[#allocation153_spill]] %s3895_s27  ;;  %s3901_s9 = sshll.u32 %s3502_s1, 4  ;;  %s500_s9 = int_to_ptr.vmem [resolvable:$true] %s3901_s9 }
 0x12d   : > { %s454_s15 = scalar_lea.hbm %s4457_s2, %s453_s16 }
 0x12e   : > { %s463_s12 = sshll.u32 %s454_s15, 4  ;;  %s464_s12 = int_to_ptr.hbm [resolvable:$true] %s463_s12 }
 0x12f   : > { %s471_s26 = scalar_lea.hbm %s4457_s2, %s470_s8  ;;  %s2291_s18 = sshra.s32 %s464_s12, 4  ;;  %s2292_s18 = int_to_ptr.hbm [resolvable:$true] %s2291_s18 }
 0x130   : > { %s2293_s21 = scalar_lea.hbm %s2292_s18, 1  ;;  %p2296_p7 = scmp.lt.s32.totalorder %s2292_s18, %s4457_s2 }
 0x131   : > { %p2294_p4 = scmp.ne.s32.totalorder %s2292_s18, %s2293_s21  ;;  %p2297_p5 = scmp.lt.s32.totalorder %s3701_s29, %s2293_s21 }
 0x133   : > { %p2298_p8 = por %p2297_p5, %p2296_p7 }
 0x135   : > { %p2299_p10 = pnand %p2298_p8, %p2294_p4 }
 0x137   : > { %2302 = shalt.err (!%p2299_p10)  }
 0x138   : > { %468 = dma.hbm_to_vmem [thread:$0]  %s464_s12, 16, %s466_s17, [#allocation3 + $0x2] }
 0x139   : > { %s480_s16 = sshll.u32 %s471_s26, 4  ;;  %s488_s15 = scalar_lea.hbm %s4457_s2, %s487_s13  ;;  %s481_s16 = int_to_ptr.hbm [resolvable:$true] %s480_s16 }
 0x13a   : > { %s497_s8 = sshll.u32 %s488_s15, 4  ;;  %s2315_s1 = sshra.s32 %s481_s16, 4  ;;  %s2316_s1 = int_to_ptr.hbm [resolvable:$true] %s2315_s1  ;;  %s498_s8 = int_to_ptr.hbm [resolvable:$true] %s497_s8 }
 0x13b   : > { %s2317_s14 = scalar_lea.hbm %s2316_s1, 1  ;;  %p2320_p6 = scmp.lt.s32.totalorder %s2316_s1, %s4457_s2 }
 0x13c   : > { %p2318_p2 = scmp.ne.s32.totalorder %s2316_s1, %s2317_s14  ;;  %p2321_p9 = scmp.lt.s32.totalorder %s3701_s29, %s2317_s14 }
 0x13e   : > { %p2322_p13 = por %p2321_p9, %p2320_p6 }
 0x140   : > { %p2323_p0 = pnand %p2322_p13, %p2318_p2 }
 0x142   : > { %2326 = shalt.err (!%p2323_p0)  }
 0x143   : > { %s4511_s17 = sld [smem:[#allocation153_spill]]  ;;  %s503_s13 = sadd.s32 22, %s3681_s11 }
 0x144   : > { %s2339_s26 = sshra.s32 %s498_s8, 4  ;;  %s2340_s26 = int_to_ptr.hbm [resolvable:$true] %s2339_s26 }
 0x145   : > { %s2341_s18 = scalar_lea.hbm %s2340_s26, 1  ;;  %p2344_p3 = scmp.lt.s32.totalorder %s2340_s26, %s4457_s2 }
 0x146   : > { %p2342_p1 = scmp.ne.s32.totalorder %s2340_s26, %s2341_s18  ;;  %p2345_p4 = scmp.lt.s32.totalorder %s3701_s29, %s2341_s18 }
 0x148   : > { %p2346_p7 = por %p2345_p4, %p2344_p3 }
 0x149   : > { %s4512_s12 = int_to_ptr.vmem [resolvable:$true] %s4511_s17 }
 0x14a   : > { %485 = dma.hbm_to_vmem [thread:$0]  %s481_s16, 16, %s4512_s12, [#allocation3 + $0x2] }
 0x14b   : > { %p2347_p5 = pnand %p2346_p7, %p2342_p1 }
 0x14d   : > { %2350 = shalt.err (!%p2347_p5)  }
 0x14e   : > { %502 = dma.hbm_to_vmem [thread:$0]  %s498_s8, 16, %s500_s9, [#allocation3 + $0x2] }
 0x14f   : > { %s504_s16 = sld [smem:[#allocation5 + %s503_s13]]  ;;  %s3503_s7 = smov [#allocation2 + $0x15]  }
 0x150   : > { %s516_s28 = sshll.u32 %s3503_s7, 4  ;;  %s520_s15 = sadd.s32 26, %s3681_s11  ;;  %s517_s28 = int_to_ptr.vmem [resolvable:$true] %s516_s28 }
 0x151   : > { %s521_s1 = sld [smem:[#allocation5 + %s520_s15]]  ;;  %s537_s14 = sadd.s32 30, %s3681_s11 }
 0x152   : > { %s3504_s25 = smov [#allocation2 + $0x16]   ;;  %s538_s17 = sld [smem:[#allocation5 + %s537_s14]] }
 0x153   : > { %s3929_s27 = sshll.u32 %s3504_s25, 4  ;;  %s3505_s21 = smov [#allocation2 + $0x17]  }
 0x154   : > { %4513 = sst [smem:[#allocation153_spill]] %s3929_s27  ;;  %s3935_s9 = sshll.u32 %s3505_s21, 4  ;;  %s551_s9 = int_to_ptr.vmem [resolvable:$true] %s3935_s9 }
 0x155   : > { %s505_s18 = scalar_lea.hbm %s4457_s2, %s504_s16 }
 0x156   : > { %s514_s8 = sshll.u32 %s505_s18, 4  ;;  %s515_s8 = int_to_ptr.hbm [resolvable:$true] %s514_s8 }
 0x157   : > { %s522_s7 = scalar_lea.hbm %s4457_s2, %s521_s1  ;;  %s2363_s15 = sshra.s32 %s515_s8, 4  ;;  %s2364_s15 = int_to_ptr.hbm [resolvable:$true] %s2363_s15 }
 0x158   : > { %s2365_s25 = scalar_lea.hbm %s2364_s15, 1  ;;  %p2368_p10 = scmp.lt.s32.totalorder %s2364_s15, %s4457_s2 }
 0x159   : > { %p2366_p8 = scmp.ne.s32.totalorder %s2364_s15, %s2365_s25  ;;  %p2369_p2 = scmp.lt.s32.totalorder %s3701_s29, %s2365_s25 }
 0x15b   : > { %p2370_p6 = por %p2369_p2, %p2368_p10 }
 0x15d   : > { %p2371_p9 = pnand %p2370_p6, %p2366_p8 }
 0x15f   : > { %2374 = shalt.err (!%p2371_p9)  }
 0x160   : > { %519 = dma.hbm_to_vmem [thread:$0]  %s515_s8, 16, %s517_s28, [#allocation3 + $0x2] }
 0x161   : > { %s531_s16 = sshll.u32 %s522_s7, 4  ;;  %s539_s18 = scalar_lea.hbm %s4457_s2, %s538_s17  ;;  %s532_s16 = int_to_ptr.hbm [resolvable:$true] %s531_s16 }
 0x162   : > { %s548_s1 = sshll.u32 %s539_s18, 4  ;;  %s2387_s21 = sshra.s32 %s532_s16, 4  ;;  %s2388_s21 = int_to_ptr.hbm [resolvable:$true] %s2387_s21  ;;  %s549_s1 = int_to_ptr.hbm [resolvable:$true] %s548_s1 }
 0x163   : > { %s2389_s13 = scalar_lea.hbm %s2388_s21, 1  ;;  %p2392_p0 = scmp.lt.s32.totalorder %s2388_s21, %s4457_s2 }
 0x164   : > { %p2390_p13 = scmp.ne.s32.totalorder %s2388_s21, %s2389_s13  ;;  %p2393_p1 = scmp.lt.s32.totalorder %s3701_s29, %s2389_s13 }
 0x166   : > { %p2394_p3 = por %p2393_p1, %p2392_p0 }
 0x168   : > { %p2395_p4 = pnand %p2394_p3, %p2390_p13 }
 0x16a   : > { %2398 = shalt.err (!%p2395_p4)  }
 0x16b   : > { %s4514_s28 = sld [smem:[#allocation153_spill]]  ;;  %s554_s17 = sadd.s32 3, %s3681_s11 }
 0x16c   : > { %s2411_s7 = sshra.s32 %s549_s1, 4  ;;  %s2412_s7 = int_to_ptr.hbm [resolvable:$true] %s2411_s7 }
 0x16d   : > { %s2413_s15 = scalar_lea.hbm %s2412_s7, 1  ;;  %p2416_p5 = scmp.lt.s32.totalorder %s2412_s7, %s4457_s2 }
 0x16e   : > { %p2414_p7 = scmp.ne.s32.totalorder %s2412_s7, %s2413_s15  ;;  %p2417_p8 = scmp.lt.s32.totalorder %s3701_s29, %s2413_s15 }
 0x170   : > { %p2418_p10 = por %p2417_p8, %p2416_p5 }
 0x171   : > { %s4515_s8 = int_to_ptr.vmem [resolvable:$true] %s4514_s28 }
 0x172   : > { %536 = dma.hbm_to_vmem [thread:$0]  %s532_s16, 16, %s4515_s8, [#allocation3 + $0x2] }
 0x173   : > { %p2419_p2 = pnand %p2418_p10, %p2414_p7 }
 0x175   : > { %2422 = shalt.err (!%p2419_p2)  }
 0x176   : > { %553 = dma.hbm_to_vmem [thread:$0]  %s549_s1, 16, %s551_s9, [#allocation3 + $0x2] }
 0x177   : > { %s555_s16 = sld [smem:[#allocation5 + %s554_s17]]  ;;  %s3506_s12 = smov [#allocation2 + $0x18]  }
 0x178   : > { %s568_s26 = sshll.u32 %s3506_s12, 4  ;;  %s572_s18 = sadd.s32 7, %s3681_s11  ;;  %s569_s26 = int_to_ptr.vmem [resolvable:$true] %s568_s26 }
 0x179   : > { %s573_s21 = sld [smem:[#allocation5 + %s572_s18]]  ;;  %s589_s13 = sadd.s32 11, %s3681_s11 }
 0x17a   : > { %s3507_s23 = smov [#allocation2 + $0x19]   ;;  %s590_s28 = sld [smem:[#allocation5 + %s589_s13]] }
 0x17b   : > { %s3963_s27 = sshll.u32 %s3507_s23, 4  ;;  %s3508_s25 = smov [#allocation2 + $0x1a]  }
 0x17c   : > { %4516 = sst [smem:[#allocation153_spill]] %s3963_s27  ;;  %s3969_s9 = sshll.u32 %s3508_s25, 4  ;;  %s603_s9 = int_to_ptr.vmem [resolvable:$true] %s3969_s9 }
 0x17d   : > { %s556_s15 = scalar_lea.hbm %s4457_s2, %s555_s16 }
 0x17e   : > { %s566_s1 = sshll.u32 %s556_s15, 4  ;;  %s567_s1 = int_to_ptr.hbm [resolvable:$true] %s566_s1 }
 0x17f   : > { %s574_s12 = scalar_lea.hbm %s4457_s2, %s573_s21  ;;  %s2435_s18 = sshra.s32 %s567_s1, 4  ;;  %s2436_s18 = int_to_ptr.hbm [resolvable:$true] %s2435_s18 }
 0x180   : > { %s2437_s23 = scalar_lea.hbm %s2436_s18, 1  ;;  %p2440_p9 = scmp.lt.s32.totalorder %s2436_s18, %s4457_s2 }
 0x181   : > { %p2438_p6 = scmp.ne.s32.totalorder %s2436_s18, %s2437_s23  ;;  %p2441_p13 = scmp.lt.s32.totalorder %s3701_s29, %s2437_s23 }
 0x183   : > { %p2442_p0 = por %p2441_p13, %p2440_p9 }
 0x185   : > { %p2443_p1 = pnand %p2442_p0, %p2438_p6 }
 0x187   : > { %2446 = shalt.err (!%p2443_p1)  }
 0x188   : > { %571 = dma.hbm_to_vmem [thread:$0]  %s567_s1, 16, %s569_s26, [#allocation3 + $0x3] }
 0x189   : > { %s583_s16 = sshll.u32 %s574_s12, 4  ;;  %s591_s15 = scalar_lea.hbm %s4457_s2, %s590_s28  ;;  %s584_s16 = int_to_ptr.hbm [resolvable:$true] %s583_s16 }
 0x18a   : > { %s600_s21 = sshll.u32 %s591_s15, 4  ;;  %s2459_s25 = sshra.s32 %s584_s16, 4  ;;  %s2460_s25 = int_to_ptr.hbm [resolvable:$true] %s2459_s25  ;;  %s601_s21 = int_to_ptr.hbm [resolvable:$true] %s600_s21 }
 0x18b   : > { %s2461_s17 = scalar_lea.hbm %s2460_s25, 1  ;;  %p2464_p4 = scmp.lt.s32.totalorder %s2460_s25, %s4457_s2 }
 0x18c   : > { %p2462_p3 = scmp.ne.s32.totalorder %s2460_s25, %s2461_s17  ;;  %p2465_p7 = scmp.lt.s32.totalorder %s3701_s29, %s2461_s17 }
 0x18e   : > { %p2466_p5 = por %p2465_p7, %p2464_p4 }
 0x190   : > { %p2467_p8 = pnand %p2466_p5, %p2462_p3 }
 0x192   : > { %2470 = shalt.err (!%p2467_p8)  }
 0x193   : > { %s4517_s26 = sld [smem:[#allocation153_spill]]  ;;  %s606_s28 = sadd.s32 15, %s3681_s11 }
 0x194   : > { %s2483_s12 = sshra.s32 %s601_s21, 4  ;;  %s2484_s12 = int_to_ptr.hbm [resolvable:$true] %s2483_s12 }
 0x195   : > { %s2485_s18 = scalar_lea.hbm %s2484_s12, 1  ;;  %p2488_p2 = scmp.lt.s32.totalorder %s2484_s12, %s4457_s2 }
 0x196   : > { %p2486_p10 = scmp.ne.s32.totalorder %s2484_s12, %s2485_s18  ;;  %p2489_p6 = scmp.lt.s32.totalorder %s3701_s29, %s2485_s18 }
 0x198   : > { %p2490_p9 = por %p2489_p6, %p2488_p2 }
 0x199   : > { %s4518_s1 = int_to_ptr.vmem [resolvable:$true] %s4517_s26 }
 0x19a   : > { %588 = dma.hbm_to_vmem [thread:$0]  %s584_s16, 16, %s4518_s1, [#allocation3 + $0x3] }
 0x19b   : > { %p2491_p13 = pnand %p2490_p9, %p2486_p10 }
 0x19d   : > { %2494 = shalt.err (!%p2491_p13)  }
 0x19e   : > { %605 = dma.hbm_to_vmem [thread:$0]  %s601_s21, 16, %s603_s9, [#allocation3 + $0x3] }
 0x19f   : > { %s607_s16 = sld [smem:[#allocation5 + %s606_s28]]  ;;  %s3509_s8 = smov [#allocation2 + $0x1b]  }
 0x1a0   : > { %s619_s7 = sshll.u32 %s3509_s8, 4  ;;  %s623_s15 = sadd.s32 19, %s3681_s11  ;;  %s620_s7 = int_to_ptr.vmem [resolvable:$true] %s619_s7 }
 0x1a1   : > { %s624_s25 = sld [smem:[#allocation5 + %s623_s15]]  ;;  %s640_s17 = sadd.s32 23, %s3681_s11 }
 0x1a2   : > { %s3510_s14 = smov [#allocation2 + $0x1c]   ;;  %s641_s26 = sld [smem:[#allocation5 + %s640_s17]] }
 0x1a3   : > { %s3997_s27 = sshll.u32 %s3510_s14, 4  ;;  %s3511_s23 = smov [#allocation2 + $0x1d]  }
 0x1a4   : > { %4519 = sst [smem:[#allocation153_spill]] %s3997_s27  ;;  %s4003_s9 = sshll.u32 %s3511_s23, 4  ;;  %s654_s9 = int_to_ptr.vmem [resolvable:$true] %s4003_s9 }
 0x1a5   : > { %s608_s18 = scalar_lea.hbm %s4457_s2, %s607_s16 }
 0x1a6   : > { %s617_s21 = sshll.u32 %s608_s18, 4  ;;  %s618_s21 = int_to_ptr.hbm [resolvable:$true] %s617_s21 }
 0x1a7   : > { %s625_s8 = scalar_lea.hbm %s4457_s2, %s624_s25  ;;  %s2507_s15 = sshra.s32 %s618_s21, 4  ;;  %s2508_s15 = int_to_ptr.hbm [resolvable:$true] %s2507_s15 }
 0x1a8   : > { %s2509_s14 = scalar_lea.hbm %s2508_s15, 1  ;;  %p2512_p1 = scmp.lt.s32.totalorder %s2508_s15, %s4457_s2 }
 0x1a9   : > { %p2510_p0 = scmp.ne.s32.totalorder %s2508_s15, %s2509_s14  ;;  %p2513_p3 = scmp.lt.s32.totalorder %s3701_s29, %s2509_s14 }
 0x1ab   : > { %p2514_p4 = por %p2513_p3, %p2512_p1 }
 0x1ad   : > { %p2515_p7 = pnand %p2514_p4, %p2510_p0 }
 0x1af   : > { %2518 = shalt.err (!%p2515_p7)  }
 0x1b0   : > { %622 = dma.hbm_to_vmem [thread:$0]  %s618_s21, 16, %s620_s7, [#allocation3 + $0x3] }
 0x1b1   : > { %s634_s16 = sshll.u32 %s625_s8, 4  ;;  %s642_s18 = scalar_lea.hbm %s4457_s2, %s641_s26  ;;  %s635_s16 = int_to_ptr.hbm [resolvable:$true] %s634_s16 }
 0x1b2   : > { %s651_s25 = sshll.u32 %s642_s18, 4  ;;  %s2531_s23 = sshra.s32 %s635_s16, 4  ;;  %s2532_s23 = int_to_ptr.hbm [resolvable:$true] %s2531_s23  ;;  %s652_s25 = int_to_ptr.hbm [resolvable:$true] %s651_s25 }
 0x1b3   : > { %s2533_s28 = scalar_lea.hbm %s2532_s23, 1  ;;  %p2536_p8 = scmp.lt.s32.totalorder %s2532_s23, %s4457_s2 }
 0x1b4   : > { %p2534_p5 = scmp.ne.s32.totalorder %s2532_s23, %s2533_s28  ;;  %p2537_p10 = scmp.lt.s32.totalorder %s3701_s29, %s2533_s28 }
 0x1b6   : > { %p2538_p2 = por %p2537_p10, %p2536_p8 }
 0x1b8   : > { %p2539_p6 = pnand %p2538_p2, %p2534_p5 }
 0x1ba   : > { %2542 = shalt.err (!%p2539_p6)  }
 0x1bb   : > { %s4520_s7 = sld [smem:[#allocation153_spill]]  ;;  %s657_s26 = sadd.s32 27, %s3681_s11 }
 0x1bc   : > { %s2555_s8 = sshra.s32 %s652_s25, 4  ;;  %s2556_s8 = int_to_ptr.hbm [resolvable:$true] %s2555_s8 }
 0x1bd   : > { %s2557_s15 = scalar_lea.hbm %s2556_s8, 1  ;;  %p2560_p13 = scmp.lt.s32.totalorder %s2556_s8, %s4457_s2 }
 0x1be   : > { %p2558_p9 = scmp.ne.s32.totalorder %s2556_s8, %s2557_s15  ;;  %p2561_p0 = scmp.lt.s32.totalorder %s3701_s29, %s2557_s15 }
 0x1c0   : > { %p2562_p1 = por %p2561_p0, %p2560_p13 }
 0x1c1   : > { %s4521_s21 = int_to_ptr.vmem [resolvable:$true] %s4520_s7 }
 0x1c2   : > { %639 = dma.hbm_to_vmem [thread:$0]  %s635_s16, 16, %s4521_s21, [#allocation3 + $0x3] }
 0x1c3   : > { %p2563_p3 = pnand %p2562_p1, %p2558_p9 }
 0x1c5   : > { %2566 = shalt.err (!%p2563_p3)  }
 0x1c6   : > { %656 = dma.hbm_to_vmem [thread:$0]  %s652_s25, 16, %s654_s9, [#allocation3 + $0x3] }
 0x1c7   : > { %s658_s16 = sld [smem:[#allocation5 + %s657_s26]]  ;;  %s3512_s1 = smov [#allocation2 + $0x1e]  }
 0x1c8   : > { %s670_s12 = sshll.u32 %s3512_s1, 4  ;;  %s674_s18 = sadd.s32 31, %s3681_s11  ;;  %s671_s12 = int_to_ptr.vmem [resolvable:$true] %s670_s12 }
 0x1c9   : > { %s675_s23 = sld [smem:[#allocation5 + %s674_s18]]  ;;  %s691_s28 = sadd.s32 32, %s3681_s11 }
 0x1ca   : > { %s3513_s13 = smov [#allocation2 + $0x1f]   ;;  %s692_s7 = sld [smem:[#allocation5 + %s691_s28]] }
 0x1cb   : > { %s4031_s27 = sshll.u32 %s3513_s13, 4  ;;  %s3514_s14 = smov [#allocation2 + $0x20]  }
 0x1cc   : > { %4522 = sst [smem:[#allocation153_spill]] %s4031_s27  ;;  %s4037_s9 = sshll.u32 %s3514_s14, 4  ;;  %s706_s9 = int_to_ptr.vmem [resolvable:$true] %s4037_s9 }
 0x1cd   : > { %s659_s15 = scalar_lea.hbm %s4457_s2, %s658_s16 }
 0x1ce   : > { %s668_s25 = sshll.u32 %s659_s15, 4  ;;  %s669_s25 = int_to_ptr.hbm [resolvable:$true] %s668_s25 }
 0x1cf   : > { %s676_s1 = scalar_lea.hbm %s4457_s2, %s675_s23  ;;  %s2579_s18 = sshra.s32 %s669_s25, 4  ;;  %s2580_s18 = int_to_ptr.hbm [resolvable:$true] %s2579_s18 }
 0x1d0   : > { %s2581_s13 = scalar_lea.hbm %s2580_s18, 1  ;;  %p2584_p7 = scmp.lt.s32.totalorder %s2580_s18, %s4457_s2 }
 0x1d1   : > { %p2582_p4 = scmp.ne.s32.totalorder %s2580_s18, %s2581_s13  ;;  %p2585_p5 = scmp.lt.s32.totalorder %s3701_s29, %s2581_s13 }
 0x1d3   : > { %p2586_p8 = por %p2585_p5, %p2584_p7 }
 0x1d5   : > { %p2587_p10 = pnand %p2586_p8, %p2582_p4 }
 0x1d7   : > { %2590 = shalt.err (!%p2587_p10)  }
 0x1d8   : > { %673 = dma.hbm_to_vmem [thread:$0]  %s669_s25, 16, %s671_s12, [#allocation3 + $0x3] }
 0x1d9   : > { %s685_s16 = sshll.u32 %s676_s1, 4  ;;  %s693_s15 = scalar_lea.hbm %s4458_s3, %s692_s7  ;;  %s686_s16 = int_to_ptr.hbm [resolvable:$true] %s685_s16 }
 0x1da   : > { %s703_s23 = sshll.u32 %s693_s15, 4  ;;  %s2603_s14 = sshra.s32 %s686_s16, 4  ;;  %s2604_s14 = int_to_ptr.hbm [resolvable:$true] %s2603_s14  ;;  %s704_s23 = int_to_ptr.hbm [resolvable:$true] %s703_s23 }
 0x1db   : > { %s2605_s26 = scalar_lea.hbm %s2604_s14, 1  ;;  %p2608_p6 = scmp.lt.s32.totalorder %s2604_s14, %s4457_s2 }
 0x1dc   : > { %p2606_p2 = scmp.ne.s32.totalorder %s2604_s14, %s2605_s26  ;;  %p2609_p9 = scmp.lt.s32.totalorder %s3701_s29, %s2605_s26 }
 0x1de   : > { %p2610_p13 = por %p2609_p9, %p2608_p6 }
 0x1e0   : > { %p2611_p0 = pnand %p2610_p13, %p2606_p2 }
 0x1e2   : > { %2614 = shalt.err (!%p2611_p0)  }
 0x1e3   : > { %s4523_s12 = sld [smem:[#allocation153_spill]]  ;;  %s709_s7 = sadd.s32 36, %s3681_s11 }
 0x1e4   : > { %s2627_s1 = sshra.s32 %s704_s23, 4  ;;  %s4060_s21 = scalar_lea.hbm %s4458_s3, 512  ;;  %s2628_s1 = int_to_ptr.hbm [resolvable:$true] %s2627_s1 }
 0x1e5   : > { %s2629_s18 = scalar_lea.hbm %s2628_s1, 1  ;;  %p2632_p3 = scmp.lt.s32.totalorder %s2628_s1, %s4458_s3 }
 0x1e6   : > { %p2630_p1 = scmp.ne.s32.totalorder %s2628_s1, %s2629_s18  ;;  %p2633_p4 = scmp.lt.s32.totalorder %s4060_s21, %s2629_s18 }
 0x1e8   : > { %p2634_p7 = por %p2633_p4, %p2632_p3 }
 0x1e9   : > { %s4524_s25 = int_to_ptr.vmem [resolvable:$true] %s4523_s12 }
 0x1ea   : > { %690 = dma.hbm_to_vmem [thread:$0]  %s686_s16, 16, %s4524_s25, [#allocation3 + $0x3] }
 0x1eb   : > { %p2635_p5 = pnand %p2634_p7, %p2630_p1 }
 0x1ed   : > { %2638 = shalt.err (!%p2635_p5)  }
 0x1ee   : > { %708 = dma.hbm_to_vmem [thread:$0]  %s704_s23, 16, %s706_s9, [#allocation3 + $0x4] }
 0x1ef   : > { %s710_s16 = sld [smem:[#allocation5 + %s709_s7]]  ;;  %s3515_s15 = smov [#allocation2 + $0x21]  }
 0x1f0   : > { %s722_s14 = sshll.u32 %s3515_s15, 4  ;;  %s726_s26 = sadd.s32 40, %s3681_s11  ;;  %s723_s14 = int_to_ptr.vmem [resolvable:$true] %s722_s14 }
 0x1f1   : > { %s727_s17 = sld [smem:[#allocation5 + %s726_s26]]  ;;  %s743_s27 = sadd.s32 44, %s3681_s11 }
 0x1f2   : > { %s3516_s12 = smov [#allocation2 + $0x22]   ;;  %s744_s1 = sld [smem:[#allocation5 + %s743_s27]] }
 0x1f3   : > { %s4070_s25 = sshll.u32 %s3516_s12, 4  ;;  %s3517_s8 = smov [#allocation2 + $0x23]  }
 0x1f4   : > { %4525 = sst [smem:[#allocation153_spill]] %s4070_s25  ;;  %s4076_s9 = sshll.u32 %s3517_s8, 4  ;;  %s757_s9 = int_to_ptr.vmem [resolvable:$true] %s4076_s9 }
 0x1f5   : > { %s711_s28 = scalar_lea.hbm %s4458_s3, %s710_s16 }
 0x1f6   : > { %s720_s23 = sshll.u32 %s711_s28, 4  ;;  %s721_s23 = int_to_ptr.hbm [resolvable:$true] %s720_s23 }
 0x1f7   : > { %s728_s15 = scalar_lea.hbm %s4458_s3, %s727_s17  ;;  %s2651_s26 = sshra.s32 %s721_s23, 4  ;;  %s2652_s26 = int_to_ptr.hbm [resolvable:$true] %s2651_s26 }
 0x1f8   : > { %s2653_s12 = scalar_lea.hbm %s2652_s26, 1  ;;  %p2656_p10 = scmp.lt.s32.totalorder %s2652_s26, %s4458_s3 }
 0x1f9   : > { %p2654_p8 = scmp.ne.s32.totalorder %s2652_s26, %s2653_s12  ;;  %p2657_p2 = scmp.lt.s32.totalorder %s4060_s21, %s2653_s12 }
 0x1fb   : > { %p2658_p6 = por %p2657_p2, %p2656_p10 }
 0x1fd   : > { %p2659_p9 = pnand %p2658_p6, %p2654_p8 }
 0x1ff   : > { %2662 = shalt.err (!%p2659_p9)  }
 0x200   : > { %725 = dma.hbm_to_vmem [thread:$0]  %s721_s23, 16, %s723_s14, [#allocation3 + $0x4] }
 0x201   : > { %s737_s16 = sshll.u32 %s728_s15, 4  ;;  %s745_s28 = scalar_lea.hbm %s4458_s3, %s744_s1  ;;  %s738_s16 = int_to_ptr.hbm [resolvable:$true] %s737_s16 }
 0x202   : > { %s754_s17 = sshll.u32 %s745_s28, 4  ;;  %s2675_s8 = sshra.s32 %s738_s16, 4  ;;  %s2676_s8 = int_to_ptr.hbm [resolvable:$true] %s2675_s8  ;;  %s755_s17 = int_to_ptr.hbm [resolvable:$true] %s754_s17 }
 0x203   : > { %s2677_s7 = scalar_lea.hbm %s2676_s8, 1  ;;  %p2680_p0 = scmp.lt.s32.totalorder %s2676_s8, %s4458_s3 }
 0x204   : > { %p2678_p13 = scmp.ne.s32.totalorder %s2676_s8, %s2677_s7  ;;  %p2681_p1 = scmp.lt.s32.totalorder %s4060_s21, %s2677_s7 }
 0x206   : > { %p2682_p3 = por %p2681_p1, %p2680_p0 }
 0x208   : > { %p2683_p4 = pnand %p2682_p3, %p2678_p13 }
 0x20a   : > { %2686 = shalt.err (!%p2683_p4)  }
 0x20b   : > { %s4526_s14 = sld [smem:[#allocation153_spill]]  ;;  %s760_s1 = sadd.s32 48, %s3681_s11 }
 0x20c   : > { %s2699_s15 = sshra.s32 %s755_s17, 4  ;;  %s2700_s15 = int_to_ptr.hbm [resolvable:$true] %s2699_s15 }
 0x20d   : > { %s2701_s26 = scalar_lea.hbm %s2700_s15, 1  ;;  %p2704_p5 = scmp.lt.s32.totalorder %s2700_s15, %s4458_s3 }
 0x20e   : > { %p2702_p7 = scmp.ne.s32.totalorder %s2700_s15, %s2701_s26  ;;  %p2705_p8 = scmp.lt.s32.totalorder %s4060_s21, %s2701_s26 }
 0x210   : > { %p2706_p10 = por %p2705_p8, %p2704_p5 }
 0x211   : > { %s4527_s23 = int_to_ptr.vmem [resolvable:$true] %s4526_s14 }
 0x212   : > { %742 = dma.hbm_to_vmem [thread:$0]  %s738_s16, 16, %s4527_s23, [#allocation3 + $0x4] }
 0x213   : > { %p2707_p2 = pnand %p2706_p10, %p2702_p7 }
 0x215   : > { %2710 = shalt.err (!%p2707_p2)  }
 0x216   : > { %759 = dma.hbm_to_vmem [thread:$0]  %s755_s17, 16, %s757_s9, [#allocation3 + $0x4] }
 0x217   : > { %s761_s16 = sld [smem:[#allocation5 + %s760_s1]]  ;;  %s3518_s18 = smov [#allocation2 + $0x24]  }
 0x218   : > { %s773_s13 = sshll.u32 %s3518_s18, 4  ;;  %s777_s28 = sadd.s32 52, %s3681_s11  ;;  %s774_s13 = int_to_ptr.vmem [resolvable:$true] %s773_s13 }
 0x219   : > { %s778_s8 = sld [smem:[#allocation5 + %s777_s28]]  ;;  %s794_s7 = sadd.s32 56, %s3681_s11 }
 0x21a   : > { %s3519_s29 = smov [#allocation2 + $0x25]   ;;  %s795_s14 = sld [smem:[#allocation5 + %s794_s7]] }
 0x21b   : > { %s4104_s25 = sshll.u32 %s3519_s29, 4  ;;  %s3520_s12 = smov [#allocation2 + $0x26]  }
 0x21c   : > { %4528 = sst [smem:[#allocation153_spill]] %s4104_s25  ;;  %s4110_s9 = sshll.u32 %s3520_s12, 4  ;;  %s808_s9 = int_to_ptr.vmem [resolvable:$true] %s4110_s9 }
 0x21d   : > { %s762_s26 = scalar_lea.hbm %s4458_s3, %s761_s16 }
 0x21e   : > { %s771_s17 = sshll.u32 %s762_s26, 4  ;;  %s772_s17 = int_to_ptr.hbm [resolvable:$true] %s771_s17 }
 0x21f   : > { %s779_s18 = scalar_lea.hbm %s4458_s3, %s778_s8  ;;  %s2723_s28 = sshra.s32 %s772_s17, 4  ;;  %s2724_s28 = int_to_ptr.hbm [resolvable:$true] %s2723_s28 }
 0x220   : > { %s2725_s29 = scalar_lea.hbm %s2724_s28, 1  ;;  %p2728_p9 = scmp.lt.s32.totalorder %s2724_s28, %s4458_s3 }
 0x221   : > { %p2726_p6 = scmp.ne.s32.totalorder %s2724_s28, %s2725_s29  ;;  %p2729_p13 = scmp.lt.s32.totalorder %s4060_s21, %s2725_s29 }
 0x223   : > { %p2730_p0 = por %p2729_p13, %p2728_p9 }
 0x225   : > { %p2731_p1 = pnand %p2730_p0, %p2726_p6 }
 0x227   : > { %2734 = shalt.err (!%p2731_p1)  }
 0x228   : > { %776 = dma.hbm_to_vmem [thread:$0]  %s772_s17, 16, %s774_s13, [#allocation3 + $0x4] }
 0x229   : > { %s788_s16 = sshll.u32 %s779_s18, 4  ;;  %s796_s26 = scalar_lea.hbm %s4458_s3, %s795_s14  ;;  %s789_s16 = int_to_ptr.hbm [resolvable:$true] %s788_s16 }
 0x22a   : > { %s805_s8 = sshll.u32 %s796_s26, 4  ;;  %s2747_s12 = sshra.s32 %s789_s16, 4  ;;  %s2748_s12 = int_to_ptr.hbm [resolvable:$true] %s2747_s12  ;;  %s806_s8 = int_to_ptr.hbm [resolvable:$true] %s805_s8 }
 0x22b   : > { %s2749_s1 = scalar_lea.hbm %s2748_s12, 1  ;;  %p2752_p4 = scmp.lt.s32.totalorder %s2748_s12, %s4458_s3 }
 0x22c   : > { %p2750_p3 = scmp.ne.s32.totalorder %s2748_s12, %s2749_s1  ;;  %p2753_p7 = scmp.lt.s32.totalorder %s4060_s21, %s2749_s1 }
 0x22e   : > { %p2754_p5 = por %p2753_p7, %p2752_p4 }
 0x230   : > { %p2755_p8 = pnand %p2754_p5, %p2750_p3 }
 0x232   : > { %2758 = shalt.err (!%p2755_p8)  }
 0x233   : > { %s4529_s13 = sld [smem:[#allocation153_spill]]  ;;  %s811_s14 = sadd.s32 60, %s3681_s11 }
 0x234   : > { %s2771_s18 = sshra.s32 %s806_s8, 4  ;;  %s2772_s18 = int_to_ptr.hbm [resolvable:$true] %s2771_s18 }
 0x235   : > { %s2773_s28 = scalar_lea.hbm %s2772_s18, 1  ;;  %p2776_p2 = scmp.lt.s32.totalorder %s2772_s18, %s4458_s3 }
 0x236   : > { %p2774_p10 = scmp.ne.s32.totalorder %s2772_s18, %s2773_s28  ;;  %p2777_p6 = scmp.lt.s32.totalorder %s4060_s21, %s2773_s28 }
 0x238   : > { %p2778_p9 = por %p2777_p6, %p2776_p2 }
 0x239   : > { %s4530_s17 = int_to_ptr.vmem [resolvable:$true] %s4529_s13 }
 0x23a   : > { %793 = dma.hbm_to_vmem [thread:$0]  %s789_s16, 16, %s4530_s17, [#allocation3 + $0x4] }
 0x23b   : > { %p2779_p13 = pnand %p2778_p9, %p2774_p10 }
 0x23d   : > { %2782 = shalt.err (!%p2779_p13)  }
 0x23e   : > { %810 = dma.hbm_to_vmem [thread:$0]  %s806_s8, 16, %s808_s9, [#allocation3 + $0x4] }
 0x23f   : > { %s812_s16 = sld [smem:[#allocation5 + %s811_s14]]  ;;  %s3521_s23 = smov [#allocation2 + $0x27]  }
 0x240   : > { %s824_s15 = sshll.u32 %s3521_s23, 4  ;;  %s828_s26 = sadd.s32 33, %s3681_s11  ;;  %s825_s15 = int_to_ptr.vmem [resolvable:$true] %s824_s15 }
 0x241   : > { %s829_s12 = sld [smem:[#allocation5 + %s828_s26]]  ;;  %s846_s1 = sadd.s32 37, %s3681_s11 }
 0x242   : > { %s3522_s27 = smov [#allocation2 + $0x28]   ;;  %s847_s13 = sld [smem:[#allocation5 + %s846_s1]] }
 0x243   : > { %s4138_s25 = sshll.u32 %s3522_s27, 4  ;;  %s3523_s29 = smov [#allocation2 + $0x29]  }
 0x244   : > { %4531 = sst [smem:[#allocation153_spill]] %s4138_s25  ;;  %s4144_s9 = sshll.u32 %s3523_s29, 4  ;;  %s860_s9 = int_to_ptr.vmem [resolvable:$true] %s4144_s9 }
 0x245   : > { %s813_s28 = scalar_lea.hbm %s4458_s3, %s812_s16 }
 0x246   : > { %s822_s8 = sshll.u32 %s813_s28, 4  ;;  %s823_s8 = int_to_ptr.hbm [resolvable:$true] %s822_s8 }
 0x247   : > { %s830_s23 = scalar_lea.hbm %s4458_s3, %s829_s12  ;;  %s2795_s26 = sshra.s32 %s823_s8, 4  ;;  %s2796_s26 = int_to_ptr.hbm [resolvable:$true] %s2795_s26 }
 0x248   : > { %s2797_s27 = scalar_lea.hbm %s2796_s26, 1  ;;  %p2800_p1 = scmp.lt.s32.totalorder %s2796_s26, %s4458_s3 }
 0x249   : > { %p2798_p0 = scmp.ne.s32.totalorder %s2796_s26, %s2797_s27  ;;  %p2801_p3 = scmp.lt.s32.totalorder %s4060_s21, %s2797_s27 }
 0x24b   : > { %p2802_p4 = por %p2801_p3, %p2800_p1 }
 0x24d   : > { %p2803_p7 = pnand %p2802_p4, %p2798_p0 }
 0x24f   : > { %2806 = shalt.err (!%p2803_p7)  }
 0x250   : > { %827 = dma.hbm_to_vmem [thread:$0]  %s823_s8, 16, %s825_s15, [#allocation3 + $0x4] }
 0x251   : > { %s840_s16 = sshll.u32 %s830_s23, 4  ;;  %s848_s28 = scalar_lea.hbm %s4458_s3, %s847_s13  ;;  %s841_s16 = int_to_ptr.hbm [resolvable:$true] %s840_s16 }
 0x252   : > { %s857_s12 = sshll.u32 %s848_s28, 4  ;;  %s2819_s29 = sshra.s32 %s841_s16, 4  ;;  %s2820_s29 = int_to_ptr.hbm [resolvable:$true] %s2819_s29  ;;  %s858_s12 = int_to_ptr.hbm [resolvable:$true] %s857_s12 }
 0x253   : > { %s2821_s14 = scalar_lea.hbm %s2820_s29, 1  ;;  %p2824_p8 = scmp.lt.s32.totalorder %s2820_s29, %s4458_s3 }
 0x254   : > { %p2822_p5 = scmp.ne.s32.totalorder %s2820_s29, %s2821_s14  ;;  %p2825_p10 = scmp.lt.s32.totalorder %s4060_s21, %s2821_s14 }
 0x256   : > { %p2826_p2 = por %p2825_p10, %p2824_p8 }
 0x258   : > { %p2827_p6 = pnand %p2826_p2, %p2822_p5 }
 0x25a   : > { %2830 = shalt.err (!%p2827_p6)  }
 0x25b   : > { %s4532_s15 = sld [smem:[#allocation153_spill]]  ;;  %s863_s13 = sadd.s32 41, %s3681_s11 }
 0x25c   : > { %s2843_s23 = sshra.s32 %s858_s12, 4  ;;  %s2844_s23 = int_to_ptr.hbm [resolvable:$true] %s2843_s23 }
 0x25d   : > { %s2845_s26 = scalar_lea.hbm %s2844_s23, 1  ;;  %p2848_p13 = scmp.lt.s32.totalorder %s2844_s23, %s4458_s3 }
 0x25e   : > { %p2846_p9 = scmp.ne.s32.totalorder %s2844_s23, %s2845_s26  ;;  %p2849_p0 = scmp.lt.s32.totalorder %s4060_s21, %s2845_s26 }
 0x260   : > { %p2850_p1 = por %p2849_p0, %p2848_p13 }
 0x261   : > { %s4533_s8 = int_to_ptr.vmem [resolvable:$true] %s4532_s15 }
 0x262   : > { %845 = dma.hbm_to_vmem [thread:$0]  %s841_s16, 16, %s4533_s8, [#allocation3 + $0x5] }
 0x263   : > { %p2851_p3 = pnand %p2850_p1, %p2846_p9 }
 0x265   : > { %2854 = shalt.err (!%p2851_p3)  }
 0x266   : > { %862 = dma.hbm_to_vmem [thread:$0]  %s858_s12, 16, %s860_s9, [#allocation3 + $0x5] }
 0x267   : > { %s864_s16 = sld [smem:[#allocation5 + %s863_s13]]  ;;  %s3524_s17 = smov [#allocation2 + $0x2a]  }
 0x268   : > { %s876_s18 = sshll.u32 %s3524_s17, 4  ;;  %s880_s28 = sadd.s32 45, %s3681_s11  ;;  %s877_s18 = int_to_ptr.vmem [resolvable:$true] %s876_s18 }
 0x269   : > { %s881_s29 = sld [smem:[#allocation5 + %s880_s28]]  ;;  %s897_s14 = sadd.s32 49, %s3681_s11 }
 0x26a   : > { %s3525_s7 = smov [#allocation2 + $0x2b]   ;;  %s898_s15 = sld [smem:[#allocation5 + %s897_s14]] }
 0x26b   : > { %s4172_s25 = sshll.u32 %s3525_s7, 4  ;;  %s3526_s27 = smov [#allocation2 + $0x2c]  }
 0x26c   : > { %4534 = sst [smem:[#allocation153_spill]] %s4172_s25  ;;  %s4178_s9 = sshll.u32 %s3526_s27, 4  ;;  %s911_s9 = int_to_ptr.vmem [resolvable:$true] %s4178_s9 }
 0x26d   : > { %s865_s26 = scalar_lea.hbm %s4458_s3, %s864_s16 }
 0x26e   : > { %s874_s12 = sshll.u32 %s865_s26, 4  ;;  %s875_s12 = int_to_ptr.hbm [resolvable:$true] %s874_s12 }
 0x26f   : > { %s882_s17 = scalar_lea.hbm %s4458_s3, %s881_s29  ;;  %s2867_s28 = sshra.s32 %s875_s12, 4  ;;  %s2868_s28 = int_to_ptr.hbm [resolvable:$true] %s2867_s28 }
 0x270   : > { %s2869_s7 = scalar_lea.hbm %s2868_s28, 1  ;;  %p2872_p7 = scmp.lt.s32.totalorder %s2868_s28, %s4458_s3 }
 0x271   : > { %p2870_p4 = scmp.ne.s32.totalorder %s2868_s28, %s2869_s7  ;;  %p2873_p5 = scmp.lt.s32.totalorder %s4060_s21, %s2869_s7 }
 0x273   : > { %p2874_p8 = por %p2873_p5, %p2872_p7 }
 0x275   : > { %p2875_p10 = pnand %p2874_p8, %p2870_p4 }
 0x277   : > { %2878 = shalt.err (!%p2875_p10)  }
 0x278   : > { %879 = dma.hbm_to_vmem [thread:$0]  %s875_s12, 16, %s877_s18, [#allocation3 + $0x5] }
 0x279   : > { %s891_s16 = sshll.u32 %s882_s17, 4  ;;  %s899_s26 = scalar_lea.hbm %s4458_s3, %s898_s15  ;;  %s892_s16 = int_to_ptr.hbm [resolvable:$true] %s891_s16 }
 0x27a   : > { %s908_s29 = sshll.u32 %s899_s26, 4  ;;  %s2891_s27 = sshra.s32 %s892_s16, 4  ;;  %s2892_s27 = int_to_ptr.hbm [resolvable:$true] %s2891_s27  ;;  %s909_s29 = int_to_ptr.hbm [resolvable:$true] %s908_s29 }
 0x27b   : > { %s2893_s13 = scalar_lea.hbm %s2892_s27, 1  ;;  %p2896_p6 = scmp.lt.s32.totalorder %s2892_s27, %s4458_s3 }
 0x27c   : > { %p2894_p2 = scmp.ne.s32.totalorder %s2892_s27, %s2893_s13  ;;  %p2897_p9 = scmp.lt.s32.totalorder %s4060_s21, %s2893_s13 }
 0x27e   : > { %p2898_p13 = por %p2897_p9, %p2896_p6 }
 0x280   : > { %p2899_p0 = pnand %p2898_p13, %p2894_p2 }
 0x282   : > { %2902 = shalt.err (!%p2899_p0)  }
 0x283   : > { %s4535_s18 = sld [smem:[#allocation153_spill]]  ;;  %s914_s15 = sadd.s32 53, %s3681_s11 }
 0x284   : > { %s2915_s17 = sshra.s32 %s909_s29, 4  ;;  %s2916_s17 = int_to_ptr.hbm [resolvable:$true] %s2915_s17 }
 0x285   : > { %s2917_s28 = scalar_lea.hbm %s2916_s17, 1  ;;  %p2920_p3 = scmp.lt.s32.totalorder %s2916_s17, %s4458_s3 }
 0x286   : > { %p2918_p1 = scmp.ne.s32.totalorder %s2916_s17, %s2917_s28  ;;  %p2921_p4 = scmp.lt.s32.totalorder %s4060_s21, %s2917_s28 }
 0x288   : > { %p2922_p7 = por %p2921_p4, %p2920_p3 }
 0x289   : > { %s4536_s12 = int_to_ptr.vmem [resolvable:$true] %s4535_s18 }
 0x28a   : > { %896 = dma.hbm_to_vmem [thread:$0]  %s892_s16, 16, %s4536_s12, [#allocation3 + $0x5] }
 0x28b   : > { %p2923_p5 = pnand %p2922_p7, %p2918_p1 }
 0x28d   : > { %2926 = shalt.err (!%p2923_p5)  }
 0x28e   : > { %913 = dma.hbm_to_vmem [thread:$0]  %s909_s29, 16, %s911_s9, [#allocation3 + $0x5] }
 0x28f   : > { %s915_s16 = sld [smem:[#allocation5 + %s914_s15]]  ;;  %s3527_s8 = smov [#allocation2 + $0x2d]  }
 0x290   : > { %s927_s23 = sshll.u32 %s3527_s8, 4  ;;  %s931_s26 = sadd.s32 57, %s3681_s11  ;;  %s928_s23 = int_to_ptr.vmem [resolvable:$true] %s927_s23 }
 0x291   : > { %s932_s27 = sld [smem:[#allocation5 + %s931_s26]]  ;;  %s948_s13 = sadd.s32 61, %s3681_s11 }
 0x292   : > { %s3528_s1 = smov [#allocation2 + $0x2e]   ;;  %s949_s18 = sld [smem:[#allocation5 + %s948_s13]] }
 0x293   : > { %s4206_s25 = sshll.u32 %s3528_s1, 4  ;;  %s3529_s7 = smov [#allocation2 + $0x2f]  }
 0x294   : > { %4537 = sst [smem:[#allocation153_spill]] %s4206_s25  ;;  %s4212_s9 = sshll.u32 %s3529_s7, 4  ;;  %s962_s9 = int_to_ptr.vmem [resolvable:$true] %s4212_s9 }
 0x295   : > { %s916_s28 = scalar_lea.hbm %s4458_s3, %s915_s16 }
 0x296   : > { %s925_s29 = sshll.u32 %s916_s28, 4  ;;  %s926_s29 = int_to_ptr.hbm [resolvable:$true] %s925_s29 }
 0x297   : > { %s933_s8 = scalar_lea.hbm %s4458_s3, %s932_s27  ;;  %s2939_s26 = sshra.s32 %s926_s29, 4  ;;  %s2940_s26 = int_to_ptr.hbm [resolvable:$true] %s2939_s26 }
 0x298   : > { %s2941_s1 = scalar_lea.hbm %s2940_s26, 1  ;;  %p2944_p10 = scmp.lt.s32.totalorder %s2940_s26, %s4458_s3 }
 0x299   : > { %p2942_p8 = scmp.ne.s32.totalorder %s2940_s26, %s2941_s1  ;;  %p2945_p2 = scmp.lt.s32.totalorder %s4060_s21, %s2941_s1 }
 0x29b   : > { %p2946_p6 = por %p2945_p2, %p2944_p10 }
 0x29d   : > { %p2947_p9 = pnand %p2946_p6, %p2942_p8 }
 0x29f   : > { %2950 = shalt.err (!%p2947_p9)  }
 0x2a0   : > { %930 = dma.hbm_to_vmem [thread:$0]  %s926_s29, 16, %s928_s23, [#allocation3 + $0x5] }
 0x2a1   : > { %s942_s16 = sshll.u32 %s933_s8, 4  ;;  %s950_s28 = scalar_lea.hbm %s4458_s3, %s949_s18  ;;  %s943_s16 = int_to_ptr.hbm [resolvable:$true] %s942_s16 }
 0x2a2   : > { %s959_s27 = sshll.u32 %s950_s28, 4  ;;  %s2963_s7 = sshra.s32 %s943_s16, 4  ;;  %s2964_s7 = int_to_ptr.hbm [resolvable:$true] %s2963_s7  ;;  %s960_s27 = int_to_ptr.hbm [resolvable:$true] %s959_s27 }
 0x2a3   : > { %s2965_s15 = scalar_lea.hbm %s2964_s7, 1  ;;  %p2968_p0 = scmp.lt.s32.totalorder %s2964_s7, %s4458_s3 }
 0x2a4   : > { %p2966_p13 = scmp.ne.s32.totalorder %s2964_s7, %s2965_s15  ;;  %p2969_p1 = scmp.lt.s32.totalorder %s4060_s21, %s2965_s15 }
 0x2a6   : > { %p2970_p3 = por %p2969_p1, %p2968_p0 }
 0x2a8   : > { %p2971_p4 = pnand %p2970_p3, %p2966_p13 }
 0x2aa   : > { %2974 = shalt.err (!%p2971_p4)  }
 0x2ab   : > { %s4538_s23 = sld [smem:[#allocation153_spill]]  ;;  %s965_s18 = sadd.s32 34, %s3681_s11 }
 0x2ac   : > { %s2987_s8 = sshra.s32 %s960_s27, 4  ;;  %s2988_s8 = int_to_ptr.hbm [resolvable:$true] %s2987_s8 }
 0x2ad   : > { %s2989_s26 = scalar_lea.hbm %s2988_s8, 1  ;;  %p2992_p5 = scmp.lt.s32.totalorder %s2988_s8, %s4458_s3 }
 0x2ae   : > { %p2990_p7 = scmp.ne.s32.totalorder %s2988_s8, %s2989_s26  ;;  %p2993_p8 = scmp.lt.s32.totalorder %s4060_s21, %s2989_s26 }
 0x2b0   : > { %p2994_p10 = por %p2993_p8, %p2992_p5 }
 0x2b1   : > { %s4539_s29 = int_to_ptr.vmem [resolvable:$true] %s4538_s23 }
 0x2b2   : > { %947 = dma.hbm_to_vmem [thread:$0]  %s943_s16, 16, %s4539_s29, [#allocation3 + $0x5] }
 0x2b3   : > { %p2995_p2 = pnand %p2994_p10, %p2990_p7 }
 0x2b5   : > { %2998 = shalt.err (!%p2995_p2)  }
 0x2b6   : > { %964 = dma.hbm_to_vmem [thread:$0]  %s960_s27, 16, %s962_s9, [#allocation3 + $0x5] }
 0x2b7   : > { %s966_s16 = sld [smem:[#allocation5 + %s965_s18]]  ;;  %s3530_s12 = smov [#allocation2 + $0x30]  }
 0x2b8   : > { %s979_s17 = sshll.u32 %s3530_s12, 4  ;;  %s983_s28 = sadd.s32 38, %s3681_s11  ;;  %s980_s17 = int_to_ptr.vmem [resolvable:$true] %s979_s17 }
 0x2b9   : > { %s984_s7 = sld [smem:[#allocation5 + %s983_s28]]  ;;  %s1000_s15 = sadd.s32 42, %s3681_s11 }
 0x2ba   : > { %s3531_s14 = smov [#allocation2 + $0x31]   ;;  %s1001_s23 = sld [smem:[#allocation5 + %s1000_s15]] }
 0x2bb   : > { %s4240_s25 = sshll.u32 %s3531_s14, 4  ;;  %s3532_s1 = smov [#allocation2 + $0x32]  }
 0x2bc   : > { %4540 = sst [smem:[#allocation153_spill]] %s4240_s25  ;;  %s4246_s9 = sshll.u32 %s3532_s1, 4  ;;  %s1014_s9 = int_to_ptr.vmem [resolvable:$true] %s4246_s9 }
 0x2bd   : > { %s967_s26 = scalar_lea.hbm %s4458_s3, %s966_s16 }
 0x2be   : > { %s977_s27 = sshll.u32 %s967_s26, 4  ;;  %s978_s27 = int_to_ptr.hbm [resolvable:$true] %s977_s27 }
 0x2bf   : > { %s985_s12 = scalar_lea.hbm %s4458_s3, %s984_s7  ;;  %s3011_s28 = sshra.s32 %s978_s27, 4  ;;  %s3012_s28 = int_to_ptr.hbm [resolvable:$true] %s3011_s28 }
 0x2c0   : > { %s3013_s14 = scalar_lea.hbm %s3012_s28, 1  ;;  %p3016_p9 = scmp.lt.s32.totalorder %s3012_s28, %s4458_s3 }
 0x2c1   : > { %p3014_p6 = scmp.ne.s32.totalorder %s3012_s28, %s3013_s14  ;;  %p3017_p13 = scmp.lt.s32.totalorder %s4060_s21, %s3013_s14 }
 0x2c3   : > { %p3018_p0 = por %p3017_p13, %p3016_p9 }
 0x2c5   : > { %p3019_p1 = pnand %p3018_p0, %p3014_p6 }
 0x2c7   : > { %3022 = shalt.err (!%p3019_p1)  }
 0x2c8   : > { %982 = dma.hbm_to_vmem [thread:$0]  %s978_s27, 16, %s980_s17, [#allocation3 + $0x6] }
 0x2c9   : > { %s994_s16 = sshll.u32 %s985_s12, 4  ;;  %s1002_s26 = scalar_lea.hbm %s4458_s3, %s1001_s23  ;;  %s995_s16 = int_to_ptr.hbm [resolvable:$true] %s994_s16 }
 0x2ca   : > { %s1011_s7 = sshll.u32 %s1002_s26, 4  ;;  %s3035_s1 = sshra.s32 %s995_s16, 4  ;;  %s3036_s1 = int_to_ptr.hbm [resolvable:$true] %s3035_s1  ;;  %s1012_s7 = int_to_ptr.hbm [resolvable:$true] %s1011_s7 }
 0x2cb   : > { %s3037_s18 = scalar_lea.hbm %s3036_s1, 1  ;;  %p3040_p4 = scmp.lt.s32.totalorder %s3036_s1, %s4458_s3 }
 0x2cc   : > { %p3038_p3 = scmp.ne.s32.totalorder %s3036_s1, %s3037_s18  ;;  %p3041_p7 = scmp.lt.s32.totalorder %s4060_s21, %s3037_s18 }
 0x2ce   : > { %p3042_p5 = por %p3041_p7, %p3040_p4 }
 0x2d0   : > { %p3043_p8 = pnand %p3042_p5, %p3038_p3 }
 0x2d2   : > { %3046 = shalt.err (!%p3043_p8)  }
 0x2d3   : > { %s4541_s17 = sld [smem:[#allocation153_spill]]  ;;  %s1017_s23 = sadd.s32 46, %s3681_s11 }
 0x2d4   : > { %s3059_s12 = sshra.s32 %s1012_s7, 4  ;;  %s3060_s12 = int_to_ptr.hbm [resolvable:$true] %s3059_s12 }
 0x2d5   : > { %s3061_s28 = scalar_lea.hbm %s3060_s12, 1  ;;  %p3064_p2 = scmp.lt.s32.totalorder %s3060_s12, %s4458_s3 }
 0x2d6   : > { %p3062_p10 = scmp.ne.s32.totalorder %s3060_s12, %s3061_s28  ;;  %p3065_p6 = scmp.lt.s32.totalorder %s4060_s21, %s3061_s28 }
 0x2d8   : > { %p3066_p9 = por %p3065_p6, %p3064_p2 }
 0x2d9   : > { %s4542_s27 = int_to_ptr.vmem [resolvable:$true] %s4541_s17 }
 0x2da   : > { %999 = dma.hbm_to_vmem [thread:$0]  %s995_s16, 16, %s4542_s27, [#allocation3 + $0x6] }
 0x2db   : > { %p3067_p13 = pnand %p3066_p9, %p3062_p10 }
 0x2dd   : > { %3070 = shalt.err (!%p3067_p13)  }
 0x2de   : > { %1016 = dma.hbm_to_vmem [thread:$0]  %s1012_s7, 16, %s1014_s9, [#allocation3 + $0x6] }
 0x2df   : > { %s1018_s16 = sld [smem:[#allocation5 + %s1017_s23]]  ;;  %s3533_s29 = smov [#allocation2 + $0x33]  }
 0x2e0   : > { %s1030_s8 = sshll.u32 %s3533_s29, 4  ;;  %s1034_s26 = sadd.s32 50, %s3681_s11  ;;  %s1031_s8 = int_to_ptr.vmem [resolvable:$true] %s1030_s8 }
 0x2e1   : > { %s1035_s1 = sld [smem:[#allocation5 + %s1034_s26]]  ;;  %s1051_s18 = sadd.s32 54, %s3681_s11 }
 0x2e2   : > { %s3534_s13 = smov [#allocation2 + $0x34]   ;;  %s1052_s17 = sld [smem:[#allocation5 + %s1051_s18]] }
 0x2e3   : > { %s4274_s25 = sshll.u32 %s3534_s13, 4  ;;  %s3535_s14 = smov [#allocation2 + $0x35]  }
 0x2e4   : > { %4543 = sst [smem:[#allocation153_spill]] %s4274_s25  ;;  %s4280_s9 = sshll.u32 %s3535_s14, 4  ;;  %s1065_s9 = int_to_ptr.vmem [resolvable:$true] %s4280_s9 }
 0x2e5   : > { %s1019_s28 = scalar_lea.hbm %s4458_s3, %s1018_s16 }
 0x2e6   : > { %s1028_s7 = sshll.u32 %s1019_s28, 4  ;;  %s1029_s7 = int_to_ptr.hbm [resolvable:$true] %s1028_s7 }
 0x2e7   : > { %s1036_s29 = scalar_lea.hbm %s4458_s3, %s1035_s1  ;;  %s3083_s26 = sshra.s32 %s1029_s7, 4  ;;  %s3084_s26 = int_to_ptr.hbm [resolvable:$true] %s3083_s26 }
 0x2e8   : > { %s3085_s13 = scalar_lea.hbm %s3084_s26, 1  ;;  %p3088_p1 = scmp.lt.s32.totalorder %s3084_s26, %s4458_s3 }
 0x2e9   : > { %p3086_p0 = scmp.ne.s32.totalorder %s3084_s26, %s3085_s13  ;;  %p3089_p3 = scmp.lt.s32.totalorder %s4060_s21, %s3085_s13 }
 0x2eb   : > { %p3090_p4 = por %p3089_p3, %p3088_p1 }
 0x2ed   : > { %p3091_p7 = pnand %p3090_p4, %p3086_p0 }
 0x2ef   : > { %3094 = shalt.err (!%p3091_p7)  }
 0x2f0   : > { %1033 = dma.hbm_to_vmem [thread:$0]  %s1029_s7, 16, %s1031_s8, [#allocation3 + $0x6] }
 0x2f1   : > { %s1045_s16 = sshll.u32 %s1036_s29, 4  ;;  %s1053_s28 = scalar_lea.hbm %s4458_s3, %s1052_s17  ;;  %s1046_s16 = int_to_ptr.hbm [resolvable:$true] %s1045_s16 }
 0x2f2   : > { %s1062_s1 = sshll.u32 %s1053_s28, 4  ;;  %s3107_s14 = sshra.s32 %s1046_s16, 4  ;;  %s3108_s14 = int_to_ptr.hbm [resolvable:$true] %s3107_s14  ;;  %s1063_s1 = int_to_ptr.hbm [resolvable:$true] %s1062_s1 }
 0x2f3   : > { %s3109_s23 = scalar_lea.hbm %s3108_s14, 1  ;;  %p3112_p8 = scmp.lt.s32.totalorder %s3108_s14, %s4458_s3 }
 0x2f4   : > { %p3110_p5 = scmp.ne.s32.totalorder %s3108_s14, %s3109_s23  ;;  %p3113_p10 = scmp.lt.s32.totalorder %s4060_s21, %s3109_s23 }
 0x2f6   : > { %p3114_p2 = por %p3113_p10, %p3112_p8 }
 0x2f8   : > { %p3115_p6 = pnand %p3114_p2, %p3110_p5 }
 0x2fa   : > { %3118 = shalt.err (!%p3115_p6)  }
 0x2fb   : > { %s4544_s8 = sld [smem:[#allocation153_spill]]  ;;  %s1068_s17 = sadd.s32 58, %s3681_s11 }
 0x2fc   : > { %s3131_s29 = sshra.s32 %s1063_s1, 4  ;;  %s3132_s29 = int_to_ptr.hbm [resolvable:$true] %s3131_s29 }
 0x2fd   : > { %s3133_s26 = scalar_lea.hbm %s3132_s29, 1  ;;  %p3136_p13 = scmp.lt.s32.totalorder %s3132_s29, %s4458_s3 }
 0x2fe   : > { %p3134_p9 = scmp.ne.s32.totalorder %s3132_s29, %s3133_s26  ;;  %p3137_p0 = scmp.lt.s32.totalorder %s4060_s21, %s3133_s26 }
 0x300   : > { %p3138_p1 = por %p3137_p0, %p3136_p13 }
 0x301   : > { %s4545_s7 = int_to_ptr.vmem [resolvable:$true] %s4544_s8 }
 0x302   : > { %1050 = dma.hbm_to_vmem [thread:$0]  %s1046_s16, 16, %s4545_s7, [#allocation3 + $0x6] }
 0x303   : > { %p3139_p3 = pnand %p3138_p1, %p3134_p9 }
 0x305   : > { %3142 = shalt.err (!%p3139_p3)  }
 0x306   : > { %1067 = dma.hbm_to_vmem [thread:$0]  %s1063_s1, 16, %s1065_s9, [#allocation3 + $0x6] }
 0x307   : > { %s1069_s16 = sld [smem:[#allocation5 + %s1068_s17]]  ;;  %s3536_s27 = smov [#allocation2 + $0x36]  }
 0x308   : > { %s1081_s12 = sshll.u32 %s3536_s27, 4  ;;  %s1085_s28 = sadd.s32 62, %s3681_s11  ;;  %s1082_s12 = int_to_ptr.vmem [resolvable:$true] %s1081_s12 }
 0x309   : > { %s1086_s14 = sld [smem:[#allocation5 + %s1085_s28]]  ;;  %s1102_s23 = sadd.s32 35, %s3681_s11 }
 0x30a   : > { %s3537_s15 = smov [#allocation2 + $0x37]   ;;  %s1103_s8 = sld [smem:[#allocation5 + %s1102_s23]] }
 0x30b   : > { %s4308_s25 = sshll.u32 %s3537_s15, 4  ;;  %s3538_s13 = smov [#allocation2 + $0x38]  }
 0x30c   : > { %4546 = sst [smem:[#allocation153_spill]] %s4308_s25  ;;  %s4314_s9 = sshll.u32 %s3538_s13, 4  ;;  %s1117_s9 = int_to_ptr.vmem [resolvable:$true] %s4314_s9 }
 0x30d   : > { %s1070_s26 = scalar_lea.hbm %s4458_s3, %s1069_s16 }
 0x30e   : > { %s1079_s1 = sshll.u32 %s1070_s26, 4  ;;  %s1080_s1 = int_to_ptr.hbm [resolvable:$true] %s1079_s1 }
 0x30f   : > { %s1087_s27 = scalar_lea.hbm %s4458_s3, %s1086_s14  ;;  %s3155_s28 = sshra.s32 %s1080_s1, 4  ;;  %s3156_s28 = int_to_ptr.hbm [resolvable:$true] %s3155_s28 }
 0x310   : > { %s3157_s15 = scalar_lea.hbm %s3156_s28, 1  ;;  %p3160_p7 = scmp.lt.s32.totalorder %s3156_s28, %s4458_s3 }
 0x311   : > { %p3158_p4 = scmp.ne.s32.totalorder %s3156_s28, %s3157_s15  ;;  %p3161_p5 = scmp.lt.s32.totalorder %s4060_s21, %s3157_s15 }
 0x313   : > { %p3162_p8 = por %p3161_p5, %p3160_p7 }
 0x315   : > { %p3163_p10 = pnand %p3162_p8, %p3158_p4 }
 0x317   : > { %3166 = shalt.err (!%p3163_p10)  }
 0x318   : > { %1084 = dma.hbm_to_vmem [thread:$0]  %s1080_s1, 16, %s1082_s12, [#allocation3 + $0x6] }
 0x319   : > { %s1096_s16 = sshll.u32 %s1087_s27, 4  ;;  %s1104_s26 = scalar_lea.hbm %s4458_s3, %s1103_s8  ;;  %s1097_s16 = int_to_ptr.hbm [resolvable:$true] %s1096_s16 }
 0x31a   : > { %s1114_s14 = sshll.u32 %s1104_s26, 4  ;;  %s3179_s13 = sshra.s32 %s1097_s16, 4  ;;  %s3180_s13 = int_to_ptr.hbm [resolvable:$true] %s3179_s13  ;;  %s1115_s14 = int_to_ptr.hbm [resolvable:$true] %s1114_s14 }
 0x31b   : > { %s3181_s17 = scalar_lea.hbm %s3180_s13, 1  ;;  %p3184_p6 = scmp.lt.s32.totalorder %s3180_s13, %s4458_s3 }
 0x31c   : > { %p3182_p2 = scmp.ne.s32.totalorder %s3180_s13, %s3181_s17  ;;  %p3185_p9 = scmp.lt.s32.totalorder %s4060_s21, %s3181_s17 }
 0x31e   : > { %p3186_p13 = por %p3185_p9, %p3184_p6 }
 0x320   : > { %p3187_p0 = pnand %p3186_p13, %p3182_p2 }
 0x322   : > { %3190 = shalt.err (!%p3187_p0)  }
 0x323   : > { %s4547_s12 = sld [smem:[#allocation153_spill]]  ;;  %s1120_s8 = sadd.s32 39, %s3681_s11 }
 0x324   : > { %s3203_s27 = sshra.s32 %s1115_s14, 4  ;;  %s3204_s27 = int_to_ptr.hbm [resolvable:$true] %s3203_s27 }
 0x325   : > { %s3205_s28 = scalar_lea.hbm %s3204_s27, 1  ;;  %p3208_p3 = scmp.lt.s32.totalorder %s3204_s27, %s4458_s3 }
 0x326   : > { %p3206_p1 = scmp.ne.s32.totalorder %s3204_s27, %s3205_s28  ;;  %p3209_p4 = scmp.lt.s32.totalorder %s4060_s21, %s3205_s28 }
 0x328   : > { %p3210_p7 = por %p3209_p4, %p3208_p3 }
 0x329   : > { %s4548_s1 = int_to_ptr.vmem [resolvable:$true] %s4547_s12 }
 0x32a   : > { %1101 = dma.hbm_to_vmem [thread:$0]  %s1097_s16, 16, %s4548_s1, [#allocation3 + $0x6] }
 0x32b   : > { %p3211_p5 = pnand %p3210_p7, %p3206_p1 }
 0x32d   : > { %3214 = shalt.err (!%p3211_p5)  }
 0x32e   : > { %1119 = dma.hbm_to_vmem [thread:$0]  %s1115_s14, 16, %s1117_s9, [#allocation3 + $0x7] }
 0x32f   : > { %s1121_s16 = sld [smem:[#allocation5 + %s1120_s8]]  ;;  %s3539_s7 = smov [#allocation2 + $0x39]  }
 0x330   : > { %s1133_s29 = sshll.u32 %s3539_s7, 4  ;;  %s1137_s26 = sadd.s32 43, %s3681_s11  ;;  %s1134_s29 = int_to_ptr.vmem [resolvable:$true] %s1133_s29 }
 0x331   : > { %s1138_s13 = sld [smem:[#allocation5 + %s1137_s26]]  ;;  %s1154_s17 = sadd.s32 47, %s3681_s11 }
 0x332   : > { %s3540_s18 = smov [#allocation2 + $0x3a]   ;;  %s1155_s12 = sld [smem:[#allocation5 + %s1154_s17]] }
 0x333   : > { %s4342_s25 = sshll.u32 %s3540_s18, 4  ;;  %s3541_s15 = smov [#allocation2 + $0x3b]  }
 0x334   : > { %4549 = sst [smem:[#allocation153_spill]] %s4342_s25  ;;  %s4348_s9 = sshll.u32 %s3541_s15, 4  ;;  %s1168_s9 = int_to_ptr.vmem [resolvable:$true] %s4348_s9 }
 0x335   : > { %s1122_s28 = scalar_lea.hbm %s4458_s3, %s1121_s16 }
 0x336   : > { %s1131_s14 = sshll.u32 %s1122_s28, 4  ;;  %s1132_s14 = int_to_ptr.hbm [resolvable:$true] %s1131_s14 }
 0x337   : > { %s1139_s7 = scalar_lea.hbm %s4458_s3, %s1138_s13  ;;  %s3227_s26 = sshra.s32 %s1132_s14, 4  ;;  %s3228_s26 = int_to_ptr.hbm [resolvable:$true] %s3227_s26 }
 0x338   : > { %s3229_s18 = scalar_lea.hbm %s3228_s26, 1  ;;  %p3232_p10 = scmp.lt.s32.totalorder %s3228_s26, %s4458_s3 }
 0x339   : > { %p3230_p8 = scmp.ne.s32.totalorder %s3228_s26, %s3229_s18  ;;  %p3233_p2 = scmp.lt.s32.totalorder %s4060_s21, %s3229_s18 }
 0x33b   : > { %p3234_p6 = por %p3233_p2, %p3232_p10 }
 0x33d   : > { %p3235_p9 = pnand %p3234_p6, %p3230_p8 }
 0x33f   : > { %3238 = shalt.err (!%p3235_p9)  }
 0x340   : > { %1136 = dma.hbm_to_vmem [thread:$0]  %s1132_s14, 16, %s1134_s29, [#allocation3 + $0x7] }
 0x341   : > { %s1148_s16 = sshll.u32 %s1139_s7, 4  ;;  %s1156_s28 = scalar_lea.hbm %s4458_s3, %s1155_s12  ;;  %s1149_s16 = int_to_ptr.hbm [resolvable:$true] %s1148_s16 }
 0x342   : > { %s1165_s13 = sshll.u32 %s1156_s28, 4  ;;  %s3251_s15 = sshra.s32 %s1149_s16, 4  ;;  %s3252_s15 = int_to_ptr.hbm [resolvable:$true] %s3251_s15  ;;  %s1166_s13 = int_to_ptr.hbm [resolvable:$true] %s1165_s13 }
 0x343   : > { %s3253_s8 = scalar_lea.hbm %s3252_s15, 1  ;;  %p3256_p0 = scmp.lt.s32.totalorder %s3252_s15, %s4458_s3 }
 0x344   : > { %p3254_p13 = scmp.ne.s32.totalorder %s3252_s15, %s3253_s8  ;;  %p3257_p1 = scmp.lt.s32.totalorder %s4060_s21, %s3253_s8 }
 0x346   : > { %p3258_p3 = por %p3257_p1, %p3256_p0 }
 0x348   : > { %p3259_p4 = pnand %p3258_p3, %p3254_p13 }
 0x34a   : > { %3262 = shalt.err (!%p3259_p4)  }
 0x34b   : > { %s4550_s29 = sld [smem:[#allocation153_spill]]  ;;  %s1171_s12 = sadd.s32 51, %s3681_s11 }
 0x34c   : > { %s3275_s7 = sshra.s32 %s1166_s13, 4  ;;  %s3276_s7 = int_to_ptr.hbm [resolvable:$true] %s3275_s7 }
 0x34d   : > { %s3277_s26 = scalar_lea.hbm %s3276_s7, 1  ;;  %p3280_p5 = scmp.lt.s32.totalorder %s3276_s7, %s4458_s3 }
 0x34e   : > { %p3278_p7 = scmp.ne.s32.totalorder %s3276_s7, %s3277_s26  ;;  %p3281_p8 = scmp.lt.s32.totalorder %s4060_s21, %s3277_s26 }
 0x350   : > { %p3282_p10 = por %p3281_p8, %p3280_p5 }
 0x351   : > { %s4551_s14 = int_to_ptr.vmem [resolvable:$true] %s4550_s29 }
 0x352   : > { %1153 = dma.hbm_to_vmem [thread:$0]  %s1149_s16, 16, %s4551_s14, [#allocation3 + $0x7] }
 0x353   : > { %p3283_p2 = pnand %p3282_p10, %p3278_p7 }
 0x355   : > { %3286 = shalt.err (!%p3283_p2)  }
 0x356   : > { %1170 = dma.hbm_to_vmem [thread:$0]  %s1166_s13, 16, %s1168_s9, [#allocation3 + $0x7] }
 0x357   : > { %s1172_s16 = sld [smem:[#allocation5 + %s1171_s12]]  ;;  %s3542_s1 = smov [#allocation2 + $0x3c]  }
 0x358   : > { %s1184_s27 = sshll.u32 %s3542_s1, 4  ;;  %s1188_s28 = sadd.s32 55, %s3681_s11  ;;  %s1185_s27 = int_to_ptr.vmem [resolvable:$true] %s1184_s27 }
 0x359   : > { %s1189_s15 = sld [smem:[#allocation5 + %s1188_s28]]  ;;  %s1205_s8 = sadd.s32 59, %s3681_s11 }
 0x35a   : > { %s3543_s23 = smov [#allocation2 + $0x3d]   ;;  %s1206_s29 = sld [smem:[#allocation5 + %s1205_s8]] }
 0x35b   : > { %s4376_s25 = sshll.u32 %s3543_s23, 4  ;;  %s3544_s18 = smov [#allocation2 + $0x3e]  }
 0x35c   : > { %4552 = sst [smem:[#allocation153_spill]] %s4376_s25  ;;  %s4382_s9 = sshll.u32 %s3544_s18, 4  ;;  %s1219_s9 = int_to_ptr.vmem [resolvable:$true] %s4382_s9 }
 0x35d   : > { %s1173_s26 = scalar_lea.hbm %s4458_s3, %s1172_s16 }
 0x35e   : > { %s1182_s13 = sshll.u32 %s1173_s26, 4  ;;  %s1183_s13 = int_to_ptr.hbm [resolvable:$true] %s1182_s13 }
 0x35f   : > { %s1190_s1 = scalar_lea.hbm %s4458_s3, %s1189_s15  ;;  %s3299_s28 = sshra.s32 %s1183_s13, 4  ;;  %s3300_s28 = int_to_ptr.hbm [resolvable:$true] %s3299_s28 }
 0x360   : > { %s3301_s23 = scalar_lea.hbm %s3300_s28, 1  ;;  %p3304_p9 = scmp.lt.s32.totalorder %s3300_s28, %s4458_s3 }
 0x361   : > { %p3302_p6 = scmp.ne.s32.totalorder %s3300_s28, %s3301_s23  ;;  %p3305_p13 = scmp.lt.s32.totalorder %s4060_s21, %s3301_s23 }
 0x363   : > { %p3306_p0 = por %p3305_p13, %p3304_p9 }
 0x365   : > { %p3307_p1 = pnand %p3306_p0, %p3302_p6 }
 0x367   : > { %3310 = shalt.err (!%p3307_p1)  }
 0x368   : > { %1187 = dma.hbm_to_vmem [thread:$0]  %s1183_s13, 16, %s1185_s27, [#allocation3 + $0x7] }
 0x369   : > { %s1199_s16 = sshll.u32 %s1190_s1, 4  ;;  %s1207_s26 = scalar_lea.hbm %s4458_s3, %s1206_s29  ;;  %s1200_s16 = int_to_ptr.hbm [resolvable:$true] %s1199_s16 }
 0x36a   : > { %s1216_s15 = sshll.u32 %s1207_s26, 4  ;;  %s3323_s18 = sshra.s32 %s1200_s16, 4  ;;  %s3324_s18 = int_to_ptr.hbm [resolvable:$true] %s3323_s18  ;;  %s1217_s15 = int_to_ptr.hbm [resolvable:$true] %s1216_s15 }
 0x36b   : > { %s3325_s12 = scalar_lea.hbm %s3324_s18, 1  ;;  %p3328_p4 = scmp.lt.s32.totalorder %s3324_s18, %s4458_s3 }
 0x36c   : > { %p3326_p3 = scmp.ne.s32.totalorder %s3324_s18, %s3325_s12  ;;  %p3329_p7 = scmp.lt.s32.totalorder %s4060_s21, %s3325_s12 }
 0x36e   : > { %p3330_p5 = por %p3329_p7, %p3328_p4 }
 0x370   : > { %p3331_p8 = pnand %p3330_p5, %p3326_p3 }
 0x372   : > { %3334 = shalt.err (!%p3331_p8)  }
 0x373   : > { %s4553_s27 = sld [smem:[#allocation153_spill]]  ;;  %s1222_s29 = sadd.s32 63, %s3681_s11 }
 0x374   : > { %s3347_s1 = sshra.s32 %s1217_s15, 4  ;;  %s3348_s1 = int_to_ptr.hbm [resolvable:$true] %s3347_s1 }
 0x375   : > { %s3349_s28 = scalar_lea.hbm %s3348_s1, 1  ;;  %p3352_p2 = scmp.lt.s32.totalorder %s3348_s1, %s4458_s3 }
 0x376   : > { %p3350_p10 = scmp.ne.s32.totalorder %s3348_s1, %s3349_s28  ;;  %p3353_p6 = scmp.lt.s32.totalorder %s4060_s21, %s3349_s28 }
 0x378   : > { %p3354_p9 = por %p3353_p6, %p3352_p2 }
 0x379   : > { %s4554_s13 = int_to_ptr.vmem [resolvable:$true] %s4553_s27 }
 0x37a   : > { %1204 = dma.hbm_to_vmem [thread:$0]  %s1200_s16, 16, %s4554_s13, [#allocation3 + $0x7] }
 0x37b   : > { %p3355_p13 = pnand %p3354_p9, %p3350_p10 }
 0x37d   : > { %3358 = shalt.err (!%p3355_p13)  }
 0x37e   : > { %1221 = dma.hbm_to_vmem [thread:$0]  %s1217_s15, 16, %s1219_s9, [#allocation3 + $0x7] }
 0x37f   : > { %s1223_s14 = sld [smem:[#allocation5 + %s1222_s29]]  ;;  %s3545_s16 = smov [#allocation2 + $0x3f]  }
 0x380   : > { %s1235_s7 = sshll.u32 %s3545_s16, 4  ;;  %s1236_s7 = int_to_ptr.vmem [resolvable:$true] %s1235_s7 }
 0x385   : > { %s1224_s18 = scalar_lea.hbm %s4458_s3, %s1223_s14 }
 0x386   : > { %s1233_s12 = sshll.u32 %s1224_s18, 4  ;;  %s1234_s12 = int_to_ptr.hbm [resolvable:$true] %s1233_s12 }
 0x387   : > { %s3371_s17 = sshra.s32 %s1234_s12, 4  ;;  %s3372_s17 = int_to_ptr.hbm [resolvable:$true] %s3371_s17 }
 0x388   : > { %s3373_s25 = scalar_lea.hbm %s3372_s17, 1  ;;  %p3376_p1 = scmp.lt.s32.totalorder %s3372_s17, %s4458_s3 }
 0x389   : > { %p3374_p0 = scmp.ne.s32.totalorder %s3372_s17, %s3373_s25  ;;  %p3377_p3 = scmp.lt.s32.totalorder %s4060_s21, %s3373_s25 }
 0x38b   : > { %p3378_p4 = por %p3377_p3, %p3376_p1 }
 0x38d   : > { %p3379_p7 = pnand %p3378_p4, %p3374_p0 }
 0x38f   : > { %3382 = shalt.err (!%p3379_p7)  }
 0x390   : > { %1238 = dma.hbm_to_vmem [thread:$0]  %s1234_s12, 16, %s1236_s7, [#allocation3 + $0x7] }
 0x391   : > { %s4555_s9 = sshll.u32 %s3668_s6, 3 }
 0x392   : > { %s4417_s15 = scalar_lea.vmem [#allocation9], %s4555_s9 }
 0x393   : > { %3445 = dma.done.wait [#allocation3], 128 }
 0x394   : > { %3446 = vsyncadd [#allocation3], 4294967168 }
 0x395   : > { %3447 = dma.done.wait [#allocation3 + $0x1], 128 }
 0x396   : > { %3448 = vsyncadd [#allocation3 + $0x1], 4294967168 }
 0x397   : > { %3449 = dma.done.wait [#allocation3 + $0x2], 128 }
 0x398   : > { %3450 = vsyncadd [#allocation3 + $0x2], 4294967168 }
 0x399   : > { %3451 = dma.done.wait [#allocation3 + $0x3], 128 }
 0x39a   : > { %3452 = vsyncadd [#allocation3 + $0x3], 4294967168 }
 0x39b   : > { %3453 = dma.done.wait [#allocation3 + $0x4], 128 }
 0x39c   : > { %3454 = vsyncadd [#allocation3 + $0x4], 4294967168 }
 0x39d   : > { %3455 = dma.done.wait [#allocation3 + $0x5], 128 }
 0x39e   : > { %3456 = vsyncadd [#allocation3 + $0x5], 4294967168 }
 0x39f   : > { %3457 = dma.done.wait [#allocation3 + $0x6], 128 }
 0x3a0   : > { %3458 = vsyncadd [#allocation3 + $0x6], 4294967168 }
 0x3a1   : > { %3459 = dma.done.wait [#allocation3 + $0x7], 128 }
 0x3a2   : > { %3460 = vsyncadd [#allocation3 + $0x7], 4294967168  ;;  %v3546_v0 = vmov 4   ;;  %v3547_v1 = vmov 0   ;;  %v3548_v2 = vmov 2   ;;  %v1368_v3 = vld [vmem:[%s3674_s10] sm:$0xff] }
 0x3a3   : > { %1806 = vset.pattern.permute.xlu1 %v3546_v0  ;;  %1804 = vset.pattern.permute.xlu0 %v3547_v1  ;;  %v3549_v4 = vmov 5   ;;  %v3550_v5 = vmov 1   ;;  %v3551_v6 = vmov 6   ;;  %v3552_v7 = vmov 3   ;;  %v1412_v13 = vld [vmem:[#allocation2 + $0x20] sm:$0xff]  ;;  %v1418_v14 = vld [vmem:[#allocation2 + $0x28] sm:$0xff] }
 0x3a4   : > { %1808 = vset.pattern.permute.xlu2 %v3548_v2  ;;  %1414 = vperm.xlu1 %1806, %v1368_v3   ;;  %v3553_v8 = vmov 7   ;;  %v1376_v15 = vld [vmem:[#allocation2 + $0x8] sm:$0xff]  ;;  %v1425_v17 = vld [vmem:[#allocation2 + $0x30] sm:$0xff]  ;;  %v1432_v20 = vld [vmem:[#allocation2 + $0x38] sm:$0xff]  ;;  %s1674_s10 = sshll.u32 %s3603_s0, 3  ;;  %s1472_s28 = sshll.u32 %s4417_s15, 4  ;;  %s1473_s28 = int_to_ptr.vmem [resolvable:$true] %s1472_s28 }
 0x3a5   : > { %1372 = vperm.xlu0 %1804, %v1368_v3   ;;  %1385 = vperm.xlu2 %1808, %v1368_v3   ;;  %v1369_v22 = vld [vmem:[#allocation2] sm:$0xff]  ;;  %v1383_v29 = vld [vmem:[#allocation2 + $0x10] sm:$0xff]  ;;  %v1390_v33 = vld [vmem:[#allocation2 + $0x18] sm:$0xff]  ;;  %s1470_s1 = scalar_lea.hbm %s4459_s4, %s1674_s10  ;;  %s1460_s8 = scalar_lea.sflag [#allocation8], %s3668_s6 }
 0x3a6   : > { %s1474_s23 = sshll.u32 %s1470_s1, 4  ;;  %s3415_s11 = scalar_lea.hbm %s4459_s4, 16  ;;  %s1475_s23 = int_to_ptr.hbm [resolvable:$true] %s1474_s23 }
 0x3a7   : > { %s3409_s14 = sshra.s32 %s1475_s23, 4  ;;  %s3410_s14 = int_to_ptr.hbm [resolvable:$true] %s3409_s14 }
 0x3a8   : > { %s3411_s16 = scalar_lea.hbm %s3410_s14, 8  ;;  %p3416_p2 = scmp.lt.s32.totalorder %s3410_s14, %s4459_s4 }
 0x3a9   : > { %p3412_p5 = scmp.ne.s32.totalorder %s3410_s14, %s3411_s16  ;;  %p3417_p6 = scmp.lt.s32.totalorder %s3415_s11, %s3411_s16 }
 0x3ab   : > { %p3413_p8 = pnand %p3412_p5, %p3632_p11  ;;  %p3418_p9 = por %p3417_p6, %p3416_p2 }
 0x3ac   : > { %1807 = vset.pattern.permute.xlu1 %v3549_v4 }
 0x3ad   : > { %1805 = vset.pattern.permute.xlu0 %v3550_v5  ;;  %1420 = vperm.xlu1 %1807, %v1368_v3   ;;  %p3414_p10 = pneg %p3413_p8 }
 0x3ae   : > { %1378 = vperm.xlu0 %1805, %v1368_v3   ;;  %1809 = vset.pattern.permute.xlu2 %v3551_v6 }
 0x3af   : > { %1427 = vperm.xlu2 %1809, %v1368_v3   ;;  %p3419_p13 = pnand %p3418_p9, %p3414_p10 }
 0x3b5   : > { %1810 = vset.pattern.permute.xlu1 %v3552_v7 }
 0x3b6   : > { %1812 = vset.pattern.permute.xlu0 %v3553_v8  ;;  %1392 = vperm.xlu1 %1810, %v1368_v3  }
 0x3b7   : > { %1811 = vset.pattern.permute.xlu2 %v3553_v8 }
 0x3b8   : > { %1434 = vperm.xlu2 %1811, %v1368_v3  }
 0x3ff   : > { %v1386_v9 = vpop.permute.xlu2 %1385 }
 0x400   : > { %v1388_v34 = vmul.f32 %v1386_v9, %v1383_v29 }
 0x409   : > { %v1428_v10 = vpop.permute.xlu2 %1427 }
 0x40a   : > { %v1430_v25 = vmul.f32 %v1428_v10, %v1425_v17 }
 0x412   : > { %v1435_v16 = vpop.permute.xlu2 %1434 }
 0x413   : > { %v1437_v27 = vmul.f32 %v1435_v16, %v1432_v20 }
 0x416   : > { %v1415_v11 = vpop.permute.xlu1 %1414 }
 0x417   : > { %v1373_v12 = vpop.permute.xlu0 %1372  ;;  %v1417_v21 = vmul.f32 %v1415_v11, %v1412_v13 }
 0x418   : > { %v1375_v28 = vmul.f32 %v1373_v12, %v1369_v22 }
 0x41f   : > { %v1421_v18 = vpop.permute.xlu1 %1420 }
 0x420   : > { %v1379_v19 = vpop.permute.xlu0 %1378  ;;  %v1423_v23 = vmul.f32 %v1421_v18, %v1418_v14 }
 0x421   : > { %v1381_v24 = vmul.f32 %v1379_v19, %v1376_v15 }
 0x422   : > { %v1424_v26 = vadd.f32 %v1423_v23, %v1417_v21 }
 0x423   : > { %v1382_v31 = vadd.f32 %v1381_v24, %v1375_v28 }
 0x424   : > { %v1431_v30 = vadd.f32 %v1430_v25, %v1424_v26 }
 0x425   : > { %v1389_v37 = vadd.f32 %v1388_v34, %v1382_v31 }
 0x426   : > { %v1438_v32 = vadd.f32 %v1437_v27, %v1431_v30 }
 0x428   : > { %v1393_v35 = vpop.permute.xlu1 %1392  ;;  %v1439_v36 = vmul.f32 %v1438_v32, %v1438_v32 }
 0x429   : > { %v1395_v38 = vmul.f32 %v1393_v35, %v1390_v33 }
 0x42a   : > { %1440 = vadd.xlane.f32.xlu1 %v1439_v36 }
 0x42b   : > { %v1396_v39 = vadd.f32 %v1395_v38, %v1389_v37 }
 0x42d   : > { %v1397_v40 = vmul.f32 %v1396_v39, %v1396_v39 }
 0x42f   : > { %1398 = vadd.xlane.f32.xlu0 %v1397_v40 }
 0x49d   : > { %v1441_v41 = vpop.xlane.xlu1 %1440 }
 0x49e   : > { %v1442_v42 = vmax.f32 %v1441_v41, 1e-24 }
 0x4a0   : > { %1813 = vrsqrt.f32 %v1442_v42  ;;  %vm1449_vm1 = vweird.f32 %v1442_v42 }
 0x4a2   : > { %v1399_v43 = vpop.xlane.xlu0 %1398 }
 0x4a3   : > { %v1400_v44 = vmax.f32 %v1399_v43, 1e-24 }
 0x4a5   : > { %1815 = vrsqrt.f32 %v1400_v44  ;;  %vm1407_vm4 = vweird.f32 %v1400_v44 }
 0x4a6   : > { %v1814_v45 = vpop.eup %1813 }
 0x4a7   : > { %v1444_v46 = vmul.f32 %v1814_v45, %v1442_v42  ;;  %vm1450_vm0 = vweird.f32 %v1814_v45 }
 0x4a8   : > { %vm1451_vm3 = vmor %vm1449_vm1, %vm1450_vm0 }
 0x4a9   : > { %v1445_v47 = vmul.f32 %v1814_v45, %v1444_v46 }
 0x4ab   : > { %v1816_v48 = vpop.eup %1815  ;;  %v1446_v49 = vmul.f32 0.5, %v1445_v47 }
 0x4ac   : > { %v1402_v50 = vmul.f32 %v1816_v48, %v1400_v44  ;;  %vm1408_vm2 = vweird.f32 %v1816_v48 }
 0x4ad   : > { %v1447_v51 = vsub.f32 1.5, %v1446_v49  ;;  %vm1409_vm5 = vmor %vm1407_vm4, %vm1408_vm2 }
 0x4ae   : > { %v1403_v52 = vmul.f32 %v1816_v48, %v1402_v50 }
 0x4af   : > { %v1448_v53 = vmul.f32 %v1814_v45, %v1447_v51 }
 0x4b0   : > { %v1404_v54 = vmul.f32 0.5, %v1403_v52 }
 0x4b1   : > { %v1452_v57 = vsel %vm1451_vm3, %v1814_v45, %v1448_v53 }
 0x4b2   : > { %v1405_v55 = vsub.f32 1.5, %v1404_v54  ;;  %v1453_v60 = vmul.f32 %v1452_v57, %v1438_v32 }
 0x4b4   : > { %v1406_v56 = vmul.f32 %v1816_v48, %v1405_v55 }
 0x4b6   : > { %v1410_v58 = vsel %vm1409_vm5, %v1816_v48, %v1406_v56 }
 0x4b7   : > { %v1411_v59 = vmul.f32 %v1410_v58, %v1396_v39 }
 0x4b9   : > { %v1454_v61 = vsub.f32 %v1411_v59, %v1453_v60 }
 0x4bb   : > { %v1455_v62 = vmul.f32 %v1454_v61, %v1454_v61 }
 0x4bd   : > { %1456 = vadd.xlane.f32.xlu2 %v1455_v62 }
 0x530   : > { %v1457_v63 = vpop.xlane.xlu2 %1456 }
 0x531   : > { %1458 = vst [vmem:[%s4417_s15] sm:$0xff] %v1457_v63 }
 0x532   : > { %3422 = shalt.err (!%p3419_p13)
}
 0x533   : > { %1687 = dma.vmem_to_hbm [thread:$0]  (%p3632_p11), %s1473_s28, 128, %s1475_s23, %s1460_s8  }
 0x534 PF: > { %s1486_s6 = sand.u32 1, %s3467_s19   ;;  %p4556_p0 = scmp.ge.s32.totalorder %s3479_s22, 2 }
 0x535   : > { %s1487_s12 = scalar_lea.sflag [#allocation8], %s1486_s6 }
 0x536   : > { %p1694_p1 = pnand %p4556_p0, %p3636_p12 }
 0x538   : > { %p1695_p3 = pneg %p1694_p1 }
 0x53a   : > { %3462 = dma.done.wait (%p1695_p3), %s1487_s12, 128  }
 0x53b   : > { %3464 = vsyncadd (%p1695_p3), %s1487_s12, 4294967168  ;;  %s4557_s17 = sld [smem:[#allocation151_spill]]  ;;  %p25_p4 = scmp.ge.s32.totalorder %s3607_s24, 4  }
 0x53c   : > { %s4558_s21 = sld [smem:[#allocation152_spill]]  ;;  %s4559_s19 = smov %s3471_s20 }
 0x53d   : > { %s4561_s22 = smov %s3607_s24  ;;  %27 = sbr.rel (!%p25_p4) target bundleno = 11 (0xb), region = 466 }
 0x541   : > { %s4560_s20 = smov %s4557_s17 }
 0x542   :  { %1493 = vsyncpa [#allocation7], 1 }
 0x543   :  { %1495 = vsyncpa [#allocation7 + $0x1], 1 }
 0x544   :  { %1496 = vsyncpa [#allocation8], 1 }
 0x545   :  { %1498 = vsyncpa [#allocation8 + $0x1], 1 }
 0x546   :  { %1499 = vsyncmov [#allocation3] }
 0x549   :  { %s1500_s22 = vpop.sfrf %1499 }
 0x54a   :  { %p1677_p11 = scmp.ne.s32.totalorder %s1500_s22, 0 }
 0x54c   :  { %1504 = shalt.err (%p1677_p11)  }
 0x54d   :  { %1506 = vsyncmov [#allocation3 + $0x1] }
 0x550   :  { %s1507_s30 = vpop.sfrf %1506 }
 0x551   :  { %p1678_p12 = scmp.ne.s32.totalorder %s1507_s30, 0 }
 0x553   :  { %1511 = shalt.err (%p1678_p12)  }
 0x554   :  { %1513 = vsyncmov [#allocation3 + $0x2] }
 0x557   :  { %s1514_s5 = vpop.sfrf %1513 }
 0x558   :  { %p1679_p7 = scmp.ne.s32.totalorder %s1514_s5, 0 }
 0x55a   :  { %1518 = shalt.err (%p1679_p7)  }
 0x55b   :  { %1520 = vsyncmov [#allocation3 + $0x3] }
 0x55e   :  { %s1521_s25 = vpop.sfrf %1520 }
 0x55f   :  { %p1680_p5 = scmp.ne.s32.totalorder %s1521_s25, 0 }
 0x561   :  { %1525 = shalt.err (%p1680_p5)  }
 0x562   :  { %1527 = vsyncmov [#allocation3 + $0x4] }
 0x565   :  { %s1528_s2 = vpop.sfrf %1527 }
 0x566   :  { %p1681_p8 = scmp.ne.s32.totalorder %s1528_s2, 0 }
 0x568   :  { %1532 = shalt.err (%p1681_p8)  }
 0x569   :  { %1534 = vsyncmov [#allocation3 + $0x5] }
 0x56c   :  { %s1535_s3 = vpop.sfrf %1534 }
 0x56d   :  { %p1682_p10 = scmp.ne.s32.totalorder %s1535_s3, 0 }
 0x56f   :  { %1539 = shalt.err (%p1682_p10)  }
 0x570   :  { %1541 = vsyncmov [#allocation3 + $0x6] }
 0x573   :  { %s1542_s4 = vpop.sfrf %1541 }
 0x574   :  { %p1683_p2 = scmp.ne.s32.totalorder %s1542_s4, 0 }
 0x576   :  { %1546 = shalt.err (%p1683_p2)  }
 0x577   :  { %1548 = vsyncmov [#allocation3 + $0x7] }
 0x57a   :  { %s1549_s19 = vpop.sfrf %1548 }
 0x57b   :  { %p1684_p6 = scmp.ne.s32.totalorder %s1549_s19, 0 }
 0x57d   :  { %1553 = shalt.err (%p1684_p6)  }

</bundles_post_ra>
